<compile_context>
chip_gen: v7x
topology: tpu7x:2x2x1
jax: 0.10.0
libtpu: 0.0.40
codegen_flags: <defaults>
</compile_context>

<pallas_src>
import jax
import jax.numpy as jnp
from jax import lax
from jax.experimental import pallas as pl
from jax.experimental.pallas import tpu as pltpu


# ----------------------------- model dims ---------------------------------
EMBED_DIM = 2048        # ResNet22 embedding size (fixed by the PANNs architecture)
HIDDEN_DIM = 256        # fc_transfer1 output
CLASSES_NUM = 10        # classes_num for the new task (small synthetic choice)
PADDED_CLASSES = 128    # classifier N padded to one full lane width

FRAME_LEN = 128         # stand-in backbone: waveform frame length
N_FRAMES = 8            # stand-in backbone: frames per clip
DATA_LENGTH = FRAME_LEN * N_FRAMES  # 1024 samples per clip

MAX_BATCH_TILE = 128    # per-tile working set ~9 MiB; safe on v5e/v6e/v7x defaults
B_ALIGN = 16            # bf16 embedding output -> 16-sublane (packed-tile) alignment


def _round_up(x, m):
    return ((x + m - 1) // m) * m


# --------------------------- fused forward kernel ---------------------------
def fused_kernel(frames_ref, wp_ref, bp_ref, w1_ref, b1_ref, w2_ref, b2_ref,
                 emb_ref, out_ref):
    bt = frames_ref.shape[1]

    # hoisted out of the frame loop: weight read + bias broadcast (no CSE in JAX)
    wp = wp_ref[...]                                           # (128, 2048) bf16
    bias_b = jnp.broadcast_to(bp_ref[...], (bt, EMBED_DIM))    # (bt, 2048) f32

    # ---- stand-in backbone: stream 8 frames through projection + ReLU,
    #      keep running sum / max pooling accumulators (VPU, no XLU reductions).
    def frame_step(t, carry):
        s_acc, m_acc = carry
        h = jnp.dot(frames_ref[t].astype(jnp.bfloat16), wp,
                    preferred_element_type=jnp.float32)        # (bt, 2048) f32
        h = jnp.maximum(h + bias_b, 0.0)
        return s_acc + h, jnp.maximum(m_acc, h)

    zeros = jnp.zeros((bt, EMBED_DIM), jnp.float32)
    # max accumulator init of 0 is exact: every h is ReLU'd (>= 0).
    s_acc, m_acc = lax.fori_loop(0, N_FRAMES, frame_step, (zeros, zeros),
                                 unroll=True)
    emb = s_acc * (1.0 / N_FRAMES) + m_acc                     # mean + max pooling
    emb_ref[...] = emb.astype(emb_ref.dtype)                   # bf16 store

    # ---- transfer head: relu(emb @ W1 + b1) @ W2 + b2 (W2/b2 N-padded to 128)
    hid = jnp.dot(emb.astype(jnp.bfloat16), w1_ref[...],
                  preferred_element_type=jnp.float32)          # (bt, 256) f32
    hid = jnp.maximum(hid + b1_ref[...], 0.0)
    out = jnp.dot(hid.astype(jnp.bfloat16), w2_ref[...],
                  preferred_element_type=jnp.float32)          # (bt, 128) f32
    out_ref[...] = (out + b2_ref[...]).astype(out_ref.dtype)


def fused_forward(frames_t, params, bt):
    """frames_t: (N_FRAMES, b_pad, FRAME_LEN), b_pad a multiple of bt."""
    b_pad = frames_t.shape[1]
    grid = (b_pad // bt,)
    return pl.pallas_call(
        fused_kernel,
        out_shape=(
            jax.ShapeDtypeStruct((b_pad, EMBED_DIM), jnp.bfloat16),
            jax.ShapeDtypeStruct((b_pad, PADDED_CLASSES), jnp.float32),
        ),
        grid_spec=pltpu.PrefetchScalarGridSpec(
            num_scalar_prefetch=0,
            grid=grid,
            in_specs=[
                # batch-tiled frames, frame axis leading (cheap per-frame slices)
                pl.BlockSpec((N_FRAMES, bt, FRAME_LEN), lambda i: (0, i, 0)),
                # weights / biases stay resident (constant index maps)
                pl.BlockSpec((FRAME_LEN, EMBED_DIM), lambda i: (0, 0)),
                pl.BlockSpec((1, EMBED_DIM), lambda i: (0, 0)),
                pl.BlockSpec((EMBED_DIM, HIDDEN_DIM), lambda i: (0, 0)),
                pl.BlockSpec((1, HIDDEN_DIM), lambda i: (0, 0)),
                pl.BlockSpec((HIDDEN_DIM, PADDED_CLASSES), lambda i: (0, 0)),
                pl.BlockSpec((1, PADDED_CLASSES), lambda i: (0, 0)),
            ],
            out_specs=[
                pl.BlockSpec((bt, EMBED_DIM), lambda i: (i, 0)),
                pl.BlockSpec((bt, PADDED_CLASSES), lambda i: (i, 0)),
            ],
        ),
        compiler_params=pltpu.CompilerParams(
            dimension_semantics=("parallel",)),
    )(frames_t, params["wp"], params["bp"], params["w1"], params["b1"],
      params["w2"], params["b2"])


# ------------------------------- full forward -------------------------------
@jax.jit
def transfer_resnet22_forward(audio, params):
    b = audio.shape[0]
    b_aligned = _round_up(b, B_ALIGN)
    # Aim for >= 2 grid steps so v7x can shard batch tiles across both TCs;
    # cap the tile at MAX_BATCH_TILE for VMEM safety on all generations.
    if b_aligned <= 2 * MAX_BATCH_TILE:
        bt = max(B_ALIGN, _round_up(pl.cdiv(b_aligned, 2), B_ALIGN))
    else:
        bt = MAX_BATCH_TILE
    b_pad = _round_up(b_aligned, bt)

    frames = audio.reshape(b, N_FRAMES, FRAME_LEN)
    if b_pad != b:
        frames = jnp.pad(frames, ((0, b_pad - b), (0, 0), (0, 0)))
    frames_t = jnp.transpose(frames, (1, 0, 2))   # (N_FRAMES, b_pad, FRAME_LEN)

    emb, logits = fused_forward(frames_t, params, bt)

    # frozen backbone (torch.no_grad()) == stop_gradient on the embedding
    embedding = jax.lax.stop_gradient(emb[:b].astype(jnp.float32))
    clipwise_output = logits[:b, :CLASSES_NUM]   # drop zero-padded classes
    return {"embedding": embedding, "clipwise_output": clipwise_output}


# ------------------------------ param init ----------------------------------
def init_params(key):
    kp, k1, k2 = jax.random.split(key, 3)

    def xavier(k, fan_in, fan_out):
        limit = jnp.sqrt(6.0 / (fan_in + fan_out))
        return jax.random.uniform(k, (fan_in, fan_out), jnp.float32, -limit, limit)

    # fc_transfer2 (256 -> classes_num), zero-padded to 128 output lanes
    w2 = xavier(k2, HIDDEN_DIM, CLASSES_NUM)
    w2 = jnp.pad(w2, ((0, 0), (0, PADDED_CLASSES - CLASSES_NUM)))

    return {
        # stand-in backbone projection (bf16 weights for the MXU)
        "wp": xavier(kp, FRAME_LEN, EMBED_DIM).astype(jnp.bfloat16),
        "bp": jnp.zeros((1, EMBED_DIM), jnp.float32),
        # fc_transfer1 (2048 -> 256), init_layer => xavier weight, zero bias
        "w1": xavier(k1, EMBED_DIM, HIDDEN_DIM).astype(jnp.bfloat16),
        "b1": jnp.zeros((1, HIDDEN_DIM), jnp.float32),
        # fc_transfer2 padded
        "w2": w2.astype(jnp.bfloat16),
        "b2": jnp.zeros((1, PADDED_CLASSES), jnp.float32),
    }


if __name__ == "__main__":
    key = jax.random.PRNGKey(0)
    k_audio, k_params = jax.random.split(key)

    batch = 2
    audio = jax.random.normal(k_audio, (batch, DATA_LENGTH), jnp.float32)
    params = init_params(k_params)

    out = transfer_resnet22_forward(audio, params)
    jax.block_until_ready(out)

    assert out["embedding"].shape == (batch, EMBED_DIM)
    assert out["clipwise_output"].shape == (batch, CLASSES_NUM)
    assert jnp.all(jnp.isfinite(out["embedding"]))
    assert jnp.all(jnp.isfinite(out["clipwise_output"]))
    print("KERNEL_OK")
</pallas_src>

<mosaic_0001>
module attributes {stable_mosaic.version = 11 : i64} {
  func.func @fused_kernel(%arg0: i32, %arg1: memref<8x16x128xf32, #tpu.memory_space<vmem>>, %arg2: memref<128x2048xbf16, #tpu.memory_space<vmem>>, %arg3: memref<1x2048xf32, #tpu.memory_space<vmem>>, %arg4: memref<2048x256xbf16, #tpu.memory_space<vmem>>, %arg5: memref<1x256xf32, #tpu.memory_space<vmem>>, %arg6: memref<256x128xbf16, #tpu.memory_space<vmem>>, %arg7: memref<1x128xf32, #tpu.memory_space<vmem>>, %arg8: memref<16x2048xbf16, #tpu.memory_space<vmem>>, %arg9: memref<16x128xf32, #tpu.memory_space<vmem>>) attributes {dimension_semantics = [#tpu.dimension_semantics<parallel>], iteration_bounds = array<i64: 1>, scalar_prefetch = 0 : i64, scratch_operands = 0 : i64, tpu.core_type = #tpu.core_type<tc>, window_params = [{transform_indices = @transform_0, window_bounds = array<i64: 8, 16, 128>}, {pipeline_mode = #tpu.pipeline_mode<synchronous>, transform_indices = @transform_1, window_bounds = array<i64: 128, 2048>}, {pipeline_mode = #tpu.pipeline_mode<synchronous>, transform_indices = @transform_2, window_bounds = array<i64: 1, 2048>}, {pipeline_mode = #tpu.pipeline_mode<synchronous>, transform_indices = @transform_3, window_bounds = array<i64: 2048, 256>}, {pipeline_mode = #tpu.pipeline_mode<synchronous>, transform_indices = @transform_4, window_bounds = array<i64: 1, 256>}, {pipeline_mode = #tpu.pipeline_mode<synchronous>, transform_indices = @transform_5, window_bounds = array<i64: 256, 128>}, {pipeline_mode = #tpu.pipeline_mode<synchronous>, transform_indices = @transform_6, window_bounds = array<i64: 1, 128>}, {transform_indices = @transform_7, window_bounds = array<i64: 16, 2048>}, {transform_indices = @transform_8, window_bounds = array<i64: 16, 128>}]} {
    %c0 = arith.constant 0 : index
    %c0_0 = arith.constant 0 : index
    %0 = vector.load %arg2[%c0, %c0_0] : memref<128x2048xbf16, #tpu.memory_space<vmem>>, vector<128x2048xbf16>
    %c0_1 = arith.constant 0 : index
    %c0_2 = arith.constant 0 : index
    %1 = vector.load %arg3[%c0_1, %c0_2] : memref<1x2048xf32, #tpu.memory_space<vmem>>, vector<1x2048xf32>
    %2 = vector.shape_cast %1 : vector<1x2048xf32> to vector<1x2048xf32>
    %3 = vector.broadcast %2 : vector<1x2048xf32> to vector<16x2048xf32>
    %cst = arith.constant 0.000000e+00 : f32
    %4 = vector.broadcast %cst : f32 to vector<16x2048xf32>
    %c0_i32 = arith.constant 0 : i32
    %5 = arith.index_cast %c0_i32 : i32 to index
    %c0_3 = arith.constant 0 : index
    %c0_4 = arith.constant 0 : index
    %6 = vector.load %arg1[%5, %c0_3, %c0_4] : memref<8x16x128xf32, #tpu.memory_space<vmem>>, vector<1x16x128xf32>
    %7 = vector.shape_cast %6 : vector<1x16x128xf32> to vector<16x128xf32>
    %8 = arith.truncf %7 : vector<16x128xf32> to vector<16x128xbf16>
    %cst_5 = arith.constant dense<0.000000e+00> : vector<16x2048xf32>
    %9 = tpu.matmul %8, %0, %cst_5 {dimension_numbers = #tpu.dot_dimension_numbers<[1], [0], [0], [1], [0, 0, 1, 1], [], []>} : vector<16x128xbf16>, vector<128x2048xbf16>, vector<16x2048xf32> -> vector<16x2048xf32>
    %10 = arith.addf %9, %3 : vector<16x2048xf32>
    %cst_6 = arith.constant 0.000000e+00 : f32
    %11 = vector.broadcast %cst_6 : f32 to vector<16x2048xf32>
    %12 = arith.maximumf %10, %11 : vector<16x2048xf32>
    %13 = arith.addf %4, %12 : vector<16x2048xf32>
    %14 = arith.maximumf %4, %12 : vector<16x2048xf32>
    %c1_i32 = arith.constant 1 : i32
    %15 = arith.index_cast %c1_i32 : i32 to index
    %c0_7 = arith.constant 0 : index
    %c0_8 = arith.constant 0 : index
    %16 = vector.load %arg1[%15, %c0_7, %c0_8] : memref<8x16x128xf32, #tpu.memory_space<vmem>>, vector<1x16x128xf32>
    %17 = vector.shape_cast %16 : vector<1x16x128xf32> to vector<16x128xf32>
    %18 = arith.truncf %17 : vector<16x128xf32> to vector<16x128xbf16>
    %cst_9 = arith.constant dense<0.000000e+00> : vector<16x2048xf32>
    %19 = tpu.matmul %18, %0, %cst_9 {dimension_numbers = #tpu.dot_dimension_numbers<[1], [0], [0], [1], [0, 0, 1, 1], [], []>} : vector<16x128xbf16>, vector<128x2048xbf16>, vector<16x2048xf32> -> vector<16x2048xf32>
    %20 = arith.addf %19, %3 : vector<16x2048xf32>
    %cst_10 = arith.constant 0.000000e+00 : f32
    %21 = vector.broadcast %cst_10 : f32 to vector<16x2048xf32>
    %22 = arith.maximumf %20, %21 : vector<16x2048xf32>
    %23 = arith.addf %13, %22 : vector<16x2048xf32>
    %24 = arith.maximumf %14, %22 : vector<16x2048xf32>
    %c2_i32 = arith.constant 2 : i32
    %25 = arith.index_cast %c2_i32 : i32 to index
    %c0_11 = arith.constant 0 : index
    %c0_12 = arith.constant 0 : index
    %26 = vector.load %arg1[%25, %c0_11, %c0_12] : memref<8x16x128xf32, #tpu.memory_space<vmem>>, vector<1x16x128xf32>
    %27 = vector.shape_cast %26 : vector<1x16x128xf32> to vector<16x128xf32>
    %28 = arith.truncf %27 : vector<16x128xf32> to vector<16x128xbf16>
    %cst_13 = arith.constant dense<0.000000e+00> : vector<16x2048xf32>
    %29 = tpu.matmul %28, %0, %cst_13 {dimension_numbers = #tpu.dot_dimension_numbers<[1], [0], [0], [1], [0, 0, 1, 1], [], []>} : vector<16x128xbf16>, vector<128x2048xbf16>, vector<16x2048xf32> -> vector<16x2048xf32>
    %30 = arith.addf %29, %3 : vector<16x2048xf32>
    %cst_14 = arith.constant 0.000000e+00 : f32
    %31 = vector.broadcast %cst_14 : f32 to vector<16x2048xf32>
    %32 = arith.maximumf %30, %31 : vector<16x2048xf32>
    %33 = arith.addf %23, %32 : vector<16x2048xf32>
    %34 = arith.maximumf %24, %32 : vector<16x2048xf32>
    %c3_i32 = arith.constant 3 : i32
    %35 = arith.index_cast %c3_i32 : i32 to index
    %c0_15 = arith.constant 0 : index
    %c0_16 = arith.constant 0 : index
    %36 = vector.load %arg1[%35, %c0_15, %c0_16] : memref<8x16x128xf32, #tpu.memory_space<vmem>>, vector<1x16x128xf32>
    %37 = vector.shape_cast %36 : vector<1x16x128xf32> to vector<16x128xf32>
    %38 = arith.truncf %37 : vector<16x128xf32> to vector<16x128xbf16>
    %cst_17 = arith.constant dense<0.000000e+00> : vector<16x2048xf32>
    %39 = tpu.matmul %38, %0, %cst_17 {dimension_numbers = #tpu.dot_dimension_numbers<[1], [0], [0], [1], [0, 0, 1, 1], [], []>} : vector<16x128xbf16>, vector<128x2048xbf16>, vector<16x2048xf32> -> vector<16x2048xf32>
    %40 = arith.addf %39, %3 : vector<16x2048xf32>
    %cst_18 = arith.constant 0.000000e+00 : f32
    %41 = vector.broadcast %cst_18 : f32 to vector<16x2048xf32>
    %42 = arith.maximumf %40, %41 : vector<16x2048xf32>
    %43 = arith.addf %33, %42 : vector<16x2048xf32>
    %44 = arith.maximumf %34, %42 : vector<16x2048xf32>
    %c4_i32 = arith.constant 4 : i32
    %45 = arith.index_cast %c4_i32 : i32 to index
    %c0_19 = arith.constant 0 : index
    %c0_20 = arith.constant 0 : index
    %46 = vector.load %arg1[%45, %c0_19, %c0_20] : memref<8x16x128xf32, #tpu.memory_space<vmem>>, vector<1x16x128xf32>
    %47 = vector.shape_cast %46 : vector<1x16x128xf32> to vector<16x128xf32>
    %48 = arith.truncf %47 : vector<16x128xf32> to vector<16x128xbf16>
    %cst_21 = arith.constant dense<0.000000e+00> : vector<16x2048xf32>
    %49 = tpu.matmul %48, %0, %cst_21 {dimension_numbers = #tpu.dot_dimension_numbers<[1], [0], [0], [1], [0, 0, 1, 1], [], []>} : vector<16x128xbf16>, vector<128x2048xbf16>, vector<16x2048xf32> -> vector<16x2048xf32>
    %50 = arith.addf %49, %3 : vector<16x2048xf32>
    %cst_22 = arith.constant 0.000000e+00 : f32
    %51 = vector.broadcast %cst_22 : f32 to vector<16x2048xf32>
    %52 = arith.maximumf %50, %51 : vector<16x2048xf32>
    %53 = arith.addf %43, %52 : vector<16x2048xf32>
    %54 = arith.maximumf %44, %52 : vector<16x2048xf32>
    %c5_i32 = arith.constant 5 : i32
    %55 = arith.index_cast %c5_i32 : i32 to index
    %c0_23 = arith.constant 0 : index
    %c0_24 = arith.constant 0 : index
    %56 = vector.load %arg1[%55, %c0_23, %c0_24] : memref<8x16x128xf32, #tpu.memory_space<vmem>>, vector<1x16x128xf32>
    %57 = vector.shape_cast %56 : vector<1x16x128xf32> to vector<16x128xf32>
    %58 = arith.truncf %57 : vector<16x128xf32> to vector<16x128xbf16>
    %cst_25 = arith.constant dense<0.000000e+00> : vector<16x2048xf32>
    %59 = tpu.matmul %58, %0, %cst_25 {dimension_numbers = #tpu.dot_dimension_numbers<[1], [0], [0], [1], [0, 0, 1, 1], [], []>} : vector<16x128xbf16>, vector<128x2048xbf16>, vector<16x2048xf32> -> vector<16x2048xf32>
    %60 = arith.addf %59, %3 : vector<16x2048xf32>
    %cst_26 = arith.constant 0.000000e+00 : f32
    %61 = vector.broadcast %cst_26 : f32 to vector<16x2048xf32>
    %62 = arith.maximumf %60, %61 : vector<16x2048xf32>
    %63 = arith.addf %53, %62 : vector<16x2048xf32>
    %64 = arith.maximumf %54, %62 : vector<16x2048xf32>
    %c6_i32 = arith.constant 6 : i32
    %65 = arith.index_cast %c6_i32 : i32 to index
    %c0_27 = arith.constant 0 : index
    %c0_28 = arith.constant 0 : index
    %66 = vector.load %arg1[%65, %c0_27, %c0_28] : memref<8x16x128xf32, #tpu.memory_space<vmem>>, vector<1x16x128xf32>
    %67 = vector.shape_cast %66 : vector<1x16x128xf32> to vector<16x128xf32>
    %68 = arith.truncf %67 : vector<16x128xf32> to vector<16x128xbf16>
    %cst_29 = arith.constant dense<0.000000e+00> : vector<16x2048xf32>
    %69 = tpu.matmul %68, %0, %cst_29 {dimension_numbers = #tpu.dot_dimension_numbers<[1], [0], [0], [1], [0, 0, 1, 1], [], []>} : vector<16x128xbf16>, vector<128x2048xbf16>, vector<16x2048xf32> -> vector<16x2048xf32>
    %70 = arith.addf %69, %3 : vector<16x2048xf32>
    %cst_30 = arith.constant 0.000000e+00 : f32
    %71 = vector.broadcast %cst_30 : f32 to vector<16x2048xf32>
    %72 = arith.maximumf %70, %71 : vector<16x2048xf32>
    %73 = arith.addf %63, %72 : vector<16x2048xf32>
    %74 = arith.maximumf %64, %72 : vector<16x2048xf32>
    %c7_i32 = arith.constant 7 : i32
    %75 = arith.index_cast %c7_i32 : i32 to index
    %c0_31 = arith.constant 0 : index
    %c0_32 = arith.constant 0 : index
    %76 = vector.load %arg1[%75, %c0_31, %c0_32] : memref<8x16x128xf32, #tpu.memory_space<vmem>>, vector<1x16x128xf32>
    %77 = vector.shape_cast %76 : vector<1x16x128xf32> to vector<16x128xf32>
    %78 = arith.truncf %77 : vector<16x128xf32> to vector<16x128xbf16>
    %cst_33 = arith.constant dense<0.000000e+00> : vector<16x2048xf32>
    %79 = tpu.matmul %78, %0, %cst_33 {dimension_numbers = #tpu.dot_dimension_numbers<[1], [0], [0], [1], [0, 0, 1, 1], [], []>} : vector<16x128xbf16>, vector<128x2048xbf16>, vector<16x2048xf32> -> vector<16x2048xf32>
    %80 = arith.addf %79, %3 : vector<16x2048xf32>
    %cst_34 = arith.constant 0.000000e+00 : f32
    %81 = vector.broadcast %cst_34 : f32 to vector<16x2048xf32>
    %82 = arith.maximumf %80, %81 : vector<16x2048xf32>
    %83 = arith.addf %73, %82 : vector<16x2048xf32>
    %84 = arith.maximumf %74, %82 : vector<16x2048xf32>
    %c8_i32 = arith.constant 8 : i32
    %cst_35 = arith.constant 1.250000e-01 : f32
    %85 = vector.broadcast %cst_35 : f32 to vector<16x2048xf32>
    %86 = arith.mulf %83, %85 : vector<16x2048xf32>
    %87 = arith.addf %86, %84 : vector<16x2048xf32>
    %88 = arith.truncf %87 : vector<16x2048xf32> to vector<16x2048xbf16>
    %c0_36 = arith.constant 0 : index
    %c0_37 = arith.constant 0 : index
    %89 = vector.load %arg8[%c0_36, %c0_37] : memref<16x2048xbf16, #tpu.memory_space<vmem>>, vector<16x2048xbf16>
    tpu.vector_store %arg8[%c0_36, %c0_37], %88 {strides = array<i32>} : memref<16x2048xbf16, #tpu.memory_space<vmem>>, vector<16x2048xbf16>,
    %90 = arith.truncf %87 : vector<16x2048xf32> to vector<16x2048xbf16>
    %c0_38 = arith.constant 0 : index
    %c0_39 = arith.constant 0 : index
    %91 = vector.load %arg4[%c0_38, %c0_39] : memref<2048x256xbf16, #tpu.memory_space<vmem>>, vector<2048x256xbf16>
    %cst_40 = arith.constant dense<0.000000e+00> : vector<16x256xf32>
    %92 = tpu.matmul %90, %91, %cst_40 {dimension_numbers = #tpu.dot_dimension_numbers<[1], [0], [0], [1], [0, 0, 1, 1], [], []>} : vector<16x2048xbf16>, vector<2048x256xbf16>, vector<16x256xf32> -> vector<16x256xf32>
    %c0_41 = arith.constant 0 : index
    %c0_42 = arith.constant 0 : index
    %93 = vector.load %arg5[%c0_41, %c0_42] : memref<1x256xf32, #tpu.memory_space<vmem>>, vector<1x256xf32>
    %94 = vector.broadcast %93 : vector<1x256xf32> to vector<16x256xf32>
    %95 = arith.addf %92, %94 : vector<16x256xf32>
    %cst_43 = arith.constant 0.000000e+00 : f32
    %96 = vector.broadcast %cst_43 : f32 to vector<16x256xf32>
    %97 = arith.maximumf %95, %96 : vector<16x256xf32>
    %98 = arith.truncf %97 : vector<16x256xf32> to vector<16x256xbf16>
    %c0_44 = arith.constant 0 : index
    %c0_45 = arith.constant 0 : index
    %99 = vector.load %arg6[%c0_44, %c0_45] : memref<256x128xbf16, #tpu.memory_space<vmem>>, vector<256x128xbf16>
    %cst_46 = arith.constant dense<0.000000e+00> : vector<16x128xf32>
    %100 = tpu.matmul %98, %99, %cst_46 {dimension_numbers = #tpu.dot_dimension_numbers<[1], [0], [0], [1], [0, 0, 1, 1], [], []>} : vector<16x256xbf16>, vector<256x128xbf16>, vector<16x128xf32> -> vector<16x128xf32>
    %c0_47 = arith.constant 0 : index
    %c0_48 = arith.constant 0 : index
    %101 = vector.load %arg7[%c0_47, %c0_48] : memref<1x128xf32, #tpu.memory_space<vmem>>, vector<1x128xf32>
    %102 = vector.broadcast %101 : vector<1x128xf32> to vector<16x128xf32>
    %103 = arith.addf %100, %102 : vector<16x128xf32>
    %c0_49 = arith.constant 0 : index
    %c0_50 = arith.constant 0 : index
    %104 = vector.load %arg9[%c0_49, %c0_50] : memref<16x128xf32, #tpu.memory_space<vmem>>, vector<16x128xf32>
    tpu.vector_store %arg9[%c0_49, %c0_50], %103 {strides = array<i32>} : memref<16x128xf32, #tpu.memory_space<vmem>>, vector<16x128xf32>,
    return
  }
  func.func @transform_0(%arg0: i32) -> (i32, i32, i32) {
    %c0_i32 = arith.constant 0 : i32
    %c0_i32_0 = arith.constant 0 : i32
    %c0_i32_1 = arith.constant 0 : i32
    return %c0_i32, %arg0, %c0_i32_0 : i32, i32, i32
  }
  func.func @transform_1(%arg0: i32) -> (i32, i32) {
    %c0_i32 = arith.constant 0 : i32
    %c0_i32_0 = arith.constant 0 : i32
    %c0_i32_1 = arith.constant 0 : i32
    return %c0_i32, %c0_i32_0 : i32, i32
  }
  func.func @transform_2(%arg0: i32) -> (i32, i32) {
    %c0_i32 = arith.constant 0 : i32
    %c0_i32_0 = arith.constant 0 : i32
    %c0_i32_1 = arith.constant 0 : i32
    return %c0_i32, %c0_i32_0 : i32, i32
  }
  func.func @transform_3(%arg0: i32) -> (i32, i32) {
    %c0_i32 = arith.constant 0 : i32
    %c0_i32_0 = arith.constant 0 : i32
    %c0_i32_1 = arith.constant 0 : i32
    return %c0_i32, %c0_i32_0 : i32, i32
  }
  func.func @transform_4(%arg0: i32) -> (i32, i32) {
    %c0_i32 = arith.constant 0 : i32
    %c0_i32_0 = arith.constant 0 : i32
    %c0_i32_1 = arith.constant 0 : i32
    return %c0_i32, %c0_i32_0 : i32, i32
  }
  func.func @transform_5(%arg0: i32) -> (i32, i32) {
    %c0_i32 = arith.constant 0 : i32
    %c0_i32_0 = arith.constant 0 : i32
    %c0_i32_1 = arith.constant 0 : i32
    return %c0_i32, %c0_i32_0 : i32, i32
  }
  func.func @transform_6(%arg0: i32) -> (i32, i32) {
    %c0_i32 = arith.constant 0 : i32
    %c0_i32_0 = arith.constant 0 : i32
    %c0_i32_1 = arith.constant 0 : i32
    return %c0_i32, %c0_i32_0 : i32, i32
  }
  func.func @transform_7(%arg0: i32) -> (i32, i32) {
    %c0_i32 = arith.constant 0 : i32
    %c0_i32_0 = arith.constant 0 : i32
    return %arg0, %c0_i32 : i32, i32
  }
  func.func @transform_8(%arg0: i32) -> (i32, i32) {
    %c0_i32 = arith.constant 0 : i32
    %c0_i32_0 = arith.constant 0 : i32
    return %arg0, %c0_i32 : i32, i32
  }
}

</mosaic_0001>

<bundles_post_ra>
// kernel: transfer_resnet22_forward.1
= control target key start
LH: loop header
LB: loop body
LE: loop exit
PB: predicated region body
PF: predicated region fallthrough
CT: control target
= control target key end

     0   :  { %14 = vsyncpa [#allocation3], 0  ;;  %s11059_s0 = inlined_call_operand.vmem [shape: f32[8,16,128], index: 0, kind: input, shape index: {}]   ;;  %s11060_s1 = inlined_call_operand.hbm [shape: bf16[128,2048], index: 1, kind: input, shape index: {}]   ;;  %s11061_s2 = inlined_call_operand.vmem [shape: f32[1,2048], index: 2, kind: input, shape index: {}]   ;;  %s11062_s3 = inlined_call_operand.hbm [shape: bf16[2048,256], index: 3, kind: input, shape index: {}]   ;;  %s11063_s4 = inlined_call_operand.vmem [shape: f32[1,256], index: 4, kind: input, shape index: {}]   ;;  %s11064_s5 = inlined_call_operand.vmem [shape: bf16[256,128], index: 5, kind: input, shape index: {}]   ;;  %s11065_s6 = inlined_call_operand.vmem [shape: f32[1,128], index: 6, kind: input, shape index: {}]   ;;  %s11066_s7 = inlined_call_operand.vmem [shape: bf16[16,2048], index: 7, kind: output, shape index: {0}]   ;;  %s11067_s8 = inlined_call_operand.vmem [shape: f32[16,128], index: 8, kind: output, shape index: {1}]  }
   0x1   :  { %15 = vsyncpa [#allocation5], 0  ;;  %s7678_s27 = smov [#allocation2]   ;;  %s7630_s9 = scalar_lea.hbm %s11060_s1, 16384 }
   0x2   :  { %s23_s28 = sshll.u32 %s7678_s27, 4  ;;  %p7631_p0 = scmp.ne.s32.totalorder %s11060_s1, %s7630_s9  ;;  %s24_s28 = int_to_ptr.vmem [resolvable:$true] %s23_s28 }
   0x3   :  { %p7634_p1 = scmp.lt.u32.totalorder %s7630_s9, %s11060_s1 }
   0x5   :  { %p7636_p2 = pnand %p7634_p1, %p7631_p0 }
   0x7   :  { %7639 = shalt.err (!%p7636_p2)
}
   0x8   :  { %s7640_s14 = scalar_lea.vmem %s24_s28, 16384  ;;  %p7645_p4 = scmp.lt.s32.totalorder %s24_s28, %s24_s28 }
   0x9   :  { %p7641_p3 = scmp.ne.s32.totalorder %s24_s28, %s7640_s14  ;;  %p7646_p5 = scmp.lt.s32.totalorder %s7640_s14, %s7640_s14 }
   0xb   :  { %p7647_p6 = por %p7646_p5, %p7645_p4 }
   0xd   :  { %p7648_p7 = pnand %p7647_p6, %p7641_p3 }
   0xf   :  { %7651 = shalt.err (!%p7648_p7)
}
  0x10   :  { %s7679_s15 = smov 1024   ;;  %s7680_s16 = smov 64  }
  0x11   :  { %29 = dma.hbm_to_vmem [thread:$0]  %s11060_s1, 16384, %s24_s28, [#allocation3], %s7679_s15, %s7679_s15, %s7680_s16  }
  0x12   :  { %s7681_s19 = smov [#allocation4]   ;;  %s7652_s23 = scalar_lea.hbm %s11062_s3, 32768 }
  0x13   :  { %s37_s20 = sshll.u32 %s7681_s19, 4  ;;  %p7653_p8 = scmp.ne.s32.totalorder %s11062_s3, %s7652_s23  ;;  %s38_s20 = int_to_ptr.vmem [resolvable:$true] %s37_s20 }
  0x14   :  { %p7656_p9 = scmp.lt.u32.totalorder %s7652_s23, %s11062_s3 }
  0x16   :  { %p7658_p10 = pnand %p7656_p9, %p7653_p8 }
  0x18   :  { %7661 = shalt.err (!%p7658_p10)
}
  0x19   :  { %s7662_s29 = scalar_lea.vmem %s38_s20, 32768  ;;  %p7667_p12 = scmp.lt.s32.totalorder %s38_s20, %s38_s20 }
  0x1a   :  { %p7663_p11 = scmp.ne.s32.totalorder %s38_s20, %s7662_s29  ;;  %p7668_p13 = scmp.lt.s32.totalorder %s7662_s29, %s7662_s29 }
  0x1c   :  { %p7669_p0 = por %p7668_p13, %p7667_p12 }
  0x1e   :  { %p7670_p1 = pnand %p7669_p0, %p7663_p11 }
  0x20   :  { %7673 = shalt.err (!%p7670_p1)
}
  0x21   :  { %s7682_s1 = smov 128   ;;  %s7683_s28 = smov 8  }
  0x22   :  { %43 = dma.hbm_to_vmem [thread:$0]  %s11062_s3, 32768, %s38_s20, [#allocation5], %s7682_s1, %s7682_s1, %s7683_s28  }
  0x23   :  { %7674 = dma.done.wait [#allocation3], 16384  }
  0x24   :  { %7675 = vsyncadd [#allocation3], 4294950912 }
  0x25   :  { %7676 = dma.done.wait [#allocation5], 32768  }
  0x26   :  { %7677 = vsyncadd [#allocation5], 4294934528  ;;  %v11068_v0 = vmov 0   ;;  %v57_v1 = vld [vmem:[#allocation2] sm:$0xff]  ;;  %v59_v3 = vld [vmem:[#allocation2 + $0x10] sm:$0xff] }
  0x27   :  { %944 = vmatprep.mubr.bf16.mxu1 %v11068_v0  ;;  %1030 = vmatprep.mubr.bf16.mxu0 %v11068_v0  ;;  %v65_v2 = vld [vmem:[#allocation2 + $0x40] sm:$0xff]  ;;  %v67_v5 = vld [vmem:[#allocation2 + $0x50] sm:$0xff]  ;;  %v58_v63 = vld [vmem:[#allocation2 + $0x8] sm:$0xff] }
  0x28   :  { %v7756_v4 = vcombine.high %v57_v1, %v65_v2  ;;  %v7758_v6 = vcombine.low %v57_v1, %v65_v2  ;;  %v73_v7 = vld [vmem:[#allocation2 + $0x80] sm:$0xff]  ;;  %v7760_v9 = vcombine.high %v59_v3, %v67_v5  ;;  %v7762_v10 = vcombine.low %v59_v3, %v67_v5  ;;  %v75_v12 = vld [vmem:[#allocation2 + $0x90] sm:$0xff]  ;;  %v66_v1 = vld [vmem:[#allocation2 + $0x48] sm:$0xff] }
  0x29   :  { %v81_v8 = vld [vmem:[#allocation2 + $0xc0] sm:$0xff]  ;;  %v83_v13 = vld [vmem:[#allocation2 + $0xd0] sm:$0xff] }
  0x2a   :  { %11387 = vst [vmem:[#allocation8_spill] sm:$0xff] %v7756_v4  ;;  %11388 = vst [vmem:[#allocation9_spill] sm:$0xff] %v7758_v6  ;;  %v7764_v11 = vcombine.high %v73_v7, %v81_v8  ;;  %v89_v14 = vld [vmem:[#allocation2 + $0x100] sm:$0xff]  ;;  %912 = vmatprep.subr.bf16.mxu1 %v7756_v4  ;;  %v7767_v15 = vcombine.high %v75_v12, %v83_v13  ;;  %v91_v17 = vld [vmem:[#allocation2 + $0x110] sm:$0xff]  ;;  %998 = vmatprep.subr.bf16.mxu0 %v7760_v9 }
  0x2b   :  { %11389 = vst [vmem:[#allocation10_spill] sm:$0xff] %v7760_v9  ;;  %11390 = vst [vmem:[#allocation11_spill] sm:$0xff] %v7762_v10  ;;  %v97_v16 = vld [vmem:[#allocation2 + $0x140] sm:$0xff]  ;;  %v99_v18 = vld [vmem:[#allocation2 + $0x150] sm:$0xff]  ;;  %913 = vmatpush1.bf16.msra.mxu1 %v7758_v6  ;;  %v7771_v19 = vcombine.low %v73_v7, %v81_v8  ;;  %999 = vmatpush1.bf16.msra.mxu0 %v7762_v10  ;;  %v7775_v20 = vcombine.low %v75_v12, %v83_v13 }
  0x2c   :  { %11391 = vst [vmem:[#allocation12_spill] sm:$0xff] %v7764_v11  ;;  %11392 = vst [vmem:[#allocation13_spill] sm:$0xff] %v7767_v15  ;;  %914 = vmatprep.subr.bf16.mxu1 %v7764_v11  ;;  %v7777_v21 = vcombine.high %v89_v14, %v97_v16  ;;  %1000 = vmatprep.subr.bf16.mxu0 %v7767_v15  ;;  %v7780_v22 = vcombine.high %v91_v17, %v99_v18  ;;  %v105_v23 = vld [vmem:[#allocation2 + $0x180] sm:$0xff]  ;;  %v107_v25 = vld [vmem:[#allocation2 + $0x190] sm:$0xff] }
  0x2d   :  { %11393 = vst [vmem:[#allocation14_spill] sm:$0xff] %v7771_v19  ;;  %11394 = vst [vmem:[#allocation15_spill] sm:$0xff] %v7775_v20  ;;  %v113_v24 = vld [vmem:[#allocation2 + $0x1c0] sm:$0xff]  ;;  %v115_v26 = vld [vmem:[#allocation2 + $0x1d0] sm:$0xff]  ;;  %v7783_v27 = vcombine.low %v89_v14, %v97_v16  ;;  %v7787_v28 = vcombine.low %v91_v17, %v99_v18  ;;  %v7855_v13 = vcombine.high %v58_v63, %v66_v1 }
  0x2e   :  { %11395 = vst [vmem:[#allocation16_spill] sm:$0xff] %v7777_v21  ;;  %11396 = vst [vmem:[#allocation17_spill] sm:$0xff] %v7780_v22  ;;  %v7789_v29 = vcombine.high %v105_v23, %v113_v24  ;;  %v7792_v30 = vcombine.high %v107_v25, %v115_v26  ;;  %v121_v31 = vld [vmem:[#allocation2 + $0x200] sm:$0xff]  ;;  %v123_v33 = vld [vmem:[#allocation2 + $0x210] sm:$0xff]  ;;  %v7795_v35 = vcombine.low %v105_v23, %v113_v24 }
  0x2f   :  { %915 = vmatpush1.bf16.msra.mxu1 %v7771_v19  ;;  %11397 = vst [vmem:[#allocation18_spill] sm:$0xff] %v7783_v27  ;;  %1001 = vmatpush1.bf16.msra.mxu0 %v7775_v20  ;;  %11398 = vst [vmem:[#allocation19_spill] sm:$0xff] %v7787_v28  ;;  %v129_v32 = vld [vmem:[#allocation2 + $0x240] sm:$0xff]  ;;  %v131_v34 = vld [vmem:[#allocation2 + $0x250] sm:$0xff]  ;;  %v7799_v36 = vcombine.low %v107_v25, %v115_v26  ;;  %v7863_v25 = vcombine.low %v58_v63, %v66_v1 }
  0x30   :  { %916 = vmatprep.subr.bf16.mxu1 %v7777_v21  ;;  %11399 = vst [vmem:[#allocation20_spill] sm:$0xff] %v7789_v29  ;;  %1002 = vmatprep.subr.bf16.mxu0 %v7780_v22  ;;  %11400 = vst [vmem:[#allocation21_spill] sm:$0xff] %v7792_v30  ;;  %v7801_v37 = vcombine.high %v121_v31, %v129_v32  ;;  %v7804_v38 = vcombine.high %v123_v33, %v131_v34  ;;  %v137_v39 = vld [vmem:[#allocation2 + $0x280] sm:$0xff]  ;;  %v139_v41 = vld [vmem:[#allocation2 + $0x290] sm:$0xff] }
  0x31   :  { %11401 = vst [vmem:[#allocation22_spill] sm:$0xff] %v7795_v35  ;;  %11402 = vst [vmem:[#allocation23_spill] sm:$0xff] %v7799_v36  ;;  %v145_v40 = vld [vmem:[#allocation2 + $0x2c0] sm:$0xff]  ;;  %v147_v42 = vld [vmem:[#allocation2 + $0x2d0] sm:$0xff]  ;;  %v7807_v43 = vcombine.low %v121_v31, %v129_v32  ;;  %v7811_v44 = vcombine.low %v123_v33, %v131_v34 }
  0x32   :  { %11403 = vst [vmem:[#allocation24_spill] sm:$0xff] %v7801_v37  ;;  %11404 = vst [vmem:[#allocation25_spill] sm:$0xff] %v7804_v38  ;;  %v7813_v45 = vcombine.high %v137_v39, %v145_v40  ;;  %v7816_v46 = vcombine.high %v139_v41, %v147_v42  ;;  %v153_v47 = vld [vmem:[#allocation2 + $0x300] sm:$0xff]  ;;  %v155_v49 = vld [vmem:[#allocation2 + $0x310] sm:$0xff]  ;;  %v7819_v51 = vcombine.low %v137_v39, %v145_v40 }
  0x33   :  { %917 = vmatpush1.bf16.msra.mxu1 %v7783_v27  ;;  %1003 = vmatpush1.bf16.msra.mxu0 %v7787_v28  ;;  %11405 = vst [vmem:[#allocation26_spill] sm:$0xff] %v7807_v43  ;;  %11406 = vst [vmem:[#allocation27_spill] sm:$0xff] %v7811_v44  ;;  %v161_v48 = vld [vmem:[#allocation2 + $0x340] sm:$0xff]  ;;  %v163_v50 = vld [vmem:[#allocation2 + $0x350] sm:$0xff]  ;;  %v7823_v52 = vcombine.low %v139_v41, %v147_v42 }
  0x34   :  { %918 = vmatprep.subr.bf16.mxu1 %v7789_v29  ;;  %1004 = vmatprep.subr.bf16.mxu0 %v7792_v30  ;;  %11407 = vst [vmem:[#allocation28_spill] sm:$0xff] %v7813_v45  ;;  %11408 = vst [vmem:[#allocation29_spill] sm:$0xff] %v7816_v46  ;;  %v7825_v53 = vcombine.high %v153_v47, %v161_v48  ;;  %v7828_v54 = vcombine.high %v155_v49, %v163_v50  ;;  %v169_v55 = vld [vmem:[#allocation2 + $0x380] sm:$0xff]  ;;  %v171_v57 = vld [vmem:[#allocation2 + $0x390] sm:$0xff] }
  0x35   :  { %11409 = vst [vmem:[#allocation30_spill] sm:$0xff] %v7819_v51  ;;  %11410 = vst [vmem:[#allocation31_spill] sm:$0xff] %v7823_v52  ;;  %v177_v56 = vld [vmem:[#allocation2 + $0x3c0] sm:$0xff]  ;;  %v179_v58 = vld [vmem:[#allocation2 + $0x3d0] sm:$0xff]  ;;  %v7831_v59 = vcombine.low %v153_v47, %v161_v48  ;;  %v7835_v60 = vcombine.low %v155_v49, %v163_v50 }
  0x36   :  { %11411 = vst [vmem:[#allocation32_spill] sm:$0xff] %v7825_v53  ;;  %11412 = vst [vmem:[#allocation33_spill] sm:$0xff] %v7828_v54  ;;  %v7837_v61 = vcombine.high %v169_v55, %v177_v56  ;;  %v7840_v62 = vcombine.high %v171_v57, %v179_v58  ;;  %v61_v2 = vld [vmem:[#allocation2 + $0x20] sm:$0xff]  ;;  %v7843_v5 = vcombine.low %v169_v55, %v177_v56  ;;  %v270_v8 = vld [vmem:[%s11059_s0 + $0x8] sm:$0xff] }
  0x37   :  { %919 = vmatpush1.bf16.msra.mxu1 %v7795_v35  ;;  %1005 = vmatpush1.bf16.msra.mxu0 %v7799_v36  ;;  %11413 = vst [vmem:[#allocation34_spill] sm:$0xff] %v7831_v59  ;;  %11414 = vst [vmem:[#allocation35_spill] sm:$0xff] %v7835_v60  ;;  %v69_v3 = vld [vmem:[#allocation2 + $0x60] sm:$0xff]  ;;  %v7853_v12 = vcombine.low %v171_v57, %v179_v58  ;;  %v74_v16 = vld [vmem:[#allocation2 + $0x88] sm:$0xff] }
  0x38   :  { %920 = vmatprep.subr.bf16.mxu1 %v7801_v37  ;;  %1006 = vmatprep.subr.bf16.mxu0 %v7804_v38  ;;  %11415 = vst [vmem:[#allocation36_spill] sm:$0xff] %v7837_v61  ;;  %11416 = vst [vmem:[#allocation37_spill] sm:$0xff] %v7840_v62  ;;  %v269_v7 = vld [vmem:[%s11059_s0] sm:$0xff]  ;;  %v7858_v14 = vcombine.high %v61_v2, %v69_v3  ;;  %v82_v17 = vld [vmem:[#allocation2 + $0xc8] sm:$0xff]  ;;  %v7867_v26 = vcombine.low %v61_v2, %v69_v3 }
  0x39   :  { %11417 = vst [vmem:[#allocation38_spill] sm:$0xff] %v7843_v5  ;;  %11418 = vst [vmem:[#allocation39_spill] sm:$0xff] %v7853_v12  ;;  %v7860_v18 = vpack.c.bf16 %v270_v8, %v269_v7  ;;  %v77_v23 = vld [vmem:[#allocation2 + $0xa0] sm:$0xff]  ;;  %v7869_v31 = vcombine.high %v74_v16, %v82_v17  ;;  %v90_v33 = vld [vmem:[#allocation2 + $0x108] sm:$0xff]  ;;  %v7877_v41 = vcombine.low %v74_v16, %v82_v17 }
  0x3a   :  { %11419 = vst [vmem:[#allocation40_spill] sm:$0xff] %v7855_v13  ;;  %11420 = vst [vmem:[#allocation41_spill] sm:$0xff] %v7858_v14  ;;  %v85_v24 = vld [vmem:[#allocation2 + $0xe0] sm:$0xff]  ;;  %v98_v34 = vld [vmem:[#allocation2 + $0x148] sm:$0xff] }
  0x3b   :  { %921 = vmatpush1.bf16.msra.mxu1 %v7807_v43  ;;  %1007 = vmatpush1.bf16.msra.mxu0 %v7811_v44  ;;  %11421 = vst [vmem:[#allocation42_spill] sm:$0xff] %v7863_v25  ;;  %11422 = vst [vmem:[#allocation43_spill] sm:$0xff] %v7867_v26  ;;  %v7872_v32 = vcombine.high %v77_v23, %v85_v24  ;;  %v93_v39 = vld [vmem:[#allocation2 + $0x120] sm:$0xff]  ;;  %v7881_v42 = vcombine.low %v77_v23, %v85_v24  ;;  %v106_v49 = vld [vmem:[#allocation2 + $0x188] sm:$0xff] }
  0x3c   :  { %922 = vmatprep.subr.bf16.mxu1 %v7813_v45  ;;  %1008 = vmatprep.subr.bf16.mxu0 %v7816_v46  ;;  %11423 = vst [vmem:[#allocation44_spill] sm:$0xff] %v7869_v31  ;;  %v101_v40 = vld [vmem:[#allocation2 + $0x160] sm:$0xff]  ;;  %11425 = vst [vmem:[#allocation46_spill] sm:$0xff] %v7877_v41  ;;  %v7883_v47 = vcombine.high %v90_v33, %v98_v34  ;;  %v114_v50 = vld [vmem:[#allocation2 + $0x1c8] sm:$0xff]  ;;  %v7891_v57 = vcombine.low %v90_v33, %v98_v34 }
  0x3d   :  { %11424 = vst [vmem:[#allocation45_spill] sm:$0xff] %v7872_v32  ;;  %11426 = vst [vmem:[#allocation47_spill] sm:$0xff] %v7881_v42  ;;  %v7886_v48 = vcombine.high %v93_v39, %v101_v40  ;;  %v109_v55 = vld [vmem:[#allocation2 + $0x1a0] sm:$0xff]  ;;  %v7895_v58 = vcombine.low %v93_v39, %v101_v40  ;;  %v7897_v63 = vcombine.high %v106_v49, %v114_v50  ;;  %v122_v2 = vld [vmem:[#allocation2 + $0x208] sm:$0xff] }
  0x3e   :  { %11427 = vst [vmem:[#allocation48_spill] sm:$0xff] %v7883_v47  ;;  %v117_v56 = vld [vmem:[#allocation2 + $0x1e0] sm:$0xff]  ;;  %11429 = vst [vmem:[#allocation50_spill] sm:$0xff] %v7891_v57  ;;  %v130_v3 = vld [vmem:[#allocation2 + $0x248] sm:$0xff]  ;;  %v7903_v16 = vcombine.low %v106_v49, %v114_v50 }
  0x3f   :  { %923 = vmatpush1.bf16.msra.mxu1 %v7819_v51  ;;  %1009 = vmatpush1.bf16.msra.mxu0 %v7823_v52  ;;  %11428 = vst [vmem:[#allocation49_spill] sm:$0xff] %v7886_v48  ;;  %11430 = vst [vmem:[#allocation51_spill] sm:$0xff] %v7895_v58  ;;  %v7900_v1 = vcombine.high %v109_v55, %v117_v56  ;;  %v125_v7 = vld [vmem:[#allocation2 + $0x220] sm:$0xff]  ;;  %v138_v17 = vld [vmem:[#allocation2 + $0x288] sm:$0xff]  ;;  %v7907_v24 = vcombine.low %v109_v55, %v117_v56 }
  0x40   :  { %924 = vmatprep.subr.bf16.mxu1 %v7825_v53  ;;  %1010 = vmatprep.subr.bf16.mxu0 %v7828_v54  ;;  %11431 = vst [vmem:[#allocation52_spill] sm:$0xff] %v7897_v63  ;;  %v133_v8 = vld [vmem:[#allocation2 + $0x260] sm:$0xff]  ;;  %11433 = vst [vmem:[#allocation54_spill] sm:$0xff] %v7903_v16  ;;  %v146_v23 = vld [vmem:[#allocation2 + $0x2c8] sm:$0xff]  ;;  %v7909_v33 = vcombine.high %v122_v2, %v130_v3  ;;  %v7915_v49 = vcombine.low %v122_v2, %v130_v3 }
  0x41   :  { %11432 = vst [vmem:[#allocation53_spill] sm:$0xff] %v7900_v1  ;;  %11434 = vst [vmem:[#allocation55_spill] sm:$0xff] %v7907_v24  ;;  %v141_v34 = vld [vmem:[#allocation2 + $0x2a0] sm:$0xff]  ;;  %v7912_v40 = vcombine.high %v125_v7, %v133_v8  ;;  %v154_v50 = vld [vmem:[#allocation2 + $0x308] sm:$0xff]  ;;  %v7919_v55 = vcombine.low %v125_v7, %v133_v8  ;;  %v7921_v56 = vcombine.high %v138_v17, %v146_v23 }
  0x42   :  { %11435 = vst [vmem:[#allocation56_spill] sm:$0xff] %v7909_v33  ;;  %v149_v39 = vld [vmem:[#allocation2 + $0x2e0] sm:$0xff]  ;;  %11437 = vst [vmem:[#allocation58_spill] sm:$0xff] %v7915_v49  ;;  %v7927_v2 = vcombine.low %v138_v17, %v146_v23  ;;  %v170_v3 = vld [vmem:[#allocation2 + $0x388] sm:$0xff] }
  0x43   :  { %925 = vmatpush1.bf16.msra.mxu1 %v7831_v59  ;;  %1011 = vmatpush1.bf16.msra.mxu0 %v7835_v60  ;;  %11436 = vst [vmem:[#allocation57_spill] sm:$0xff] %v7912_v40  ;;  %11438 = vst [vmem:[#allocation59_spill] sm:$0xff] %v7919_v55  ;;  %v7931_v7 = vcombine.low %v141_v34, %v149_v39  ;;  %v60_v23 = vld [vmem:[#allocation2 + $0x18] sm:$0xff] }
  0x44   :  { %926 = vmatprep.subr.bf16.mxu1 %v7837_v61  ;;  %1012 = vmatprep.subr.bf16.mxu0 %v7840_v62  ;;  %11439 = vst [vmem:[#allocation60_spill] sm:$0xff] %v7921_v56  ;;  %11441 = vst [vmem:[#allocation62_spill] sm:$0xff] %v7927_v2 }
  0x45   :  { %11442 = vst [vmem:[#allocation63_spill] sm:$0xff] %v7931_v7 }
  0x47   :  { %927 = vmatpush1.bf16.msra.mxu1 %v7843_v5  ;;  %1013 = vmatpush1.bf16.msra.mxu0 %v7853_v12 }
  0x48   :  { %955 = vmatprep.subr.bf16.mxu1 %v7855_v13  ;;  %1084 = vmatprep.subr.bf16.mxu0 %v7858_v14 }
  0x4a   :  { %945 = vmatmul.mubr.bf16.vlgmr.msra.gmra.mrb[0].mxu1 %v7860_v18  ;;  %1031 = vmatmul.mubr.bf16.vlgmr.msra.gmra.mrb[0].mxu0 %v7860_v18 }
  0x4b   :  { %956 = vmatpush1.bf16.msra.mxu1 %v7863_v25  ;;  %1085 = vmatpush1.bf16.msra.mxu0 %v7867_v26 }
  0x4c   :  { %957 = vmatprep.subr.bf16.mxu1 %v7869_v31  ;;  %1086 = vmatprep.subr.bf16.mxu0 %v7872_v32 }
  0x4d   :  { %987 = vmatprep.mubr.bf16.mxu1 %v11068_v0  ;;  %1116 = vmatprep.mubr.bf16.mxu0 %v11068_v0  ;;  %v162_v0 = vld [vmem:[#allocation2 + $0x348] sm:$0xff] }
  0x4e   :  { %v7933_v8 = vcombine.high %v154_v50, %v162_v0  ;;  %v7939_v17 = vcombine.low %v154_v50, %v162_v0  ;;  %v76_v50 = vld [vmem:[#allocation2 + $0x98] sm:$0xff] }
  0x4f   :  { %958 = vmatpush1.bf16.msra.mxu1 %v7877_v41  ;;  %1087 = vmatpush1.bf16.msra.mxu0 %v7881_v42 }
  0x50   :  { %959 = vmatprep.subr.bf16.mxu1 %v7883_v47  ;;  %1088 = vmatprep.subr.bf16.mxu0 %v7886_v48  ;;  %11443 = vst [vmem:[#allocation64_spill] sm:$0xff] %v7933_v8  ;;  %11445 = vst [vmem:[#allocation66_spill] sm:$0xff] %v7939_v17 }
  0x53   :  { %960 = vmatpush1.bf16.msra.mxu1 %v7891_v57  ;;  %1089 = vmatpush1.bf16.msra.mxu0 %v7895_v58  ;;  %v165_v58 = vld [vmem:[#allocation2 + $0x360] sm:$0xff] }
  0x54   :  { %961 = vmatprep.subr.bf16.mxu1 %v7897_v63  ;;  %1090 = vmatprep.subr.bf16.mxu0 %v7900_v1  ;;  %v157_v63 = vld [vmem:[#allocation2 + $0x320] sm:$0xff]  ;;  %v7924_v1 = vcombine.high %v141_v34, %v149_v39 }
  0x55   :  { %v7943_v34 = vcombine.low %v157_v63, %v165_v58 }
  0x56   :  { %11440 = vst [vmem:[#allocation61_spill] sm:$0xff] %v7924_v1 }
  0x57   :  { %962 = vmatpush1.bf16.msra.mxu1 %v7903_v16  ;;  %1091 = vmatpush1.bf16.msra.mxu0 %v7907_v24  ;;  %v178_v16 = vld [vmem:[#allocation2 + $0x3c8] sm:$0xff]  ;;  %v181_v24 = vld [vmem:[#allocation2 + $0x3e0] sm:$0xff]  ;;  %11446 = vst [vmem:[#allocation67_spill] sm:$0xff] %v7943_v34 }
  0x58   :  { %963 = vmatprep.subr.bf16.mxu1 %v7909_v33  ;;  %1092 = vmatprep.subr.bf16.mxu0 %v7912_v40  ;;  %v173_v33 = vld [vmem:[#allocation2 + $0x3a0] sm:$0xff]  ;;  %v7936_v40 = vcombine.high %v157_v63, %v165_v58  ;;  %v7945_v39 = vcombine.high %v170_v3, %v178_v16  ;;  %v7951_v0 = vcombine.low %v170_v3, %v178_v16  ;;  %v92_v3 = vld [vmem:[#allocation2 + $0x118] sm:$0xff] }
  0x59   :  { %v7955_v58 = vcombine.low %v173_v33, %v181_v24 }
  0x5a   :  { %11444 = vst [vmem:[#allocation65_spill] sm:$0xff] %v7936_v40  ;;  %11447 = vst [vmem:[#allocation68_spill] sm:$0xff] %v7945_v39 }
  0x5b   :  { %964 = vmatpush1.bf16.msra.mxu1 %v7915_v49  ;;  %1093 = vmatpush1.bf16.msra.mxu0 %v7919_v55  ;;  %v68_v49 = vld [vmem:[#allocation2 + $0x58] sm:$0xff]  ;;  %v71_v55 = vld [vmem:[#allocation2 + $0x70] sm:$0xff]  ;;  %11449 = vst [vmem:[#allocation70_spill] sm:$0xff] %v7951_v0  ;;  %11450 = vst [vmem:[#allocation71_spill] sm:$0xff] %v7955_v58 }
  0x5c   :  { %965 = vmatprep.subr.bf16.mxu1 %v7921_v56  ;;  %1094 = vmatprep.subr.bf16.mxu0 %v7924_v1  ;;  %v63_v56 = vld [vmem:[#allocation2 + $0x30] sm:$0xff]  ;;  %v7948_v1 = vcombine.high %v173_v33, %v181_v24  ;;  %v7957_v63 = vcombine.high %v60_v23, %v68_v49  ;;  %v7963_v16 = vcombine.low %v60_v23, %v68_v49  ;;  %v108_v23 = vld [vmem:[#allocation2 + $0x198] sm:$0xff] }
  0x5d   :  { %v7967_v24 = vcombine.low %v63_v56, %v71_v55 }
  0x5e   :  { %11448 = vst [vmem:[#allocation69_spill] sm:$0xff] %v7948_v1  ;;  %11451 = vst [vmem:[#allocation72_spill] sm:$0xff] %v7957_v63 }
  0x5f   :  { %966 = vmatpush1.bf16.msra.mxu1 %v7927_v2  ;;  %1095 = vmatpush1.bf16.msra.mxu0 %v7931_v7  ;;  %v84_v2 = vld [vmem:[#allocation2 + $0xd8] sm:$0xff]  ;;  %v87_v7 = vld [vmem:[#allocation2 + $0xf0] sm:$0xff]  ;;  %11453 = vst [vmem:[#allocation74_spill] sm:$0xff] %v7963_v16  ;;  %11454 = vst [vmem:[#allocation75_spill] sm:$0xff] %v7967_v24 }
  0x60   :  { %967 = vmatprep.subr.bf16.mxu1 %v7933_v8  ;;  %1096 = vmatprep.subr.bf16.mxu0 %v7936_v40  ;;  %v79_v8 = vld [vmem:[#allocation2 + $0xb0] sm:$0xff]  ;;  %v7960_v40 = vcombine.high %v63_v56, %v71_v55  ;;  %v7969_v33 = vcombine.high %v76_v50, %v84_v2  ;;  %v7977_v49 = vcombine.low %v76_v50, %v84_v2  ;;  %v124_v50 = vld [vmem:[#allocation2 + $0x218] sm:$0xff] }
  0x61   :  { %v7981_v55 = vcombine.low %v79_v8, %v87_v7 }
  0x62   :  { %11452 = vst [vmem:[#allocation73_spill] sm:$0xff] %v7960_v40  ;;  %11455 = vst [vmem:[#allocation76_spill] sm:$0xff] %v7969_v33 }
  0x63   :  { %968 = vmatpush1.bf16.msra.mxu1 %v7939_v17  ;;  %1097 = vmatpush1.bf16.msra.mxu0 %v7943_v34  ;;  %v100_v17 = vld [vmem:[#allocation2 + $0x158] sm:$0xff]  ;;  %v103_v34 = vld [vmem:[#allocation2 + $0x170] sm:$0xff]  ;;  %11457 = vst [vmem:[#allocation78_spill] sm:$0xff] %v7977_v49  ;;  %11458 = vst [vmem:[#allocation79_spill] sm:$0xff] %v7981_v55 }
  0x64   :  { %969 = vmatprep.subr.bf16.mxu1 %v7945_v39  ;;  %1098 = vmatprep.subr.bf16.mxu0 %v7948_v1  ;;  %v95_v39 = vld [vmem:[#allocation2 + $0x130] sm:$0xff]  ;;  %v7972_v1 = vcombine.high %v79_v8, %v87_v7  ;;  %v7983_v56 = vcombine.high %v92_v3, %v100_v17  ;;  %v7991_v2 = vcombine.low %v92_v3, %v100_v17  ;;  %v140_v3 = vld [vmem:[#allocation2 + $0x298] sm:$0xff] }
  0x65   :  { %v7995_v7 = vcombine.low %v95_v39, %v103_v34 }
  0x66   :  { %11456 = vst [vmem:[#allocation77_spill] sm:$0xff] %v7972_v1  ;;  %11459 = vst [vmem:[#allocation80_spill] sm:$0xff] %v7983_v56 }
  0x67   :  { %970 = vmatpush1.bf16.msra.mxu1 %v7951_v0  ;;  %1099 = vmatpush1.bf16.msra.mxu0 %v7955_v58  ;;  %v119_v58 = vld [vmem:[#allocation2 + $0x1f0] sm:$0xff]  ;;  %v7986_v0 = vcombine.high %v95_v39, %v103_v34  ;;  %11462 = vst [vmem:[#allocation82_spill] sm:$0xff] %v7991_v2  ;;  %11463 = vst [vmem:[#allocation83_spill] sm:$0xff] %v7995_v7 }
  0x68   :  { %1041 = vmatprep.subr.bf16.mxu1 %v7957_v63  ;;  %1170 = vmatprep.subr.bf16.mxu0 %v7960_v40  ;;  %v116_v63 = vld [vmem:[#allocation2 + $0x1d8] sm:$0xff]  ;;  %v111_v40 = vld [vmem:[#allocation2 + $0x1b0] sm:$0xff] }
  0x69   :  { %11460 = vst [vmem:[#allocation81_spill] sm:$0xff] %v7986_v0  ;;  %v7997_v8 = vcombine.high %v108_v23, %v116_v63  ;;  %v8000_v57 = vcombine.high %v111_v40, %v119_v58  ;;  %v8003_v17 = vcombine.low %v108_v23, %v116_v63  ;;  %v8007_v34 = vcombine.low %v111_v40, %v119_v58  ;;  %v156_v23 = vld [vmem:[#allocation2 + $0x318] sm:$0xff] }
  0x6a   :  { %988 = vmatmul.mubr.bf16.vlgmr.msra.gmra.mrb[4].mxu1 %v7860_v18  ;;  %1117 = vmatmul.mubr.bf16.vlgmr.msra.gmra.mrb[4].mxu0 %v7860_v18 }
  0x6b   :  { %1042 = vmatpush1.bf16.msra.mxu1 %v7963_v16  ;;  %1171 = vmatpush1.bf16.msra.mxu0 %v7967_v24  ;;  %v11461_v16 = vmov 0   ;;  %11464 = vst [vmem:[#allocation84_spill] sm:$0xff] %v7997_v8  ;;  %v135_v24 = vld [vmem:[#allocation2 + $0x270] sm:$0xff]  ;;  %11465 = vst [vmem:[#allocation85_spill] sm:$0xff] %v8000_v57 }
  0x6c   :  { %1043 = vmatprep.subr.bf16.mxu1 %v7969_v33  ;;  %1172 = vmatprep.subr.bf16.mxu0 %v7972_v1  ;;  %v132_v33 = vld [vmem:[#allocation2 + $0x258] sm:$0xff]  ;;  %v127_v1 = vld [vmem:[#allocation2 + $0x230] sm:$0xff]  ;;  %11466 = vst [vmem:[#allocation86_spill] sm:$0xff] %v8003_v17  ;;  %11467 = vst [vmem:[#allocation87_spill] sm:$0xff] %v8007_v34 }
  0x6d   :  { %1073 = vmatprep.mubr.bf16.mxu1 %v11461_v16  ;;  %1202 = vmatprep.mubr.bf16.mxu0 %v11461_v16  ;;  %v8009_v39 = vcombine.high %v124_v50, %v132_v33  ;;  %v8015_v63 = vcombine.low %v124_v50, %v132_v33  ;;  %v8019_v40 = vcombine.low %v127_v1, %v135_v24  ;;  %v172_v50 = vld [vmem:[#allocation2 + $0x398] sm:$0xff] }
  0x6f   :  { %1044 = vmatpush1.bf16.msra.mxu1 %v7977_v49  ;;  %1173 = vmatpush1.bf16.msra.mxu0 %v7981_v55  ;;  %v148_v49 = vld [vmem:[#allocation2 + $0x2d8] sm:$0xff]  ;;  %11468 = vst [vmem:[#allocation88_spill] sm:$0xff] %v8009_v39  ;;  %v151_v55 = vld [vmem:[#allocation2 + $0x2f0] sm:$0xff]  ;;  %11470 = vst [vmem:[#allocation90_spill] sm:$0xff] %v8015_v63 }
  0x70   :  { %1045 = vmatprep.subr.bf16.mxu1 %v7983_v56  ;;  %1174 = vmatprep.subr.bf16.mxu0 %v7986_v0  ;;  %v143_v56 = vld [vmem:[#allocation2 + $0x2b0] sm:$0xff]  ;;  %v8012_v0 = vcombine.high %v127_v1, %v135_v24  ;;  %11471 = vst [vmem:[#allocation91_spill] sm:$0xff] %v8019_v40  ;;  %v8021_v58 = vcombine.high %v140_v3, %v148_v49 }
  0x71   :  { %v8027_v33 = vcombine.low %v140_v3, %v148_v49  ;;  %v8031_v1 = vcombine.low %v143_v56, %v151_v55  ;;  %v62_v3 = vld [vmem:[#allocation2 + $0x28] sm:$0xff] }
  0x72   :  { %11469 = vst [vmem:[#allocation89_spill] sm:$0xff] %v8012_v0  ;;  %11472 = vst [vmem:[#allocation92_spill] sm:$0xff] %v8021_v58 }
  0x73   :  { %1046 = vmatpush1.bf16.msra.mxu1 %v7991_v2  ;;  %1175 = vmatpush1.bf16.msra.mxu0 %v7995_v7  ;;  %v164_v2 = vld [vmem:[#allocation2 + $0x358] sm:$0xff]  ;;  %v167_v7 = vld [vmem:[#allocation2 + $0x370] sm:$0xff]  ;;  %11474 = vst [vmem:[#allocation94_spill] sm:$0xff] %v8027_v33  ;;  %11475 = vst [vmem:[#allocation95_spill] sm:$0xff] %v8031_v1 }
  0x74   :  { %1047 = vmatprep.subr.bf16.mxu1 %v7997_v8  ;;  %1176 = vmatprep.subr.bf16.mxu0 %v8000_v57  ;;  %v159_v8 = vld [vmem:[#allocation2 + $0x330] sm:$0xff]  ;;  %v8024_v57 = vcombine.high %v143_v56, %v151_v55  ;;  %v8033_v24 = vcombine.high %v156_v23, %v164_v2  ;;  %v8039_v49 = vcombine.low %v156_v23, %v164_v2  ;;  %v78_v2 = vld [vmem:[#allocation2 + $0xa8] sm:$0xff] }
  0x75   :  { %v8043_v55 = vcombine.low %v159_v8, %v167_v7  ;;  %v86_v23 = vld [vmem:[#allocation2 + $0xe8] sm:$0xff] }
  0x76   :  { %11473 = vst [vmem:[#allocation93_spill] sm:$0xff] %v8024_v57  ;;  %11476 = vst [vmem:[#allocation96_spill] sm:$0xff] %v8033_v24 }
  0x77   :  { %1048 = vmatpush1.bf16.msra.mxu1 %v8003_v17  ;;  %1177 = vmatpush1.bf16.msra.mxu0 %v8007_v34  ;;  %v180_v17 = vld [vmem:[#allocation2 + $0x3d8] sm:$0xff]  ;;  %v183_v34 = vld [vmem:[#allocation2 + $0x3f0] sm:$0xff]  ;;  %11478 = vst [vmem:[#allocation98_spill] sm:$0xff] %v8039_v49  ;;  %11479 = vst [vmem:[#allocation99_spill] sm:$0xff] %v8043_v55 }
  0x78   :  { %1049 = vmatprep.subr.bf16.mxu1 %v8009_v39  ;;  %1178 = vmatprep.subr.bf16.mxu0 %v8012_v0  ;;  %v175_v39 = vld [vmem:[#allocation2 + $0x3b0] sm:$0xff]  ;;  %v8036_v0 = vcombine.high %v159_v8, %v167_v7  ;;  %v8045_v56 = vcombine.high %v172_v50, %v180_v17 }
  0x7a   :  { %11477 = vst [vmem:[#allocation97_spill] sm:$0xff] %v8036_v0  ;;  %11480 = vst [vmem:[#allocation100_spill] sm:$0xff] %v8045_v56 }
  0x7b   :  { %1050 = vmatpush1.bf16.msra.mxu1 %v8015_v63  ;;  %1179 = vmatpush1.bf16.msra.mxu0 %v8019_v40  ;;  %v70_v63 = vld [vmem:[#allocation2 + $0x68] sm:$0xff] }
  0x7c   :  { %1051 = vmatprep.subr.bf16.mxu1 %v8021_v58  ;;  %1180 = vmatprep.subr.bf16.mxu0 %v8024_v57  ;;  %v8048_v58 = vcombine.high %v175_v39, %v183_v34  ;;  %v8051_v57 = vcombine.low %v172_v50, %v180_v17  ;;  %v8057_v7 = vcombine.high %v62_v3, %v70_v63 }
  0x7d   :  { %v8061_v8 = vcombine.low %v62_v3, %v70_v63  ;;  %v8065_v17 = vcombine.high %v78_v2, %v86_v23  ;;  %v118_v63 = vld [vmem:[#allocation2 + $0x1e8] sm:$0xff] }
  0x7e   :  { %11481 = vst [vmem:[#allocation101_spill] sm:$0xff] %v8048_v58  ;;  %11482 = vst [vmem:[#allocation102_spill] sm:$0xff] %v8051_v57 }
  0x7f   :  { %1052 = vmatpush1.bf16.msra.mxu1 %v8027_v33  ;;  %1181 = vmatpush1.bf16.msra.mxu0 %v8031_v1  ;;  %v8055_v1 = vcombine.low %v175_v39, %v183_v34  ;;  %11484 = vst [vmem:[#allocation104_spill] sm:$0xff] %v8057_v7  ;;  %11485 = vst [vmem:[#allocation105_spill] sm:$0xff] %v8061_v8  ;;  %v8071_v34 = vcombine.low %v78_v2, %v86_v23  ;;  %v110_v39 = vld [vmem:[#allocation2 + $0x1a8] sm:$0xff] }
  0x80   :  { %1053 = vmatprep.subr.bf16.mxu1 %v8033_v24  ;;  %1182 = vmatprep.subr.bf16.mxu0 %v8036_v0  ;;  %v94_v0 = vld [vmem:[#allocation2 + $0x128] sm:$0xff]  ;;  %11486 = vst [vmem:[#allocation106_spill] sm:$0xff] %v8065_v17 }
  0x81   :  { %11483 = vst [vmem:[#allocation103_spill] sm:$0xff] %v8055_v1  ;;  %11487 = vst [vmem:[#allocation107_spill] sm:$0xff] %v8071_v34  ;;  %v126_v2 = vld [vmem:[#allocation2 + $0x228] sm:$0xff] }
  0x82   :  { %v134_v23 = vld [vmem:[#allocation2 + $0x268] sm:$0xff] }
  0x83   :  { %1054 = vmatpush1.bf16.msra.mxu1 %v8039_v49  ;;  %1183 = vmatpush1.bf16.msra.mxu0 %v8043_v55  ;;  %v102_v49 = vld [vmem:[#allocation2 + $0x168] sm:$0xff] }
  0x84   :  { %1055 = vmatprep.subr.bf16.mxu1 %v8045_v56  ;;  %1184 = vmatprep.subr.bf16.mxu0 %v8048_v58  ;;  %v8075_v50 = vcombine.high %v94_v0, %v102_v49  ;;  %v8081_v3 = vcombine.low %v94_v0, %v102_v49  ;;  %v8093_v0 = vcombine.high %v126_v2, %v134_v23 }
  0x85   :  { %v8097_v49 = vcombine.low %v126_v2, %v134_v23  ;;  %v182_v23 = vld [vmem:[#allocation2 + $0x3e8] sm:$0xff] }
  0x86   :  { %11488 = vst [vmem:[#allocation108_spill] sm:$0xff] %v8075_v50  ;;  %11489 = vst [vmem:[#allocation109_spill] sm:$0xff] %v8081_v3 }
  0x87   :  { %1056 = vmatpush1.bf16.msra.mxu1 %v8051_v57  ;;  %1185 = vmatpush1.bf16.msra.mxu0 %v8055_v1  ;;  %11492 = vst [vmem:[#allocation112_spill] sm:$0xff] %v8093_v0  ;;  %11493 = vst [vmem:[#allocation113_spill] sm:$0xff] %v8097_v49 }
  0x88   :  { %1127 = vmatprep.subr.bf16.mxu1 %v8057_v7  ;;  %1356 = vmatprep.subr.bf16.mxu0 %v7756_v4 }
  0x8a   :  { %1074 = vmatmul.mubr.bf16.vlgmr.msra.gmra.mrb[8].mxu1 %v7860_v18  ;;  %1203 = vmatmul.mubr.bf16.vlgmr.msra.gmra.mrb[8].mxu0 %v7860_v18 }
  0x8b   :  { %1128 = vmatpush1.bf16.msra.mxu1 %v8061_v8  ;;  %1357 = vmatpush1.bf16.msra.mxu0 %v7758_v6  ;;  %v8085_v6 = vcombine.high %v110_v39, %v118_v63  ;;  %v150_v8 = vld [vmem:[#allocation2 + $0x2e8] sm:$0xff] }
  0x8c   :  { %1129 = vmatprep.subr.bf16.mxu1 %v8065_v17  ;;  %1358 = vmatprep.subr.bf16.mxu0 %v7764_v11  ;;  %v8089_v11 = vcombine.low %v110_v39, %v118_v63  ;;  %v142_v17 = vld [vmem:[#allocation2 + $0x2a8] sm:$0xff] }
  0x8d   :  { %1159 = vmatprep.mubr.bf16.mxu1 %v11461_v16  ;;  %1388 = vmatprep.mubr.bf16.mxu0 %v11461_v16  ;;  %11490 = vst [vmem:[#allocation110_spill] sm:$0xff] %v8085_v6  ;;  %v8101_v39 = vcombine.high %v142_v17, %v150_v8  ;;  %v8105_v63 = vcombine.low %v142_v17, %v150_v8  ;;  %v6850_v17 = vld [vmem:[%s11059_s0 + $0x10] sm:$0xff] }
  0x8e   :  { %11491 = vst [vmem:[#allocation111_spill] sm:$0xff] %v8089_v11 }
  0x8f   :  { %1130 = vmatpush1.bf16.msra.mxu1 %v8071_v34  ;;  %1359 = vmatpush1.bf16.msra.mxu0 %v7771_v19  ;;  %11494 = vst [vmem:[#allocation114_spill] sm:$0xff] %v8101_v39  ;;  %11495 = vst [vmem:[#allocation115_spill] sm:$0xff] %v8105_v63 }
  0x90   :  { %1131 = vmatprep.subr.bf16.mxu1 %v8075_v50  ;;  %1360 = vmatprep.subr.bf16.mxu0 %v7777_v21  ;;  %v158_v50 = vld [vmem:[#allocation2 + $0x328] sm:$0xff] }
  0x91   :  { %v166_v21 = vld [vmem:[#allocation2 + $0x368] sm:$0xff] }
  0x92   :  { %v8109_v2 = vcombine.high %v158_v50, %v166_v21 }
  0x93   :  { %1132 = vmatpush1.bf16.msra.mxu1 %v8081_v3  ;;  %1361 = vmatpush1.bf16.msra.mxu0 %v7783_v27 }
  0x94   :  { %1133 = vmatprep.subr.bf16.mxu1 %v8085_v6  ;;  %1362 = vmatprep.subr.bf16.mxu0 %v7789_v29  ;;  %v174_v6 = vld [vmem:[#allocation2 + $0x3a8] sm:$0xff]  ;;  %11496 = vst [vmem:[#allocation116_spill] sm:$0xff] %v8109_v2 }
  0x95   :  { %v8117_v8 = vcombine.high %v174_v6, %v182_v23 }
  0x97   :  { %1134 = vmatpush1.bf16.msra.mxu1 %v8089_v11  ;;  %1363 = vmatpush1.bf16.msra.mxu0 %v7795_v35  ;;  %v64_v35 = vld [vmem:[#allocation2 + $0x38] sm:$0xff]  ;;  %11498 = vst [vmem:[#allocation118_spill] sm:$0xff] %v8117_v8 }
  0x98   :  { %1135 = vmatprep.subr.bf16.mxu1 %v8093_v0  ;;  %1364 = vmatprep.subr.bf16.mxu0 %v7801_v37  ;;  %v8113_v0 = vcombine.low %v158_v50, %v166_v21  ;;  %v72_v37 = vld [vmem:[#allocation2 + $0x78] sm:$0xff]  ;;  %v8127_v21 = vcombine.low %v174_v6, %v182_v23 }
  0x99   :  { %v80_v50 = vld [vmem:[#allocation2 + $0xb8] sm:$0xff] }
  0x9a   :  { %11497 = vst [vmem:[#allocation117_spill] sm:$0xff] %v8113_v0  ;;  %11499 = vst [vmem:[#allocation119_spill] sm:$0xff] %v8127_v21  ;;  %v96_v23 = vld [vmem:[#allocation2 + $0x138] sm:$0xff] }
  0x9b   :  { %1136 = vmatpush1.bf16.msra.mxu1 %v8097_v49  ;;  %1365 = vmatpush1.bf16.msra.mxu0 %v7807_v43 }
  0x9c   :  { %1137 = vmatprep.subr.bf16.mxu1 %v8101_v39  ;;  %1366 = vmatprep.subr.bf16.mxu0 %v7813_v45  ;;  %v8137_v45 = vcombine.low %v64_v35, %v72_v37 }
  0x9e   :  { %11501 = vst [vmem:[#allocation121_spill] sm:$0xff] %v8137_v45 }
  0x9f   :  { %1138 = vmatpush1.bf16.msra.mxu1 %v8105_v63  ;;  %1367 = vmatpush1.bf16.msra.mxu0 %v7819_v51  ;;  %v6851_v63 = vld [vmem:[%s11059_s0 + $0x18] sm:$0xff] }
  0xa0   :  { %1139 = vmatprep.subr.bf16.mxu1 %v8109_v2  ;;  %1368 = vmatprep.subr.bf16.mxu0 %v7825_v53  ;;  %v88_v51 = vld [vmem:[#allocation2 + $0xf8] sm:$0xff]  ;;  %v8131_v2 = vcombine.high %v64_v35, %v72_v37  ;;  %v8135_v53 = vpack.c.bf16 %v6851_v63, %v6850_v17 }
  0xa1   :  { %v8141_v6 = vcombine.high %v80_v50, %v88_v51  ;;  %v8147_v63 = vcombine.low %v80_v50, %v88_v51  ;;  %v112_v35 = vld [vmem:[#allocation2 + $0x1b8] sm:$0xff] }
  0xa2   :  { %11500 = vst [vmem:[#allocation120_spill] sm:$0xff] %v8131_v2  ;;  %v120_v37 = vld [vmem:[#allocation2 + $0x1f8] sm:$0xff] }
  0xa3   :  { %1140 = vmatpush1.bf16.msra.mxu1 %v8113_v0  ;;  %1369 = vmatpush1.bf16.msra.mxu0 %v7831_v59  ;;  %11502 = vst [vmem:[#allocation122_spill] sm:$0xff] %v8141_v6  ;;  %v104_v59 = vld [vmem:[#allocation2 + $0x178] sm:$0xff]  ;;  %11503 = vst [vmem:[#allocation123_spill] sm:$0xff] %v8147_v63 }
  0xa4   :  { %1141 = vmatprep.subr.bf16.mxu1 %v8117_v8  ;;  %1370 = vmatprep.subr.bf16.mxu0 %v7837_v61  ;;  %v8151_v17 = vcombine.high %v96_v23, %v104_v59  ;;  %v128_v51 = vld [vmem:[#allocation2 + $0x238] sm:$0xff] }
  0xa5   :  { %v136_v50 = vld [vmem:[#allocation2 + $0x278] sm:$0xff] }
  0xa6   :  { %11504 = vst [vmem:[#allocation124_spill] sm:$0xff] %v8151_v17 }
  0xa7   :  { %1142 = vmatpush1.bf16.msra.mxu1 %v8127_v21  ;;  %1371 = vmatpush1.bf16.msra.mxu0 %v7843_v5 }
  0xa8   :  { %1213 = vmatprep.subr.bf16.mxu1 %v8131_v2  ;;  %1442 = vmatprep.subr.bf16.mxu0 %v7760_v9  ;;  %v8157_v9 = vcombine.low %v96_v23, %v104_v59  ;;  %v8169_v59 = vcombine.high %v128_v51, %v136_v50  ;;  %v144_v23 = vld [vmem:[#allocation2 + $0x2b8] sm:$0xff] }
  0xaa   :  { %1160 = vmatmul.mubr.bf16.vlgmr.msra.gmra.mrb[12].mxu1 %v7860_v18  ;;  %1389 = vmatmul.mubr.bf16.vlgmr.msra.gmra.mrb[12].mxu0 %v8135_v53  ;;  %11505 = vst [vmem:[#allocation125_spill] sm:$0xff] %v8157_v9  ;;  %11508 = vst [vmem:[#allocation128_spill] sm:$0xff] %v8169_v59 }
  0xab   :  { %1214 = vmatpush1.bf16.msra.mxu1 %v8137_v45  ;;  %1443 = vmatpush1.bf16.msra.mxu0 %v7762_v10  ;;  %v8161_v10 = vcombine.high %v112_v35, %v120_v37 }
  0xac   :  { %1215 = vmatprep.subr.bf16.mxu1 %v8141_v6  ;;  %1444 = vmatprep.subr.bf16.mxu0 %v7767_v15  ;;  %v8165_v15 = vcombine.low %v112_v35, %v120_v37  ;;  %v160_v37 = vld [vmem:[#allocation2 + $0x338] sm:$0xff] }
  0xad   :  { %1245 = vmatprep.mubr.bf16.mxu1 %v11461_v16  ;;  %1474 = vmatprep.mubr.bf16.mxu0 %v11461_v16  ;;  %11506 = vst [vmem:[#allocation126_spill] sm:$0xff] %v8161_v10 }
  0xae   :  { %11507 = vst [vmem:[#allocation127_spill] sm:$0xff] %v8165_v15 }
  0xaf   :  { %1216 = vmatpush1.bf16.msra.mxu1 %v8147_v63  ;;  %1445 = vmatpush1.bf16.msra.mxu0 %v7775_v20  ;;  %v152_v20 = vld [vmem:[#allocation2 + $0x2f8] sm:$0xff] }
  0xb0   :  { %1217 = vmatprep.subr.bf16.mxu1 %v8151_v17  ;;  %1446 = vmatprep.subr.bf16.mxu0 %v7780_v22  ;;  %v8173_v17 = vcombine.low %v128_v51, %v136_v50  ;;  %v8177_v35 = vcombine.high %v144_v23, %v152_v20  ;;  %v176_v50 = vld [vmem:[#allocation2 + $0x3b8] sm:$0xff] }
  0xb2   :  { %11509 = vst [vmem:[#allocation129_spill] sm:$0xff] %v8173_v17  ;;  %11510 = vst [vmem:[#allocation130_spill] sm:$0xff] %v8177_v35 }
  0xb3   :  { %1218 = vmatpush1.bf16.msra.mxu1 %v8157_v9  ;;  %1447 = vmatpush1.bf16.msra.mxu0 %v7787_v28  ;;  %v8181_v28 = vcombine.low %v144_v23, %v152_v20 }
  0xb4   :  { %1219 = vmatprep.subr.bf16.mxu1 %v8161_v10  ;;  %1448 = vmatprep.subr.bf16.mxu0 %v7792_v30  ;;  %v168_v10 = vld [vmem:[#allocation2 + $0x378] sm:$0xff] }
  0xb5   :  { %11511 = vst [vmem:[#allocation131_spill] sm:$0xff] %v8181_v28  ;;  %v8185_v51 = vcombine.high %v160_v37, %v168_v10 }
  0xb7   :  { %1220 = vmatpush1.bf16.msra.mxu1 %v8165_v15  ;;  %1449 = vmatpush1.bf16.msra.mxu0 %v7799_v36  ;;  %11512 = vst [vmem:[#allocation132_spill] sm:$0xff] %v8185_v51  ;;  %v8189_v36 = vcombine.low %v160_v37, %v168_v10  ;;  %v11516_v10 = vld [vmem:[#allocation50_spill] sm:$0xff]  ;;  %v11519_v37 = vld [vmem:[#allocation53_spill] sm:$0xff] }
  0xb8   :  { %1221 = vmatprep.subr.bf16.mxu1 %v8169_v59  ;;  %1450 = vmatprep.subr.bf16.mxu0 %v7804_v38  ;;  %v184_v59 = vld [vmem:[#allocation2 + $0x3f8] sm:$0xff] }
  0xb9   :  { %11513 = vst [vmem:[#allocation133_spill] sm:$0xff] %v8189_v36  ;;  %v8193_v20 = vcombine.high %v176_v50, %v184_v59  ;;  %v8197_v23 = vcombine.low %v176_v50, %v184_v59  ;;  %v11518_v59 = vld [vmem:[#allocation52_spill] sm:$0xff]  ;;  %v11520_v50 = vld [vmem:[#allocation54_spill] sm:$0xff] }
  0xbb   :  { %1222 = vmatpush1.bf16.msra.mxu1 %v8173_v17  ;;  %1451 = vmatpush1.bf16.msra.mxu0 %v7811_v44  ;;  %11514 = vst [vmem:[#allocation134_spill] sm:$0xff] %v8193_v20  ;;  %11515 = vst [vmem:[#allocation135_spill] sm:$0xff] %v8197_v23 }
  0xbc   :  { %1223 = vmatprep.subr.bf16.mxu1 %v8177_v35  ;;  %1452 = vmatprep.subr.bf16.mxu0 %v7816_v46 }
  0xbf   :  { %1224 = vmatpush1.bf16.msra.mxu1 %v8181_v28  ;;  %1453 = vmatpush1.bf16.msra.mxu0 %v7823_v52 }
  0xc0   :  { %1225 = vmatprep.subr.bf16.mxu1 %v8185_v51  ;;  %1454 = vmatprep.subr.bf16.mxu0 %v7828_v54 }
  0xc3   :  { %1226 = vmatpush1.bf16.msra.mxu1 %v8189_v36  ;;  %1455 = vmatpush1.bf16.msra.mxu0 %v7835_v60 }
  0xc4   :  { %1227 = vmatprep.subr.bf16.mxu1 %v8193_v20  ;;  %1456 = vmatprep.subr.bf16.mxu0 %v7840_v62 }
  0xc7   :  { %1228 = vmatpush1.bf16.msra.mxu1 %v8197_v23  ;;  %1457 = vmatpush1.bf16.msra.mxu0 %v7853_v12 }
  0xc8   :  { %1399 = vmatprep.subr.bf16.mxu1 %v7855_v13  ;;  %1528 = vmatprep.subr.bf16.mxu0 %v7858_v14 }
  0xca   :  { %1246 = vmatmul.mubr.bf16.vlgmr.msra.gmra.mrb[16].mxu1 %v7860_v18  ;;  %1475 = vmatmul.mubr.bf16.vlgmr.msra.gmra.mrb[16].mxu0 %v8135_v53  ;;  %v11517_v18 = vld [vmem:[#allocation51_spill] sm:$0xff] }
  0xcb   :  { %1400 = vmatpush1.bf16.msra.mxu1 %v7863_v25  ;;  %1529 = vmatpush1.bf16.msra.mxu0 %v7867_v26 }
  0xcc   :  { %1401 = vmatprep.subr.bf16.mxu1 %v7869_v31  ;;  %1530 = vmatprep.subr.bf16.mxu0 %v7872_v32  ;;  %v11521_v32 = vld [vmem:[#allocation55_spill] sm:$0xff]  ;;  %v11522_v31 = vld [vmem:[#allocation56_spill] sm:$0xff] }
  0xcd   :  { %1431 = vmatprep.mubr.bf16.mxu1 %v11461_v16  ;;  %1560 = vmatprep.mubr.bf16.mxu0 %v11461_v16 }
  0xcf   :  { %1402 = vmatpush1.bf16.msra.mxu1 %v7877_v41  ;;  %1531 = vmatpush1.bf16.msra.mxu0 %v7881_v42  ;;  %v11523_v41 = vld [vmem:[#allocation57_spill] sm:$0xff]  ;;  %v11524_v42 = vld [vmem:[#allocation58_spill] sm:$0xff] }
  0xd0   :  { %1403 = vmatprep.subr.bf16.mxu1 %v7883_v47  ;;  %1532 = vmatprep.subr.bf16.mxu0 %v7886_v48  ;;  %v11525_v47 = vld [vmem:[#allocation59_spill] sm:$0xff]  ;;  %v11526_v48 = vld [vmem:[#allocation60_spill] sm:$0xff] }
  0xd3   :  { %1404 = vmatpush1.bf16.msra.mxu1 %v11516_v10  ;;  %1533 = vmatpush1.bf16.msra.mxu0 %v11517_v18  ;;  %v11527_v10 = vld [vmem:[#allocation61_spill] sm:$0xff]  ;;  %v11528_v18 = vld [vmem:[#allocation62_spill] sm:$0xff] }
  0xd4   :  { %1405 = vmatprep.subr.bf16.mxu1 %v11518_v59  ;;  %1534 = vmatprep.subr.bf16.mxu0 %v11519_v37  ;;  %v11529_v59 = vld [vmem:[#allocation63_spill] sm:$0xff]  ;;  %v11530_v37 = vld [vmem:[#allocation64_spill] sm:$0xff] }
  0xd7   :  { %1406 = vmatpush1.bf16.msra.mxu1 %v11520_v50  ;;  %1535 = vmatpush1.bf16.msra.mxu0 %v11521_v32  ;;  %v11531_v50 = vld [vmem:[#allocation65_spill] sm:$0xff]  ;;  %v11532_v32 = vld [vmem:[#allocation66_spill] sm:$0xff] }
  0xd8   :  { %1407 = vmatprep.subr.bf16.mxu1 %v11522_v31  ;;  %1536 = vmatprep.subr.bf16.mxu0 %v11523_v41  ;;  %v11533_v31 = vld [vmem:[#allocation67_spill] sm:$0xff]  ;;  %v11534_v41 = vld [vmem:[#allocation68_spill] sm:$0xff] }
  0xdb   :  { %1408 = vmatpush1.bf16.msra.mxu1 %v11524_v42  ;;  %1537 = vmatpush1.bf16.msra.mxu0 %v11525_v47  ;;  %v11535_v42 = vld [vmem:[#allocation69_spill] sm:$0xff]  ;;  %v11536_v47 = vld [vmem:[#allocation70_spill] sm:$0xff] }
  0xdc   :  { %1409 = vmatprep.subr.bf16.mxu1 %v11526_v48  ;;  %1538 = vmatprep.subr.bf16.mxu0 %v11527_v10  ;;  %v11537_v48 = vld [vmem:[#allocation71_spill] sm:$0xff]  ;;  %v11538_v10 = vld [vmem:[#allocation72_spill] sm:$0xff] }
  0xdf   :  { %1410 = vmatpush1.bf16.msra.mxu1 %v11528_v18  ;;  %1539 = vmatpush1.bf16.msra.mxu0 %v11529_v59  ;;  %v11539_v18 = vld [vmem:[#allocation73_spill] sm:$0xff]  ;;  %v11554_v59 = vld [vmem:[#allocation88_spill] sm:$0xff] }
  0xe0   :  { %1411 = vmatprep.subr.bf16.mxu1 %v11530_v37  ;;  %1540 = vmatprep.subr.bf16.mxu0 %v11531_v50  ;;  %v11540_v50 = vld [vmem:[#allocation74_spill] sm:$0xff]  ;;  %v11553_v37 = vld [vmem:[#allocation87_spill] sm:$0xff] }
  0xe3   :  { %1412 = vmatpush1.bf16.msra.mxu1 %v11532_v32  ;;  %1541 = vmatpush1.bf16.msra.mxu0 %v11533_v31  ;;  %v11541_v32 = vld [vmem:[#allocation75_spill] sm:$0xff]  ;;  %v11542_v31 = vld [vmem:[#allocation76_spill] sm:$0xff] }
  0xe4   :  { %1413 = vmatprep.subr.bf16.mxu1 %v11534_v41  ;;  %1542 = vmatprep.subr.bf16.mxu0 %v11535_v42  ;;  %v11543_v41 = vld [vmem:[#allocation77_spill] sm:$0xff]  ;;  %v11548_v42 = vld [vmem:[#allocation82_spill] sm:$0xff] }
  0xe7   :  { %1414 = vmatpush1.bf16.msra.mxu1 %v11536_v47  ;;  %1543 = vmatpush1.bf16.msra.mxu0 %v11537_v48  ;;  %v11544_v48 = vld [vmem:[#allocation78_spill] sm:$0xff]  ;;  %v11547_v47 = vld [vmem:[#allocation81_spill] sm:$0xff] }
  0xe8   :  { %1485 = vmatprep.subr.bf16.mxu1 %v11538_v10  ;;  %1614 = vmatprep.subr.bf16.mxu0 %v11539_v18  ;;  %v11545_v10 = vld [vmem:[#allocation79_spill] sm:$0xff]  ;;  %v11546_v18 = vld [vmem:[#allocation80_spill] sm:$0xff] }
  0xea   :  { %1432 = vmatmul.mubr.bf16.vlgmr.msra.gmra.mrb[20].mxu1 %v8135_v53  ;;  %1561 = vmatmul.mubr.bf16.vlgmr.msra.gmra.mrb[20].mxu0 %v8135_v53 }
  0xeb   :  { %1486 = vmatpush1.bf16.msra.mxu1 %v11540_v50  ;;  %1615 = vmatpush1.bf16.msra.mxu0 %v11541_v32  ;;  %v11549_v50 = vld [vmem:[#allocation83_spill] sm:$0xff]  ;;  %v11550_v32 = vld [vmem:[#allocation84_spill] sm:$0xff] }
  0xec   :  { %1487 = vmatprep.subr.bf16.mxu1 %v11542_v31  ;;  %1616 = vmatprep.subr.bf16.mxu0 %v11543_v41  ;;  %v11551_v31 = vld [vmem:[#allocation85_spill] sm:$0xff]  ;;  %v11552_v41 = vld [vmem:[#allocation86_spill] sm:$0xff] }
  0xed   :  { %1517 = vmatprep.mubr.bf16.mxu1 %v11461_v16  ;;  %1646 = vmatprep.mubr.bf16.mxu0 %v11461_v16 }
  0xef   :  { %1488 = vmatpush1.bf16.msra.mxu1 %v11544_v48  ;;  %1617 = vmatpush1.bf16.msra.mxu0 %v11545_v10  ;;  %v11555_v48 = vld [vmem:[#allocation89_spill] sm:$0xff]  ;;  %v11556_v10 = vld [vmem:[#allocation90_spill] sm:$0xff] }
  0xf0   :  { %1489 = vmatprep.subr.bf16.mxu1 %v11546_v18  ;;  %1618 = vmatprep.subr.bf16.mxu0 %v11547_v47  ;;  %v11557_v47 = vld [vmem:[#allocation92_spill] sm:$0xff] }
  0xf3   :  { %1490 = vmatpush1.bf16.msra.mxu1 %v11548_v42  ;;  %1619 = vmatpush1.bf16.msra.mxu0 %v11549_v50  ;;  %v11558_v42 = vld [vmem:[#allocation93_spill] sm:$0xff] }
  0xf4   :  { %1491 = vmatprep.subr.bf16.mxu1 %v11550_v32  ;;  %1620 = vmatprep.subr.bf16.mxu0 %v11551_v31  ;;  %v11559_v32 = vld [vmem:[#allocation95_spill] sm:$0xff] }
  0xf7   :  { %1492 = vmatpush1.bf16.msra.mxu1 %v11552_v41  ;;  %1621 = vmatpush1.bf16.msra.mxu0 %v11553_v37  ;;  %v11560_v41 = vld [vmem:[#allocation97_spill] sm:$0xff]  ;;  %v11561_v37 = vld [vmem:[#allocation98_spill] sm:$0xff] }
  0xf8   :  { %1493 = vmatprep.subr.bf16.mxu1 %v11554_v59  ;;  %1622 = vmatprep.subr.bf16.mxu0 %v11555_v48 }
  0xfb   :  { %1494 = vmatpush1.bf16.msra.mxu1 %v11556_v10  ;;  %1623 = vmatpush1.bf16.msra.mxu0 %v8019_v40 }
  0xfc   :  { %1495 = vmatprep.subr.bf16.mxu1 %v11557_v47  ;;  %1624 = vmatprep.subr.bf16.mxu0 %v11558_v42 }
  0xff   :  { %1496 = vmatpush1.bf16.msra.mxu1 %v8027_v33  ;;  %1625 = vmatpush1.bf16.msra.mxu0 %v11559_v32 }
 0x100   :  { %1497 = vmatprep.subr.bf16.mxu1 %v8033_v24  ;;  %1626 = vmatprep.subr.bf16.mxu0 %v11560_v41  ;;  %v11562_v41 = vld [vmem:[#allocation105_spill] sm:$0xff] }
 0x103   :  { %1498 = vmatpush1.bf16.msra.mxu1 %v11561_v37  ;;  %1627 = vmatpush1.bf16.msra.mxu0 %v8043_v55  ;;  %v11563_v37 = vld [vmem:[#allocation9_spill] sm:$0xff]  ;;  %v11564_v55 = vld [vmem:[#allocation106_spill] sm:$0xff] }
 0x104   :  { %1499 = vmatprep.subr.bf16.mxu1 %v8045_v56  ;;  %1628 = vmatprep.subr.bf16.mxu0 %v8048_v58  ;;  %v11565_v56 = vld [vmem:[#allocation12_spill] sm:$0xff] }
 0x107   :  { %1500 = vmatpush1.bf16.msra.mxu1 %v8051_v57  ;;  %1629 = vmatpush1.bf16.msra.mxu0 %v8055_v1 }
 0x108   :  { %1571 = vmatprep.subr.bf16.mxu1 %v8057_v7  ;;  %1800 = vmatprep.subr.bf16.mxu0 %v7756_v4  ;;  %v11566_v4 = vld [vmem:[#allocation108_spill] sm:$0xff] }
 0x109   :  { %v11567_v7 = vld [vmem:[#allocation16_spill] sm:$0xff] }
 0x10a   :  { %1518 = vmatmul.mubr.bf16.vlgmr.msra.gmra.mrb[24].mxu1 %v8135_v53  ;;  %1647 = vmatmul.mubr.bf16.vlgmr.msra.gmra.mrb[24].mxu0 %v8135_v53 }
 0x10b   :  { %1572 = vmatpush1.bf16.msra.mxu1 %v11562_v41  ;;  %1801 = vmatpush1.bf16.msra.mxu0 %v11563_v37  ;;  %v11568_v37 = vld [vmem:[#allocation110_spill] sm:$0xff] }
 0x10c   :  { %1573 = vmatprep.subr.bf16.mxu1 %v11564_v55  ;;  %1802 = vmatprep.subr.bf16.mxu0 %v11565_v56  ;;  %v189_v55 = vlaneseq  ;;  %v11569_v56 = vld [vmem:[#allocation22_spill] sm:$0xff] }
 0x10d   :  { %1603 = vmatprep.mubr.bf16.mxu1 %v11461_v16  ;;  %1832 = vmatprep.mubr.bf16.mxu0 %v11461_v16 }
 0x10f   :  { %1574 = vmatpush1.bf16.msra.mxu1 %v8071_v34  ;;  %1803 = vmatpush1.bf16.msra.mxu0 %v7771_v19  ;;  %v11570_v34 = vld [vmem:[#allocation112_spill] sm:$0xff]  ;;  %v8297_v19 = vshrl.u32 %v189_v55, 7 }
 0x110   :  { %1575 = vmatprep.subr.bf16.mxu1 %v11566_v4  ;;  %1804 = vmatprep.subr.bf16.mxu0 %v11567_v7  ;;  %v11571_v4 = vld [vmem:[#allocation24_spill] sm:$0xff] }
 0x111   :  { %v11246_v7 = vsub.s32 6, %v8297_v19 }
 0x113   :  { %1576 = vmatpush1.bf16.msra.mxu1 %v8081_v3  ;;  %1805 = vmatpush1.bf16.msra.mxu0 %v7783_v27  ;;  %v11578_v27 = vld [vmem:[#allocation116_spill] sm:$0xff] }
 0x114   :  { %1577 = vmatprep.subr.bf16.mxu1 %v11568_v37  ;;  %1806 = vmatprep.subr.bf16.mxu0 %v7789_v29  ;;  %v8305_v37 = vld [vmem:[%s11061_s2 + $0x8] sm:$0xff] }
 0x115   :  { %v8312_v55 = vrot.slane %v8305_v37, %v11246_v7 }
 0x117   :  { %1578 = vmatpush1.bf16.msra.mxu1 %v8089_v11  ;;  %1807 = vmatpush1.bf16.msra.mxu0 %v11569_v56  ;;  %11572 = vst [vmem:[#allocation136_spill] sm:$0xff] %v8312_v55  ;;  %v11577_v55 = vld [vmem:[#allocation30_spill] sm:$0xff] }
 0x118   :  { %1579 = vmatprep.subr.bf16.mxu1 %v11570_v34  ;;  %1808 = vmatprep.subr.bf16.mxu0 %v11571_v4  ;;  %v11573_v4 = vld [vmem:[#allocation28_spill] sm:$0xff] }
 0x11b   :  { %1580 = vmatpush1.bf16.msra.mxu1 %v8097_v49  ;;  %1809 = vmatpush1.bf16.msra.mxu0 %v7807_v43  ;;  %v11252_v49 = vsub.s32 7, %v8297_v19  ;;  %v11575_v43 = vld [vmem:[#allocation115_spill] sm:$0xff] }
 0x11c   :  { %1581 = vmatprep.subr.bf16.mxu1 %v8101_v39  ;;  %1810 = vmatprep.subr.bf16.mxu0 %v11573_v4 }
 0x11d   :  { %v8314_v34 = vpop.f32.mrb[0].mxu1  ;;  %v8320_v11 = vpop.f32.mrb[0].mxu0  ;;  %v8330_v7 = vrot.slane %v8305_v37, %v11252_v49  ;;  %v6852_v49 = vld [vmem:[%s11059_s0 + $0x20] sm:$0xff] }
 0x11e   :  { %v8318_v56 = vpop.f32.mrb[1].mxu1  ;;  %11574 = vst [vmem:[#allocation137_spill] sm:$0xff] %v8320_v11  ;;  %v8325_v39 = vpop.f32.mrb[1].mxu0  ;;  %v11579_v11 = vld [vmem:[#allocation32_spill] sm:$0xff] }
 0x11f   :  { %v8322_v29 = vpop.f32.mrb[2].mxu1  ;;  %1582 = vmatpush1.bf16.msra.mxu1 %v11575_v43  ;;  %11576 = vst [vmem:[#allocation138_spill] sm:$0xff] %v8330_v7  ;;  %1811 = vmatpush1.bf16.msra.mxu0 %v11577_v55  ;;  %v8336_v3 = vpop.f32.mrb[2].mxu0  ;;  %v11580_v43 = vld [vmem:[#allocation34_spill] sm:$0xff] }
 0x120   :  { %v8333_v4 = vpop.f32.mrb[3].mxu1  ;;  %1583 = vmatprep.subr.bf16.mxu1 %v11578_v27  ;;  %1812 = vmatprep.subr.bf16.mxu0 %v11579_v11  ;;  %v8339_v41 = vpop.f32.mrb[3].mxu0  ;;  %v6853_v27 = vld [vmem:[%s11059_s0 + $0x28] sm:$0xff] }
 0x121   :  { %v8352_v11 = vpack.c.bf16 %v6853_v27, %v6852_v49  ;;  %v11584_v27 = vld [vmem:[#allocation15_spill] sm:$0xff]  ;;  %v11585_v49 = vld [vmem:[#allocation124_spill] sm:$0xff] }
 0x123   :  { %1584 = vmatpush1.bf16.msra.mxu1 %v8113_v0  ;;  %1813 = vmatpush1.bf16.msra.mxu0 %v11580_v43  ;;  %v11581_v43 = vld [vmem:[#allocation10_spill] sm:$0xff] }
 0x124   :  { %1585 = vmatprep.subr.bf16.mxu1 %v8117_v8  ;;  %1814 = vmatprep.subr.bf16.mxu0 %v7837_v61  ;;  %v11582_v8 = vld [vmem:[#allocation11_spill] sm:$0xff]  ;;  %v11583_v61 = vld [vmem:[#allocation13_spill] sm:$0xff] }
 0x127   :  { %1586 = vmatpush1.bf16.msra.mxu1 %v8127_v21  ;;  %1815 = vmatpush1.bf16.msra.mxu0 %v7843_v5 }
 0x128   :  { %1657 = vmatprep.subr.bf16.mxu1 %v8131_v2  ;;  %1886 = vmatprep.subr.bf16.mxu0 %v11581_v43 }
 0x12a   :  { %1604 = vmatmul.mubr.bf16.vlgmr.msra.gmra.mrb[28].mxu1 %v8135_v53  ;;  %1833 = vmatmul.mubr.bf16.vlgmr.msra.gmra.mrb[28].mxu0 %v8352_v11 }
 0x12b   :  { %1658 = vmatpush1.bf16.msra.mxu1 %v8137_v45  ;;  %1887 = vmatpush1.bf16.msra.mxu0 %v11582_v8  ;;  %v11586_v45 = vld [vmem:[#allocation19_spill] sm:$0xff]  ;;  %v11587_v8 = vld [vmem:[#allocation126_spill] sm:$0xff] }
 0x12c   :  { %1659 = vmatprep.subr.bf16.mxu1 %v8141_v6  ;;  %1888 = vmatprep.subr.bf16.mxu0 %v11583_v61  ;;  %v11588_v61 = vld [vmem:[#allocation23_spill] sm:$0xff]  ;;  %v11589_v6 = vld [vmem:[#allocation128_spill] sm:$0xff] }
 0x12d   :  { %1689 = vmatprep.mubr.bf16.mxu1 %v11461_v16  ;;  %1918 = vmatprep.mubr.bf16.mxu0 %v11461_v16 }
 0x12f   :  { %1660 = vmatpush1.bf16.msra.mxu1 %v8147_v63  ;;  %1889 = vmatpush1.bf16.msra.mxu0 %v11584_v27 }
 0x130   :  { %1661 = vmatprep.subr.bf16.mxu1 %v11585_v49  ;;  %1890 = vmatprep.subr.bf16.mxu0 %v7780_v22 }
 0x133   :  { %1662 = vmatpush1.bf16.msra.mxu1 %v8157_v9  ;;  %1891 = vmatpush1.bf16.msra.mxu0 %v11586_v45 }
 0x134   :  { %1663 = vmatprep.subr.bf16.mxu1 %v11587_v8  ;;  %1892 = vmatprep.subr.bf16.mxu0 %v7792_v30 }
 0x137   :  { %1664 = vmatpush1.bf16.msra.mxu1 %v8165_v15  ;;  %1893 = vmatpush1.bf16.msra.mxu0 %v11588_v61 }
 0x138   :  { %1665 = vmatprep.subr.bf16.mxu1 %v11589_v6  ;;  %1894 = vmatprep.subr.bf16.mxu0 %v7804_v38 }
 0x13b   :  { %1666 = vmatpush1.bf16.msra.mxu1 %v8173_v17  ;;  %1895 = vmatpush1.bf16.msra.mxu0 %v7811_v44 }
 0x13c   :  { %1667 = vmatprep.subr.bf16.mxu1 %v8177_v35  ;;  %1896 = vmatprep.subr.bf16.mxu0 %v7816_v46 }
 0x13d   :  { %v8380_v9 = vpop.f32.mrb[4].mxu1  ;;  %v8385_v30 = vpop.f32.mrb[4].mxu0 }
 0x13e   :  { %v8383_v8 = vpop.f32.mrb[5].mxu1  ;;  %v8390_v6 = vpop.f32.mrb[5].mxu0 }
 0x13f   :  { %v8387_v15 = vpop.f32.mrb[6].mxu1  ;;  %1668 = vmatpush1.bf16.msra.mxu1 %v8181_v28  ;;  %1897 = vmatpush1.bf16.msra.mxu0 %v7823_v52  ;;  %v8396_v35 = vpop.f32.mrb[6].mxu0 }
 0x140   :  { %v8393_v17 = vpop.f32.mrb[7].mxu1  ;;  %1669 = vmatprep.subr.bf16.mxu1 %v8185_v51  ;;  %1898 = vmatprep.subr.bf16.mxu0 %v7828_v54  ;;  %v8399_v46 = vpop.f32.mrb[7].mxu0  ;;  %v11615_v54 = vld [vmem:[#allocation63_spill] sm:$0xff] }
 0x143   :  { %1670 = vmatpush1.bf16.msra.mxu1 %v8189_v36  ;;  %1899 = vmatpush1.bf16.msra.mxu0 %v7835_v60  ;;  %v11590_v60 = vld [vmem:[#allocation44_spill] sm:$0xff] }
 0x144   :  { %1671 = vmatprep.subr.bf16.mxu1 %v8193_v20  ;;  %1900 = vmatprep.subr.bf16.mxu0 %v7840_v62  ;;  %v11591_v20 = vld [vmem:[#allocation45_spill] sm:$0xff]  ;;  %v11601_v62 = vld [vmem:[#allocation55_spill] sm:$0xff]  ;;  %v11602_v36 = vld [vmem:[#allocation56_spill] sm:$0xff] }
 0x147   :  { %1672 = vmatpush1.bf16.msra.mxu1 %v8197_v23  ;;  %1901 = vmatpush1.bf16.msra.mxu0 %v7853_v12  ;;  %v11592_v12 = vld [vmem:[#allocation46_spill] sm:$0xff] }
 0x148   :  { %1843 = vmatprep.subr.bf16.mxu1 %v7855_v13  ;;  %1972 = vmatprep.subr.bf16.mxu0 %v7858_v14  ;;  %v11593_v13 = vld [vmem:[#allocation47_spill] sm:$0xff]  ;;  %v11594_v14 = vld [vmem:[#allocation48_spill] sm:$0xff]  ;;  %v11596_v23 = vld [vmem:[#allocation50_spill] sm:$0xff] }
 0x14a   :  { %1690 = vmatmul.mubr.bf16.vlgmr.msra.gmra.mrb[32].mxu1 %v8135_v53  ;;  %1919 = vmatmul.mubr.bf16.vlgmr.msra.gmra.mrb[32].mxu0 %v8352_v11  ;;  %v11595_v53 = vld [vmem:[#allocation49_spill] sm:$0xff] }
 0x14b   :  { %1844 = vmatpush1.bf16.msra.mxu1 %v7863_v25  ;;  %1973 = vmatpush1.bf16.msra.mxu0 %v7867_v26  ;;  %v11597_v25 = vld [vmem:[#allocation51_spill] sm:$0xff]  ;;  %v11598_v26 = vld [vmem:[#allocation52_spill] sm:$0xff] }
 0x14c   :  { %1845 = vmatprep.subr.bf16.mxu1 %v11590_v60  ;;  %1974 = vmatprep.subr.bf16.mxu0 %v11591_v20  ;;  %v11599_v60 = vld [vmem:[#allocation53_spill] sm:$0xff]  ;;  %v11600_v20 = vld [vmem:[#allocation54_spill] sm:$0xff] }
 0x14d   :  { %1875 = vmatprep.mubr.bf16.mxu1 %v11461_v16  ;;  %2004 = vmatprep.mubr.bf16.mxu0 %v11461_v16 }
 0x14f   :  { %1846 = vmatpush1.bf16.msra.mxu1 %v11592_v12  ;;  %1975 = vmatpush1.bf16.msra.mxu0 %v11593_v13  ;;  %v11603_v12 = vld [vmem:[#allocation57_spill] sm:$0xff]  ;;  %v11604_v13 = vld [vmem:[#allocation58_spill] sm:$0xff] }
 0x150   :  { %1847 = vmatprep.subr.bf16.mxu1 %v11594_v14  ;;  %1976 = vmatprep.subr.bf16.mxu0 %v11595_v53  ;;  %v11293_v14 = vsub.s32 4, %v8297_v19  ;;  %v11298_v53 = vsub.s32 5, %v8297_v19 }
 0x153   :  { %1848 = vmatpush1.bf16.msra.mxu1 %v11596_v23  ;;  %1977 = vmatpush1.bf16.msra.mxu0 %v11597_v25 }
 0x154   :  { %1849 = vmatprep.subr.bf16.mxu1 %v11598_v26  ;;  %1978 = vmatprep.subr.bf16.mxu0 %v11599_v60  ;;  %v8435_v26 = vrot.slane %v8305_v37, %v11293_v14  ;;  %v11606_v60 = vld [vmem:[#allocation59_spill] sm:$0xff]  ;;  %v11613_v14 = vld [vmem:[#allocation62_spill] sm:$0xff] }
 0x156   :  { %11605 = vst [vmem:[#allocation139_spill] sm:$0xff] %v8435_v26 }
 0x157   :  { %1850 = vmatpush1.bf16.msra.mxu1 %v11600_v20  ;;  %1979 = vmatpush1.bf16.msra.mxu0 %v11601_v62  ;;  %v11607_v20 = vld [vmem:[#allocation60_spill] sm:$0xff]  ;;  %v11610_v62 = vld [vmem:[#allocation61_spill] sm:$0xff] }
 0x158   :  { %1851 = vmatprep.subr.bf16.mxu1 %v11602_v36  ;;  %1980 = vmatprep.subr.bf16.mxu0 %v11603_v12  ;;  %v8442_v36 = vrot.slane %v8305_v37, %v11298_v53  ;;  %v11617_v53 = vld [vmem:[#allocation64_spill] sm:$0xff] }
 0x15a   :  { %11608 = vst [vmem:[#allocation140_spill] sm:$0xff] %v8442_v36 }
 0x15b   :  { %1852 = vmatpush1.bf16.msra.mxu1 %v11604_v13  ;;  %1981 = vmatpush1.bf16.msra.mxu0 %v11606_v60 }
 0x15c   :  { %1853 = vmatprep.subr.bf16.mxu1 %v11607_v20  ;;  %1982 = vmatprep.subr.bf16.mxu0 %v11610_v62 }
 0x15d   :  { %v8444_v12 = vpop.f32.mrb[8].mxu1  ;;  %v1204_v13 = vpop.f32.mrb[8].mxu0 }
 0x15e   :  { %11609 = vst [vmem:[#allocation141_spill] sm:$0xff] %v8444_v12  ;;  %v8447_v25 = vpop.f32.mrb[9].mxu1  ;;  %v8453_v60 = vadd.f32 %v1204_v13, %v8435_v26  ;;  %v1206_v20 = vpop.f32.mrb[9].mxu0 }
 0x15f   :  { %11611 = vst [vmem:[#allocation142_spill] sm:$0xff] %v8447_v25  ;;  %v8449_v23 = vpop.f32.mrb[10].mxu1  ;;  %1854 = vmatpush1.bf16.msra.mxu1 %v11613_v14  ;;  %1983 = vmatpush1.bf16.msra.mxu0 %v11615_v54  ;;  %v8460_v12 = vadd.f32 %v1206_v20, %v8442_v36  ;;  %v1208_v62 = vpop.f32.mrb[10].mxu0  ;;  %v11619_v25 = vld [vmem:[#allocation65_spill] sm:$0xff]  ;;  %v11622_v54 = vld [vmem:[#allocation67_spill] sm:$0xff]  ;;  %v11625_v20 = vld [vmem:[#allocation70_spill] sm:$0xff] }
 0x160   :  { %11612 = vst [vmem:[#allocation143_spill] sm:$0xff] %v8449_v23  ;;  %11614 = vst [vmem:[#allocation144_spill] sm:$0xff] %v8453_v60  ;;  %v8456_v51 = vpop.f32.mrb[11].mxu1  ;;  %1855 = vmatprep.subr.bf16.mxu1 %v11617_v53  ;;  %1984 = vmatprep.subr.bf16.mxu0 %v11619_v25  ;;  %v8464_v23 = vadd.f32 %v1208_v62, %v8435_v26  ;;  %v1210_v14 = vpop.f32.mrb[11].mxu0  ;;  %v11621_v60 = vld [vmem:[#allocation66_spill] sm:$0xff]  ;;  %v11624_v53 = vld [vmem:[#allocation69_spill] sm:$0xff] }
 0x161   :  { %11616 = vst [vmem:[#allocation145_spill] sm:$0xff] %v8456_v51  ;;  %11618 = vst [vmem:[#allocation146_spill] sm:$0xff] %v8460_v12  ;;  %v8467_v13 = vadd.f32 %v1210_v14, %v8442_v36  ;;  %v11623_v51 = vld [vmem:[#allocation68_spill] sm:$0xff]  ;;  %v11626_v12 = vld [vmem:[#allocation71_spill] sm:$0xff] }
 0x162   :  { %v11627_v25 = vld [vmem:[#allocation72_spill] sm:$0xff]  ;;  %v11628_v62 = vld [vmem:[#allocation73_spill] sm:$0xff]  ;;  %v11629_v14 = vld [vmem:[#allocation74_spill] sm:$0xff] }
 0x163   :  { %11620 = vst [vmem:[#allocation147_spill] sm:$0xff] %v8467_v13  ;;  %1856 = vmatpush1.bf16.msra.mxu1 %v11621_v60  ;;  %1985 = vmatpush1.bf16.msra.mxu0 %v11622_v54  ;;  %v11630_v60 = vld [vmem:[#allocation75_spill] sm:$0xff]  ;;  %v11631_v54 = vld [vmem:[#allocation76_spill] sm:$0xff] }
 0x164   :  { %1857 = vmatprep.subr.bf16.mxu1 %v11623_v51  ;;  %1986 = vmatprep.subr.bf16.mxu0 %v11624_v53  ;;  %v11632_v51 = vld [vmem:[#allocation77_spill] sm:$0xff]  ;;  %v11641_v53 = vld [vmem:[#allocation87_spill] sm:$0xff] }
 0x167   :  { %1858 = vmatpush1.bf16.msra.mxu1 %v11625_v20  ;;  %1987 = vmatpush1.bf16.msra.mxu0 %v11626_v12  ;;  %v11633_v12 = vld [vmem:[#allocation78_spill] sm:$0xff] }
 0x168   :  { %1929 = vmatprep.subr.bf16.mxu1 %v11627_v25  ;;  %2058 = vmatprep.subr.bf16.mxu0 %v11628_v62  ;;  %v8487_v62 = vsub.s32 0, %v8297_v19  ;;  %v11635_v25 = vld [vmem:[#allocation79_spill] sm:$0xff] }
 0x16a   :  { %1876 = vmatmul.mubr.bf16.vlgmr.msra.gmra.mrb[36].mxu1 %v8352_v11  ;;  %2005 = vmatmul.mubr.bf16.vlgmr.msra.gmra.mrb[36].mxu0 %v8352_v11  ;;  %11634 = vst [vmem:[#allocation148_spill] sm:$0xff] %v8487_v62 }
 0x16b   :  { %1930 = vmatpush1.bf16.msra.mxu1 %v11629_v14  ;;  %2059 = vmatpush1.bf16.msra.mxu0 %v11630_v60  ;;  %v8494_v60 = vld [vmem:[%s11061_s2] sm:$0xff]  ;;  %v11638_v14 = vld [vmem:[#allocation82_spill] sm:$0xff] }
 0x16c   :  { %1931 = vmatprep.subr.bf16.mxu1 %v11631_v54  ;;  %2060 = vmatprep.subr.bf16.mxu0 %v11632_v51  ;;  %v11636_v54 = vld [vmem:[#allocation81_spill] sm:$0xff]  ;;  %v8498_v51 = vsub.s32 1, %v8297_v19 }
 0x16d   :  { %1961 = vmatprep.mubr.bf16.mxu1 %v11461_v16  ;;  %2090 = vmatprep.mubr.bf16.mxu0 %v11461_v16 }
 0x16e   :  { %11637 = vst [vmem:[#allocation149_spill] sm:$0xff] %v8498_v51 }
 0x16f   :  { %1932 = vmatpush1.bf16.msra.mxu1 %v11633_v12  ;;  %2061 = vmatpush1.bf16.msra.mxu0 %v11635_v25  ;;  %v8503_v12 = vrot.slane %v8494_v60, %v8487_v62  ;;  %v11639_v25 = vld [vmem:[#allocation84_spill] sm:$0xff] }
 0x170   :  { %1933 = vmatprep.subr.bf16.mxu1 %v11546_v18  ;;  %2062 = vmatprep.subr.bf16.mxu0 %v11636_v54  ;;  %v8510_v18 = vrot.slane %v8494_v60, %v8498_v51  ;;  %v11640_v54 = vld [vmem:[#allocation86_spill] sm:$0xff] }
 0x171   :  { %v947_v20 = vadd.f32 %v8314_v34, %v8503_v12  ;;  %v951_v34 = vadd.f32 %v8322_v29, %v8503_v12 }
 0x173   :  { %1934 = vmatpush1.bf16.msra.mxu1 %v11638_v14  ;;  %2063 = vmatpush1.bf16.msra.mxu0 %v11549_v50  ;;  %v11303_v14 = vsub.s32 2, %v8297_v19  ;;  %v11308_v50 = vsub.s32 3, %v8297_v19  ;;  %v1272_v36 = vmax.f32 %v951_v34, 0.0 }
 0x174   :  { %1935 = vmatprep.subr.bf16.mxu1 %v11639_v25  ;;  %2064 = vmatprep.subr.bf16.mxu0 %v11551_v31  ;;  %v949_v31 = vadd.f32 %v8318_v56, %v8510_v18  ;;  %v953_v56 = vadd.f32 %v8333_v4, %v8510_v18 }
 0x177   :  { %1936 = vmatpush1.bf16.msra.mxu1 %v11640_v54  ;;  %2065 = vmatpush1.bf16.msra.mxu0 %v11641_v53  ;;  %v8525_v54 = vrot.slane %v8305_v37, %v11303_v14  ;;  %v1256_v53 = vmax.f32 %v947_v20, 0.0 }
 0x178   :  { %1937 = vmatprep.subr.bf16.mxu1 %v11554_v59  ;;  %2066 = vmatprep.subr.bf16.mxu0 %v11555_v48  ;;  %v8533_v59 = vrot.slane %v8305_v37, %v11308_v50  ;;  %v1257_v48 = vmax.f32 %v949_v31, 0.0 }
 0x179   :  { %11642 = vst [vmem:[#allocation150_spill] sm:$0xff] %v8525_v54  ;;  %v1320_v4 = vmax.f32 %v1256_v53, 0.0 }
 0x17b   :  { %1938 = vmatpush1.bf16.msra.mxu1 %v11556_v10  ;;  %2067 = vmatpush1.bf16.msra.mxu0 %v8019_v40 }
 0x17c   :  { %1939 = vmatprep.subr.bf16.mxu1 %v11557_v47  ;;  %2068 = vmatprep.subr.bf16.mxu0 %v11558_v42 }
 0x17d   :  { %v1161_v14 = vpop.f32.mrb[12].mxu1  ;;  %v1390_v10 = vpop.f32.mrb[12].mxu0 }
 0x17e   :  { %v8541_v29 = vadd.f32 %v1161_v14, %v8525_v54  ;;  %v1163_v25 = vpop.f32.mrb[13].mxu1  ;;  %v1391_v50 = vadd.f32 %v1390_v10, %v8503_v12  ;;  %v1392_v40 = vpop.f32.mrb[13].mxu0  ;;  %v1273_v10 = vmax.f32 %v953_v56, 0.0  ;;  %v11648_v56 = vld [vmem:[#allocation98_spill] sm:$0xff] }
 0x17f   :  { %v8545_v20 = vadd.f32 %v1163_v25, %v8533_v59  ;;  %v1165_v47 = vpop.f32.mrb[14].mxu1  ;;  %1940 = vmatpush1.bf16.msra.mxu1 %v8027_v33  ;;  %v1393_v26 = vadd.f32 %v1392_v40, %v8510_v18  ;;  %v1394_v14 = vpop.f32.mrb[14].mxu0  ;;  %2069 = vmatpush1.bf16.msra.mxu0 %v11559_v32  ;;  %v1321_v40 = vmax.f32 %v1257_v48, 0.0 }
 0x180   :  { %11643 = vst [vmem:[#allocation151_spill] sm:$0xff] %v8541_v29  ;;  %v8550_v31 = vadd.f32 %v1165_v47, %v8525_v54  ;;  %v1167_v42 = vpop.f32.mrb[15].mxu1  ;;  %1941 = vmatprep.subr.bf16.mxu1 %v8033_v24  ;;  %v1700_v34 = vmax.f32 %v1391_v50, 0.0  ;;  %v1395_v25 = vadd.f32 %v1394_v14, %v8503_v12  ;;  %v1396_v33 = vpop.f32.mrb[15].mxu0  ;;  %v11647_v29 = vld [vmem:[#allocation97_spill] sm:$0xff]  ;;  %v1336_v54 = vmax.f32 %v1272_v36, 0.0 }
 0x181   :  { %11644 = vst [vmem:[#allocation152_spill] sm:$0xff] %v8545_v20  ;;  %v8556_v20 = vadd.f32 %v1167_v42, %v8533_v59  ;;  %2070 = vmatprep.subr.bf16.mxu0 %v11647_v29  ;;  %v1701_v13 = vmax.f32 %v1393_v26, 0.0  ;;  %v1397_v47 = vadd.f32 %v1396_v33, %v8510_v18  ;;  %v11649_v42 = vld [vmem:[#allocation99_spill] sm:$0xff]  ;;  %v1337_v29 = vmax.f32 %v1273_v10, 0.0 }
 0x182   :  { %11645 = vst [vmem:[#allocation153_spill] sm:$0xff] %v8550_v31  ;;  %v8560_v31 = vadd.f32 %v1700_v34, %v1256_v53  ;;  %v8562_v32 = vmax.f32 %v1320_v4, %v1700_v34  ;;  %v1716_v24 = vmax.f32 %v1395_v25, 0.0  ;;  %v11662_v25 = vld [vmem:[#allocation14_spill] sm:$0xff] }
 0x183   :  { %11646 = vst [vmem:[#allocation154_spill] sm:$0xff] %v8556_v20  ;;  %1942 = vmatpush1.bf16.msra.mxu1 %v11648_v56  ;;  %v8565_v50 = vadd.f32 %v1701_v13, %v1257_v48  ;;  %v8567_v14 = vmax.f32 %v1321_v40, %v1701_v13  ;;  %2071 = vmatpush1.bf16.msra.mxu0 %v11649_v42  ;;  %v11650_v20 = vld [vmem:[#allocation100_spill] sm:$0xff]  ;;  %v1717_v53 = vmax.f32 %v1397_v47, 0.0 }
 0x184   :  { %1943 = vmatprep.subr.bf16.mxu1 %v11650_v20  ;;  %v8571_v26 = vadd.f32 %v1716_v24, %v1272_v36  ;;  %v8573_v33 = vmax.f32 %v1336_v54, %v1716_v24  ;;  %2072 = vmatprep.subr.bf16.mxu0 %v8048_v58  ;;  %v11655_v48 = vld [vmem:[#allocation104_spill] sm:$0xff]  ;;  %v11657_v36 = vld [vmem:[#allocation105_spill] sm:$0xff]  ;;  %v11659_v24 = vld [vmem:[#allocation106_spill] sm:$0xff] }
 0x185   :  { %v8576_v4 = vadd.f32 %v1717_v53, %v1273_v10  ;;  %v8578_v34 = vmax.f32 %v1337_v29, %v1717_v53  ;;  %v11656_v13 = vld [vmem:[#allocation8_spill] sm:$0xff]  ;;  %v11658_v54 = vld [vmem:[#allocation9_spill] sm:$0xff]  ;;  %v11661_v10 = vld [vmem:[#allocation107_spill] sm:$0xff] }
 0x186   :  { %11651 = vst [vmem:[#allocation155_spill] sm:$0xff] %v8571_v26  ;;  %11652 = vst [vmem:[#allocation156_spill] sm:$0xff] %v8573_v33  ;;  %v11660_v29 = vld [vmem:[#allocation12_spill] sm:$0xff]  ;;  %v11665_v53 = vld [vmem:[#allocation109_spill] sm:$0xff] }
 0x187   :  { %11653 = vst [vmem:[#allocation157_spill] sm:$0xff] %v8576_v4  ;;  %11654 = vst [vmem:[#allocation158_spill] sm:$0xff] %v8578_v34  ;;  %1944 = vmatpush1.bf16.msra.mxu1 %v8051_v57  ;;  %2073 = vmatpush1.bf16.msra.mxu0 %v8055_v1  ;;  %v11663_v40 = vld [vmem:[#allocation108_spill] sm:$0xff]  ;;  %v11673_v4 = vld [vmem:[#allocation22_spill] sm:$0xff] }
 0x188   :  { %2015 = vmatprep.subr.bf16.mxu1 %v11655_v48  ;;  %2244 = vmatprep.subr.bf16.mxu0 %v11656_v13  ;;  %v11664_v47 = vld [vmem:[#allocation16_spill] sm:$0xff]  ;;  %v11677_v48 = vld [vmem:[#allocation26_spill] sm:$0xff]  ;;  %v11683_v26 = vld [vmem:[#allocation115_spill] sm:$0xff] }
 0x189   :  { %v11669_v34 = vld [vmem:[#allocation20_spill] sm:$0xff] }
 0x18a   :  { %1962 = vmatmul.mubr.bf16.vlgmr.msra.gmra.mrb[40].mxu1 %v8352_v11  ;;  %2091 = vmatmul.mubr.bf16.vlgmr.msra.gmra.mrb[40].mxu0 %v8352_v11  ;;  %v11675_v13 = vld [vmem:[#allocation24_spill] sm:$0xff] }
 0x18b   :  { %2016 = vmatpush1.bf16.msra.mxu1 %v11657_v36  ;;  %2245 = vmatpush1.bf16.msra.mxu0 %v11658_v54  ;;  %v11666_v54 = vsub.s32 4, %v8297_v19  ;;  %v11668_v36 = vld [vmem:[#allocation110_spill] sm:$0xff]  ;;  %v11680_v1 = vld [vmem:[#allocation136_spill] sm:$0xff] }
 0x18c   :  { %2017 = vmatprep.subr.bf16.mxu1 %v11659_v24  ;;  %2246 = vmatprep.subr.bf16.mxu0 %v11660_v29  ;;  %v11667_v29 = vld [vmem:[#allocation18_spill] sm:$0xff]  ;;  %v11686_v20 = vld [vmem:[#allocation32_spill] sm:$0xff] }
 0x18d   :  { %2047 = vmatprep.mubr.bf16.mxu1 %v11461_v16  ;;  %2276 = vmatprep.mubr.bf16.mxu0 %v11461_v16  ;;  %v8600_v24 = vrot.slane %v8494_v60, %v11666_v54  ;;  %v11674_v54 = vld [vmem:[#allocation112_spill] sm:$0xff] }
 0x18f   :  { %2018 = vmatpush1.bf16.msra.mxu1 %v11661_v10  ;;  %2247 = vmatpush1.bf16.msra.mxu0 %v11662_v25  ;;  %v11670_v10 = vsub.s32 5, %v8297_v19 }
 0x190   :  { %2019 = vmatprep.subr.bf16.mxu1 %v11663_v40  ;;  %2248 = vmatprep.subr.bf16.mxu0 %v11664_v47  ;;  %v11671_v40 = vld [vmem:[#allocation111_spill] sm:$0xff] }
 0x191   :  { %v8608_v25 = vrot.slane %v8494_v60, %v11670_v10 }
 0x193   :  { %2020 = vmatpush1.bf16.msra.mxu1 %v11665_v53  ;;  %2249 = vmatpush1.bf16.msra.mxu0 %v11667_v29  ;;  %v11672_v53 = vld [vmem:[#allocation137_spill] sm:$0xff] }
 0x194   :  { %2021 = vmatprep.subr.bf16.mxu1 %v11668_v36  ;;  %2250 = vmatprep.subr.bf16.mxu0 %v11669_v34  ;;  %v1033_v47 = vadd.f32 %v11672_v53, %v8600_v24  ;;  %v1035_v36 = vadd.f32 %v8325_v39, %v8608_v25  ;;  %v1037_v34 = vadd.f32 %v8336_v3, %v8600_v24  ;;  %v11676_v29 = vld [vmem:[#allocation113_spill] sm:$0xff] }
 0x195   :  { %v1039_v53 = vadd.f32 %v8339_v41, %v8608_v25 }
 0x196   :  { %v1260_v10 = vmax.f32 %v1033_v47, 0.0  ;;  %v1276_v3 = vmax.f32 %v1037_v34, 0.0  ;;  %v11685_v34 = vld [vmem:[#allocation116_spill] sm:$0xff] }
 0x197   :  { %2022 = vmatpush1.bf16.msra.mxu1 %v11671_v40  ;;  %2251 = vmatpush1.bf16.msra.mxu0 %v11673_v4  ;;  %v11678_v40 = vld [vmem:[#allocation114_spill] sm:$0xff] }
 0x198   :  { %2023 = vmatprep.subr.bf16.mxu1 %v11674_v54  ;;  %2252 = vmatprep.subr.bf16.mxu0 %v11675_v13  ;;  %v11679_v54 = vld [vmem:[#allocation28_spill] sm:$0xff]  ;;  %v1261_v13 = vmax.f32 %v1035_v36, 0.0  ;;  %v1324_v41 = vmax.f32 %v1260_v10, 0.0 }
 0x19b   :  { %2024 = vmatpush1.bf16.msra.mxu1 %v11676_v29  ;;  %2253 = vmatpush1.bf16.msra.mxu0 %v11677_v48 }
 0x19c   :  { %2025 = vmatprep.subr.bf16.mxu1 %v11678_v40  ;;  %2254 = vmatprep.subr.bf16.mxu0 %v11679_v54 }
 0x19d   :  { %v1247_v4 = vpop.f32.mrb[16].mxu1  ;;  %v1476_v39 = vpop.f32.mrb[16].mxu0 }
 0x19e   :  { %v8627_v57 = vadd.f32 %v1247_v4, %v11680_v1  ;;  %v1249_v33 = vpop.f32.mrb[17].mxu1  ;;  %v1477_v29 = vadd.f32 %v1476_v39, %v8600_v24  ;;  %v1478_v48 = vpop.f32.mrb[17].mxu0  ;;  %v1277_v39 = vmax.f32 %v1039_v53, 0.0 }
 0x19f   :  { %v8631_v47 = vadd.f32 %v1249_v33, %v8330_v7  ;;  %v1251_v40 = vpop.f32.mrb[18].mxu1  ;;  %2026 = vmatpush1.bf16.msra.mxu1 %v11683_v26  ;;  %v1479_v58 = vadd.f32 %v1478_v48, %v8608_v25  ;;  %v1480_v4 = vpop.f32.mrb[18].mxu0  ;;  %2255 = vmatpush1.bf16.msra.mxu0 %v11577_v55  ;;  %v1325_v48 = vmax.f32 %v1261_v13, 0.0 }
 0x1a0   :  { %11681 = vst [vmem:[#allocation137_spill] sm:$0xff] %v8627_v57  ;;  %v8636_v36 = vadd.f32 %v1251_v40, %v11680_v1  ;;  %v1253_v54 = vpop.f32.mrb[19].mxu1  ;;  %2027 = vmatprep.subr.bf16.mxu1 %v11685_v34  ;;  %v1704_v57 = vmax.f32 %v1477_v29, 0.0  ;;  %v1481_v33 = vadd.f32 %v1480_v4, %v8600_v24  ;;  %v1482_v26 = vpop.f32.mrb[19].mxu0  ;;  %2256 = vmatprep.subr.bf16.mxu0 %v11686_v20  ;;  %v1340_v1 = vmax.f32 %v1276_v3, 0.0  ;;  %v11688_v4 = vld [vmem:[#allocation118_spill] sm:$0xff] }
 0x1a1   :  { %11682 = vst [vmem:[#allocation159_spill] sm:$0xff] %v8631_v47  ;;  %v8642_v47 = vadd.f32 %v1253_v54, %v8330_v7  ;;  %v1705_v42 = vmax.f32 %v1479_v58, 0.0  ;;  %v1483_v40 = vadd.f32 %v1482_v26, %v8608_v25  ;;  %v11687_v54 = vld [vmem:[#allocation34_spill] sm:$0xff]  ;;  %v1341_v26 = vmax.f32 %v1277_v39, 0.0 }
 0x1a2   :  { %11684 = vst [vmem:[#allocation160_spill] sm:$0xff] %v8636_v36  ;;  %v8646_v36 = vadd.f32 %v1704_v57, %v1260_v10  ;;  %v8648_v55 = vmax.f32 %v1324_v41, %v1704_v57  ;;  %v1720_v34 = vmax.f32 %v1481_v33, 0.0  ;;  %v6854_v58 = vld [vmem:[%s11059_s0 + $0x30] sm:$0xff]  ;;  %v6855_v57 = vld [vmem:[%s11059_s0 + $0x38] sm:$0xff] }
 0x1a3   :  { %2028 = vmatpush1.bf16.msra.mxu1 %v8113_v0  ;;  %v8651_v29 = vadd.f32 %v1705_v42, %v1261_v13  ;;  %v8653_v53 = vmax.f32 %v1325_v48, %v1705_v42  ;;  %2257 = vmatpush1.bf16.msra.mxu0 %v11687_v54  ;;  %v1721_v13 = vmax.f32 %v1483_v40, 0.0  ;;  %v11690_v42 = vld [vmem:[#allocation36_spill] sm:$0xff]  ;;  %v11697_v40 = vsub.s32 2, %v8297_v19 }
 0x1a4   :  { %2029 = vmatprep.subr.bf16.mxu1 %v11688_v4  ;;  %v8663_v10 = vadd.f32 %v1720_v34, %v1276_v3  ;;  %v8665_v41 = vmax.f32 %v1340_v1, %v1720_v34  ;;  %2258 = vmatprep.subr.bf16.mxu0 %v11690_v42  ;;  %v8673_v4 = vpack.c.bf16 %v6855_v57, %v6854_v58  ;;  %v11693_v1 = vld [vmem:[#allocation121_spill] sm:$0xff]  ;;  %v11694_v3 = vld [vmem:[#allocation11_spill] sm:$0xff]  ;;  %v11695_v34 = vld [vmem:[#allocation122_spill] sm:$0xff]  ;;  %v11699_v57 = vsub.s32 3, %v8297_v19 }
 0x1a5   :  { %v8668_v33 = vadd.f32 %v1721_v13, %v1277_v39  ;;  %v8670_v48 = vmax.f32 %v1341_v26, %v1721_v13  ;;  %v11696_v39 = vld [vmem:[#allocation13_spill] sm:$0xff]  ;;  %v8692_v58 = vrot.slane %v8494_v60, %v11697_v40  ;;  %v8702_v13 = vrot.slane %v8305_v37, %v8487_v62  ;;  %v11702_v40 = vld [vmem:[#allocation126_spill] sm:$0xff] }
 0x1a6   :  { %11689 = vst [vmem:[#allocation32_spill] sm:$0xff] %v8665_v41  ;;  %v8697_v26 = vrot.slane %v8494_v60, %v11699_v57 }
 0x1a7   :  { %11691 = vst [vmem:[#allocation161_spill] sm:$0xff] %v8668_v33  ;;  %11692 = vst [vmem:[#allocation162_spill] sm:$0xff] %v8670_v48  ;;  %2030 = vmatpush1.bf16.msra.mxu1 %v8127_v21  ;;  %2259 = vmatpush1.bf16.msra.mxu0 %v7843_v5  ;;  %v990_v57 = vadd.f32 %v8380_v9, %v8692_v58  ;;  %v994_v62 = vadd.f32 %v8387_v15, %v8692_v58  ;;  %v11705_v9 = vld [vmem:[#allocation128_spill] sm:$0xff] }
 0x1a8   :  { %2101 = vmatprep.subr.bf16.mxu1 %v8131_v2  ;;  %2330 = vmatprep.subr.bf16.mxu0 %v11581_v43  ;;  %11698 = vst [vmem:[#allocation163_spill] sm:$0xff] %v8692_v58  ;;  %11700 = vst [vmem:[#allocation164_spill] sm:$0xff] %v8697_v26  ;;  %v11709_v2 = vld [vmem:[#allocation132_spill] sm:$0xff] }
 0x1a9   :  { %v1274_v15 = vmax.f32 %v994_v62, 0.0 }
 0x1aa   :  { %2048 = vmatmul.mubr.bf16.vlgmr.msra.gmra.mrb[44].mxu1 %v8352_v11  ;;  %2277 = vmatmul.mubr.bf16.vlgmr.msra.gmra.mrb[44].mxu0 %v8673_v4 }
 0x1ab   :  { %2102 = vmatpush1.bf16.msra.mxu1 %v11693_v1  ;;  %2331 = vmatpush1.bf16.msra.mxu0 %v11694_v3 }
 0x1ac   :  { %2103 = vmatprep.subr.bf16.mxu1 %v11695_v34  ;;  %2332 = vmatprep.subr.bf16.mxu0 %v11696_v39 }
 0x1ad   :  { %2133 = vmatprep.mubr.bf16.mxu1 %v11461_v16  ;;  %2362 = vmatprep.mubr.bf16.mxu0 %v11461_v16 }
 0x1af   :  { %2104 = vmatpush1.bf16.msra.mxu1 %v8147_v63  ;;  %2333 = vmatpush1.bf16.msra.mxu0 %v11584_v27  ;;  %v8706_v27 = vrot.slane %v8305_v37, %v8498_v51  ;;  %v11703_v63 = vld [vmem:[#allocation21_spill] sm:$0xff]  ;;  %v1119_v37 = vadd.f32 %v8385_v30, %v8702_v13  ;;  %v1123_v30 = vadd.f32 %v8396_v35, %v8702_v13 }
 0x1b0   :  { %2105 = vmatprep.subr.bf16.mxu1 %v11585_v49  ;;  %2334 = vmatprep.subr.bf16.mxu0 %v7780_v22  ;;  %v11701_v49 = vld [vmem:[#allocation125_spill] sm:$0xff]  ;;  %v992_v22 = vadd.f32 %v8383_v8, %v8697_v26  ;;  %v1258_v8 = vmax.f32 %v990_v57, 0.0  ;;  %v11707_v57 = vld [vmem:[#allocation130_spill] sm:$0xff] }
 0x1b1   :  { %v1121_v51 = vadd.f32 %v8390_v6, %v8706_v27 }
 0x1b3   :  { %2106 = vmatpush1.bf16.msra.mxu1 %v11701_v49  ;;  %2335 = vmatpush1.bf16.msra.mxu0 %v11586_v45  ;;  %v11704_v45 = vld [vmem:[#allocation127_spill] sm:$0xff]  ;;  %v1264_v49 = vmax.f32 %v1119_v37, 0.0  ;;  %v1265_v6 = vmax.f32 %v1121_v51, 0.0  ;;  %v11708_v37 = vld [vmem:[#allocation29_spill] sm:$0xff]  ;;  %v1280_v51 = vmax.f32 %v1123_v30, 0.0 }
 0x1b4   :  { %2107 = vmatprep.subr.bf16.mxu1 %v11702_v40  ;;  %2336 = vmatprep.subr.bf16.mxu0 %v11703_v63  ;;  %v8725_v40 = vadd.f32 %v8393_v17, %v8697_v26  ;;  %v1259_v63 = vmax.f32 %v992_v22, 0.0  ;;  %v11706_v17 = vld [vmem:[#allocation129_spill] sm:$0xff]  ;;  %v1322_v22 = vmax.f32 %v1258_v8, 0.0 }
 0x1b5   :  { %v1328_v35 = vmax.f32 %v1264_v49, 0.0  ;;  %v1329_v3 = vmax.f32 %v1265_v6, 0.0 }
 0x1b7   :  { %2108 = vmatpush1.bf16.msra.mxu1 %v11704_v45  ;;  %2337 = vmatpush1.bf16.msra.mxu0 %v11588_v61  ;;  %v8734_v45 = vadd.f32 %v8399_v46, %v8706_v27  ;;  %v1275_v61 = vmax.f32 %v8725_v40, 0.0 }
 0x1b8   :  { %2109 = vmatprep.subr.bf16.mxu1 %v11705_v9  ;;  %2338 = vmatprep.subr.bf16.mxu0 %v7804_v38  ;;  %v1323_v38 = vmax.f32 %v1259_v63, 0.0  ;;  %v1338_v9 = vmax.f32 %v1274_v15, 0.0 }
 0x1b9   :  { %v1339_v48 = vmax.f32 %v1275_v61, 0.0 }
 0x1bb   :  { %2110 = vmatpush1.bf16.msra.mxu1 %v11706_v17  ;;  %2339 = vmatpush1.bf16.msra.mxu0 %v7811_v44  ;;  %v1281_v17 = vmax.f32 %v8734_v45, 0.0 }
 0x1bc   :  { %2111 = vmatprep.subr.bf16.mxu1 %v11707_v57  ;;  %2340 = vmatprep.subr.bf16.mxu0 %v11708_v37 }
 0x1bd   :  { %v1433_v62 = vpop.f32.mrb[20].mxu1  ;;  %v1562_v46 = vpop.f32.mrb[20].mxu0 }
 0x1be   :  { %v1434_v39 = vadd.f32 %v1433_v62, %v8692_v58  ;;  %v1435_v34 = vpop.f32.mrb[21].mxu1  ;;  %v1563_v40 = vadd.f32 %v1562_v46, %v8702_v13  ;;  %v1564_v57 = vpop.f32.mrb[21].mxu0 }
 0x1bf   :  { %v1436_v44 = vadd.f32 %v1435_v34, %v8697_v26  ;;  %v1437_v1 = vpop.f32.mrb[22].mxu1  ;;  %2112 = vmatpush1.bf16.msra.mxu1 %v8181_v28  ;;  %v1565_v33 = vadd.f32 %v1564_v57, %v8706_v27  ;;  %v1566_v62 = vpop.f32.mrb[22].mxu0  ;;  %2341 = vmatpush1.bf16.msra.mxu0 %v7823_v52  ;;  %v11710_v28 = vld [vmem:[#allocation33_spill] sm:$0xff] }
 0x1c0   :  { %v1702_v37 = vmax.f32 %v1434_v39, 0.0  ;;  %v1438_v30 = vadd.f32 %v1437_v1, %v8692_v58  ;;  %v1439_v43 = vpop.f32.mrb[23].mxu1  ;;  %2113 = vmatprep.subr.bf16.mxu1 %v11709_v2  ;;  %v1708_v45 = vmax.f32 %v1563_v40, 0.0  ;;  %v1567_v34 = vadd.f32 %v1566_v62, %v8702_v13  ;;  %v1568_v21 = vpop.f32.mrb[23].mxu0  ;;  %2342 = vmatprep.subr.bf16.mxu0 %v11710_v28  ;;  %v11717_v40 = vld [vmem:[#allocation133_spill] sm:$0xff] }
 0x1c1   :  { %v1703_v46 = vmax.f32 %v1436_v44, 0.0  ;;  %v1440_v5 = vadd.f32 %v1439_v43, %v8697_v26  ;;  %v1709_v1 = vmax.f32 %v1565_v33, 0.0  ;;  %v11722_v33 = vld [vmem:[#allocation35_spill] sm:$0xff] }
 0x1c2   :  { %v8753_v39 = vadd.f32 %v1702_v37, %v1258_v8  ;;  %v8755_v57 = vmax.f32 %v1322_v22, %v1702_v37  ;;  %v1718_v58 = vmax.f32 %v1438_v30, 0.0  ;;  %v8757_v41 = vadd.f32 %v1708_v45, %v1264_v49  ;;  %v11723_v30 = vld [vmem:[#allocation134_spill] sm:$0xff] }
 0x1c3   :  { %v8759_v52 = vmax.f32 %v1328_v35, %v1708_v45  ;;  %v8761_v2 = vadd.f32 %v1703_v46, %v1259_v63  ;;  %v8763_v44 = vmax.f32 %v1323_v38, %v1703_v46  ;;  %2114 = vmatpush1.bf16.msra.mxu1 %v11717_v40  ;;  %v8766_v43 = vadd.f32 %v1709_v1, %v1265_v6  ;;  %v11724_v38 = vld [vmem:[#allocation37_spill] sm:$0xff] }
 0x1c4   :  { %11711 = vst [vmem:[#allocation165_spill] sm:$0xff] %v8753_v39  ;;  %11712 = vst [vmem:[#allocation166_spill] sm:$0xff] %v8755_v57  ;;  %v8768_v62 = vmax.f32 %v1329_v3, %v1709_v1  ;;  %v8770_v8 = vadd.f32 %v1718_v58, %v1274_v15  ;;  %v8772_v22 = vmax.f32 %v1338_v9, %v1718_v58  ;;  %2343 = vmatpush1.bf16.msra.mxu0 %v11722_v33  ;;  %v11729_v58 = vld [vmem:[#allocation135_spill] sm:$0xff] }
 0x1c5   :  { %11713 = vst [vmem:[#allocation167_spill] sm:$0xff] %v8757_v41  ;;  %11714 = vst [vmem:[#allocation168_spill] sm:$0xff] %v8759_v52  ;;  %v1344_v49 = vmax.f32 %v1280_v51, 0.0  ;;  %v1724_v37 = vmax.f32 %v1567_v34, 0.0  ;;  %v1719_v35 = vmax.f32 %v1440_v5, 0.0  ;;  %v1569_v63 = vadd.f32 %v1568_v21, %v8706_v27  ;;  %2115 = vmatprep.subr.bf16.mxu1 %v11723_v30  ;;  %2344 = vmatprep.subr.bf16.mxu0 %v11724_v38  ;;  %v11730_v34 = vld [vmem:[#allocation39_spill] sm:$0xff] }
 0x1c6   :  { %11715 = vst [vmem:[#allocation169_spill] sm:$0xff] %v8761_v2  ;;  %11716 = vst [vmem:[#allocation170_spill] sm:$0xff] %v8763_v44  ;;  %v1345_v9 = vmax.f32 %v1281_v17, 0.0  ;;  %v11731_v5 = vld [vmem:[#allocation40_spill] sm:$0xff]  ;;  %v11732_v21 = vld [vmem:[#allocation41_spill] sm:$0xff] }
 0x1c7   :  { %11718 = vst [vmem:[#allocation171_spill] sm:$0xff] %v8766_v43  ;;  %11719 = vst [vmem:[#allocation172_spill] sm:$0xff] %v8768_v62  ;;  %v8778_v45 = vadd.f32 %v1724_v37, %v1280_v51  ;;  %v8780_v6 = vmax.f32 %v1344_v49, %v1724_v37  ;;  %v8782_v3 = vadd.f32 %v1719_v35, %v1275_v61  ;;  %2116 = vmatpush1.bf16.msra.mxu1 %v11729_v58  ;;  %v11735_v61 = vld [vmem:[#allocation42_spill] sm:$0xff]  ;;  %v11737_v49 = vld [vmem:[#allocation44_spill] sm:$0xff] }
 0x1c8   :  { %11720 = vst [vmem:[#allocation173_spill] sm:$0xff] %v8770_v8  ;;  %11721 = vst [vmem:[#allocation174_spill] sm:$0xff] %v8772_v22  ;;  %v8784_v15 = vmax.f32 %v1339_v48, %v1719_v35  ;;  %v1725_v46 = vmax.f32 %v1569_v63, 0.0  ;;  %2345 = vmatpush1.bf16.msra.mxu0 %v11730_v34  ;;  %2287 = vmatprep.subr.bf16.mxu1 %v11731_v5  ;;  %v11736_v48 = vld [vmem:[#allocation43_spill] sm:$0xff]  ;;  %v11738_v37 = vld [vmem:[#allocation45_spill] sm:$0xff] }
 0x1c9   :  { %11725 = vst [vmem:[#allocation175_spill] sm:$0xff] %v8778_v45  ;;  %11726 = vst [vmem:[#allocation176_spill] sm:$0xff] %v8780_v6  ;;  %2416 = vmatprep.subr.bf16.mxu0 %v11732_v21  ;;  %v11740_v35 = vld [vmem:[#allocation47_spill] sm:$0xff]  ;;  %v11741_v63 = vld [vmem:[#allocation48_spill] sm:$0xff] }
 0x1ca   :  { %11727 = vst [vmem:[#allocation177_spill] sm:$0xff] %v8782_v3  ;;  %11728 = vst [vmem:[#allocation178_spill] sm:$0xff] %v8784_v15  ;;  %v8790_v1 = vadd.f32 %v1725_v46, %v1281_v17  ;;  %v8792_v51 = vmax.f32 %v1345_v9, %v1725_v46  ;;  %2134 = vmatmul.mubr.bf16.vlgmr.msra.gmra.mrb[48].mxu1 %v8352_v11  ;;  %v11739_v17 = vld [vmem:[#allocation46_spill] sm:$0xff]  ;;  %v11742_v11 = vsub.s32 6, %v8297_v19  ;;  %v11744_v46 = vsub.s32 7, %v8297_v19  ;;  %v11752_v19 = vld [vmem:[#allocation143_spill] sm:$0xff] }
 0x1cb   :  { %2363 = vmatmul.mubr.bf16.vlgmr.msra.gmra.mrb[48].mxu0 %v8673_v4  ;;  %2288 = vmatpush1.bf16.msra.mxu1 %v11735_v61  ;;  %v11747_v61 = vld [vmem:[#allocation51_spill] sm:$0xff]  ;;  %v11757_v5 = vld [vmem:[#allocation57_spill] sm:$0xff]  ;;  %v11758_v34 = vld [vmem:[#allocation144_spill] sm:$0xff] }
 0x1cc   :  { %11733 = vst [vmem:[#allocation179_spill] sm:$0xff] %v8790_v1  ;;  %11734 = vst [vmem:[#allocation180_spill] sm:$0xff] %v8792_v51  ;;  %2417 = vmatpush1.bf16.msra.mxu0 %v11736_v48  ;;  %2289 = vmatprep.subr.bf16.mxu1 %v11737_v49  ;;  %v8808_v9 = vrot.slane %v8494_v60, %v11742_v11  ;;  %v8813_v49 = vrot.slane %v8494_v60, %v11744_v46  ;;  %v11746_v48 = vld [vmem:[#allocation50_spill] sm:$0xff]  ;;  %v11751_v1 = vld [vmem:[#allocation53_spill] sm:$0xff] }
 0x1cd   :  { %2418 = vmatprep.subr.bf16.mxu0 %v11738_v37  ;;  %2319 = vmatprep.mubr.bf16.mxu1 %v11461_v16  ;;  %v11745_v37 = vld [vmem:[#allocation49_spill] sm:$0xff]  ;;  %v11750_v51 = vld [vmem:[#allocation142_spill] sm:$0xff]  ;;  %v11761_v3 = vld [vmem:[#allocation59_spill] sm:$0xff] }
 0x1ce   :  { %2448 = vmatprep.mubr.bf16.mxu0 %v11461_v16  ;;  %11743 = vst [vmem:[#allocation181_spill] sm:$0xff] %v8808_v9  ;;  %v1078_v11 = vadd.f32 %v11750_v51, %v8813_v49  ;;  %v1080_v60 = vadd.f32 %v11752_v19, %v8808_v9  ;;  %v11753_v46 = vld [vmem:[#allocation54_spill] sm:$0xff]  ;;  %v11764_v38 = vld [vmem:[#allocation147_spill] sm:$0xff]  ;;  %v11767_v43 = vld [vmem:[#allocation140_spill] sm:$0xff] }
 0x1cf   :  { %2290 = vmatpush1.bf16.msra.mxu1 %v11739_v17  ;;  %v11748_v17 = vld [vmem:[#allocation52_spill] sm:$0xff]  ;;  %v11759_v58 = vld [vmem:[#allocation146_spill] sm:$0xff]  ;;  %v11765_v30 = vld [vmem:[#allocation139_spill] sm:$0xff] }
 0x1d0   :  { %2419 = vmatpush1.bf16.msra.mxu0 %v11740_v35  ;;  %2291 = vmatprep.subr.bf16.mxu1 %v11741_v63  ;;  %v11749_v63 = vld [vmem:[#allocation141_spill] sm:$0xff]  ;;  %v1278_v51 = vmax.f32 %v1080_v60, 0.0  ;;  %v1269_v15 = vmax.f32 %v11759_v58, 0.0  ;;  %v11760_v19 = vld [vmem:[#allocation58_spill] sm:$0xff]  ;;  %v1284_v60 = vmax.f32 %v8464_v23, 0.0  ;;  %v11768_v44 = vld [vmem:[#allocation63_spill] sm:$0xff] }
 0x1d1   :  { %2420 = vmatprep.subr.bf16.mxu0 %v11745_v37  ;;  %v1076_v35 = vadd.f32 %v11749_v63, %v8808_v9  ;;  %v11754_v37 = vld [vmem:[#allocation145_spill] sm:$0xff]  ;;  %v1263_v63 = vmax.f32 %v1078_v11, 0.0  ;;  %v11766_v8 = vld [vmem:[#allocation62_spill] sm:$0xff]  ;;  %v11769_v52 = vld [vmem:[#allocation64_spill] sm:$0xff] }
 0x1d2   :  { %v1342_v11 = vmax.f32 %v1278_v51, 0.0 }
 0x1d3   :  { %2292 = vmatpush1.bf16.msra.mxu1 %v11746_v48  ;;  %v8829_v48 = vadd.f32 %v11754_v37, %v8813_v49  ;;  %v1262_v21 = vmax.f32 %v1076_v35, 0.0  ;;  %v11762_v37 = vld [vmem:[#allocation60_spill] sm:$0xff]  ;;  %v1327_v6 = vmax.f32 %v1263_v63, 0.0  ;;  %v11763_v35 = vld [vmem:[#allocation61_spill] sm:$0xff] }
 0x1d4   :  { %2421 = vmatpush1.bf16.msra.mxu0 %v11747_v61  ;;  %2293 = vmatprep.subr.bf16.mxu1 %v11748_v17  ;;  %v11755_v61 = vld [vmem:[#allocation55_spill] sm:$0xff]  ;;  %v11756_v17 = vld [vmem:[#allocation56_spill] sm:$0xff] }
 0x1d5   :  { %2422 = vmatprep.subr.bf16.mxu0 %v11751_v1  ;;  %v1268_v1 = vmax.f32 %v11758_v34, 0.0 }
 0x1d7   :  { %2294 = vmatpush1.bf16.msra.mxu1 %v11753_v46  ;;  %v1279_v46 = vmax.f32 %v8829_v48, 0.0  ;;  %v1285_v48 = vmax.f32 %v11764_v38, 0.0 }
 0x1d8   :  { %2423 = vmatpush1.bf16.msra.mxu0 %v11755_v61  ;;  %2295 = vmatprep.subr.bf16.mxu1 %v11756_v17  ;;  %v1326_v61 = vmax.f32 %v1262_v21, 0.0 }
 0x1d9   :  { %2424 = vmatprep.subr.bf16.mxu0 %v11757_v5  ;;  %v1332_v5 = vmax.f32 %v1268_v1, 0.0 }
 0x1db   :  { %2296 = vmatpush1.bf16.msra.mxu1 %v11760_v19  ;;  %v1333_v19 = vmax.f32 %v1269_v15, 0.0 }
 0x1dc   :  { %2425 = vmatpush1.bf16.msra.mxu0 %v11761_v3  ;;  %2297 = vmatprep.subr.bf16.mxu1 %v11762_v37 }
 0x1dd   :  { %v1519_v17 = vpop.f32.mrb[24].mxu1  ;;  %2426 = vmatprep.subr.bf16.mxu0 %v11763_v35  ;;  %v1648_v58 = vpop.f32.mrb[24].mxu0  ;;  %v1343_v35 = vmax.f32 %v1279_v46, 0.0 }
 0x1de   :  { %v1520_v34 = vadd.f32 %v1519_v17, %v8808_v9  ;;  %v1521_v45 = vpop.f32.mrb[25].mxu1  ;;  %v1649_v3 = vadd.f32 %v1648_v58, %v11765_v30  ;;  %v1650_v33 = vpop.f32.mrb[25].mxu0 }
 0x1df   :  { %v1522_v37 = vadd.f32 %v1521_v45, %v8813_v49  ;;  %v1523_v22 = vpop.f32.mrb[26].mxu1  ;;  %2298 = vmatpush1.bf16.msra.mxu1 %v11766_v8  ;;  %v1651_v40 = vadd.f32 %v1650_v33, %v11767_v43  ;;  %v1652_v17 = vpop.f32.mrb[26].mxu0  ;;  %v11770_v8 = vld [vmem:[#allocation65_spill] sm:$0xff] }
 0x1e0   :  { %v1706_v62 = vmax.f32 %v1520_v34, 0.0  ;;  %v1524_v23 = vadd.f32 %v1523_v22, %v8808_v9  ;;  %2427 = vmatpush1.bf16.msra.mxu0 %v11768_v44  ;;  %v1525_v2 = vpop.f32.mrb[27].mxu1  ;;  %2299 = vmatprep.subr.bf16.mxu1 %v11769_v52  ;;  %v1712_v38 = vmax.f32 %v1649_v3, 0.0  ;;  %v1653_v45 = vadd.f32 %v1652_v17, %v11765_v30  ;;  %v1654_v57 = vpop.f32.mrb[27].mxu0 }
 0x1e1   :  { %v1707_v58 = vmax.f32 %v1522_v37, 0.0  ;;  %v1526_v41 = vadd.f32 %v1525_v2, %v8813_v49  ;;  %2428 = vmatprep.subr.bf16.mxu0 %v11770_v8  ;;  %v1713_v22 = vmax.f32 %v1651_v40, 0.0  ;;  %v11771_v37 = vld [vmem:[#allocation66_spill] sm:$0xff]  ;;  %v11776_v40 = vld [vmem:[#allocation67_spill] sm:$0xff] }
 0x1e2   :  { %v8854_v34 = vadd.f32 %v1706_v62, %v1262_v21  ;;  %v8856_v33 = vmax.f32 %v1326_v61, %v1706_v62  ;;  %v1722_v9 = vmax.f32 %v1524_v23, 0.0  ;;  %v8858_v39 = vadd.f32 %v1712_v38, %v1268_v1  ;;  %v11777_v23 = vld [vmem:[#allocation68_spill] sm:$0xff] }
 0x1e3   :  { %v8860_v44 = vmax.f32 %v1332_v5, %v1712_v38  ;;  %v8862_v52 = vadd.f32 %v1707_v58, %v1263_v63  ;;  %v8864_v3 = vmax.f32 %v1327_v6, %v1707_v58  ;;  %2300 = vmatpush1.bf16.msra.mxu1 %v11771_v37  ;;  %v8867_v2 = vadd.f32 %v1713_v22, %v1269_v15  ;;  %v11778_v6 = vld [vmem:[#allocation69_spill] sm:$0xff] }
 0x1e4   :  { %v8869_v17 = vmax.f32 %v1333_v19, %v1713_v22  ;;  %v8871_v21 = vadd.f32 %v1722_v9, %v1278_v51  ;;  %v8873_v62 = vmax.f32 %v1342_v11, %v1722_v9  ;;  %2429 = vmatpush1.bf16.msra.mxu0 %v11776_v40  ;;  %v1348_v1 = vmax.f32 %v1284_v60, 0.0  ;;  %2301 = vmatprep.subr.bf16.mxu1 %v11777_v23  ;;  %v11783_v9 = vld [vmem:[#allocation70_spill] sm:$0xff]  ;;  %v11815_v40 = vld [vmem:[#allocation95_spill] sm:$0xff]  ;;  %v11817_v37 = vld [vmem:[#allocation97_spill] sm:$0xff] }
 0x1e5   :  { %11772 = vst [vmem:[#allocation141_spill] sm:$0xff] %v8867_v2  ;;  %v1728_v61 = vmax.f32 %v1653_v45, 0.0  ;;  %v1723_v5 = vmax.f32 %v1526_v41, 0.0  ;;  %v1655_v63 = vadd.f32 %v1654_v57, %v11767_v43  ;;  %2430 = vmatprep.subr.bf16.mxu0 %v11778_v6  ;;  %v1349_v11 = vmax.f32 %v1285_v48, 0.0  ;;  %v11784_v45 = vld [vmem:[#allocation71_spill] sm:$0xff]  ;;  %v11785_v41 = vld [vmem:[#allocation72_spill] sm:$0xff] }
 0x1e6   :  { %11773 = vst [vmem:[#allocation142_spill] sm:$0xff] %v8869_v17  ;;  %11774 = vst [vmem:[#allocation143_spill] sm:$0xff] %v8871_v21  ;;  %v11786_v57 = vld [vmem:[#allocation73_spill] sm:$0xff]  ;;  %v11816_v21 = vld [vmem:[#allocation96_spill] sm:$0xff] }
 0x1e7   :  { %11775 = vst [vmem:[#allocation145_spill] sm:$0xff] %v8873_v62  ;;  %v8879_v38 = vadd.f32 %v1728_v61, %v1284_v60  ;;  %v8881_v15 = vmax.f32 %v1348_v1, %v1728_v61  ;;  %v8883_v19 = vadd.f32 %v1723_v5, %v1279_v46  ;;  %v8885_v51 = vmax.f32 %v1343_v35, %v1723_v5  ;;  %v11789_v46 = vld [vmem:[#allocation74_spill] sm:$0xff]  ;;  %v11790_v35 = vld [vmem:[#allocation75_spill] sm:$0xff]  ;;  %v11791_v1 = vld [vmem:[#allocation76_spill] sm:$0xff] }
 0x1e8   :  { %2302 = vmatpush1.bf16.msra.mxu1 %v11783_v9  ;;  %v1729_v58 = vmax.f32 %v1655_v63, 0.0  ;;  %2431 = vmatpush1.bf16.msra.mxu0 %v11784_v45  ;;  %v11792_v61 = vld [vmem:[#allocation77_spill] sm:$0xff]  ;;  %v11794_v5 = vld [vmem:[#allocation79_spill] sm:$0xff]  ;;  %v11795_v63 = vld [vmem:[#allocation80_spill] sm:$0xff] }
 0x1e9   :  { %11779 = vst [vmem:[#allocation144_spill] sm:$0xff] %v8879_v38  ;;  %11780 = vst [vmem:[#allocation146_spill] sm:$0xff] %v8881_v15  ;;  %2373 = vmatprep.subr.bf16.mxu1 %v11785_v41  ;;  %2502 = vmatprep.subr.bf16.mxu0 %v11786_v57  ;;  %v11806_v57 = vld [vmem:[#allocation152_spill] sm:$0xff]  ;;  %v11807_v41 = vld [vmem:[#allocation153_spill] sm:$0xff] }
 0x1ea   :  { %11781 = vst [vmem:[#allocation147_spill] sm:$0xff] %v8883_v19  ;;  %11782 = vst [vmem:[#allocation139_spill] sm:$0xff] %v8885_v51  ;;  %v8891_v22 = vadd.f32 %v1729_v58, %v1285_v48  ;;  %v8893_v60 = vmax.f32 %v1349_v11, %v1729_v58  ;;  %v11793_v48 = vld [vmem:[#allocation78_spill] sm:$0xff]  ;;  %v11796_v11 = vld [vmem:[#allocation81_spill] sm:$0xff] }
 0x1eb   :  { %2320 = vmatmul.mubr.bf16.vlgmr.msra.gmra.mrb[52].mxu1 %v8673_v4  ;;  %2449 = vmatmul.mubr.bf16.vlgmr.msra.gmra.mrb[52].mxu0 %v8673_v4  ;;  %v11797_v58 = vld [vmem:[#allocation82_spill] sm:$0xff] }
 0x1ec   :  { %11787 = vst [vmem:[#allocation140_spill] sm:$0xff] %v8891_v22  ;;  %11788 = vst [vmem:[#allocation182_spill] sm:$0xff] %v8893_v60  ;;  %2374 = vmatpush1.bf16.msra.mxu1 %v11789_v46  ;;  %2503 = vmatpush1.bf16.msra.mxu0 %v11790_v35  ;;  %v11798_v46 = vld [vmem:[#allocation83_spill] sm:$0xff]  ;;  %v11799_v35 = vld [vmem:[#allocation84_spill] sm:$0xff] }
 0x1ed   :  { %2375 = vmatprep.subr.bf16.mxu1 %v11791_v1  ;;  %2504 = vmatprep.subr.bf16.mxu0 %v11792_v61  ;;  %v11800_v1 = vld [vmem:[#allocation85_spill] sm:$0xff]  ;;  %v11801_v61 = vld [vmem:[#allocation86_spill] sm:$0xff]  ;;  %v11802_v60 = vld [vmem:[#allocation87_spill] sm:$0xff] }
 0x1ee   :  { %2405 = vmatprep.mubr.bf16.mxu1 %v11461_v16  ;;  %2534 = vmatprep.mubr.bf16.mxu0 %v11461_v16  ;;  %v11803_v22 = vld [vmem:[#allocation88_spill] sm:$0xff]  ;;  %v11808_v45 = vld [vmem:[#allocation90_spill] sm:$0xff] }
 0x1ef   :  { %v11812_v9 = vld [vmem:[#allocation150_spill] sm:$0xff] }
 0x1f0   :  { %2376 = vmatpush1.bf16.msra.mxu1 %v11793_v48  ;;  %2505 = vmatpush1.bf16.msra.mxu0 %v11794_v5  ;;  %v11804_v48 = vld [vmem:[#allocation89_spill] sm:$0xff]  ;;  %v11805_v5 = vld [vmem:[#allocation151_spill] sm:$0xff]  ;;  %v11813_v38 = vld [vmem:[#allocation94_spill] sm:$0xff] }
 0x1f1   :  { %2377 = vmatprep.subr.bf16.mxu1 %v11795_v63  ;;  %2506 = vmatprep.subr.bf16.mxu0 %v11796_v11  ;;  %v1266_v63 = vmax.f32 %v11805_v5, 0.0  ;;  %v1267_v11 = vmax.f32 %v11806_v57, 0.0 }
 0x1f3   :  { %v1331_v19 = vmax.f32 %v1267_v11, 0.0 }
 0x1f4   :  { %2378 = vmatpush1.bf16.msra.mxu1 %v11797_v58  ;;  %2507 = vmatpush1.bf16.msra.mxu0 %v11798_v46  ;;  %v1282_v58 = vmax.f32 %v11807_v41, 0.0  ;;  %v11809_v46 = vld [vmem:[#allocation91_spill] sm:$0xff] }
 0x1f5   :  { %2379 = vmatprep.subr.bf16.mxu1 %v11799_v35  ;;  %2508 = vmatprep.subr.bf16.mxu0 %v11800_v1  ;;  %v11810_v35 = vld [vmem:[#allocation92_spill] sm:$0xff] }
 0x1f6   :  { %v1346_v5 = vmax.f32 %v1282_v58, 0.0 }
 0x1f8   :  { %2380 = vmatpush1.bf16.msra.mxu1 %v11801_v61  ;;  %2509 = vmatpush1.bf16.msra.mxu0 %v11802_v60  ;;  %v11811_v61 = vld [vmem:[#allocation93_spill] sm:$0xff]  ;;  %v1330_v60 = vmax.f32 %v1266_v63, 0.0 }
 0x1f9   :  { %2381 = vmatprep.subr.bf16.mxu1 %v11803_v22  ;;  %2510 = vmatprep.subr.bf16.mxu0 %v11804_v48 }
 0x1fc   :  { %2382 = vmatpush1.bf16.msra.mxu1 %v11808_v45  ;;  %2511 = vmatpush1.bf16.msra.mxu0 %v11809_v46  ;;  %v11814_v46 = vld [vmem:[#allocation154_spill] sm:$0xff] }
 0x1fd   :  { %2383 = vmatprep.subr.bf16.mxu1 %v11810_v35  ;;  %v1605_v1 = vpop.f32.mrb[28].mxu1  ;;  %2512 = vmatprep.subr.bf16.mxu0 %v11811_v61  ;;  %v1834_v51 = vpop.f32.mrb[28].mxu0  ;;  %v1283_v35 = vmax.f32 %v11814_v46, 0.0 }
 0x1fe   :  { %v1606_v22 = vadd.f32 %v1605_v1, %v11812_v9  ;;  %v1607_v48 = vpop.f32.mrb[29].mxu1  ;;  %v1835_v57 = vadd.f32 %v1834_v51, %v8503_v12  ;;  %v1836_v15 = vpop.f32.mrb[29].mxu0 }
 0x1ff   :  { %v1608_v41 = vadd.f32 %v1607_v48, %v8533_v59  ;;  %v1609_v45 = vpop.f32.mrb[30].mxu1  ;;  %v1837_v61 = vadd.f32 %v1836_v15, %v8510_v18  ;;  %v1838_v1 = vpop.f32.mrb[30].mxu0 }
 0x200   :  { %2384 = vmatpush1.bf16.msra.mxu1 %v11813_v38  ;;  %v1710_v6 = vmax.f32 %v1606_v22, 0.0  ;;  %v1610_v23 = vadd.f32 %v1609_v45, %v11812_v9  ;;  %2513 = vmatpush1.bf16.msra.mxu0 %v11815_v40  ;;  %v1611_v62 = vpop.f32.mrb[31].mxu1  ;;  %v2144_v51 = vmax.f32 %v1835_v57, 0.0  ;;  %v1839_v48 = vadd.f32 %v1838_v1, %v8503_v12  ;;  %v1840_v38 = vpop.f32.mrb[31].mxu0 }
 0x201   :  { %2385 = vmatprep.subr.bf16.mxu1 %v11816_v21  ;;  %v1711_v17 = vmax.f32 %v1608_v41, 0.0  ;;  %v1612_v2 = vadd.f32 %v1611_v62, %v8533_v59  ;;  %2514 = vmatprep.subr.bf16.mxu0 %v11817_v37  ;;  %v2145_v45 = vmax.f32 %v1837_v61, 0.0 }
 0x202   :  { %v8934_v22 = vadd.f32 %v1710_v6, %v1266_v63  ;;  %v8936_v15 = vmax.f32 %v1330_v60, %v1710_v6  ;;  %v1726_v46 = vmax.f32 %v1610_v23, 0.0  ;;  %v8939_v40 = vadd.f32 %v2144_v51, %v8560_v31  ;;  %v11823_v31 = vld [vmem:[#allocation99_spill] sm:$0xff] }
 0x203   :  { %v8942_v21 = vmax.f32 %v8562_v32, %v2144_v51  ;;  %v8944_v57 = vadd.f32 %v1711_v17, %v1267_v11  ;;  %v8946_v41 = vmax.f32 %v1331_v19, %v1711_v17  ;;  %v8950_v62 = vadd.f32 %v2145_v45, %v8565_v50  ;;  %v11824_v19 = vld [vmem:[#allocation100_spill] sm:$0xff]  ;;  %v11825_v11 = vld [vmem:[#allocation101_spill] sm:$0xff]  ;;  %v11826_v50 = vld [vmem:[#allocation155_spill] sm:$0xff] }
 0x204   :  { %2386 = vmatpush1.bf16.msra.mxu1 %v11648_v56  ;;  %v8953_v6 = vmax.f32 %v8567_v14, %v2145_v45  ;;  %v8955_v60 = vadd.f32 %v1726_v46, %v1282_v58  ;;  %v8957_v23 = vmax.f32 %v1346_v5, %v1726_v46  ;;  %2515 = vmatpush1.bf16.msra.mxu0 %v11823_v31  ;;  %v1347_v32 = vmax.f32 %v1283_v35, 0.0  ;;  %v11828_v14 = vld [vmem:[#allocation156_spill] sm:$0xff]  ;;  %v11832_v45 = vld [vmem:[#allocation102_spill] sm:$0xff]  ;;  %v11864_v31 = vld [vmem:[#allocation115_spill] sm:$0xff] }
 0x205   :  { %11818 = vst [vmem:[#allocation151_spill] sm:$0xff] %v8946_v41  ;;  %11819 = vst [vmem:[#allocation152_spill] sm:$0xff] %v8950_v62  ;;  %v2160_v61 = vmax.f32 %v1839_v48, 0.0  ;;  %v1727_v63 = vmax.f32 %v1612_v2, 0.0  ;;  %v1841_v17 = vadd.f32 %v1840_v38, %v8510_v18  ;;  %2387 = vmatprep.subr.bf16.mxu1 %v11824_v19  ;;  %2516 = vmatprep.subr.bf16.mxu0 %v11825_v11  ;;  %v11833_v2 = vld [vmem:[#allocation103_spill] sm:$0xff]  ;;  %v11834_v38 = vld [vmem:[#allocation104_spill] sm:$0xff] }
 0x206   :  { %11820 = vst [vmem:[#allocation153_spill] sm:$0xff] %v8953_v6  ;;  %11821 = vst [vmem:[#allocation154_spill] sm:$0xff] %v8955_v60  ;;  %v11835_v46 = vld [vmem:[#allocation8_spill] sm:$0xff]  ;;  %v11836_v11 = vld [vmem:[#allocation157_spill] sm:$0xff] }
 0x207   :  { %11822 = vst [vmem:[#allocation183_spill] sm:$0xff] %v8957_v23  ;;  %v8964_v1 = vadd.f32 %v2160_v61, %v11826_v50  ;;  %v8967_v51 = vmax.f32 %v11828_v14, %v2160_v61  ;;  %v8969_v58 = vadd.f32 %v1727_v63, %v1283_v35  ;;  %v8971_v5 = vmax.f32 %v1347_v32, %v1727_v63  ;;  %v11838_v50 = vld [vmem:[#allocation158_spill] sm:$0xff]  ;;  %v11840_v35 = vld [vmem:[#allocation105_spill] sm:$0xff]  ;;  %v11843_v63 = vld [vmem:[#allocation12_spill] sm:$0xff] }
 0x208   :  { %2388 = vmatpush1.bf16.msra.mxu1 %v11832_v45  ;;  %v2161_v48 = vmax.f32 %v1841_v17, 0.0  ;;  %2517 = vmatpush1.bf16.msra.mxu0 %v11833_v2  ;;  %v11841_v32 = vld [vmem:[#allocation9_spill] sm:$0xff]  ;;  %v11842_v61 = vld [vmem:[#allocation106_spill] sm:$0xff]  ;;  %v11844_v17 = vld [vmem:[#allocation107_spill] sm:$0xff] }
 0x209   :  { %11827 = vst [vmem:[#allocation155_spill] sm:$0xff] %v8964_v1  ;;  %11829 = vst [vmem:[#allocation156_spill] sm:$0xff] %v8967_v51  ;;  %2459 = vmatprep.subr.bf16.mxu1 %v11834_v38  ;;  %2688 = vmatprep.subr.bf16.mxu0 %v11835_v46  ;;  %v11846_v14 = vld [vmem:[#allocation108_spill] sm:$0xff]  ;;  %v11857_v46 = vld [vmem:[#allocation159_spill] sm:$0xff] }
 0x20a   :  { %11830 = vst [vmem:[#allocation184_spill] sm:$0xff] %v8969_v58  ;;  %11831 = vst [vmem:[#allocation185_spill] sm:$0xff] %v8971_v5  ;;  %v8978_v19 = vadd.f32 %v2161_v48, %v11836_v11  ;;  %v8981_v1 = vmax.f32 %v11838_v50, %v2161_v48  ;;  %v11845_v11 = vld [vmem:[#allocation14_spill] sm:$0xff]  ;;  %v11847_v48 = vld [vmem:[#allocation16_spill] sm:$0xff] }
 0x20b   :  { %2406 = vmatmul.mubr.bf16.vlgmr.msra.gmra.mrb[56].mxu1 %v8673_v4  ;;  %2535 = vmatmul.mubr.bf16.vlgmr.msra.gmra.mrb[56].mxu0 %v8673_v4  ;;  %v11848_v50 = vld [vmem:[#allocation109_spill] sm:$0xff]  ;;  %v11858_v38 = vld [vmem:[#allocation160_spill] sm:$0xff]  ;;  %v11865_v60 = vld [vmem:[#allocation30_spill] sm:$0xff] }
 0x20c   :  { %11837 = vst [vmem:[#allocation157_spill] sm:$0xff] %v8978_v19  ;;  %11839 = vst [vmem:[#allocation158_spill] sm:$0xff] %v8981_v1  ;;  %2460 = vmatpush1.bf16.msra.mxu1 %v11840_v35  ;;  %2689 = vmatpush1.bf16.msra.mxu0 %v11841_v32  ;;  %v11849_v35 = vld [vmem:[#allocation18_spill] sm:$0xff]  ;;  %v11854_v19 = vld [vmem:[#allocation112_spill] sm:$0xff] }
 0x20d   :  { %2461 = vmatprep.subr.bf16.mxu1 %v11842_v61  ;;  %2690 = vmatprep.subr.bf16.mxu0 %v11843_v63  ;;  %v11850_v32 = vld [vmem:[#allocation110_spill] sm:$0xff]  ;;  %v11851_v61 = vld [vmem:[#allocation20_spill] sm:$0xff]  ;;  %v11852_v63 = vld [vmem:[#allocation111_spill] sm:$0xff] }
 0x20e   :  { %2491 = vmatprep.mubr.bf16.mxu1 %v11461_v16  ;;  %2720 = vmatprep.mubr.bf16.mxu0 %v11461_v16  ;;  %v11853_v1 = vld [vmem:[#allocation22_spill] sm:$0xff]  ;;  %v11859_v2 = vld [vmem:[#allocation113_spill] sm:$0xff]  ;;  %v11863_v45 = vld [vmem:[#allocation136_spill] sm:$0xff] }
 0x20f   :  { %v11866_v62 = vld [vmem:[#allocation116_spill] sm:$0xff] }
 0x210   :  { %2462 = vmatpush1.bf16.msra.mxu1 %v11844_v17  ;;  %2691 = vmatpush1.bf16.msra.mxu0 %v11845_v11  ;;  %v11855_v17 = vld [vmem:[#allocation24_spill] sm:$0xff]  ;;  %v11856_v11 = vld [vmem:[#allocation137_spill] sm:$0xff] }
 0x211   :  { %2463 = vmatprep.subr.bf16.mxu1 %v11846_v14  ;;  %2692 = vmatprep.subr.bf16.mxu0 %v11847_v48  ;;  %v1270_v14 = vmax.f32 %v11856_v11, 0.0  ;;  %v1271_v48 = vmax.f32 %v11857_v46, 0.0 }
 0x213   :  { %v1335_v58 = vmax.f32 %v1271_v48, 0.0 }
 0x214   :  { %2464 = vmatpush1.bf16.msra.mxu1 %v11848_v50  ;;  %2693 = vmatpush1.bf16.msra.mxu0 %v11849_v35  ;;  %v1286_v50 = vmax.f32 %v11858_v38, 0.0  ;;  %v11860_v35 = vld [vmem:[#allocation26_spill] sm:$0xff] }
 0x215   :  { %2465 = vmatprep.subr.bf16.mxu1 %v11850_v32  ;;  %2694 = vmatprep.subr.bf16.mxu0 %v11851_v61  ;;  %v11861_v32 = vld [vmem:[#allocation114_spill] sm:$0xff] }
 0x216   :  { %v1350_v11 = vmax.f32 %v1286_v50, 0.0 }
 0x218   :  { %2466 = vmatpush1.bf16.msra.mxu1 %v11852_v63  ;;  %2695 = vmatpush1.bf16.msra.mxu0 %v11853_v1  ;;  %v11862_v63 = vld [vmem:[#allocation28_spill] sm:$0xff]  ;;  %v1334_v1 = vmax.f32 %v1270_v14, 0.0 }
 0x219   :  { %2467 = vmatprep.subr.bf16.mxu1 %v11854_v19  ;;  %2696 = vmatprep.subr.bf16.mxu0 %v11855_v17 }
 0x21c   :  { %2468 = vmatpush1.bf16.msra.mxu1 %v11859_v2  ;;  %2697 = vmatpush1.bf16.msra.mxu0 %v11860_v35 }
 0x21d   :  { %2469 = vmatprep.subr.bf16.mxu1 %v11861_v32  ;;  %v1691_v61 = vpop.f32.mrb[32].mxu1  ;;  %2698 = vmatprep.subr.bf16.mxu0 %v11862_v63  ;;  %v1920_v5 = vpop.f32.mrb[32].mxu0  ;;  %v1287_v32 = vmax.f32 %v8642_v47, 0.0 }
 0x21e   :  { %v1692_v19 = vadd.f32 %v1691_v61, %v11863_v45  ;;  %v1693_v17 = vpop.f32.mrb[33].mxu1  ;;  %v1921_v46 = vadd.f32 %v1920_v5, %v8600_v24  ;;  %v1922_v51 = vpop.f32.mrb[33].mxu0 }
 0x21f   :  { %v1694_v38 = vadd.f32 %v1693_v17, %v8330_v7  ;;  %v1695_v2 = vpop.f32.mrb[34].mxu1  ;;  %v1923_v63 = vadd.f32 %v1922_v51, %v8608_v25  ;;  %v1924_v61 = vpop.f32.mrb[34].mxu0 }
 0x220   :  { %2470 = vmatpush1.bf16.msra.mxu1 %v11864_v31  ;;  %v1714_v35 = vmax.f32 %v1692_v19, 0.0  ;;  %v1696_v23 = vadd.f32 %v1695_v2, %v11863_v45  ;;  %2699 = vmatpush1.bf16.msra.mxu0 %v11865_v60  ;;  %v1697_v6 = vpop.f32.mrb[35].mxu1  ;;  %v2148_v5 = vmax.f32 %v1921_v46, 0.0  ;;  %v1925_v17 = vadd.f32 %v1924_v61, %v8600_v24  ;;  %v1926_v31 = vpop.f32.mrb[35].mxu0 }
 0x221   :  { %2471 = vmatprep.subr.bf16.mxu1 %v11866_v62  ;;  %v1715_v56 = vmax.f32 %v1694_v38, 0.0  ;;  %v1698_v41 = vadd.f32 %v1697_v6, %v8330_v7  ;;  %2700 = vmatprep.subr.bf16.mxu0 %v11686_v20  ;;  %v2149_v51 = vmax.f32 %v1923_v63, 0.0  ;;  %v6856_v6 = vld [vmem:[%s11059_s0 + $0x40] sm:$0xff] }
 0x222   :  { %v9022_v47 = vadd.f32 %v1714_v35, %v1270_v14  ;;  %v9024_v19 = vmax.f32 %v1334_v1, %v1714_v35  ;;  %v1730_v2 = vmax.f32 %v1696_v23, 0.0  ;;  %v9027_v60 = vadd.f32 %v2148_v5, %v8646_v36  ;;  %v6857_v23 = vld [vmem:[%s11059_s0 + $0x48] sm:$0xff] }
 0x223   :  { %v9030_v62 = vmax.f32 %v8648_v55, %v2148_v5  ;;  %v9032_v46 = vadd.f32 %v1715_v56, %v1271_v48  ;;  %v9034_v38 = vmax.f32 %v1335_v58, %v1715_v56  ;;  %v9044_v36 = vadd.f32 %v2149_v51, %v8651_v29  ;;  %v11867_v48 = vld [vmem:[#allocation118_spill] sm:$0xff] }
 0x224   :  { %2472 = vmatpush1.bf16.msra.mxu1 %v8113_v0  ;;  %v9047_v55 = vmax.f32 %v8653_v53, %v2149_v51  ;;  %v9049_v1 = vadd.f32 %v1730_v2, %v1286_v50  ;;  %v9051_v56 = vmax.f32 %v1350_v11, %v1730_v2  ;;  %2701 = vmatpush1.bf16.msra.mxu0 %v11687_v54  ;;  %v1351_v58 = vmax.f32 %v1287_v32, 0.0  ;;  %v11869_v50 = vld [vmem:[#allocation32_spill] sm:$0xff]  ;;  %v11876_v2 = vld [vmem:[#allocation10_spill] sm:$0xff] }
 0x225   :  { %v2164_v35 = vmax.f32 %v1925_v17, 0.0  ;;  %v1731_v63 = vmax.f32 %v1698_v41, 0.0  ;;  %v1927_v14 = vadd.f32 %v1926_v31, %v8608_v25  ;;  %2473 = vmatprep.subr.bf16.mxu1 %v11867_v48  ;;  %2702 = vmatprep.subr.bf16.mxu0 %v11690_v42  ;;  %v9057_v29 = vpack.c.bf16 %v6857_v23, %v6856_v6  ;;  %v11873_v17 = vld [vmem:[#allocation119_spill] sm:$0xff]  ;;  %v11874_v31 = vld [vmem:[#allocation38_spill] sm:$0xff]  ;;  %v11875_v51 = vld [vmem:[#allocation120_spill] sm:$0xff] }
 0x226   :  { %v11877_v6 = vld [vmem:[#allocation161_spill] sm:$0xff]  ;;  %v11908_v48 = vld [vmem:[#allocation167_spill] sm:$0xff] }
 0x227   :  { %v9060_v53 = vadd.f32 %v2164_v35, %v8663_v10  ;;  %v9063_v61 = vmax.f32 %v11869_v50, %v2164_v35  ;;  %v9065_v11 = vadd.f32 %v1731_v63, %v1287_v32  ;;  %v9067_v5 = vmax.f32 %v1351_v58, %v1731_v63  ;;  %v11879_v10 = vld [vmem:[#allocation162_spill] sm:$0xff]  ;;  %v11881_v32 = vld [vmem:[#allocation121_spill] sm:$0xff]  ;;  %v11882_v58 = vld [vmem:[#allocation11_spill] sm:$0xff] }
 0x228   :  { %2474 = vmatpush1.bf16.msra.mxu1 %v11873_v17  ;;  %v2165_v41 = vmax.f32 %v1927_v14, 0.0  ;;  %2703 = vmatpush1.bf16.msra.mxu0 %v11874_v31  ;;  %v11883_v35 = vld [vmem:[#allocation122_spill] sm:$0xff]  ;;  %v11884_v63 = vld [vmem:[#allocation13_spill] sm:$0xff]  ;;  %v11885_v14 = vld [vmem:[#allocation123_spill] sm:$0xff] }
 0x229   :  { %11868 = vst [vmem:[#allocation137_spill] sm:$0xff] %v9060_v53  ;;  %11870 = vst [vmem:[#allocation159_spill] sm:$0xff] %v9063_v61  ;;  %2545 = vmatprep.subr.bf16.mxu1 %v11875_v51  ;;  %2774 = vmatprep.subr.bf16.mxu0 %v11876_v2  ;;  %v11886_v50 = vld [vmem:[#allocation15_spill] sm:$0xff] }
 0x22a   :  { %11871 = vst [vmem:[#allocation160_spill] sm:$0xff] %v9065_v11  ;;  %11872 = vst [vmem:[#allocation32_spill] sm:$0xff] %v9067_v5  ;;  %v9074_v23 = vadd.f32 %v2165_v41, %v11877_v6  ;;  %v9077_v53 = vmax.f32 %v11879_v10, %v2165_v41  ;;  %v11887_v41 = vld [vmem:[#allocation124_spill] sm:$0xff]  ;;  %v11888_v6 = vld [vmem:[#allocation17_spill] sm:$0xff] }
 0x22b   :  { %2492 = vmatmul.mubr.bf16.vlgmr.msra.gmra.mrb[60].mxu1 %v8673_v4  ;;  %2721 = vmatmul.mubr.bf16.vlgmr.msra.gmra.mrb[60].mxu0 %v9057_v29  ;;  %v11889_v10 = vld [vmem:[#allocation125_spill] sm:$0xff]  ;;  %v11903_v5 = vld [vmem:[#allocation31_spill] sm:$0xff] }
 0x22c   :  { %11878 = vst [vmem:[#allocation161_spill] sm:$0xff] %v9074_v23  ;;  %11880 = vst [vmem:[#allocation162_spill] sm:$0xff] %v9077_v53  ;;  %2546 = vmatpush1.bf16.msra.mxu1 %v11881_v32  ;;  %2775 = vmatpush1.bf16.msra.mxu0 %v11882_v58  ;;  %v11890_v32 = vld [vmem:[#allocation19_spill] sm:$0xff]  ;;  %v11891_v58 = vld [vmem:[#allocation126_spill] sm:$0xff] }
 0x22d   :  { %2547 = vmatprep.subr.bf16.mxu1 %v11883_v35  ;;  %2776 = vmatprep.subr.bf16.mxu0 %v11884_v63  ;;  %v11892_v35 = vld [vmem:[#allocation21_spill] sm:$0xff]  ;;  %v11893_v63 = vld [vmem:[#allocation127_spill] sm:$0xff]  ;;  %v11895_v23 = vld [vmem:[#allocation128_spill] sm:$0xff] }
 0x22e   :  { %2577 = vmatprep.mubr.bf16.mxu1 %v11461_v16  ;;  %2806 = vmatprep.mubr.bf16.mxu0 %v11461_v16  ;;  %v11894_v53 = vld [vmem:[#allocation23_spill] sm:$0xff] }
 0x230   :  { %2548 = vmatpush1.bf16.msra.mxu1 %v11885_v14  ;;  %2777 = vmatpush1.bf16.msra.mxu0 %v11886_v50  ;;  %v11896_v14 = vld [vmem:[#allocation25_spill] sm:$0xff] }
 0x231   :  { %2549 = vmatprep.subr.bf16.mxu1 %v11887_v41  ;;  %2778 = vmatprep.subr.bf16.mxu0 %v11888_v6  ;;  %v11897_v50 = vld [vmem:[#allocation129_spill] sm:$0xff]  ;;  %v11898_v41 = vld [vmem:[#allocation27_spill] sm:$0xff]  ;;  %v11899_v6 = vld [vmem:[#allocation130_spill] sm:$0xff] }
 0x234   :  { %2550 = vmatpush1.bf16.msra.mxu1 %v11889_v10  ;;  %2779 = vmatpush1.bf16.msra.mxu0 %v11890_v32  ;;  %v11900_v32 = vld [vmem:[#allocation29_spill] sm:$0xff] }
 0x235   :  { %2551 = vmatprep.subr.bf16.mxu1 %v11891_v58  ;;  %2780 = vmatprep.subr.bf16.mxu0 %v11892_v35  ;;  %v11901_v58 = vld [vmem:[#allocation163_spill] sm:$0xff] }
 0x238   :  { %2552 = vmatpush1.bf16.msra.mxu1 %v11893_v63  ;;  %2781 = vmatpush1.bf16.msra.mxu0 %v11894_v53 }
 0x239   :  { %2553 = vmatprep.subr.bf16.mxu1 %v11895_v23  ;;  %2782 = vmatprep.subr.bf16.mxu0 %v11896_v14  ;;  %v11902_v14 = vld [vmem:[#allocation131_spill] sm:$0xff] }
 0x23c   :  { %2554 = vmatpush1.bf16.msra.mxu1 %v11897_v50  ;;  %2783 = vmatpush1.bf16.msra.mxu0 %v11898_v41 }
 0x23d   :  { %2555 = vmatprep.subr.bf16.mxu1 %v11899_v6  ;;  %v1877_v10 = vpop.f32.mrb[36].mxu1  ;;  %2784 = vmatprep.subr.bf16.mxu0 %v11900_v32  ;;  %v2006_v35 = vpop.f32.mrb[36].mxu0 }
 0x23e   :  { %v1878_v2 = vadd.f32 %v1877_v10, %v11901_v58  ;;  %v1879_v51 = vpop.f32.mrb[37].mxu1  ;;  %v2007_v63 = vadd.f32 %v2006_v35, %v8702_v13  ;;  %v2008_v23 = vpop.f32.mrb[37].mxu0  ;;  %v11904_v10 = vld [vmem:[#allocation132_spill] sm:$0xff] }
 0x23f   :  { %v1880_v53 = vadd.f32 %v1879_v51, %v8697_v26  ;;  %v1881_v31 = vpop.f32.mrb[38].mxu1  ;;  %v2009_v41 = vadd.f32 %v2008_v23, %v8706_v27  ;;  %v2010_v17 = vpop.f32.mrb[38].mxu0  ;;  %v11907_v23 = vld [vmem:[#allocation166_spill] sm:$0xff] }
 0x240   :  { %2556 = vmatpush1.bf16.msra.mxu1 %v11902_v14  ;;  %v2146_v50 = vmax.f32 %v1878_v2, 0.0  ;;  %v1882_v6 = vadd.f32 %v1881_v31, %v11901_v58  ;;  %2785 = vmatpush1.bf16.msra.mxu0 %v11903_v5  ;;  %v1883_v32 = vpop.f32.mrb[39].mxu1  ;;  %v2152_v11 = vmax.f32 %v2007_v63, 0.0  ;;  %v2011_v35 = vadd.f32 %v2010_v17, %v8702_v13  ;;  %v2012_v42 = vpop.f32.mrb[39].mxu0  ;;  %v11905_v2 = vld [vmem:[#allocation165_spill] sm:$0xff]  ;;  %v11909_v63 = vld [vmem:[#allocation168_spill] sm:$0xff] }
 0x241   :  { %2557 = vmatprep.subr.bf16.mxu1 %v11904_v10  ;;  %v2147_v61 = vmax.f32 %v1880_v53, 0.0  ;;  %v1884_v51 = vadd.f32 %v1883_v32, %v8697_v26  ;;  %2786 = vmatprep.subr.bf16.mxu0 %v11710_v28  ;;  %v2153_v58 = vmax.f32 %v2009_v41, 0.0  ;;  %v11910_v17 = vld [vmem:[#allocation169_spill] sm:$0xff]  ;;  %v11912_v32 = vld [vmem:[#allocation170_spill] sm:$0xff] }
 0x242   :  { %v9115_v14 = vadd.f32 %v2146_v50, %v11905_v2  ;;  %v9118_v31 = vmax.f32 %v11907_v23, %v2146_v50  ;;  %v2162_v5 = vmax.f32 %v1882_v6, 0.0  ;;  %v9121_v54 = vadd.f32 %v2152_v11, %v11908_v48  ;;  %v11913_v28 = vld [vmem:[#allocation133_spill] sm:$0xff]  ;;  %v11914_v2 = vld [vmem:[#allocation171_spill] sm:$0xff]  ;;  %v11916_v50 = vld [vmem:[#allocation172_spill] sm:$0xff] }
 0x243   :  { %v9124_v53 = vmax.f32 %v11909_v63, %v2152_v11  ;;  %v9127_v10 = vadd.f32 %v2147_v61, %v11910_v17  ;;  %v9130_v26 = vmax.f32 %v11912_v32, %v2147_v61  ;;  %v9137_v41 = vmax.f32 %v11916_v50, %v2153_v58  ;;  %v11917_v6 = vld [vmem:[#allocation173_spill] sm:$0xff]  ;;  %v11919_v23 = vld [vmem:[#allocation174_spill] sm:$0xff]  ;;  %v11921_v63 = vld [vmem:[#allocation35_spill] sm:$0xff] }
 0x244   :  { %11906 = vst [vmem:[#allocation165_spill] sm:$0xff] %v9115_v14  ;;  %2558 = vmatpush1.bf16.msra.mxu1 %v11913_v28  ;;  %v9134_v14 = vadd.f32 %v2153_v58, %v11914_v2  ;;  %v9140_v48 = vadd.f32 %v2162_v5, %v11917_v6  ;;  %v9143_v11 = vmax.f32 %v11919_v23, %v2162_v5  ;;  %v2168_v17 = vmax.f32 %v2011_v35, 0.0  ;;  %v11922_v32 = vld [vmem:[#allocation134_spill] sm:$0xff]  ;;  %v11923_v28 = vld [vmem:[#allocation37_spill] sm:$0xff]  ;;  %v11924_v2 = vld [vmem:[#allocation175_spill] sm:$0xff] }
 0x245   :  { %11911 = vst [vmem:[#allocation166_spill] sm:$0xff] %v9127_v10  ;;  %2787 = vmatpush1.bf16.msra.mxu0 %v11921_v63  ;;  %v2163_v10 = vmax.f32 %v1884_v51, 0.0  ;;  %v2013_v61 = vadd.f32 %v2012_v42, %v8706_v27  ;;  %2559 = vmatprep.subr.bf16.mxu1 %v11922_v32  ;;  %v11926_v58 = vld [vmem:[#allocation176_spill] sm:$0xff]  ;;  %v11928_v6 = vld [vmem:[#allocation177_spill] sm:$0xff]  ;;  %v11930_v5 = vld [vmem:[#allocation178_spill] sm:$0xff] }
 0x246   :  { %11915 = vst [vmem:[#allocation167_spill] sm:$0xff] %v9134_v14  ;;  %11918 = vst [vmem:[#allocation168_spill] sm:$0xff] %v9140_v48  ;;  %2788 = vmatprep.subr.bf16.mxu0 %v11923_v28  ;;  %v9150_v14 = vadd.f32 %v2168_v17, %v11924_v2  ;;  %v9153_v50 = vmax.f32 %v11926_v58, %v2168_v17  ;;  %v11932_v35 = vld [vmem:[#allocation135_spill] sm:$0xff]  ;;  %v11934_v32 = vld [vmem:[#allocation40_spill] sm:$0xff] }
 0x247   :  { %11920 = vst [vmem:[#allocation169_spill] sm:$0xff] %v9143_v11  ;;  %v9156_v48 = vadd.f32 %v2163_v10, %v11928_v6  ;;  %v9159_v23 = vmax.f32 %v11930_v5, %v2163_v10  ;;  %v2169_v51 = vmax.f32 %v2013_v61, 0.0  ;;  %v11933_v42 = vld [vmem:[#allocation39_spill] sm:$0xff]  ;;  %v11935_v28 = vld [vmem:[#allocation41_spill] sm:$0xff]  ;;  %v11938_v17 = vld [vmem:[#allocation180_spill] sm:$0xff] }
 0x248   :  { %11925 = vst [vmem:[#allocation170_spill] sm:$0xff] %v9150_v14  ;;  %11927 = vst [vmem:[#allocation171_spill] sm:$0xff] %v9153_v50  ;;  %2560 = vmatpush1.bf16.msra.mxu1 %v11932_v35  ;;  %v11936_v2 = vld [vmem:[#allocation179_spill] sm:$0xff]  ;;  %v11940_v10 = vld [vmem:[#allocation42_spill] sm:$0xff] }
 0x249   :  { %11929 = vst [vmem:[#allocation172_spill] sm:$0xff] %v9156_v48  ;;  %11931 = vst [vmem:[#allocation173_spill] sm:$0xff] %v9159_v23  ;;  %2789 = vmatpush1.bf16.msra.mxu0 %v11933_v42  ;;  %2731 = vmatprep.subr.bf16.mxu1 %v11934_v32  ;;  %v9166_v14 = vadd.f32 %v2169_v51, %v11936_v2  ;;  %v9169_v58 = vmax.f32 %v11938_v17, %v2169_v51  ;;  %v11941_v6 = vld [vmem:[#allocation43_spill] sm:$0xff]  ;;  %v11942_v61 = vld [vmem:[#allocation44_spill] sm:$0xff] }
 0x24a   :  { %2860 = vmatprep.subr.bf16.mxu0 %v11935_v28  ;;  %v11943_v5 = vld [vmem:[#allocation45_spill] sm:$0xff]  ;;  %v11944_v2 = vld [vmem:[#allocation46_spill] sm:$0xff]  ;;  %v11945_v51 = vld [vmem:[#allocation47_spill] sm:$0xff] }
 0x24b   :  { %11937 = vst [vmem:[#allocation174_spill] sm:$0xff] %v9166_v14  ;;  %11939 = vst [vmem:[#allocation175_spill] sm:$0xff] %v9169_v58  ;;  %2578 = vmatmul.mubr.bf16.vlgmr.msra.gmra.mrb[64].mxu1 %v8673_v4  ;;  %v11946_v17 = vld [vmem:[#allocation48_spill] sm:$0xff]  ;;  %v11947_v4 = vld [vmem:[#allocation49_spill] sm:$0xff] }
 0x24c   :  { %2807 = vmatmul.mubr.bf16.vlgmr.msra.gmra.mrb[64].mxu0 %v9057_v29  ;;  %2732 = vmatpush1.bf16.msra.mxu1 %v11940_v10  ;;  %v11948_v58 = vld [vmem:[#allocation50_spill] sm:$0xff]  ;;  %v11949_v10 = vld [vmem:[#allocation51_spill] sm:$0xff]  ;;  %v11954_v28 = vld [vmem:[#allocation56_spill] sm:$0xff] }
 0x24d   :  { %2861 = vmatpush1.bf16.msra.mxu0 %v11941_v6  ;;  %2733 = vmatprep.subr.bf16.mxu1 %v11942_v61  ;;  %v11950_v6 = vld [vmem:[#allocation52_spill] sm:$0xff]  ;;  %v11951_v61 = vld [vmem:[#allocation53_spill] sm:$0xff]  ;;  %v11953_v14 = vld [vmem:[#allocation55_spill] sm:$0xff] }
 0x24e   :  { %2862 = vmatprep.subr.bf16.mxu0 %v11943_v5  ;;  %2763 = vmatprep.mubr.bf16.mxu1 %v11461_v16  ;;  %v11952_v5 = vld [vmem:[#allocation54_spill] sm:$0xff]  ;;  %v11962_v48 = vld [vmem:[#allocation63_spill] sm:$0xff] }
 0x24f   :  { %2892 = vmatprep.mubr.bf16.mxu0 %v11461_v16 }
 0x250   :  { %2734 = vmatpush1.bf16.msra.mxu1 %v11944_v2  ;;  %v11955_v2 = vld [vmem:[#allocation57_spill] sm:$0xff] }
 0x251   :  { %2863 = vmatpush1.bf16.msra.mxu0 %v11945_v51  ;;  %2735 = vmatprep.subr.bf16.mxu1 %v11946_v17  ;;  %v11956_v51 = vld [vmem:[#allocation58_spill] sm:$0xff]  ;;  %v11957_v17 = vld [vmem:[#allocation59_spill] sm:$0xff] }
 0x252   :  { %2864 = vmatprep.subr.bf16.mxu0 %v11947_v4  ;;  %v11958_v4 = vld [vmem:[#allocation60_spill] sm:$0xff] }
 0x254   :  { %2736 = vmatpush1.bf16.msra.mxu1 %v11948_v58 }
 0x255   :  { %2865 = vmatpush1.bf16.msra.mxu0 %v11949_v10  ;;  %2737 = vmatprep.subr.bf16.mxu1 %v11950_v6  ;;  %v11959_v10 = vld [vmem:[#allocation61_spill] sm:$0xff] }
 0x256   :  { %2866 = vmatprep.subr.bf16.mxu0 %v11951_v61  ;;  %v11960_v6 = vld [vmem:[#allocation181_spill] sm:$0xff] }
 0x258   :  { %2738 = vmatpush1.bf16.msra.mxu1 %v11952_v5 }
 0x259   :  { %2867 = vmatpush1.bf16.msra.mxu0 %v11953_v14  ;;  %2739 = vmatprep.subr.bf16.mxu1 %v11954_v28 }
 0x25a   :  { %2868 = vmatprep.subr.bf16.mxu0 %v11955_v2  ;;  %v11961_v2 = vld [vmem:[#allocation62_spill] sm:$0xff] }
 0x25c   :  { %2740 = vmatpush1.bf16.msra.mxu1 %v11956_v51 }
 0x25d   :  { %2869 = vmatpush1.bf16.msra.mxu0 %v11957_v17  ;;  %2741 = vmatprep.subr.bf16.mxu1 %v11958_v4  ;;  %v1963_v58 = vpop.f32.mrb[40].mxu1  ;;  %v2092_v61 = vpop.f32.mrb[40].mxu0 }
 0x25e   :  { %2870 = vmatprep.subr.bf16.mxu0 %v11959_v10  ;;  %v1964_v32 = vadd.f32 %v1963_v58, %v11960_v6  ;;  %v1965_v42 = vpop.f32.mrb[41].mxu1  ;;  %v2093_v5 = vadd.f32 %v2092_v61, %v11765_v30  ;;  %v2094_v28 = vpop.f32.mrb[41].mxu0  ;;  %v11963_v58 = vld [vmem:[#allocation64_spill] sm:$0xff] }
 0x25f   :  { %v1966_v14 = vadd.f32 %v1965_v42, %v8813_v49  ;;  %v1967_v35 = vpop.f32.mrb[42].mxu1  ;;  %v2095_v17 = vadd.f32 %v2094_v28, %v11767_v43  ;;  %v2096_v23 = vpop.f32.mrb[42].mxu0 }
 0x260   :  { %2742 = vmatpush1.bf16.msra.mxu1 %v11961_v2  ;;  %v2150_v51 = vmax.f32 %v1964_v32, 0.0  ;;  %v1968_v4 = vadd.f32 %v1967_v35, %v11960_v6  ;;  %v1969_v10 = vpop.f32.mrb[43].mxu1  ;;  %v2156_v50 = vmax.f32 %v2093_v5, 0.0  ;;  %v2097_v61 = vadd.f32 %v2096_v23, %v11765_v30  ;;  %v2098_v11 = vpop.f32.mrb[43].mxu0  ;;  %v11966_v5 = vld [vmem:[#allocation66_spill] sm:$0xff] }
 0x261   :  { %2871 = vmatpush1.bf16.msra.mxu0 %v11962_v48  ;;  %2743 = vmatprep.subr.bf16.mxu1 %v11963_v58  ;;  %v2151_v63 = vmax.f32 %v1966_v14, 0.0  ;;  %v1970_v42 = vadd.f32 %v1969_v10, %v8813_v49  ;;  %v2157_v35 = vmax.f32 %v2095_v17, 0.0  ;;  %v11970_v17 = vld [vmem:[#allocation143_spill] sm:$0xff] }
 0x262   :  { %2872 = vmatprep.subr.bf16.mxu0 %v11770_v8  ;;  %v9207_v32 = vadd.f32 %v2150_v51, %v8854_v34  ;;  %v9210_v28 = vmax.f32 %v8856_v33, %v2150_v51  ;;  %v2166_v48 = vmax.f32 %v1968_v4, 0.0  ;;  %v9213_v2 = vadd.f32 %v2156_v50, %v8858_v39  ;;  %v11967_v34 = vld [vmem:[#allocation141_spill] sm:$0xff]  ;;  %v11969_v33 = vld [vmem:[#allocation142_spill] sm:$0xff] }
 0x263   :  { %v9216_v14 = vmax.f32 %v8860_v44, %v2156_v50  ;;  %v9219_v23 = vadd.f32 %v2151_v63, %v8862_v52  ;;  %v9222_v10 = vmax.f32 %v8864_v3, %v2151_v63  ;;  %v9229_v51 = vmax.f32 %v11969_v33, %v2157_v35  ;;  %v11972_v4 = vld [vmem:[#allocation145_spill] sm:$0xff]  ;;  %v11974_v50 = vld [vmem:[#allocation67_spill] sm:$0xff]  ;;  %v11975_v63 = vld [vmem:[#allocation68_spill] sm:$0xff] }
 0x264   :  { %11964 = vst [vmem:[#allocation176_spill] sm:$0xff] %v9207_v32  ;;  %2744 = vmatpush1.bf16.msra.mxu1 %v11966_v5  ;;  %v9226_v32 = vadd.f32 %v2157_v35, %v11967_v34  ;;  %v9232_v39 = vadd.f32 %v2166_v48, %v11970_v17  ;;  %v9235_v44 = vmax.f32 %v11972_v4, %v2166_v48  ;;  %v2172_v52 = vmax.f32 %v2097_v61, 0.0  ;;  %v11976_v5 = vld [vmem:[#allocation69_spill] sm:$0xff]  ;;  %v11977_v34 = vld [vmem:[#allocation144_spill] sm:$0xff]  ;;  %v11979_v35 = vld [vmem:[#allocation146_spill] sm:$0xff] }
 0x265   :  { %11965 = vst [vmem:[#allocation177_spill] sm:$0xff] %v9219_v23  ;;  %2873 = vmatpush1.bf16.msra.mxu0 %v11974_v50  ;;  %v2167_v23 = vmax.f32 %v1970_v42, 0.0  ;;  %v2099_v3 = vadd.f32 %v2098_v11, %v11767_v43  ;;  %2745 = vmatprep.subr.bf16.mxu1 %v11975_v63  ;;  %v11981_v17 = vld [vmem:[#allocation147_spill] sm:$0xff]  ;;  %v11985_v61 = vld [vmem:[#allocation70_spill] sm:$0xff]  ;;  %v11987_v63 = vld [vmem:[#allocation72_spill] sm:$0xff] }
 0x266   :  { %11968 = vst [vmem:[#allocation178_spill] sm:$0xff] %v9226_v32  ;;  %11971 = vst [vmem:[#allocation179_spill] sm:$0xff] %v9232_v39  ;;  %2874 = vmatprep.subr.bf16.mxu0 %v11976_v5  ;;  %v9242_v32 = vadd.f32 %v2172_v52, %v11977_v34  ;;  %v9245_v33 = vmax.f32 %v11979_v35, %v2172_v52  ;;  %v11983_v48 = vld [vmem:[#allocation139_spill] sm:$0xff]  ;;  %v11988_v5 = vld [vmem:[#allocation73_spill] sm:$0xff] }
 0x267   :  { %11973 = vst [vmem:[#allocation180_spill] sm:$0xff] %v9235_v44  ;;  %v9248_v39 = vadd.f32 %v2167_v23, %v11981_v17  ;;  %v9251_v4 = vmax.f32 %v11983_v48, %v2167_v23  ;;  %v2173_v42 = vmax.f32 %v2099_v3, 0.0  ;;  %v11986_v11 = vld [vmem:[#allocation71_spill] sm:$0xff]  ;;  %v11989_v34 = vld [vmem:[#allocation140_spill] sm:$0xff]  ;;  %v11991_v52 = vld [vmem:[#allocation182_spill] sm:$0xff] }
 0x268   :  { %11978 = vst [vmem:[#allocation64_spill] sm:$0xff] %v9242_v32  ;;  %11980 = vst [vmem:[#allocation141_spill] sm:$0xff] %v9245_v33  ;;  %2746 = vmatpush1.bf16.msra.mxu1 %v11985_v61  ;;  %v11993_v23 = vld [vmem:[#allocation74_spill] sm:$0xff]  ;;  %v11994_v17 = vld [vmem:[#allocation75_spill] sm:$0xff] }
 0x269   :  { %11982 = vst [vmem:[#allocation142_spill] sm:$0xff] %v9248_v39  ;;  %11984 = vst [vmem:[#allocation143_spill] sm:$0xff] %v9251_v4  ;;  %2875 = vmatpush1.bf16.msra.mxu0 %v11986_v11  ;;  %2817 = vmatprep.subr.bf16.mxu1 %v11987_v63  ;;  %v9258_v32 = vadd.f32 %v2173_v42, %v11989_v34  ;;  %v9261_v35 = vmax.f32 %v11991_v52, %v2173_v42  ;;  %v11995_v3 = vld [vmem:[#allocation76_spill] sm:$0xff]  ;;  %v11996_v48 = vld [vmem:[#allocation77_spill] sm:$0xff] }
 0x26a   :  { %2946 = vmatprep.subr.bf16.mxu0 %v11988_v5  ;;  %v11997_v34 = vld [vmem:[#allocation78_spill] sm:$0xff]  ;;  %v11998_v42 = vld [vmem:[#allocation79_spill] sm:$0xff]  ;;  %v11999_v52 = vld [vmem:[#allocation80_spill] sm:$0xff] }
 0x26b   :  { %11990 = vst [vmem:[#allocation145_spill] sm:$0xff] %v9258_v32  ;;  %11992 = vst [vmem:[#allocation144_spill] sm:$0xff] %v9261_v35  ;;  %2764 = vmatmul.mubr.bf16.vlgmr.msra.gmra.mrb[68].mxu1 %v9057_v29  ;;  %v12000_v35 = vld [vmem:[#allocation81_spill] sm:$0xff]  ;;  %v12001_v32 = vld [vmem:[#allocation82_spill] sm:$0xff] }
 0x26c   :  { %2893 = vmatmul.mubr.bf16.vlgmr.msra.gmra.mrb[68].mxu0 %v9057_v29  ;;  %2818 = vmatpush1.bf16.msra.mxu1 %v11993_v23  ;;  %v12002_v23 = vld [vmem:[#allocation83_spill] sm:$0xff]  ;;  %v12007_v63 = vld [vmem:[#allocation88_spill] sm:$0xff] }
 0x26d   :  { %2947 = vmatpush1.bf16.msra.mxu0 %v11994_v17  ;;  %2819 = vmatprep.subr.bf16.mxu1 %v11995_v3  ;;  %v12003_v17 = vld [vmem:[#allocation84_spill] sm:$0xff]  ;;  %v12004_v3 = vld [vmem:[#allocation85_spill] sm:$0xff]  ;;  %v12006_v5 = vld [vmem:[#allocation87_spill] sm:$0xff] }
 0x26e   :  { %2948 = vmatprep.subr.bf16.mxu0 %v11996_v48  ;;  %2849 = vmatprep.mubr.bf16.mxu1 %v11461_v16  ;;  %v12005_v48 = vld [vmem:[#allocation86_spill] sm:$0xff]  ;;  %v12014_v39 = vld [vmem:[#allocation95_spill] sm:$0xff] }
 0x26f   :  { %2978 = vmatprep.mubr.bf16.mxu0 %v11461_v16 }
 0x270   :  { %2820 = vmatpush1.bf16.msra.mxu1 %v11997_v34  ;;  %v12008_v34 = vld [vmem:[#allocation89_spill] sm:$0xff] }
 0x271   :  { %2949 = vmatpush1.bf16.msra.mxu0 %v11998_v42  ;;  %2821 = vmatprep.subr.bf16.mxu1 %v11999_v52  ;;  %v12009_v42 = vld [vmem:[#allocation90_spill] sm:$0xff]  ;;  %v12010_v52 = vld [vmem:[#allocation91_spill] sm:$0xff] }
 0x272   :  { %2950 = vmatprep.subr.bf16.mxu0 %v12000_v35  ;;  %v12011_v35 = vld [vmem:[#allocation92_spill] sm:$0xff] }
 0x274   :  { %2822 = vmatpush1.bf16.msra.mxu1 %v12001_v32 }
 0x275   :  { %2951 = vmatpush1.bf16.msra.mxu0 %v12002_v23  ;;  %2823 = vmatprep.subr.bf16.mxu1 %v12003_v17  ;;  %v12012_v23 = vld [vmem:[#allocation93_spill] sm:$0xff] }
 0x276   :  { %2952 = vmatprep.subr.bf16.mxu0 %v12004_v3 }
 0x278   :  { %2824 = vmatpush1.bf16.msra.mxu1 %v12005_v48 }
 0x279   :  { %2953 = vmatpush1.bf16.msra.mxu0 %v12006_v5  ;;  %2825 = vmatprep.subr.bf16.mxu1 %v12007_v63 }
 0x27a   :  { %2954 = vmatprep.subr.bf16.mxu0 %v12008_v34  ;;  %v12013_v34 = vld [vmem:[#allocation94_spill] sm:$0xff] }
 0x27c   :  { %2826 = vmatpush1.bf16.msra.mxu1 %v12009_v42 }
 0x27d   :  { %2955 = vmatpush1.bf16.msra.mxu0 %v12010_v52  ;;  %2827 = vmatprep.subr.bf16.mxu1 %v12011_v35  ;;  %v2049_v32 = vpop.f32.mrb[44].mxu1  ;;  %v2278_v3 = vpop.f32.mrb[44].mxu0 }
 0x27e   :  { %2956 = vmatprep.subr.bf16.mxu0 %v12012_v23  ;;  %v2050_v17 = vadd.f32 %v2049_v32, %v11812_v9  ;;  %v2051_v11 = vpop.f32.mrb[45].mxu1  ;;  %v2279_v48 = vadd.f32 %v2278_v3, %v8503_v12  ;;  %v2280_v63 = vpop.f32.mrb[45].mxu0  ;;  %v12015_v32 = vld [vmem:[#allocation96_spill] sm:$0xff] }
 0x27f   :  { %v2052_v5 = vadd.f32 %v2051_v11, %v8533_v59  ;;  %v2053_v61 = vpop.f32.mrb[46].mxu1  ;;  %v2281_v52 = vadd.f32 %v2280_v63, %v8510_v18  ;;  %v2282_v4 = vpop.f32.mrb[46].mxu0 }
 0x280   :  { %2828 = vmatpush1.bf16.msra.mxu1 %v12013_v34  ;;  %v2154_v42 = vmax.f32 %v2050_v17, 0.0  ;;  %v2054_v35 = vadd.f32 %v2053_v61, %v11812_v9  ;;  %v2055_v23 = vpop.f32.mrb[47].mxu1  ;;  %v2588_v33 = vmax.f32 %v2279_v48, 0.0  ;;  %v2283_v3 = vadd.f32 %v2282_v4, %v8503_v12  ;;  %v2284_v44 = vpop.f32.mrb[47].mxu0 }
 0x281   :  { %2957 = vmatpush1.bf16.msra.mxu0 %v12014_v39  ;;  %2829 = vmatprep.subr.bf16.mxu1 %v12015_v32  ;;  %v2155_v50 = vmax.f32 %v2052_v5, 0.0  ;;  %v2056_v11 = vadd.f32 %v2055_v23, %v8533_v59  ;;  %v2589_v61 = vmax.f32 %v2281_v52, 0.0  ;;  %v12018_v23 = vld [vmem:[#allocation151_spill] sm:$0xff] }
 0x282   :  { %2958 = vmatprep.subr.bf16.mxu0 %v11817_v37  ;;  %v9299_v17 = vadd.f32 %v2154_v42, %v8934_v22  ;;  %v9302_v63 = vmax.f32 %v8936_v15, %v2154_v42  ;;  %v2170_v39 = vmax.f32 %v2054_v35, 0.0  ;;  %v9305_v34 = vadd.f32 %v2588_v33, %v8939_v40  ;;  %v12019_v37 = vld [vmem:[#allocation98_spill] sm:$0xff]  ;;  %v12020_v22 = vld [vmem:[#allocation152_spill] sm:$0xff]  ;;  %v12022_v15 = vld [vmem:[#allocation153_spill] sm:$0xff] }
 0x283   :  { %v9308_v5 = vmax.f32 %v8942_v21, %v2588_v33  ;;  %v9311_v4 = vadd.f32 %v2155_v50, %v8944_v57  ;;  %v9314_v48 = vmax.f32 %v12018_v23, %v2155_v50  ;;  %v9321_v42 = vmax.f32 %v12022_v15, %v2589_v61  ;;  %v12023_v35 = vld [vmem:[#allocation154_spill] sm:$0xff]  ;;  %v12025_v52 = vld [vmem:[#allocation183_spill] sm:$0xff]  ;;  %v12028_v23 = vld [vmem:[#allocation100_spill] sm:$0xff] }
 0x284   :  { %12016 = vst [vmem:[#allocation146_spill] sm:$0xff] %v9299_v17  ;;  %2830 = vmatpush1.bf16.msra.mxu1 %v12019_v37  ;;  %v9318_v17 = vadd.f32 %v2589_v61, %v12020_v22  ;;  %v9324_v40 = vadd.f32 %v2170_v39, %v12023_v35  ;;  %v9327_v21 = vmax.f32 %v12025_v52, %v2170_v39  ;;  %v12027_v33 = vld [vmem:[#allocation99_spill] sm:$0xff]  ;;  %v2604_v57 = vmax.f32 %v2283_v3, 0.0  ;;  %v12029_v37 = vld [vmem:[#allocation101_spill] sm:$0xff]  ;;  %v12032_v61 = vld [vmem:[#allocation156_spill] sm:$0xff] }
 0x285   :  { %12017 = vst [vmem:[#allocation147_spill] sm:$0xff] %v9311_v4  ;;  %2959 = vmatpush1.bf16.msra.mxu0 %v12027_v33  ;;  %v2171_v4 = vmax.f32 %v2056_v11, 0.0  ;;  %v2285_v50 = vadd.f32 %v2284_v44, %v8510_v18  ;;  %2831 = vmatprep.subr.bf16.mxu1 %v12028_v23  ;;  %v12030_v22 = vld [vmem:[#allocation155_spill] sm:$0xff]  ;;  %v12034_v35 = vld [vmem:[#allocation184_spill] sm:$0xff]  ;;  %v12036_v39 = vld [vmem:[#allocation185_spill] sm:$0xff] }
 0x286   :  { %12021 = vst [vmem:[#allocation139_spill] sm:$0xff] %v9318_v17  ;;  %12024 = vst [vmem:[#allocation140_spill] sm:$0xff] %v9324_v40  ;;  %2960 = vmatprep.subr.bf16.mxu0 %v12029_v37  ;;  %v9334_v17 = vadd.f32 %v2604_v57, %v12030_v22  ;;  %v9337_v15 = vmax.f32 %v12032_v61, %v2604_v57  ;;  %v12038_v3 = vld [vmem:[#allocation102_spill] sm:$0xff]  ;;  %v12039_v44 = vld [vmem:[#allocation103_spill] sm:$0xff] }
 0x287   :  { %12026 = vst [vmem:[#allocation182_spill] sm:$0xff] %v9327_v21  ;;  %v9340_v40 = vadd.f32 %v2171_v4, %v12034_v35  ;;  %v9343_v52 = vmax.f32 %v12036_v39, %v2171_v4  ;;  %v2605_v11 = vmax.f32 %v2285_v50, 0.0  ;;  %v12040_v23 = vld [vmem:[#allocation104_spill] sm:$0xff]  ;;  %v12042_v22 = vld [vmem:[#allocation157_spill] sm:$0xff]  ;;  %v12044_v57 = vld [vmem:[#allocation158_spill] sm:$0xff] }
 0x288   :  { %12031 = vst [vmem:[#allocation96_spill] sm:$0xff] %v9334_v17  ;;  %12033 = vst [vmem:[#allocation151_spill] sm:$0xff] %v9337_v15  ;;  %2832 = vmatpush1.bf16.msra.mxu1 %v12038_v3  ;;  %v12041_v37 = vld [vmem:[#allocation8_spill] sm:$0xff]  ;;  %v12046_v4 = vld [vmem:[#allocation105_spill] sm:$0xff] }
 0x289   :  { %12035 = vst [vmem:[#allocation152_spill] sm:$0xff] %v9340_v40  ;;  %12037 = vst [vmem:[#allocation153_spill] sm:$0xff] %v9343_v52  ;;  %2961 = vmatpush1.bf16.msra.mxu0 %v12039_v44  ;;  %2903 = vmatprep.subr.bf16.mxu1 %v12040_v23  ;;  %v9350_v17 = vadd.f32 %v2605_v11, %v12042_v22  ;;  %v9353_v61 = vmax.f32 %v12044_v57, %v2605_v11  ;;  %v12047_v35 = vld [vmem:[#allocation9_spill] sm:$0xff]  ;;  %v12048_v50 = vld [vmem:[#allocation106_spill] sm:$0xff] }
 0x28a   :  { %3132 = vmatprep.subr.bf16.mxu0 %v12041_v37  ;;  %v12049_v39 = vld [vmem:[#allocation12_spill] sm:$0xff]  ;;  %v12050_v22 = vld [vmem:[#allocation107_spill] sm:$0xff]  ;;  %v12051_v11 = vld [vmem:[#allocation14_spill] sm:$0xff] }
 0x28b   :  { %12043 = vst [vmem:[#allocation154_spill] sm:$0xff] %v9350_v17  ;;  %12045 = vst [vmem:[#allocation183_spill] sm:$0xff] %v9353_v61  ;;  %2850 = vmatmul.mubr.bf16.vlgmr.msra.gmra.mrb[72].mxu1 %v9057_v29  ;;  %v12052_v57 = vld [vmem:[#allocation108_spill] sm:$0xff]  ;;  %v12054_v17 = vld [vmem:[#allocation109_spill] sm:$0xff] }
 0x28c   :  { %2979 = vmatmul.mubr.bf16.vlgmr.msra.gmra.mrb[72].mxu0 %v9057_v29  ;;  %2904 = vmatpush1.bf16.msra.mxu1 %v12046_v4  ;;  %v12053_v61 = vld [vmem:[#allocation16_spill] sm:$0xff]  ;;  %v12055_v4 = vld [vmem:[#allocation18_spill] sm:$0xff] }
 0x28d   :  { %3133 = vmatpush1.bf16.msra.mxu0 %v12047_v35  ;;  %2905 = vmatprep.subr.bf16.mxu1 %v12048_v50  ;;  %v12056_v35 = vld [vmem:[#allocation110_spill] sm:$0xff]  ;;  %v12057_v50 = vld [vmem:[#allocation20_spill] sm:$0xff] }
 0x28e   :  { %3134 = vmatprep.subr.bf16.mxu0 %v12049_v39  ;;  %2935 = vmatprep.mubr.bf16.mxu1 %v11461_v16  ;;  %v12058_v39 = vld [vmem:[#allocation111_spill] sm:$0xff]  ;;  %v12059_v37 = vld [vmem:[#allocation22_spill] sm:$0xff]  ;;  %v12060_v23 = vld [vmem:[#allocation112_spill] sm:$0xff] }
 0x28f   :  { %3164 = vmatprep.mubr.bf16.mxu0 %v11461_v16  ;;  %v12067_v40 = vld [vmem:[#allocation30_spill] sm:$0xff] }
 0x290   :  { %2906 = vmatpush1.bf16.msra.mxu1 %v12050_v22  ;;  %v12061_v22 = vld [vmem:[#allocation24_spill] sm:$0xff] }
 0x291   :  { %3135 = vmatpush1.bf16.msra.mxu0 %v12051_v11  ;;  %2907 = vmatprep.subr.bf16.mxu1 %v12052_v57  ;;  %v12062_v11 = vld [vmem:[#allocation113_spill] sm:$0xff]  ;;  %v12063_v57 = vld [vmem:[#allocation26_spill] sm:$0xff] }
 0x292   :  { %3136 = vmatprep.subr.bf16.mxu0 %v12053_v61  ;;  %v12064_v61 = vld [vmem:[#allocation114_spill] sm:$0xff] }
 0x294   :  { %2908 = vmatpush1.bf16.msra.mxu1 %v12054_v17 }
 0x295   :  { %3137 = vmatpush1.bf16.msra.mxu0 %v12055_v4  ;;  %2909 = vmatprep.subr.bf16.mxu1 %v12056_v35  ;;  %v12065_v4 = vld [vmem:[#allocation28_spill] sm:$0xff] }
 0x296   :  { %3138 = vmatprep.subr.bf16.mxu0 %v12057_v50 }
 0x298   :  { %2910 = vmatpush1.bf16.msra.mxu1 %v12058_v39 }
 0x299   :  { %3139 = vmatpush1.bf16.msra.mxu0 %v12059_v37  ;;  %2911 = vmatprep.subr.bf16.mxu1 %v12060_v23 }
 0x29a   :  { %3140 = vmatprep.subr.bf16.mxu0 %v12061_v22  ;;  %v12066_v22 = vld [vmem:[#allocation115_spill] sm:$0xff] }
 0x29c   :  { %2912 = vmatpush1.bf16.msra.mxu1 %v12062_v11 }
 0x29d   :  { %3141 = vmatpush1.bf16.msra.mxu0 %v12063_v57  ;;  %2913 = vmatprep.subr.bf16.mxu1 %v12064_v61  ;;  %v2135_v17 = vpop.f32.mrb[48].mxu1 }
 0x29e   :  { %3142 = vmatprep.subr.bf16.mxu0 %v12065_v4  ;;  %v2136_v35 = vadd.f32 %v2135_v17, %v11863_v45  ;;  %v2364_v50 = vpop.f32.mrb[48].mxu0  ;;  %v2137_v44 = vpop.f32.mrb[49].mxu1  ;;  %v12068_v17 = vld [vmem:[#allocation116_spill] sm:$0xff] }
 0x29f   :  { %v2365_v39 = vadd.f32 %v2364_v50, %v8600_v24  ;;  %v2138_v37 = vadd.f32 %v2137_v44, %v8330_v7  ;;  %v2366_v23 = vpop.f32.mrb[49].mxu0  ;;  %v2139_v3 = vpop.f32.mrb[50].mxu1 }
 0x2a0   :  { %2914 = vmatpush1.bf16.msra.mxu1 %v12066_v22  ;;  %v2158_v11 = vmax.f32 %v2136_v35, 0.0  ;;  %v2367_v57 = vadd.f32 %v2366_v23, %v8608_v25  ;;  %v2140_v61 = vadd.f32 %v2139_v3, %v11863_v45  ;;  %v2368_v52 = vpop.f32.mrb[50].mxu0  ;;  %v2141_v4 = vpop.f32.mrb[51].mxu1 }
 0x2a1   :  { %3143 = vmatpush1.bf16.msra.mxu0 %v12067_v40  ;;  %2915 = vmatprep.subr.bf16.mxu1 %v12068_v17  ;;  %v2592_v15 = vmax.f32 %v2365_v39, 0.0  ;;  %v2159_v33 = vmax.f32 %v2138_v37, 0.0  ;;  %v2369_v50 = vadd.f32 %v2368_v52, %v8600_v24  ;;  %v2142_v44 = vadd.f32 %v2141_v4, %v8330_v7  ;;  %v2370_v21 = vpop.f32.mrb[51].mxu0 }
 0x2a2   :  { %3144 = vmatprep.subr.bf16.mxu0 %v11686_v20  ;;  %v9391_v35 = vadd.f32 %v2158_v11, %v9022_v47  ;;  %v9394_v23 = vmax.f32 %v9024_v19, %v2158_v11  ;;  %v2593_v3 = vmax.f32 %v2367_v57, 0.0  ;;  %v2174_v40 = vmax.f32 %v2140_v61, 0.0  ;;  %v6858_v47 = vld [vmem:[%s11059_s0 + $0x50] sm:$0xff]  ;;  %v12075_v57 = vld [vmem:[#allocation36_spill] sm:$0xff] }
 0x2a3   :  { %v9397_v22 = vadd.f32 %v2592_v15, %v9027_v60  ;;  %v9400_v37 = vmax.f32 %v9030_v62, %v2592_v15  ;;  %v9403_v52 = vadd.f32 %v2159_v33, %v9032_v46  ;;  %v9406_v4 = vmax.f32 %v9034_v38, %v2159_v33  ;;  %v6859_v60 = vld [vmem:[%s11059_s0 + $0x58] sm:$0xff]  ;;  %v12073_v33 = vld [vmem:[#allocation34_spill] sm:$0xff] }
 0x2a4   :  { %2916 = vmatpush1.bf16.msra.mxu1 %v8113_v0  ;;  %v9416_v19 = vadd.f32 %v2593_v3, %v9044_v36  ;;  %v9419_v62 = vmax.f32 %v9047_v55, %v2593_v3  ;;  %v9422_v46 = vadd.f32 %v2174_v40, %v9049_v1  ;;  %v9425_v38 = vmax.f32 %v9051_v56, %v2174_v40  ;;  %v12074_v11 = vld [vmem:[#allocation118_spill] sm:$0xff]  ;;  %v12076_v55 = vld [vmem:[#allocation137_spill] sm:$0xff]  ;;  %v12078_v1 = vld [vmem:[#allocation159_spill] sm:$0xff] }
 0x2a5   :  { %3145 = vmatpush1.bf16.msra.mxu0 %v12073_v33  ;;  %v2608_v15 = vmax.f32 %v2369_v50, 0.0  ;;  %v2175_v61 = vmax.f32 %v2142_v44, 0.0  ;;  %v2371_v39 = vadd.f32 %v2370_v21, %v8608_v25  ;;  %2917 = vmatprep.subr.bf16.mxu1 %v12074_v11  ;;  %v9431_v36 = vpack.c.bf16 %v6859_v60, %v6858_v47  ;;  %v12080_v56 = vld [vmem:[#allocation160_spill] sm:$0xff]  ;;  %v12084_v44 = vld [vmem:[#allocation119_spill] sm:$0xff]  ;;  %v12085_v11 = vld [vmem:[#allocation38_spill] sm:$0xff] }
 0x2a6   :  { %12069 = vst [vmem:[#allocation155_spill] sm:$0xff] %v9416_v19  ;;  %12070 = vst [vmem:[#allocation156_spill] sm:$0xff] %v9419_v62  ;;  %3146 = vmatprep.subr.bf16.mxu0 %v12075_v57  ;;  %v12082_v33 = vld [vmem:[#allocation32_spill] sm:$0xff]  ;;  %v12087_v47 = vld [vmem:[#allocation10_spill] sm:$0xff] }
 0x2a7   :  { %12071 = vst [vmem:[#allocation184_spill] sm:$0xff] %v9422_v46  ;;  %12072 = vst [vmem:[#allocation185_spill] sm:$0xff] %v9425_v38  ;;  %v9434_v3 = vadd.f32 %v2608_v15, %v12076_v55  ;;  %v9437_v46 = vmax.f32 %v12078_v1, %v2608_v15  ;;  %v9440_v40 = vadd.f32 %v2175_v61, %v12080_v56  ;;  %v2609_v21 = vmax.f32 %v2371_v39, 0.0  ;;  %v12086_v57 = vld [vmem:[#allocation120_spill] sm:$0xff]  ;;  %v12088_v60 = vld [vmem:[#allocation161_spill] sm:$0xff] }
 0x2a8   :  { %v9443_v50 = vmax.f32 %v12082_v33, %v2175_v61  ;;  %2918 = vmatpush1.bf16.msra.mxu1 %v12084_v44  ;;  %v12090_v15 = vld [vmem:[#allocation162_spill] sm:$0xff]  ;;  %v12092_v33 = vld [vmem:[#allocation121_spill] sm:$0xff]  ;;  %v12093_v61 = vld [vmem:[#allocation11_spill] sm:$0xff] }
 0x2a9   :  { %12077 = vst [vmem:[#allocation157_spill] sm:$0xff] %v9434_v3  ;;  %12079 = vst [vmem:[#allocation158_spill] sm:$0xff] %v9437_v46  ;;  %3147 = vmatpush1.bf16.msra.mxu0 %v12085_v11  ;;  %2989 = vmatprep.subr.bf16.mxu1 %v12086_v57  ;;  %v9450_v55 = vadd.f32 %v2609_v21, %v12088_v60  ;;  %v9453_v1 = vmax.f32 %v12090_v15, %v2609_v21  ;;  %v12094_v39 = vld [vmem:[#allocation122_spill] sm:$0xff]  ;;  %v12095_v56 = vld [vmem:[#allocation13_spill] sm:$0xff] }
 0x2aa   :  { %12081 = vst [vmem:[#allocation137_spill] sm:$0xff] %v9440_v40  ;;  %12083 = vst [vmem:[#allocation159_spill] sm:$0xff] %v9443_v50  ;;  %3218 = vmatprep.subr.bf16.mxu0 %v12087_v47  ;;  %v12096_v60 = vld [vmem:[#allocation123_spill] sm:$0xff]  ;;  %v12098_v15 = vld [vmem:[#allocation124_spill] sm:$0xff] }
 0x2ab   :  { %12089 = vst [vmem:[#allocation160_spill] sm:$0xff] %v9450_v55  ;;  %12091 = vst [vmem:[#allocation32_spill] sm:$0xff] %v9453_v1  ;;  %2936 = vmatmul.mubr.bf16.vlgmr.msra.gmra.mrb[76].mxu1 %v9057_v29  ;;  %v12097_v21 = vld [vmem:[#allocation15_spill] sm:$0xff]  ;;  %v12099_v1 = vld [vmem:[#allocation17_spill] sm:$0xff] }
 0x2ac   :  { %3165 = vmatmul.mubr.bf16.vlgmr.msra.gmra.mrb[76].mxu0 %v9431_v36  ;;  %2990 = vmatpush1.bf16.msra.mxu1 %v12092_v33  ;;  %v12100_v55 = vld [vmem:[#allocation125_spill] sm:$0xff]  ;;  %v12101_v33 = vld [vmem:[#allocation19_spill] sm:$0xff]  ;;  %v12106_v57 = vld [vmem:[#allocation128_spill] sm:$0xff] }
 0x2ad   :  { %3219 = vmatpush1.bf16.msra.mxu0 %v12093_v61  ;;  %2991 = vmatprep.subr.bf16.mxu1 %v12094_v39  ;;  %v12102_v61 = vld [vmem:[#allocation126_spill] sm:$0xff]  ;;  %v12103_v39 = vld [vmem:[#allocation21_spill] sm:$0xff]  ;;  %v12105_v47 = vld [vmem:[#allocation23_spill] sm:$0xff] }
 0x2ae   :  { %3220 = vmatprep.subr.bf16.mxu0 %v12095_v56  ;;  %3021 = vmatprep.mubr.bf16.mxu1 %v11461_v16  ;;  %v12104_v56 = vld [vmem:[#allocation127_spill] sm:$0xff]  ;;  %v12117_v0 = vld [vmem:[#allocation33_spill] sm:$0xff] }
 0x2af   :  { %3250 = vmatprep.mubr.bf16.mxu0 %v11461_v16  ;;  %v12115_v3 = vld [vmem:[#allocation31_spill] sm:$0xff] }
 0x2b0   :  { %2992 = vmatpush1.bf16.msra.mxu1 %v12096_v60  ;;  %v12107_v60 = vld [vmem:[#allocation25_spill] sm:$0xff] }
 0x2b1   :  { %3221 = vmatpush1.bf16.msra.mxu0 %v12097_v21  ;;  %2993 = vmatprep.subr.bf16.mxu1 %v12098_v15  ;;  %v12108_v21 = vld [vmem:[#allocation129_spill] sm:$0xff]  ;;  %v12109_v15 = vld [vmem:[#allocation27_spill] sm:$0xff] }
 0x2b2   :  { %3222 = vmatprep.subr.bf16.mxu0 %v12099_v1  ;;  %v12110_v1 = vld [vmem:[#allocation130_spill] sm:$0xff] }
 0x2b4   :  { %2994 = vmatpush1.bf16.msra.mxu1 %v12100_v55 }
 0x2b5   :  { %3223 = vmatpush1.bf16.msra.mxu0 %v12101_v33  ;;  %2995 = vmatprep.subr.bf16.mxu1 %v12102_v61  ;;  %v12111_v33 = vld [vmem:[#allocation29_spill] sm:$0xff]  ;;  %v12112_v61 = vld [vmem:[#allocation163_spill] sm:$0xff] }
 0x2b6   :  { %3224 = vmatprep.subr.bf16.mxu0 %v12103_v39 }
 0x2b8   :  { %2996 = vmatpush1.bf16.msra.mxu1 %v12104_v56 }
 0x2b9   :  { %3225 = vmatpush1.bf16.msra.mxu0 %v12105_v47  ;;  %2997 = vmatprep.subr.bf16.mxu1 %v12106_v57  ;;  %v12113_v47 = vld [vmem:[#allocation164_spill] sm:$0xff] }
 0x2ba   :  { %3226 = vmatprep.subr.bf16.mxu0 %v12107_v60  ;;  %v12114_v60 = vld [vmem:[#allocation131_spill] sm:$0xff] }
 0x2bc   :  { %2998 = vmatpush1.bf16.msra.mxu1 %v12108_v21 }
 0x2bd   :  { %3227 = vmatpush1.bf16.msra.mxu0 %v12109_v15  ;;  %2999 = vmatprep.subr.bf16.mxu1 %v12110_v1 }
 0x2be   :  { %v2321_v55 = vpop.f32.mrb[52].mxu1  ;;  %3228 = vmatprep.subr.bf16.mxu0 %v12111_v33  ;;  %v2450_v39 = vpop.f32.mrb[52].mxu0 }
 0x2bf   :  { %v2322_v11 = vadd.f32 %v2321_v55, %v12112_v61  ;;  %v2323_v44 = vpop.f32.mrb[53].mxu1  ;;  %v2451_v56 = vadd.f32 %v2450_v39, %v8702_v13  ;;  %v2452_v57 = vpop.f32.mrb[53].mxu0  ;;  %v12116_v55 = vld [vmem:[#allocation132_spill] sm:$0xff] }
 0x2c0   :  { %v2324_v50 = vadd.f32 %v2323_v44, %v12113_v47  ;;  %v2325_v40 = vpop.f32.mrb[54].mxu1  ;;  %3000 = vmatpush1.bf16.msra.mxu1 %v12114_v60  ;;  %v2453_v15 = vadd.f32 %v2452_v57, %v8706_v27  ;;  %v2454_v46 = vpop.f32.mrb[54].mxu0 }
 0x2c1   :  { %v2590_v21 = vmax.f32 %v2322_v11, 0.0  ;;  %v2326_v1 = vadd.f32 %v2325_v40, %v12112_v61  ;;  %3229 = vmatpush1.bf16.msra.mxu0 %v12115_v3  ;;  %v2327_v33 = vpop.f32.mrb[55].mxu1  ;;  %3001 = vmatprep.subr.bf16.mxu1 %v12116_v55  ;;  %v2596_v38 = vmax.f32 %v2451_v56, 0.0  ;;  %v2455_v39 = vadd.f32 %v2454_v46, %v8702_v13  ;;  %v2456_v19 = vpop.f32.mrb[55].mxu0  ;;  %v12118_v11 = vld [vmem:[#allocation165_spill] sm:$0xff]  ;;  %v12120_v46 = vld [vmem:[#allocation166_spill] sm:$0xff] }
 0x2c2   :  { %v2591_v62 = vmax.f32 %v2324_v50, 0.0  ;;  %v2328_v44 = vadd.f32 %v2327_v33, %v12113_v47  ;;  %3230 = vmatprep.subr.bf16.mxu0 %v12117_v0  ;;  %v2597_v40 = vmax.f32 %v2453_v15, 0.0  ;;  %v12121_v0 = vld [vmem:[#allocation133_spill] sm:$0xff] }
 0x2c3   :  { %v9491_v60 = vadd.f32 %v2590_v21, %v12118_v11  ;;  %v9494_v57 = vmax.f32 %v9118_v31, %v2590_v21  ;;  %v2606_v3 = vmax.f32 %v2326_v1, 0.0  ;;  %v9497_v61 = vadd.f32 %v2596_v38, %v9121_v54  ;;  %v12122_v11 = vld [vmem:[#allocation167_spill] sm:$0xff]  ;;  %v12124_v1 = vld [vmem:[#allocation168_spill] sm:$0xff]  ;;  %v12126_v21 = vld [vmem:[#allocation169_spill] sm:$0xff] }
 0x2c4   :  { %v9500_v50 = vmax.f32 %v9124_v53, %v2596_v38  ;;  %v9503_v56 = vadd.f32 %v2591_v62, %v12120_v46  ;;  %v9506_v33 = vmax.f32 %v9130_v26, %v2591_v62  ;;  %3002 = vmatpush1.bf16.msra.mxu1 %v12121_v0  ;;  %v9513_v31 = vmax.f32 %v9137_v41, %v2597_v40  ;;  %v12127_v38 = vld [vmem:[#allocation35_spill] sm:$0xff]  ;;  %v12128_v62 = vld [vmem:[#allocation134_spill] sm:$0xff]  ;;  %v12129_v0 = vld [vmem:[#allocation37_spill] sm:$0xff] }
 0x2c5   :  { %12119 = vst [vmem:[#allocation161_spill] sm:$0xff] %v9491_v60  ;;  %v9510_v60 = vadd.f32 %v2597_v40, %v12122_v11  ;;  %v9516_v54 = vadd.f32 %v2606_v3, %v12124_v1  ;;  %v9519_v53 = vmax.f32 %v12126_v21, %v2606_v3  ;;  %3231 = vmatpush1.bf16.msra.mxu0 %v12127_v38  ;;  %v2612_v15 = vmax.f32 %v2455_v39, 0.0  ;;  %v12130_v11 = vld [vmem:[#allocation170_spill] sm:$0xff]  ;;  %v12132_v41 = vld [vmem:[#allocation171_spill] sm:$0xff]  ;;  %v12134_v1 = vld [vmem:[#allocation172_spill] sm:$0xff] }
 0x2c6   :  { %v2607_v46 = vmax.f32 %v2328_v44, 0.0  ;;  %v2457_v26 = vadd.f32 %v2456_v19, %v8706_v27  ;;  %3003 = vmatprep.subr.bf16.mxu1 %v12128_v62  ;;  %3232 = vmatprep.subr.bf16.mxu0 %v12129_v0  ;;  %v12136_v3 = vld [vmem:[#allocation173_spill] sm:$0xff]  ;;  %v12138_v39 = vld [vmem:[#allocation135_spill] sm:$0xff]  ;;  %v12140_v62 = vld [vmem:[#allocation40_spill] sm:$0xff] }
 0x2c7   :  { %12123 = vst [vmem:[#allocation162_spill] sm:$0xff] %v9510_v60  ;;  %12125 = vst [vmem:[#allocation164_spill] sm:$0xff] %v9516_v54  ;;  %v9526_v60 = vadd.f32 %v2612_v15, %v12130_v11  ;;  %v9529_v40 = vmax.f32 %v12132_v41, %v2612_v15  ;;  %v12139_v19 = vld [vmem:[#allocation39_spill] sm:$0xff]  ;;  %v12141_v0 = vld [vmem:[#allocation41_spill] sm:$0xff] }
 0x2c8   :  { %v9532_v54 = vadd.f32 %v2607_v46, %v12134_v1  ;;  %v9535_v21 = vmax.f32 %v12136_v3, %v2607_v46  ;;  %3004 = vmatpush1.bf16.msra.mxu1 %v12138_v39  ;;  %v2613_v44 = vmax.f32 %v2457_v26, 0.0  ;;  %v12142_v11 = vld [vmem:[#allocation174_spill] sm:$0xff]  ;;  %v12144_v15 = vld [vmem:[#allocation175_spill] sm:$0xff]  ;;  %v12148_v26 = vld [vmem:[#allocation44_spill] sm:$0xff] }
 0x2c9   :  { %12131 = vst [vmem:[#allocation132_spill] sm:$0xff] %v9526_v60  ;;  %12133 = vst [vmem:[#allocation165_spill] sm:$0xff] %v9529_v40  ;;  %3233 = vmatpush1.bf16.msra.mxu0 %v12139_v19  ;;  %3175 = vmatprep.subr.bf16.mxu1 %v12140_v62  ;;  %v12146_v46 = vld [vmem:[#allocation42_spill] sm:$0xff]  ;;  %v12147_v1 = vld [vmem:[#allocation43_spill] sm:$0xff] }
 0x2ca   :  { %12135 = vst [vmem:[#allocation166_spill] sm:$0xff] %v9532_v54  ;;  %12137 = vst [vmem:[#allocation167_spill] sm:$0xff] %v9535_v21  ;;  %3304 = vmatprep.subr.bf16.mxu0 %v12141_v0  ;;  %v9542_v60 = vadd.f32 %v2613_v44, %v12142_v11  ;;  %v9545_v41 = vmax.f32 %v12144_v15, %v2613_v44  ;;  %v12149_v3 = vld [vmem:[#allocation45_spill] sm:$0xff]  ;;  %v12150_v11 = vld [vmem:[#allocation46_spill] sm:$0xff] }
 0x2cb   :  { %3022 = vmatmul.mubr.bf16.vlgmr.msra.gmra.mrb[80].mxu1 %v9057_v29  ;;  %v12151_v44 = vld [vmem:[#allocation47_spill] sm:$0xff]  ;;  %v12152_v15 = vld [vmem:[#allocation48_spill] sm:$0xff]  ;;  %v12153_v29 = vld [vmem:[#allocation49_spill] sm:$0xff] }
 0x2cc   :  { %12143 = vst [vmem:[#allocation168_spill] sm:$0xff] %v9542_v60  ;;  %12145 = vst [vmem:[#allocation169_spill] sm:$0xff] %v9545_v41  ;;  %3251 = vmatmul.mubr.bf16.vlgmr.msra.gmra.mrb[80].mxu0 %v9431_v36  ;;  %3176 = vmatpush1.bf16.msra.mxu1 %v12146_v46  ;;  %v12154_v41 = vld [vmem:[#allocation50_spill] sm:$0xff]  ;;  %v12155_v46 = vld [vmem:[#allocation51_spill] sm:$0xff] }
 0x2cd   :  { %3305 = vmatpush1.bf16.msra.mxu0 %v12147_v1  ;;  %3177 = vmatprep.subr.bf16.mxu1 %v12148_v26  ;;  %v12156_v1 = vld [vmem:[#allocation52_spill] sm:$0xff]  ;;  %v12157_v26 = vld [vmem:[#allocation53_spill] sm:$0xff]  ;;  %v12159_v60 = vld [vmem:[#allocation55_spill] sm:$0xff] }
 0x2ce   :  { %3306 = vmatprep.subr.bf16.mxu0 %v12149_v3  ;;  %3207 = vmatprep.mubr.bf16.mxu1 %v11461_v16  ;;  %v12158_v3 = vld [vmem:[#allocation54_spill] sm:$0xff]  ;;  %v12160_v0 = vld [vmem:[#allocation56_spill] sm:$0xff]  ;;  %v12167_v21 = vld [vmem:[#allocation63_spill] sm:$0xff] }
 0x2cf   :  { %3336 = vmatprep.mubr.bf16.mxu0 %v11461_v16 }
 0x2d0   :  { %3178 = vmatpush1.bf16.msra.mxu1 %v12150_v11  ;;  %v12161_v11 = vld [vmem:[#allocation57_spill] sm:$0xff] }
 0x2d1   :  { %3307 = vmatpush1.bf16.msra.mxu0 %v12151_v44  ;;  %3179 = vmatprep.subr.bf16.mxu1 %v12152_v15  ;;  %v12162_v44 = vld [vmem:[#allocation58_spill] sm:$0xff]  ;;  %v12163_v15 = vld [vmem:[#allocation59_spill] sm:$0xff] }
 0x2d2   :  { %3308 = vmatprep.subr.bf16.mxu0 %v12153_v29  ;;  %v12164_v29 = vld [vmem:[#allocation60_spill] sm:$0xff] }
 0x2d4   :  { %3180 = vmatpush1.bf16.msra.mxu1 %v12154_v41 }
 0x2d5   :  { %3309 = vmatpush1.bf16.msra.mxu0 %v12155_v46  ;;  %3181 = vmatprep.subr.bf16.mxu1 %v12156_v1  ;;  %v12165_v46 = vld [vmem:[#allocation61_spill] sm:$0xff] }
 0x2d6   :  { %3310 = vmatprep.subr.bf16.mxu0 %v12157_v26 }
 0x2d8   :  { %3182 = vmatpush1.bf16.msra.mxu1 %v12158_v3 }
 0x2d9   :  { %3311 = vmatpush1.bf16.msra.mxu0 %v12159_v60  ;;  %3183 = vmatprep.subr.bf16.mxu1 %v12160_v0 }
 0x2da   :  { %3312 = vmatprep.subr.bf16.mxu0 %v12161_v11  ;;  %v12166_v11 = vld [vmem:[#allocation62_spill] sm:$0xff] }
 0x2dc   :  { %3184 = vmatpush1.bf16.msra.mxu1 %v12162_v44 }
 0x2dd   :  { %3313 = vmatpush1.bf16.msra.mxu0 %v12163_v15  ;;  %3185 = vmatprep.subr.bf16.mxu1 %v12164_v29 }
 0x2de   :  { %v2407_v41 = vpop.f32.mrb[56].mxu1  ;;  %3314 = vmatprep.subr.bf16.mxu0 %v12165_v46  ;;  %v2536_v26 = vpop.f32.mrb[56].mxu0 }
 0x2df   :  { %v2408_v1 = vadd.f32 %v2407_v41, %v11960_v6  ;;  %v2409_v62 = vpop.f32.mrb[57].mxu1  ;;  %v2537_v3 = vadd.f32 %v2536_v26, %v11765_v30  ;;  %v2538_v0 = vpop.f32.mrb[57].mxu0 }
 0x2e0   :  { %v2410_v60 = vadd.f32 %v2409_v62, %v8813_v49  ;;  %v2411_v19 = vpop.f32.mrb[58].mxu1  ;;  %3186 = vmatpush1.bf16.msra.mxu1 %v12166_v11  ;;  %v2539_v15 = vadd.f32 %v2538_v0, %v11767_v43  ;;  %v2540_v39 = vpop.f32.mrb[58].mxu0 }
 0x2e1   :  { %v2594_v44 = vmax.f32 %v2408_v1, 0.0  ;;  %v2412_v29 = vadd.f32 %v2411_v19, %v11960_v6  ;;  %3315 = vmatpush1.bf16.msra.mxu0 %v12167_v21  ;;  %v2413_v46 = vpop.f32.mrb[59].mxu1  ;;  %3187 = vmatprep.subr.bf16.mxu1 %v11963_v58  ;;  %v2600_v41 = vmax.f32 %v2537_v3, 0.0  ;;  %v2541_v26 = vadd.f32 %v2540_v39, %v11765_v30  ;;  %v2542_v40 = vpop.f32.mrb[59].mxu0  ;;  %v12168_v1 = vld [vmem:[#allocation176_spill] sm:$0xff]  ;;  %v12170_v39 = vld [vmem:[#allocation177_spill] sm:$0xff] }
 0x2e2   :  { %v2595_v54 = vmax.f32 %v2410_v60, 0.0  ;;  %v2414_v62 = vadd.f32 %v2413_v46, %v8813_v49  ;;  %3316 = vmatprep.subr.bf16.mxu0 %v11770_v8  ;;  %v2601_v19 = vmax.f32 %v2539_v15, 0.0  ;;  %v12171_v8 = vld [vmem:[#allocation66_spill] sm:$0xff]  ;;  %v12176_v15 = vld [vmem:[#allocation180_spill] sm:$0xff] }
 0x2e3   :  { %v9583_v11 = vadd.f32 %v2594_v44, %v12168_v1  ;;  %v9586_v0 = vmax.f32 %v9210_v28, %v2594_v44  ;;  %v2610_v21 = vmax.f32 %v2412_v29, 0.0  ;;  %v9589_v6 = vadd.f32 %v2600_v41, %v9213_v2  ;;  %v12172_v1 = vld [vmem:[#allocation178_spill] sm:$0xff]  ;;  %v12174_v44 = vld [vmem:[#allocation179_spill] sm:$0xff] }
 0x2e4   :  { %v9592_v60 = vmax.f32 %v9216_v14, %v2600_v41  ;;  %v9595_v3 = vadd.f32 %v2595_v54, %v12170_v39  ;;  %v9598_v46 = vmax.f32 %v9222_v10, %v2595_v54  ;;  %3188 = vmatpush1.bf16.msra.mxu1 %v12171_v8  ;;  %v9605_v28 = vmax.f32 %v9229_v51, %v2601_v19  ;;  %v12178_v29 = vld [vmem:[#allocation67_spill] sm:$0xff]  ;;  %v12179_v54 = vld [vmem:[#allocation68_spill] sm:$0xff]  ;;  %v12180_v8 = vld [vmem:[#allocation69_spill] sm:$0xff] }
 0x2e5   :  { %12169 = vst [vmem:[#allocation170_spill] sm:$0xff] %v9583_v11  ;;  %v9602_v11 = vadd.f32 %v2601_v19, %v12172_v1  ;;  %v9608_v2 = vadd.f32 %v2610_v21, %v12174_v44  ;;  %v9611_v14 = vmax.f32 %v12176_v15, %v2610_v21  ;;  %3317 = vmatpush1.bf16.msra.mxu0 %v12178_v29  ;;  %v2616_v41 = vmax.f32 %v2541_v26, 0.0  ;;  %v12181_v1 = vld [vmem:[#allocation64_spill] sm:$0xff]  ;;  %v12183_v51 = vld [vmem:[#allocation141_spill] sm:$0xff]  ;;  %v12185_v44 = vld [vmem:[#allocation142_spill] sm:$0xff] }
 0x2e6   :  { %v2611_v39 = vmax.f32 %v2414_v62, 0.0  ;;  %v2543_v10 = vadd.f32 %v2542_v40, %v11767_v43  ;;  %3189 = vmatprep.subr.bf16.mxu1 %v12179_v54  ;;  %3318 = vmatprep.subr.bf16.mxu0 %v12180_v8  ;;  %v12187_v21 = vld [vmem:[#allocation143_spill] sm:$0xff]  ;;  %v12189_v26 = vld [vmem:[#allocation70_spill] sm:$0xff]  ;;  %v12191_v54 = vld [vmem:[#allocation72_spill] sm:$0xff] }
 0x2e7   :  { %12173 = vst [vmem:[#allocation171_spill] sm:$0xff] %v9602_v11  ;;  %12175 = vst [vmem:[#allocation172_spill] sm:$0xff] %v9608_v2  ;;  %v9618_v11 = vadd.f32 %v2616_v41, %v12181_v1  ;;  %v9621_v19 = vmax.f32 %v12183_v51, %v2616_v41  ;;  %v12190_v40 = vld [vmem:[#allocation71_spill] sm:$0xff]  ;;  %v12192_v8 = vld [vmem:[#allocation73_spill] sm:$0xff] }
 0x2e8   :  { %12177 = vst [vmem:[#allocation173_spill] sm:$0xff] %v9611_v14  ;;  %v9624_v2 = vadd.f32 %v2611_v39, %v12185_v44  ;;  %v9627_v15 = vmax.f32 %v12187_v21, %v2611_v39  ;;  %3190 = vmatpush1.bf16.msra.mxu1 %v12189_v26  ;;  %v2617_v62 = vmax.f32 %v2543_v10, 0.0  ;;  %v12193_v1 = vld [vmem:[#allocation145_spill] sm:$0xff]  ;;  %v12195_v41 = vld [vmem:[#allocation144_spill] sm:$0xff]  ;;  %v12197_v39 = vld [vmem:[#allocation74_spill] sm:$0xff] }
 0x2e9   :  { %12182 = vst [vmem:[#allocation174_spill] sm:$0xff] %v9618_v11  ;;  %12184 = vst [vmem:[#allocation175_spill] sm:$0xff] %v9621_v19  ;;  %3319 = vmatpush1.bf16.msra.mxu0 %v12190_v40  ;;  %3261 = vmatprep.subr.bf16.mxu1 %v12191_v54  ;;  %v12198_v44 = vld [vmem:[#allocation75_spill] sm:$0xff]  ;;  %v12199_v10 = vld [vmem:[#allocation76_spill] sm:$0xff] }
 0x2ea   :  { %12186 = vst [vmem:[#allocation176_spill] sm:$0xff] %v9624_v2  ;;  %12188 = vst [vmem:[#allocation177_spill] sm:$0xff] %v9627_v15  ;;  %3390 = vmatprep.subr.bf16.mxu0 %v12192_v8  ;;  %v9634_v11 = vadd.f32 %v2617_v62, %v12193_v1  ;;  %v9637_v51 = vmax.f32 %v12195_v41, %v2617_v62  ;;  %v12200_v21 = vld [vmem:[#allocation77_spill] sm:$0xff]  ;;  %v12201_v1 = vld [vmem:[#allocation78_spill] sm:$0xff] }
 0x2eb   :  { %3208 = vmatmul.mubr.bf16.vlgmr.msra.gmra.mrb[84].mxu1 %v9431_v36  ;;  %v12202_v62 = vld [vmem:[#allocation79_spill] sm:$0xff]  ;;  %v12203_v41 = vld [vmem:[#allocation80_spill] sm:$0xff]  ;;  %v12219_v14 = vld [vmem:[#allocation97_spill] sm:$0xff] }
 0x2ec   :  { %12194 = vst [vmem:[#allocation178_spill] sm:$0xff] %v9634_v11  ;;  %12196 = vst [vmem:[#allocation179_spill] sm:$0xff] %v9637_v51  ;;  %3337 = vmatmul.mubr.bf16.vlgmr.msra.gmra.mrb[84].mxu0 %v9431_v36  ;;  %3262 = vmatpush1.bf16.msra.mxu1 %v12197_v39  ;;  %v12204_v51 = vld [vmem:[#allocation81_spill] sm:$0xff]  ;;  %v12205_v11 = vld [vmem:[#allocation82_spill] sm:$0xff] }
 0x2ed   :  { %3391 = vmatpush1.bf16.msra.mxu0 %v12198_v44  ;;  %3263 = vmatprep.subr.bf16.mxu1 %v12199_v10  ;;  %v12206_v39 = vld [vmem:[#allocation83_spill] sm:$0xff]  ;;  %v12207_v44 = vld [vmem:[#allocation84_spill] sm:$0xff]  ;;  %v12208_v10 = vld [vmem:[#allocation85_spill] sm:$0xff] }
 0x2ee   :  { %3392 = vmatprep.subr.bf16.mxu0 %v12200_v21  ;;  %3293 = vmatprep.mubr.bf16.mxu1 %v11461_v16  ;;  %v12209_v21 = vld [vmem:[#allocation86_spill] sm:$0xff]  ;;  %v12210_v8 = vld [vmem:[#allocation87_spill] sm:$0xff]  ;;  %v12211_v54 = vld [vmem:[#allocation88_spill] sm:$0xff] }
 0x2ef   :  { %3422 = vmatprep.mubr.bf16.mxu0 %v11461_v16  ;;  %v12218_v2 = vld [vmem:[#allocation95_spill] sm:$0xff] }
 0x2f0   :  { %3264 = vmatpush1.bf16.msra.mxu1 %v12201_v1  ;;  %v12212_v1 = vld [vmem:[#allocation89_spill] sm:$0xff] }
 0x2f1   :  { %3393 = vmatpush1.bf16.msra.mxu0 %v12202_v62  ;;  %3265 = vmatprep.subr.bf16.mxu1 %v12203_v41  ;;  %v12213_v62 = vld [vmem:[#allocation90_spill] sm:$0xff]  ;;  %v12214_v41 = vld [vmem:[#allocation91_spill] sm:$0xff] }
 0x2f2   :  { %3394 = vmatprep.subr.bf16.mxu0 %v12204_v51  ;;  %v12215_v51 = vld [vmem:[#allocation92_spill] sm:$0xff] }
 0x2f4   :  { %3266 = vmatpush1.bf16.msra.mxu1 %v12205_v11 }
 0x2f5   :  { %3395 = vmatpush1.bf16.msra.mxu0 %v12206_v39  ;;  %3267 = vmatprep.subr.bf16.mxu1 %v12207_v44  ;;  %v12216_v39 = vld [vmem:[#allocation93_spill] sm:$0xff] }
 0x2f6   :  { %3396 = vmatprep.subr.bf16.mxu0 %v12208_v10 }
 0x2f8   :  { %3268 = vmatpush1.bf16.msra.mxu1 %v12209_v21 }
 0x2f9   :  { %3397 = vmatpush1.bf16.msra.mxu0 %v12210_v8  ;;  %3269 = vmatprep.subr.bf16.mxu1 %v12211_v54 }
 0x2fa   :  { %3398 = vmatprep.subr.bf16.mxu0 %v12212_v1  ;;  %v12217_v1 = vld [vmem:[#allocation94_spill] sm:$0xff] }
 0x2fc   :  { %3270 = vmatpush1.bf16.msra.mxu1 %v12213_v62 }
 0x2fd   :  { %3399 = vmatpush1.bf16.msra.mxu0 %v12214_v41  ;;  %3271 = vmatprep.subr.bf16.mxu1 %v12215_v51 }
 0x2fe   :  { %v2493_v11 = vpop.f32.mrb[60].mxu1  ;;  %3400 = vmatprep.subr.bf16.mxu0 %v12216_v39  ;;  %v2722_v10 = vpop.f32.mrb[60].mxu0 }
 0x2ff   :  { %v2494_v44 = vadd.f32 %v2493_v11, %v11812_v9  ;;  %v2495_v40 = vpop.f32.mrb[61].mxu1  ;;  %v2723_v21 = vadd.f32 %v2722_v10, %v8503_v12  ;;  %v2724_v54 = vpop.f32.mrb[61].mxu0 }
 0x300   :  { %v2496_v8 = vadd.f32 %v2495_v40, %v8533_v59  ;;  %v2497_v26 = vpop.f32.mrb[62].mxu1  ;;  %3272 = vmatpush1.bf16.msra.mxu1 %v12217_v1  ;;  %v2725_v41 = vadd.f32 %v2724_v54, %v8510_v18  ;;  %v2726_v15 = vpop.f32.mrb[62].mxu0 }
 0x301   :  { %v2598_v62 = vmax.f32 %v2494_v44, 0.0  ;;  %v2498_v51 = vadd.f32 %v2497_v26, %v11812_v9  ;;  %3401 = vmatpush1.bf16.msra.mxu0 %v12218_v2  ;;  %v2499_v39 = vpop.f32.mrb[63].mxu1  ;;  %3273 = vmatprep.subr.bf16.mxu1 %v12015_v32  ;;  %v3032_v11 = vmax.f32 %v2723_v21, 0.0  ;;  %v2727_v10 = vadd.f32 %v2726_v15, %v8503_v12  ;;  %v2728_v29 = vpop.f32.mrb[63].mxu0  ;;  %v12220_v44 = vld [vmem:[#allocation146_spill] sm:$0xff]  ;;  %v12222_v15 = vld [vmem:[#allocation147_spill] sm:$0xff] }
 0x302   :  { %v2599_v19 = vmax.f32 %v2496_v8, 0.0  ;;  %v2500_v40 = vadd.f32 %v2499_v39, %v8533_v59  ;;  %3402 = vmatprep.subr.bf16.mxu0 %v12219_v14  ;;  %v3033_v26 = vmax.f32 %v2725_v41, 0.0  ;;  %v12223_v14 = vld [vmem:[#allocation98_spill] sm:$0xff]  ;;  %v12229_v41 = vld [vmem:[#allocation99_spill] sm:$0xff] }
 0x303   :  { %v9675_v1 = vadd.f32 %v2598_v62, %v12220_v44  ;;  %v9678_v54 = vmax.f32 %v9302_v63, %v2598_v62  ;;  %v2614_v2 = vmax.f32 %v2498_v51, 0.0  ;;  %v9681_v9 = vadd.f32 %v3032_v11, %v9305_v34  ;;  %v12224_v44 = vld [vmem:[#allocation139_spill] sm:$0xff]  ;;  %v12226_v51 = vld [vmem:[#allocation140_spill] sm:$0xff]  ;;  %v12228_v62 = vld [vmem:[#allocation182_spill] sm:$0xff] }
 0x304   :  { %v9684_v8 = vmax.f32 %v9308_v5, %v3032_v11  ;;  %v9687_v21 = vadd.f32 %v2599_v19, %v12222_v15  ;;  %v9690_v39 = vmax.f32 %v9314_v48, %v2599_v19  ;;  %3274 = vmatpush1.bf16.msra.mxu1 %v12223_v14  ;;  %v9697_v63 = vmax.f32 %v9321_v42, %v3033_v26  ;;  %v12230_v19 = vld [vmem:[#allocation100_spill] sm:$0xff]  ;;  %v12231_v14 = vld [vmem:[#allocation101_spill] sm:$0xff]  ;;  %v12234_v42 = vld [vmem:[#allocation151_spill] sm:$0xff] }
 0x305   :  { %12221 = vst [vmem:[#allocation180_spill] sm:$0xff] %v9675_v1  ;;  %v9694_v1 = vadd.f32 %v3033_v26, %v12224_v44  ;;  %v9700_v34 = vadd.f32 %v2614_v2, %v12226_v51  ;;  %v9703_v5 = vmax.f32 %v12228_v62, %v2614_v2  ;;  %3403 = vmatpush1.bf16.msra.mxu0 %v12229_v41  ;;  %v3048_v11 = vmax.f32 %v2727_v10, 0.0  ;;  %v12232_v44 = vld [vmem:[#allocation96_spill] sm:$0xff]  ;;  %v12238_v2 = vld [vmem:[#allocation153_spill] sm:$0xff]  ;;  %v12240_v10 = vld [vmem:[#allocation102_spill] sm:$0xff] }
 0x306   :  { %v2615_v15 = vmax.f32 %v2500_v40, 0.0  ;;  %v2729_v48 = vadd.f32 %v2728_v29, %v8510_v18  ;;  %3275 = vmatprep.subr.bf16.mxu1 %v12230_v19  ;;  %3404 = vmatprep.subr.bf16.mxu0 %v12231_v14  ;;  %v12236_v51 = vld [vmem:[#allocation152_spill] sm:$0xff]  ;;  %v12241_v29 = vld [vmem:[#allocation103_spill] sm:$0xff] }
 0x307   :  { %12225 = vst [vmem:[#allocation64_spill] sm:$0xff] %v9694_v1  ;;  %12227 = vst [vmem:[#allocation141_spill] sm:$0xff] %v9700_v34  ;;  %v9710_v1 = vadd.f32 %v3048_v11, %v12232_v44  ;;  %v9713_v26 = vmax.f32 %v12234_v42, %v3048_v11  ;;  %v12242_v19 = vld [vmem:[#allocation104_spill] sm:$0xff]  ;;  %v12244_v44 = vld [vmem:[#allocation154_spill] sm:$0xff] }
 0x308   :  { %v9716_v34 = vadd.f32 %v2615_v15, %v12236_v51  ;;  %v9719_v62 = vmax.f32 %v12238_v2, %v2615_v15  ;;  %3276 = vmatpush1.bf16.msra.mxu1 %v12240_v10  ;;  %v3049_v40 = vmax.f32 %v2729_v48, 0.0  ;;  %v12243_v14 = vld [vmem:[#allocation8_spill] sm:$0xff]  ;;  %v12246_v11 = vld [vmem:[#allocation183_spill] sm:$0xff]  ;;  %v12248_v15 = vld [vmem:[#allocation105_spill] sm:$0xff] }
 0x309   :  { %12233 = vst [vmem:[#allocation142_spill] sm:$0xff] %v9710_v1  ;;  %12235 = vst [vmem:[#allocation143_spill] sm:$0xff] %v9713_v26  ;;  %3405 = vmatpush1.bf16.msra.mxu0 %v12241_v29  ;;  %3347 = vmatprep.subr.bf16.mxu1 %v12242_v19  ;;  %v12249_v51 = vld [vmem:[#allocation9_spill] sm:$0xff]  ;;  %v12250_v48 = vld [vmem:[#allocation106_spill] sm:$0xff] }
 0x30a   :  { %12237 = vst [vmem:[#allocation145_spill] sm:$0xff] %v9716_v34  ;;  %12239 = vst [vmem:[#allocation144_spill] sm:$0xff] %v9719_v62  ;;  %3576 = vmatprep.subr.bf16.mxu0 %v12243_v14  ;;  %v9726_v1 = vadd.f32 %v3049_v40, %v12244_v44  ;;  %v9729_v42 = vmax.f32 %v12246_v11, %v3049_v40  ;;  %v12251_v2 = vld [vmem:[#allocation12_spill] sm:$0xff]  ;;  %v12252_v44 = vld [vmem:[#allocation107_spill] sm:$0xff] }
 0x30b   :  { %3294 = vmatmul.mubr.bf16.vlgmr.msra.gmra.mrb[88].mxu1 %v9431_v36  ;;  %v12253_v40 = vld [vmem:[#allocation14_spill] sm:$0xff]  ;;  %v12254_v11 = vld [vmem:[#allocation108_spill] sm:$0xff] }
 0x30c   :  { %12245 = vst [vmem:[#allocation146_spill] sm:$0xff] %v9726_v1  ;;  %12247 = vst [vmem:[#allocation147_spill] sm:$0xff] %v9729_v42  ;;  %3423 = vmatmul.mubr.bf16.vlgmr.msra.gmra.mrb[88].mxu0 %v9431_v36  ;;  %3348 = vmatpush1.bf16.msra.mxu1 %v12248_v15  ;;  %v12255_v42 = vld [vmem:[#allocation16_spill] sm:$0xff]  ;;  %v12256_v1 = vld [vmem:[#allocation109_spill] sm:$0xff] }
 0x30d   :  { %3577 = vmatpush1.bf16.msra.mxu0 %v12249_v51  ;;  %3349 = vmatprep.subr.bf16.mxu1 %v12250_v48  ;;  %v12257_v15 = vld [vmem:[#allocation18_spill] sm:$0xff]  ;;  %v12259_v48 = vld [vmem:[#allocation20_spill] sm:$0xff] }
 0x30e   :  { %3578 = vmatprep.subr.bf16.mxu0 %v12251_v2  ;;  %3379 = vmatprep.mubr.bf16.mxu1 %v11461_v16  ;;  %v12258_v51 = vld [vmem:[#allocation110_spill] sm:$0xff]  ;;  %v12260_v2 = vld [vmem:[#allocation111_spill] sm:$0xff]  ;;  %v12262_v19 = vld [vmem:[#allocation112_spill] sm:$0xff] }
 0x30f   :  { %3608 = vmatprep.mubr.bf16.mxu0 %v11461_v16  ;;  %v12261_v14 = vld [vmem:[#allocation22_spill] sm:$0xff] }
 0x310   :  { %3350 = vmatpush1.bf16.msra.mxu1 %v12252_v44  ;;  %v12263_v44 = vld [vmem:[#allocation24_spill] sm:$0xff]  ;;  %v12269_v34 = vld [vmem:[#allocation30_spill] sm:$0xff] }
 0x311   :  { %3579 = vmatpush1.bf16.msra.mxu0 %v12253_v40  ;;  %3351 = vmatprep.subr.bf16.mxu1 %v12254_v11  ;;  %v12264_v40 = vld [vmem:[#allocation113_spill] sm:$0xff]  ;;  %v12265_v11 = vld [vmem:[#allocation26_spill] sm:$0xff] }
 0x312   :  { %3580 = vmatprep.subr.bf16.mxu0 %v12255_v42  ;;  %v12266_v42 = vld [vmem:[#allocation114_spill] sm:$0xff] }
 0x314   :  { %3352 = vmatpush1.bf16.msra.mxu1 %v12256_v1 }
 0x315   :  { %3581 = vmatpush1.bf16.msra.mxu0 %v12257_v15  ;;  %3353 = vmatprep.subr.bf16.mxu1 %v12258_v51  ;;  %v12267_v15 = vld [vmem:[#allocation28_spill] sm:$0xff] }
 0x316   :  { %3582 = vmatprep.subr.bf16.mxu0 %v12259_v48 }
 0x318   :  { %3354 = vmatpush1.bf16.msra.mxu1 %v12260_v2 }
 0x319   :  { %3583 = vmatpush1.bf16.msra.mxu0 %v12261_v14  ;;  %3355 = vmatprep.subr.bf16.mxu1 %v12262_v19 }
 0x31a   :  { %3584 = vmatprep.subr.bf16.mxu0 %v12263_v44  ;;  %v12268_v44 = vld [vmem:[#allocation115_spill] sm:$0xff] }
 0x31c   :  { %3356 = vmatpush1.bf16.msra.mxu1 %v12264_v40 }
 0x31d   :  { %3585 = vmatpush1.bf16.msra.mxu0 %v12265_v11  ;;  %3357 = vmatprep.subr.bf16.mxu1 %v12266_v42 }
 0x31e   :  { %v2579_v1 = vpop.f32.mrb[64].mxu1  ;;  %3586 = vmatprep.subr.bf16.mxu0 %v12267_v15 }
 0x31f   :  { %v2580_v51 = vadd.f32 %v2579_v1, %v11863_v45  ;;  %v2808_v48 = vpop.f32.mrb[64].mxu0  ;;  %v2581_v29 = vpop.f32.mrb[65].mxu1 }
 0x320   :  { %v2809_v2 = vadd.f32 %v2808_v48, %v8600_v24  ;;  %v2582_v14 = vadd.f32 %v2581_v29, %v8330_v7  ;;  %v2810_v19 = vpop.f32.mrb[65].mxu0  ;;  %v2583_v10 = vpop.f32.mrb[66].mxu1  ;;  %3358 = vmatpush1.bf16.msra.mxu1 %v12268_v44 }
 0x321   :  { %v2602_v40 = vmax.f32 %v2580_v51, 0.0  ;;  %v2811_v11 = vadd.f32 %v2810_v19, %v8608_v25  ;;  %v2584_v42 = vadd.f32 %v2583_v10, %v11863_v45  ;;  %v2812_v62 = vpop.f32.mrb[66].mxu0  ;;  %3587 = vmatpush1.bf16.msra.mxu0 %v12269_v34  ;;  %v2585_v15 = vpop.f32.mrb[67].mxu1  ;;  %3359 = vmatprep.subr.bf16.mxu1 %v12068_v17 }
 0x322   :  { %v3036_v1 = vmax.f32 %v2809_v2, 0.0  ;;  %v2603_v26 = vmax.f32 %v2582_v14, 0.0  ;;  %v2813_v48 = vadd.f32 %v2812_v62, %v8600_v24  ;;  %v2586_v29 = vadd.f32 %v2585_v15, %v8330_v7  ;;  %v2814_v41 = vpop.f32.mrb[67].mxu0  ;;  %3588 = vmatprep.subr.bf16.mxu0 %v11686_v20  ;;  %v12274_v2 = vld [vmem:[#allocation117_spill] sm:$0xff] }
 0x323   :  { %v9767_v51 = vadd.f32 %v2602_v40, %v9391_v35  ;;  %v9770_v19 = vmax.f32 %v9394_v23, %v2602_v40  ;;  %v3037_v10 = vmax.f32 %v2811_v11, 0.0  ;;  %v2618_v34 = vmax.f32 %v2584_v42, 0.0  ;;  %v6860_v35 = vld [vmem:[%s11059_s0 + $0x60] sm:$0xff]  ;;  %v12275_v23 = vld [vmem:[#allocation155_spill] sm:$0xff] }
 0x324   :  { %v9773_v44 = vadd.f32 %v3036_v1, %v9397_v22  ;;  %v9776_v14 = vmax.f32 %v9400_v37, %v3036_v1  ;;  %v9779_v62 = vadd.f32 %v2603_v26, %v9403_v52  ;;  %v9782_v15 = vmax.f32 %v9406_v4, %v2603_v26  ;;  %3360 = vmatpush1.bf16.msra.mxu1 %v12274_v2  ;;  %v6861_v22 = vld [vmem:[%s11059_s0 + $0x68] sm:$0xff]  ;;  %v12276_v37 = vld [vmem:[#allocation156_spill] sm:$0xff]  ;;  %v12282_v1 = vld [vmem:[#allocation34_spill] sm:$0xff] }
 0x325   :  { %v9792_v42 = vadd.f32 %v3037_v10, %v12275_v23  ;;  %v9795_v40 = vmax.f32 %v12276_v37, %v3037_v10  ;;  %v12278_v52 = vld [vmem:[#allocation184_spill] sm:$0xff]  ;;  %v12280_v4 = vld [vmem:[#allocation185_spill] sm:$0xff]  ;;  %3589 = vmatpush1.bf16.msra.mxu0 %v12282_v1  ;;  %v3052_v2 = vmax.f32 %v2813_v48, 0.0  ;;  %v9807_v23 = vpack.c.bf16 %v6861_v22, %v6860_v35  ;;  %v12291_v1 = vld [vmem:[#allocation159_spill] sm:$0xff] }
 0x326   :  { %12270 = vst [vmem:[#allocation139_spill] sm:$0xff] %v9773_v44  ;;  %12271 = vst [vmem:[#allocation140_spill] sm:$0xff] %v9776_v14  ;;  %v9798_v11 = vadd.f32 %v2618_v34, %v12278_v52  ;;  %v9801_v26 = vmax.f32 %v12280_v4, %v2618_v34  ;;  %v12283_v14 = vld [vmem:[#allocation118_spill] sm:$0xff]  ;;  %v12284_v44 = vld [vmem:[#allocation36_spill] sm:$0xff] }
 0x327   :  { %12272 = vst [vmem:[#allocation182_spill] sm:$0xff] %v9779_v62  ;;  %12273 = vst [vmem:[#allocation96_spill] sm:$0xff] %v9782_v15  ;;  %v2619_v15 = vmax.f32 %v2586_v29, 0.0  ;;  %v2815_v62 = vadd.f32 %v2814_v41, %v8608_v25  ;;  %3361 = vmatprep.subr.bf16.mxu1 %v12283_v14  ;;  %3590 = vmatprep.subr.bf16.mxu0 %v12284_v44  ;;  %v12285_v10 = vld [vmem:[#allocation157_spill] sm:$0xff]  ;;  %v12287_v52 = vld [vmem:[#allocation158_spill] sm:$0xff] }
 0x328   :  { %12277 = vst [vmem:[#allocation151_spill] sm:$0xff] %v9795_v40  ;;  %12279 = vst [vmem:[#allocation152_spill] sm:$0xff] %v9798_v11  ;;  %v9810_v37 = vadd.f32 %v3052_v2, %v12285_v10  ;;  %v9813_v11 = vmax.f32 %v12287_v52, %v3052_v2  ;;  %v12289_v34 = vld [vmem:[#allocation137_spill] sm:$0xff]  ;;  %v12293_v29 = vld [vmem:[#allocation119_spill] sm:$0xff] }
 0x329   :  { %12281 = vst [vmem:[#allocation153_spill] sm:$0xff] %v9801_v26  ;;  %v9816_v4 = vadd.f32 %v2619_v15, %v12289_v34  ;;  %v9819_v48 = vmax.f32 %v12291_v1, %v2619_v15  ;;  %3362 = vmatpush1.bf16.msra.mxu1 %v12293_v29  ;;  %v3053_v41 = vmax.f32 %v2815_v62, 0.0  ;;  %v12294_v14 = vld [vmem:[#allocation38_spill] sm:$0xff]  ;;  %v12295_v44 = vld [vmem:[#allocation120_spill] sm:$0xff]  ;;  %v12301_v15 = vld [vmem:[#allocation121_spill] sm:$0xff] }
 0x32a   :  { %12286 = vst [vmem:[#allocation154_spill] sm:$0xff] %v9810_v37  ;;  %12288 = vst [vmem:[#allocation183_spill] sm:$0xff] %v9813_v11  ;;  %3591 = vmatpush1.bf16.msra.mxu0 %v12294_v14  ;;  %3433 = vmatprep.subr.bf16.mxu1 %v12295_v44  ;;  %v12296_v35 = vld [vmem:[#allocation10_spill] sm:$0xff]  ;;  %v12297_v22 = vld [vmem:[#allocation160_spill] sm:$0xff] }
 0x32b   :  { %12290 = vst [vmem:[#allocation155_spill] sm:$0xff] %v9816_v4  ;;  %12292 = vst [vmem:[#allocation156_spill] sm:$0xff] %v9819_v48  ;;  %3662 = vmatprep.subr.bf16.mxu0 %v12296_v35  ;;  %v9826_v10 = vadd.f32 %v3053_v41, %v12297_v22  ;;  %v12299_v2 = vld [vmem:[#allocation32_spill] sm:$0xff]  ;;  %v12302_v1 = vld [vmem:[#allocation11_spill] sm:$0xff] }
 0x32c   :  { %v9829_v52 = vmax.f32 %v12299_v2, %v3053_v41  ;;  %3380 = vmatmul.mubr.bf16.vlgmr.msra.gmra.mrb[92].mxu1 %v9431_v36  ;;  %v12303_v62 = vld [vmem:[#allocation122_spill] sm:$0xff]  ;;  %v12304_v34 = vld [vmem:[#allocation13_spill] sm:$0xff]  ;;  %v12305_v22 = vld [vmem:[#allocation123_spill] sm:$0xff] }
 0x32d   :  { %12298 = vst [vmem:[#allocation184_spill] sm:$0xff] %v9826_v10  ;;  %3609 = vmatmul.mubr.bf16.vlgmr.msra.gmra.mrb[92].mxu0 %v9807_v23  ;;  %3434 = vmatpush1.bf16.msra.mxu1 %v12301_v15  ;;  %v12306_v41 = vld [vmem:[#allocation15_spill] sm:$0xff]  ;;  %v12307_v2 = vld [vmem:[#allocation124_spill] sm:$0xff]  ;;  %v12309_v10 = vld [vmem:[#allocation125_spill] sm:$0xff] }
 0x32e   :  { %12300 = vst [vmem:[#allocation185_spill] sm:$0xff] %v9829_v52  ;;  %3663 = vmatpush1.bf16.msra.mxu0 %v12302_v1  ;;  %3435 = vmatprep.subr.bf16.mxu1 %v12303_v62  ;;  %v12308_v52 = vld [vmem:[#allocation17_spill] sm:$0xff]  ;;  %v12310_v15 = vld [vmem:[#allocation19_spill] sm:$0xff]  ;;  %v12311_v1 = vld [vmem:[#allocation126_spill] sm:$0xff] }
 0x32f   :  { %3664 = vmatprep.subr.bf16.mxu0 %v12304_v34  ;;  %3465 = vmatprep.mubr.bf16.mxu1 %v11461_v16  ;;  %v12312_v62 = vld [vmem:[#allocation21_spill] sm:$0xff]  ;;  %v12313_v34 = vld [vmem:[#allocation127_spill] sm:$0xff]  ;;  %v12315_v44 = vld [vmem:[#allocation128_spill] sm:$0xff] }
 0x330   :  { %3694 = vmatprep.mubr.bf16.mxu0 %v11461_v16  ;;  %v12314_v35 = vld [vmem:[#allocation23_spill] sm:$0xff]  ;;  %v12324_v40 = vld [vmem:[#allocation33_spill] sm:$0xff] }
 0x331   :  { %3436 = vmatpush1.bf16.msra.mxu1 %v12305_v22  ;;  %v12316_v22 = vld [vmem:[#allocation25_spill] sm:$0xff]  ;;  %v12323_v11 = vld [vmem:[#allocation31_spill] sm:$0xff] }
 0x332   :  { %3665 = vmatpush1.bf16.msra.mxu0 %v12306_v41  ;;  %3437 = vmatprep.subr.bf16.mxu1 %v12307_v2  ;;  %v12317_v41 = vld [vmem:[#allocation129_spill] sm:$0xff]  ;;  %v12318_v2 = vld [vmem:[#allocation27_spill] sm:$0xff] }
 0x333   :  { %3666 = vmatprep.subr.bf16.mxu0 %v12308_v52  ;;  %v12319_v52 = vld [vmem:[#allocation130_spill] sm:$0xff] }
 0x335   :  { %3438 = vmatpush1.bf16.msra.mxu1 %v12309_v10 }
 0x336   :  { %3667 = vmatpush1.bf16.msra.mxu0 %v12310_v15  ;;  %3439 = vmatprep.subr.bf16.mxu1 %v12311_v1  ;;  %v12320_v15 = vld [vmem:[#allocation29_spill] sm:$0xff]  ;;  %v12321_v1 = vld [vmem:[#allocation163_spill] sm:$0xff] }
 0x337   :  { %3668 = vmatprep.subr.bf16.mxu0 %v12312_v62 }
 0x339   :  { %3440 = vmatpush1.bf16.msra.mxu1 %v12313_v34 }
 0x33a   :  { %3669 = vmatpush1.bf16.msra.mxu0 %v12314_v35  ;;  %3441 = vmatprep.subr.bf16.mxu1 %v12315_v44 }
 0x33b   :  { %3670 = vmatprep.subr.bf16.mxu0 %v12316_v22  ;;  %v12322_v22 = vld [vmem:[#allocation131_spill] sm:$0xff] }
 0x33d   :  { %3442 = vmatpush1.bf16.msra.mxu1 %v12317_v41 }
 0x33e   :  { %3671 = vmatpush1.bf16.msra.mxu0 %v12318_v2  ;;  %3443 = vmatprep.subr.bf16.mxu1 %v12319_v52  ;;  %v2765_v10 = vpop.f32.mrb[68].mxu1 }
 0x33f   :  { %3672 = vmatprep.subr.bf16.mxu0 %v12320_v15  ;;  %v2766_v14 = vadd.f32 %v2765_v10, %v12321_v1  ;;  %v2894_v62 = vpop.f32.mrb[68].mxu0  ;;  %v2767_v29 = vpop.f32.mrb[69].mxu1 }
 0x340   :  { %v2895_v34 = vadd.f32 %v2894_v62, %v8702_v13  ;;  %v2768_v35 = vadd.f32 %v2767_v29, %v12113_v47  ;;  %v2896_v44 = vpop.f32.mrb[69].mxu0  ;;  %v2769_v48 = vpop.f32.mrb[70].mxu1 }
 0x341   :  { %3444 = vmatpush1.bf16.msra.mxu1 %v12322_v22  ;;  %v3034_v41 = vmax.f32 %v2766_v14, 0.0  ;;  %v2897_v2 = vadd.f32 %v2896_v44, %v8706_v27  ;;  %v2770_v52 = vadd.f32 %v2769_v48, %v12321_v1  ;;  %v2898_v4 = vpop.f32.mrb[70].mxu0  ;;  %v2771_v15 = vpop.f32.mrb[71].mxu1  ;;  %v12325_v14 = vld [vmem:[#allocation161_spill] sm:$0xff] }
 0x342   :  { %3673 = vmatpush1.bf16.msra.mxu0 %v12323_v11  ;;  %3445 = vmatprep.subr.bf16.mxu1 %v12116_v55  ;;  %v3040_v10 = vmax.f32 %v2895_v34, 0.0  ;;  %v3035_v37 = vmax.f32 %v2768_v35, 0.0  ;;  %v2899_v62 = vadd.f32 %v2898_v4, %v8702_v13  ;;  %v2772_v29 = vadd.f32 %v2771_v15, %v12113_v47  ;;  %v2900_v26 = vpop.f32.mrb[71].mxu0  ;;  %v12327_v34 = vld [vmem:[#allocation133_spill] sm:$0xff] }
 0x343   :  { %3674 = vmatprep.subr.bf16.mxu0 %v12324_v40  ;;  %v9867_v22 = vadd.f32 %v3034_v41, %v12325_v14  ;;  %v9870_v44 = vmax.f32 %v9494_v57, %v3034_v41  ;;  %v3041_v48 = vmax.f32 %v2897_v2, 0.0  ;;  %v3050_v11 = vmax.f32 %v2770_v52, 0.0  ;;  %v12328_v14 = vld [vmem:[#allocation162_spill] sm:$0xff]  ;;  %v12329_v52 = vld [vmem:[#allocation164_spill] sm:$0xff]  ;;  %v12333_v2 = vld [vmem:[#allocation37_spill] sm:$0xff] }
 0x344   :  { %v9873_v1 = vadd.f32 %v3040_v10, %v9497_v61  ;;  %v9876_v35 = vmax.f32 %v9500_v50, %v3040_v10  ;;  %v9879_v4 = vadd.f32 %v3035_v37, %v9503_v56  ;;  %v9882_v15 = vmax.f32 %v9506_v33, %v3035_v37  ;;  %v12332_v37 = vld [vmem:[#allocation134_spill] sm:$0xff]  ;;  %v12334_v10 = vld [vmem:[#allocation132_spill] sm:$0xff] }
 0x345   :  { %12326 = vst [vmem:[#allocation157_spill] sm:$0xff] %v9867_v22  ;;  %3446 = vmatpush1.bf16.msra.mxu1 %v12327_v34  ;;  %v9886_v22 = vadd.f32 %v3041_v48, %v12328_v14  ;;  %v9889_v57 = vmax.f32 %v9513_v31, %v3041_v48  ;;  %v9892_v61 = vadd.f32 %v3050_v11, %v12329_v52  ;;  %v3056_v56 = vmax.f32 %v2899_v62, 0.0  ;;  %v12336_v31 = vld [vmem:[#allocation165_spill] sm:$0xff]  ;;  %v12338_v52 = vld [vmem:[#allocation166_spill] sm:$0xff]  ;;  %v12342_v62 = vld [vmem:[#allocation135_spill] sm:$0xff] }
 0x346   :  { %v9895_v50 = vmax.f32 %v9519_v53, %v3050_v11  ;;  %3675 = vmatpush1.bf16.msra.mxu0 %v12127_v38  ;;  %v3051_v41 = vmax.f32 %v2772_v29, 0.0  ;;  %v2901_v33 = vadd.f32 %v2900_v26, %v8706_v27  ;;  %3447 = vmatprep.subr.bf16.mxu1 %v12332_v37  ;;  %v12340_v53 = vld [vmem:[#allocation167_spill] sm:$0xff]  ;;  %v12344_v37 = vld [vmem:[#allocation40_spill] sm:$0xff] }
 0x347   :  { %12330 = vst [vmem:[#allocation158_spill] sm:$0xff] %v9892_v61  ;;  %3676 = vmatprep.subr.bf16.mxu0 %v12333_v2  ;;  %v9902_v14 = vadd.f32 %v3056_v56, %v12334_v10  ;;  %v9905_v48 = vmax.f32 %v12336_v31, %v3056_v56  ;;  %v12343_v26 = vld [vmem:[#allocation39_spill] sm:$0xff]  ;;  %v12345_v2 = vld [vmem:[#allocation41_spill] sm:$0xff]  ;;  %v12346_v10 = vld [vmem:[#allocation168_spill] sm:$0xff] }
 0x348   :  { %12331 = vst [vmem:[#allocation137_spill] sm:$0xff] %v9895_v50  ;;  %v9908_v61 = vadd.f32 %v3051_v41, %v12338_v52  ;;  %v9911_v11 = vmax.f32 %v12340_v53, %v3051_v41  ;;  %v3057_v29 = vmax.f32 %v2901_v33, 0.0  ;;  %v12348_v56 = vld [vmem:[#allocation169_spill] sm:$0xff]  ;;  %v12350_v41 = vld [vmem:[#allocation42_spill] sm:$0xff]  ;;  %v12351_v52 = vld [vmem:[#allocation43_spill] sm:$0xff] }
 0x349   :  { %12335 = vst [vmem:[#allocation159_spill] sm:$0xff] %v9902_v14  ;;  %12337 = vst [vmem:[#allocation160_spill] sm:$0xff] %v9905_v48  ;;  %3448 = vmatpush1.bf16.msra.mxu1 %v12342_v62  ;;  %v12352_v33 = vld [vmem:[#allocation44_spill] sm:$0xff]  ;;  %v12353_v53 = vld [vmem:[#allocation45_spill] sm:$0xff] }
 0x34a   :  { %12339 = vst [vmem:[#allocation32_spill] sm:$0xff] %v9908_v61  ;;  %12341 = vst [vmem:[#allocation33_spill] sm:$0xff] %v9911_v11  ;;  %3677 = vmatpush1.bf16.msra.mxu0 %v12343_v26  ;;  %3619 = vmatprep.subr.bf16.mxu1 %v12344_v37  ;;  %v9918_v14 = vadd.f32 %v3057_v29, %v12346_v10  ;;  %v9921_v31 = vmax.f32 %v12348_v56, %v3057_v29  ;;  %v12354_v10 = vld [vmem:[#allocation46_spill] sm:$0xff]  ;;  %v12355_v29 = vld [vmem:[#allocation47_spill] sm:$0xff] }
 0x34b   :  { %3748 = vmatprep.subr.bf16.mxu0 %v12345_v2  ;;  %v12356_v56 = vld [vmem:[#allocation48_spill] sm:$0xff]  ;;  %v12372_v61 = vld [vmem:[#allocation63_spill] sm:$0xff]  ;;  %v12373_v50 = vld [vmem:[#allocation65_spill] sm:$0xff] }
 0x34c   :  { %12347 = vst [vmem:[#allocation161_spill] sm:$0xff] %v9918_v14  ;;  %12349 = vst [vmem:[#allocation133_spill] sm:$0xff] %v9921_v31  ;;  %3466 = vmatmul.mubr.bf16.vlgmr.msra.gmra.mrb[96].mxu1 %v9431_v36  ;;  %v12357_v36 = vld [vmem:[#allocation49_spill] sm:$0xff]  ;;  %v12358_v31 = vld [vmem:[#allocation50_spill] sm:$0xff] }
 0x34d   :  { %3695 = vmatmul.mubr.bf16.vlgmr.msra.gmra.mrb[96].mxu0 %v9807_v23  ;;  %3620 = vmatpush1.bf16.msra.mxu1 %v12350_v41  ;;  %v12359_v41 = vld [vmem:[#allocation51_spill] sm:$0xff]  ;;  %v12364_v2 = vld [vmem:[#allocation56_spill] sm:$0xff] }
 0x34e   :  { %3749 = vmatpush1.bf16.msra.mxu0 %v12351_v52  ;;  %3621 = vmatprep.subr.bf16.mxu1 %v12352_v33  ;;  %v12360_v52 = vld [vmem:[#allocation52_spill] sm:$0xff]  ;;  %v12361_v33 = vld [vmem:[#allocation53_spill] sm:$0xff]  ;;  %v12363_v14 = vld [vmem:[#allocation55_spill] sm:$0xff] }
 0x34f   :  { %3750 = vmatprep.subr.bf16.mxu0 %v12353_v53  ;;  %3651 = vmatprep.mubr.bf16.mxu1 %v11461_v16  ;;  %v12362_v53 = vld [vmem:[#allocation54_spill] sm:$0xff] }
 0x350   :  { %3780 = vmatprep.mubr.bf16.mxu0 %v11461_v16 }
 0x351   :  { %3622 = vmatpush1.bf16.msra.mxu1 %v12354_v10  ;;  %v12365_v10 = vld [vmem:[#allocation57_spill] sm:$0xff] }
 0x352   :  { %3751 = vmatpush1.bf16.msra.mxu0 %v12355_v29  ;;  %3623 = vmatprep.subr.bf16.mxu1 %v12356_v56  ;;  %v12366_v29 = vld [vmem:[#allocation58_spill] sm:$0xff]  ;;  %v12367_v56 = vld [vmem:[#allocation59_spill] sm:$0xff] }
 0x353   :  { %3752 = vmatprep.subr.bf16.mxu0 %v12357_v36  ;;  %v12368_v36 = vld [vmem:[#allocation60_spill] sm:$0xff] }
 0x355   :  { %3624 = vmatpush1.bf16.msra.mxu1 %v12358_v31 }
 0x356   :  { %3753 = vmatpush1.bf16.msra.mxu0 %v12359_v41  ;;  %3625 = vmatprep.subr.bf16.mxu1 %v12360_v52  ;;  %v12369_v41 = vld [vmem:[#allocation61_spill] sm:$0xff] }
 0x357   :  { %3754 = vmatprep.subr.bf16.mxu0 %v12361_v33  ;;  %v12370_v52 = vld [vmem:[#allocation181_spill] sm:$0xff] }
 0x359   :  { %3626 = vmatpush1.bf16.msra.mxu1 %v12362_v53 }
 0x35a   :  { %3755 = vmatpush1.bf16.msra.mxu0 %v12363_v14  ;;  %3627 = vmatprep.subr.bf16.mxu1 %v12364_v2 }
 0x35b   :  { %3756 = vmatprep.subr.bf16.mxu0 %v12365_v10  ;;  %v12371_v10 = vld [vmem:[#allocation62_spill] sm:$0xff] }
 0x35d   :  { %3628 = vmatpush1.bf16.msra.mxu1 %v12366_v29 }
 0x35e   :  { %3757 = vmatpush1.bf16.msra.mxu0 %v12367_v56  ;;  %3629 = vmatprep.subr.bf16.mxu1 %v12368_v36  ;;  %v2851_v31 = vpop.f32.mrb[72].mxu1 }
 0x35f   :  { %3758 = vmatprep.subr.bf16.mxu0 %v12369_v41  ;;  %v2852_v37 = vadd.f32 %v2851_v31, %v12370_v52  ;;  %v2980_v33 = vpop.f32.mrb[72].mxu0  ;;  %v2853_v26 = vpop.f32.mrb[73].mxu1 }
 0x360   :  { %v2981_v53 = vadd.f32 %v2980_v33, %v11765_v30  ;;  %v2854_v14 = vadd.f32 %v2853_v26, %v8813_v49  ;;  %v2982_v2 = vpop.f32.mrb[73].mxu0  ;;  %v2855_v62 = vpop.f32.mrb[74].mxu1 }
 0x361   :  { %3630 = vmatpush1.bf16.msra.mxu1 %v12371_v10  ;;  %v3038_v29 = vmax.f32 %v2852_v37, 0.0  ;;  %v2983_v56 = vadd.f32 %v2982_v2, %v11767_v43  ;;  %v2856_v36 = vadd.f32 %v2855_v62, %v12370_v52  ;;  %v2984_v11 = vpop.f32.mrb[74].mxu0  ;;  %v2857_v41 = vpop.f32.mrb[75].mxu1  ;;  %v12374_v37 = vld [vmem:[#allocation170_spill] sm:$0xff] }
 0x362   :  { %3759 = vmatpush1.bf16.msra.mxu0 %v12372_v61  ;;  %3631 = vmatprep.subr.bf16.mxu1 %v11963_v58  ;;  %v3044_v31 = vmax.f32 %v2981_v53, 0.0  ;;  %v3039_v48 = vmax.f32 %v2854_v14, 0.0  ;;  %v2985_v33 = vadd.f32 %v2984_v11, %v11765_v30  ;;  %v2858_v26 = vadd.f32 %v2857_v41, %v8813_v49  ;;  %v2986_v38 = vpop.f32.mrb[75].mxu0  ;;  %v12376_v53 = vld [vmem:[#allocation66_spill] sm:$0xff] }
 0x363   :  { %3760 = vmatprep.subr.bf16.mxu0 %v12373_v50  ;;  %v9959_v10 = vadd.f32 %v3038_v29, %v12374_v37  ;;  %v9962_v2 = vmax.f32 %v9586_v0, %v3038_v29  ;;  %v3045_v62 = vmax.f32 %v2983_v56, 0.0  ;;  %v3054_v61 = vmax.f32 %v2856_v36, 0.0  ;;  %v12377_v37 = vld [vmem:[#allocation171_spill] sm:$0xff]  ;;  %v12380_v29 = vld [vmem:[#allocation172_spill] sm:$0xff]  ;;  %v12382_v56 = vld [vmem:[#allocation173_spill] sm:$0xff] }
 0x364   :  { %v9965_v52 = vadd.f32 %v3044_v31, %v9589_v6  ;;  %v9968_v14 = vmax.f32 %v9592_v60, %v3044_v31  ;;  %v9971_v11 = vadd.f32 %v3039_v48, %v9595_v3  ;;  %v9974_v41 = vmax.f32 %v9598_v46, %v3039_v48  ;;  %v12384_v36 = vld [vmem:[#allocation67_spill] sm:$0xff]  ;;  %v12385_v48 = vld [vmem:[#allocation68_spill] sm:$0xff] }
 0x365   :  { %12375 = vst [vmem:[#allocation162_spill] sm:$0xff] %v9959_v10  ;;  %3632 = vmatpush1.bf16.msra.mxu1 %v12376_v53  ;;  %v9978_v10 = vadd.f32 %v3045_v62, %v12377_v37  ;;  %v9981_v0 = vmax.f32 %v9605_v28, %v3045_v62  ;;  %v9984_v6 = vadd.f32 %v3054_v61, %v12380_v29  ;;  %v3060_v3 = vmax.f32 %v2985_v33, 0.0  ;;  %v12386_v53 = vld [vmem:[#allocation69_spill] sm:$0xff]  ;;  %v12387_v37 = vld [vmem:[#allocation174_spill] sm:$0xff]  ;;  %v12389_v28 = vld [vmem:[#allocation175_spill] sm:$0xff] }
 0x366   :  { %v9987_v60 = vmax.f32 %v12382_v56, %v3054_v61  ;;  %3761 = vmatpush1.bf16.msra.mxu0 %v12384_v36  ;;  %v3055_v31 = vmax.f32 %v2858_v26, 0.0  ;;  %v2987_v46 = vadd.f32 %v2986_v38, %v11767_v43  ;;  %3633 = vmatprep.subr.bf16.mxu1 %v12385_v48  ;;  %v12391_v29 = vld [vmem:[#allocation176_spill] sm:$0xff]  ;;  %v12393_v61 = vld [vmem:[#allocation177_spill] sm:$0xff]  ;;  %v12395_v33 = vld [vmem:[#allocation70_spill] sm:$0xff] }
 0x367   :  { %12378 = vst [vmem:[#allocation164_spill] sm:$0xff] %v9978_v10  ;;  %12379 = vst [vmem:[#allocation132_spill] sm:$0xff] %v9981_v0  ;;  %3762 = vmatprep.subr.bf16.mxu0 %v12386_v53  ;;  %v9994_v10 = vadd.f32 %v3060_v3, %v12387_v37  ;;  %v9997_v62 = vmax.f32 %v12389_v28, %v3060_v3  ;;  %v12396_v38 = vld [vmem:[#allocation71_spill] sm:$0xff]  ;;  %v12397_v48 = vld [vmem:[#allocation72_spill] sm:$0xff] }
 0x368   :  { %12381 = vst [vmem:[#allocation165_spill] sm:$0xff] %v9984_v6  ;;  %12383 = vst [vmem:[#allocation166_spill] sm:$0xff] %v9987_v60  ;;  %v10000_v6 = vadd.f32 %v3055_v31, %v12391_v29  ;;  %v10003_v56 = vmax.f32 %v12393_v61, %v3055_v31  ;;  %v3061_v26 = vmax.f32 %v2987_v46, 0.0  ;;  %v12398_v53 = vld [vmem:[#allocation73_spill] sm:$0xff]  ;;  %v12399_v37 = vld [vmem:[#allocation178_spill] sm:$0xff] }
 0x369   :  { %12388 = vst [vmem:[#allocation167_spill] sm:$0xff] %v9994_v10  ;;  %12390 = vst [vmem:[#allocation168_spill] sm:$0xff] %v9997_v62  ;;  %3634 = vmatpush1.bf16.msra.mxu1 %v12395_v33  ;;  %v12401_v3 = vld [vmem:[#allocation179_spill] sm:$0xff]  ;;  %v12403_v31 = vld [vmem:[#allocation74_spill] sm:$0xff] }
 0x36a   :  { %12392 = vst [vmem:[#allocation169_spill] sm:$0xff] %v10000_v6  ;;  %12394 = vst [vmem:[#allocation65_spill] sm:$0xff] %v10003_v56  ;;  %3763 = vmatpush1.bf16.msra.mxu0 %v12396_v38  ;;  %3705 = vmatprep.subr.bf16.mxu1 %v12397_v48  ;;  %v10010_v10 = vadd.f32 %v3061_v26, %v12399_v37  ;;  %v10013_v28 = vmax.f32 %v12401_v3, %v3061_v26  ;;  %v12404_v29 = vld [vmem:[#allocation75_spill] sm:$0xff]  ;;  %v12405_v46 = vld [vmem:[#allocation76_spill] sm:$0xff] }
 0x36b   :  { %3834 = vmatprep.subr.bf16.mxu0 %v12398_v53  ;;  %v12406_v61 = vld [vmem:[#allocation77_spill] sm:$0xff]  ;;  %v12407_v37 = vld [vmem:[#allocation78_spill] sm:$0xff]  ;;  %v12408_v26 = vld [vmem:[#allocation79_spill] sm:$0xff] }
 0x36c   :  { %12400 = vst [vmem:[#allocation170_spill] sm:$0xff] %v10010_v10  ;;  %12402 = vst [vmem:[#allocation171_spill] sm:$0xff] %v10013_v28  ;;  %3652 = vmatmul.mubr.bf16.vlgmr.msra.gmra.mrb[100].mxu1 %v9807_v23  ;;  %v12409_v3 = vld [vmem:[#allocation80_spill] sm:$0xff]  ;;  %v12410_v28 = vld [vmem:[#allocation81_spill] sm:$0xff] }
 0x36d   :  { %3781 = vmatmul.mubr.bf16.vlgmr.msra.gmra.mrb[100].mxu0 %v9807_v23  ;;  %3706 = vmatpush1.bf16.msra.mxu1 %v12403_v31  ;;  %v12411_v10 = vld [vmem:[#allocation82_spill] sm:$0xff]  ;;  %v12412_v31 = vld [vmem:[#allocation83_spill] sm:$0xff]  ;;  %v12417_v48 = vld [vmem:[#allocation88_spill] sm:$0xff] }
 0x36e   :  { %3835 = vmatpush1.bf16.msra.mxu0 %v12404_v29  ;;  %3707 = vmatprep.subr.bf16.mxu1 %v12405_v46  ;;  %v12413_v29 = vld [vmem:[#allocation84_spill] sm:$0xff]  ;;  %v12414_v46 = vld [vmem:[#allocation85_spill] sm:$0xff]  ;;  %v12416_v53 = vld [vmem:[#allocation87_spill] sm:$0xff] }
 0x36f   :  { %3836 = vmatprep.subr.bf16.mxu0 %v12406_v61  ;;  %3737 = vmatprep.mubr.bf16.mxu1 %v11461_v16  ;;  %v12415_v61 = vld [vmem:[#allocation86_spill] sm:$0xff]  ;;  %v12425_v62 = vld [vmem:[#allocation95_spill] sm:$0xff]  ;;  %v12426_v0 = vld [vmem:[#allocation97_spill] sm:$0xff] }
 0x370   :  { %3866 = vmatprep.mubr.bf16.mxu0 %v11461_v16 }
 0x371   :  { %3708 = vmatpush1.bf16.msra.mxu1 %v12407_v37  ;;  %v12418_v37 = vld [vmem:[#allocation89_spill] sm:$0xff] }
 0x372   :  { %3837 = vmatpush1.bf16.msra.mxu0 %v12408_v26  ;;  %3709 = vmatprep.subr.bf16.mxu1 %v12409_v3  ;;  %v12419_v26 = vld [vmem:[#allocation90_spill] sm:$0xff]  ;;  %v12420_v3 = vld [vmem:[#allocation91_spill] sm:$0xff] }
 0x373   :  { %3838 = vmatprep.subr.bf16.mxu0 %v12410_v28  ;;  %v12421_v28 = vld [vmem:[#allocation92_spill] sm:$0xff] }
 0x375   :  { %3710 = vmatpush1.bf16.msra.mxu1 %v12411_v10 }
 0x376   :  { %3839 = vmatpush1.bf16.msra.mxu0 %v12412_v31  ;;  %3711 = vmatprep.subr.bf16.mxu1 %v12413_v29  ;;  %v12422_v31 = vld [vmem:[#allocation93_spill] sm:$0xff]  ;;  %v12423_v29 = vld [vmem:[#allocation150_spill] sm:$0xff] }
 0x377   :  { %3840 = vmatprep.subr.bf16.mxu0 %v12414_v46 }
 0x379   :  { %3712 = vmatpush1.bf16.msra.mxu1 %v12415_v61 }
 0x37a   :  { %3841 = vmatpush1.bf16.msra.mxu0 %v12416_v53  ;;  %3713 = vmatprep.subr.bf16.mxu1 %v12417_v48 }
 0x37b   :  { %3842 = vmatprep.subr.bf16.mxu0 %v12418_v37  ;;  %v12424_v37 = vld [vmem:[#allocation94_spill] sm:$0xff] }
 0x37d   :  { %3714 = vmatpush1.bf16.msra.mxu1 %v12419_v26 }
 0x37e   :  { %3843 = vmatpush1.bf16.msra.mxu0 %v12420_v3  ;;  %3715 = vmatprep.subr.bf16.mxu1 %v12421_v28  ;;  %v2937_v10 = vpop.f32.mrb[76].mxu1 }
 0x37f   :  { %3844 = vmatprep.subr.bf16.mxu0 %v12422_v31  ;;  %v2938_v38 = vadd.f32 %v2937_v10, %v12423_v29  ;;  %v3166_v46 = vpop.f32.mrb[76].mxu0  ;;  %v2939_v33 = vpop.f32.mrb[77].mxu1 }
 0x380   :  { %v3167_v61 = vadd.f32 %v3166_v46, %v8503_v12  ;;  %v2940_v53 = vadd.f32 %v2939_v33, %v8533_v59  ;;  %v3168_v48 = vpop.f32.mrb[77].mxu0  ;;  %v2941_v56 = vpop.f32.mrb[78].mxu1 }
 0x381   :  { %3716 = vmatpush1.bf16.msra.mxu1 %v12424_v37  ;;  %v3042_v26 = vmax.f32 %v2938_v38, 0.0  ;;  %v3169_v3 = vadd.f32 %v3168_v48, %v8510_v18  ;;  %v2942_v28 = vadd.f32 %v2941_v56, %v12423_v29  ;;  %v3170_v6 = vpop.f32.mrb[78].mxu0  ;;  %v2943_v31 = vpop.f32.mrb[79].mxu1  ;;  %v12427_v38 = vld [vmem:[#allocation180_spill] sm:$0xff] }
 0x382   :  { %3845 = vmatpush1.bf16.msra.mxu0 %v12425_v62  ;;  %3717 = vmatprep.subr.bf16.mxu1 %v12015_v32  ;;  %v3476_v10 = vmax.f32 %v3167_v61, 0.0  ;;  %v3043_v36 = vmax.f32 %v2940_v53, 0.0  ;;  %v3171_v46 = vadd.f32 %v3170_v6, %v8503_v12  ;;  %v2944_v33 = vadd.f32 %v2943_v31, %v8533_v59  ;;  %v3172_v60 = vpop.f32.mrb[79].mxu0  ;;  %v12429_v61 = vld [vmem:[#allocation98_spill] sm:$0xff] }
 0x383   :  { %3846 = vmatprep.subr.bf16.mxu0 %v12426_v0  ;;  %v10051_v37 = vadd.f32 %v3042_v26, %v12427_v38  ;;  %v10054_v48 = vmax.f32 %v9678_v54, %v3042_v26  ;;  %v3477_v56 = vmax.f32 %v3169_v3, 0.0  ;;  %v3058_v62 = vmax.f32 %v2942_v28, 0.0  ;;  %v12430_v38 = vld [vmem:[#allocation64_spill] sm:$0xff]  ;;  %v12432_v28 = vld [vmem:[#allocation141_spill] sm:$0xff]  ;;  %v12434_v26 = vld [vmem:[#allocation99_spill] sm:$0xff] }
 0x384   :  { %v10057_v29 = vadd.f32 %v3476_v10, %v9681_v9  ;;  %v10060_v53 = vmax.f32 %v9684_v8, %v3476_v10  ;;  %v10063_v6 = vadd.f32 %v3043_v36, %v9687_v21  ;;  %v10066_v31 = vmax.f32 %v9690_v39, %v3043_v36  ;;  %v12435_v36 = vld [vmem:[#allocation100_spill] sm:$0xff]  ;;  %v12436_v10 = vld [vmem:[#allocation101_spill] sm:$0xff] }
 0x385   :  { %12428 = vst [vmem:[#allocation172_spill] sm:$0xff] %v10051_v37  ;;  %3718 = vmatpush1.bf16.msra.mxu1 %v12429_v61  ;;  %v10070_v37 = vadd.f32 %v3477_v56, %v12430_v38  ;;  %v10073_v54 = vmax.f32 %v9697_v63, %v3477_v56  ;;  %v10076_v9 = vadd.f32 %v3058_v62, %v12432_v28  ;;  %v3492_v21 = vmax.f32 %v3171_v46, 0.0  ;;  %v12437_v38 = vld [vmem:[#allocation142_spill] sm:$0xff]  ;;  %v12439_v63 = vld [vmem:[#allocation143_spill] sm:$0xff]  ;;  %v12441_v28 = vld [vmem:[#allocation145_spill] sm:$0xff] }
 0x386   :  { %v10079_v8 = vmax.f32 %v9703_v5, %v3058_v62  ;;  %3847 = vmatpush1.bf16.msra.mxu0 %v12434_v26  ;;  %v3059_v3 = vmax.f32 %v2944_v33, 0.0  ;;  %v3173_v39 = vadd.f32 %v3172_v60, %v8510_v18  ;;  %3719 = vmatprep.subr.bf16.mxu1 %v12435_v36  ;;  %v12443_v5 = vld [vmem:[#allocation144_spill] sm:$0xff]  ;;  %v12445_v46 = vld [vmem:[#allocation102_spill] sm:$0xff]  ;;  %v12446_v60 = vld [vmem:[#allocation103_spill] sm:$0xff] }
 0x387   :  { %12431 = vst [vmem:[#allocation173_spill] sm:$0xff] %v10070_v37  ;;  %12433 = vst [vmem:[#allocation174_spill] sm:$0xff] %v10076_v9  ;;  %3848 = vmatprep.subr.bf16.mxu0 %v12436_v10  ;;  %v10086_v37 = vadd.f32 %v3492_v21, %v12437_v38  ;;  %v10089_v56 = vmax.f32 %v12439_v63, %v3492_v21  ;;  %v12447_v36 = vld [vmem:[#allocation104_spill] sm:$0xff]  ;;  %v12449_v38 = vld [vmem:[#allocation146_spill] sm:$0xff] }
 0x388   :  { %v10092_v9 = vadd.f32 %v3059_v3, %v12441_v28  ;;  %v10095_v62 = vmax.f32 %v12443_v5, %v3059_v3  ;;  %v3493_v33 = vmax.f32 %v3173_v39, 0.0  ;;  %v12448_v10 = vld [vmem:[#allocation8_spill] sm:$0xff]  ;;  %v12451_v21 = vld [vmem:[#allocation147_spill] sm:$0xff]  ;;  %v12453_v3 = vld [vmem:[#allocation105_spill] sm:$0xff] }
 0x389   :  { %12438 = vst [vmem:[#allocation175_spill] sm:$0xff] %v10086_v37  ;;  %12440 = vst [vmem:[#allocation176_spill] sm:$0xff] %v10089_v56  ;;  %3720 = vmatpush1.bf16.msra.mxu1 %v12445_v46  ;;  %v12454_v28 = vld [vmem:[#allocation9_spill] sm:$0xff]  ;;  %v12455_v39 = vld [vmem:[#allocation106_spill] sm:$0xff] }
 0x38a   :  { %12442 = vst [vmem:[#allocation177_spill] sm:$0xff] %v10092_v9  ;;  %12444 = vst [vmem:[#allocation178_spill] sm:$0xff] %v10095_v62  ;;  %3849 = vmatpush1.bf16.msra.mxu0 %v12446_v60  ;;  %3791 = vmatprep.subr.bf16.mxu1 %v12447_v36  ;;  %v10102_v37 = vadd.f32 %v3493_v33, %v12449_v38  ;;  %v10105_v63 = vmax.f32 %v12451_v21, %v3493_v33  ;;  %v12456_v5 = vld [vmem:[#allocation12_spill] sm:$0xff]  ;;  %v12458_v33 = vld [vmem:[#allocation14_spill] sm:$0xff] }
 0x38b   :  { %4020 = vmatprep.subr.bf16.mxu0 %v12448_v10  ;;  %v12457_v10 = vld [vmem:[#allocation107_spill] sm:$0xff]  ;;  %v12459_v38 = vld [vmem:[#allocation108_spill] sm:$0xff]  ;;  %v12474_v9 = vld [vmem:[#allocation30_spill] sm:$0xff] }
 0x38c   :  { %12450 = vst [vmem:[#allocation179_spill] sm:$0xff] %v10102_v37  ;;  %12452 = vst [vmem:[#allocation97_spill] sm:$0xff] %v10105_v63  ;;  %3738 = vmatmul.mubr.bf16.vlgmr.msra.gmra.mrb[104].mxu1 %v9807_v23  ;;  %v12460_v21 = vld [vmem:[#allocation16_spill] sm:$0xff]  ;;  %v12461_v63 = vld [vmem:[#allocation109_spill] sm:$0xff] }
 0x38d   :  { %3867 = vmatmul.mubr.bf16.vlgmr.msra.gmra.mrb[104].mxu0 %v9807_v23  ;;  %3792 = vmatpush1.bf16.msra.mxu1 %v12453_v3  ;;  %v12462_v3 = vld [vmem:[#allocation18_spill] sm:$0xff]  ;;  %v12467_v36 = vld [vmem:[#allocation112_spill] sm:$0xff] }
 0x38e   :  { %4021 = vmatpush1.bf16.msra.mxu0 %v12454_v28  ;;  %3793 = vmatprep.subr.bf16.mxu1 %v12455_v39  ;;  %v12463_v28 = vld [vmem:[#allocation110_spill] sm:$0xff]  ;;  %v12464_v39 = vld [vmem:[#allocation20_spill] sm:$0xff] }
 0x38f   :  { %4022 = vmatprep.subr.bf16.mxu0 %v12456_v5  ;;  %3823 = vmatprep.mubr.bf16.mxu1 %v11461_v16  ;;  %v12465_v5 = vld [vmem:[#allocation111_spill] sm:$0xff]  ;;  %v12466_v37 = vld [vmem:[#allocation22_spill] sm:$0xff] }
 0x390   :  { %4052 = vmatprep.mubr.bf16.mxu0 %v11461_v16 }
 0x391   :  { %3794 = vmatpush1.bf16.msra.mxu1 %v12457_v10  ;;  %v12468_v10 = vld [vmem:[#allocation24_spill] sm:$0xff] }
 0x392   :  { %4023 = vmatpush1.bf16.msra.mxu0 %v12458_v33  ;;  %3795 = vmatprep.subr.bf16.mxu1 %v12459_v38  ;;  %v12469_v33 = vld [vmem:[#allocation113_spill] sm:$0xff]  ;;  %v12470_v38 = vld [vmem:[#allocation26_spill] sm:$0xff] }
 0x393   :  { %4024 = vmatprep.subr.bf16.mxu0 %v12460_v21  ;;  %v12471_v21 = vld [vmem:[#allocation114_spill] sm:$0xff] }
 0x395   :  { %3796 = vmatpush1.bf16.msra.mxu1 %v12461_v63 }
 0x396   :  { %4025 = vmatpush1.bf16.msra.mxu0 %v12462_v3  ;;  %3797 = vmatprep.subr.bf16.mxu1 %v12463_v28  ;;  %v12472_v3 = vld [vmem:[#allocation28_spill] sm:$0xff] }
 0x397   :  { %4026 = vmatprep.subr.bf16.mxu0 %v12464_v39 }
 0x399   :  { %3798 = vmatpush1.bf16.msra.mxu1 %v12465_v5 }
 0x39a   :  { %4027 = vmatpush1.bf16.msra.mxu0 %v12466_v37  ;;  %3799 = vmatprep.subr.bf16.mxu1 %v12467_v36 }
 0x39b   :  { %4028 = vmatprep.subr.bf16.mxu0 %v12468_v10  ;;  %v12473_v10 = vld [vmem:[#allocation115_spill] sm:$0xff] }
 0x39d   :  { %3800 = vmatpush1.bf16.msra.mxu1 %v12469_v33 }
 0x39e   :  { %4029 = vmatpush1.bf16.msra.mxu0 %v12470_v38  ;;  %3801 = vmatprep.subr.bf16.mxu1 %v12471_v21  ;;  %v3023_v63 = vpop.f32.mrb[80].mxu1 }
 0x39f   :  { %4030 = vmatprep.subr.bf16.mxu0 %v12472_v3  ;;  %v3024_v28 = vadd.f32 %v3023_v63, %v11863_v45  ;;  %v3252_v39 = vpop.f32.mrb[80].mxu0  ;;  %v3025_v60 = vpop.f32.mrb[81].mxu1 }
 0x3a0   :  { %v3253_v5 = vadd.f32 %v3252_v39, %v8600_v24  ;;  %v3026_v37 = vadd.f32 %v3025_v60, %v8330_v7  ;;  %v3254_v36 = vpop.f32.mrb[81].mxu0  ;;  %v3027_v46 = vpop.f32.mrb[82].mxu1 }
 0x3a1   :  { %3802 = vmatpush1.bf16.msra.mxu1 %v12473_v10  ;;  %v3046_v33 = vmax.f32 %v3024_v28, 0.0  ;;  %v3255_v38 = vadd.f32 %v3254_v36, %v8608_v25  ;;  %v3028_v21 = vadd.f32 %v3027_v46, %v11863_v45  ;;  %v3256_v62 = vpop.f32.mrb[82].mxu0  ;;  %v3029_v3 = vpop.f32.mrb[83].mxu1  ;;  %v12475_v10 = vld [vmem:[#allocation139_spill] sm:$0xff] }
 0x3a2   :  { %4031 = vmatpush1.bf16.msra.mxu0 %v12474_v9  ;;  %3803 = vmatprep.subr.bf16.mxu1 %v12068_v17  ;;  %v3480_v63 = vmax.f32 %v3253_v5, 0.0  ;;  %v3047_v56 = vmax.f32 %v3026_v37, 0.0  ;;  %v3257_v39 = vadd.f32 %v3256_v62, %v8600_v24  ;;  %v3030_v60 = vadd.f32 %v3029_v3, %v8330_v7  ;;  %v3258_v26 = vpop.f32.mrb[83].mxu0  ;;  %v12476_v5 = vld [vmem:[#allocation140_spill] sm:$0xff]  ;;  %v12478_v62 = vld [vmem:[#allocation182_spill] sm:$0xff] }
 0x3a3   :  { %4032 = vmatprep.subr.bf16.mxu0 %v11686_v20  ;;  %v10143_v28 = vadd.f32 %v3046_v33, %v9767_v51  ;;  %v10146_v36 = vmax.f32 %v9770_v19, %v3046_v33  ;;  %v3481_v46 = vmax.f32 %v3255_v38, 0.0  ;;  %v3062_v9 = vmax.f32 %v3028_v21, 0.0  ;;  %v12480_v3 = vld [vmem:[#allocation96_spill] sm:$0xff]  ;;  %v12482_v20 = vld [vmem:[#allocation117_spill] sm:$0xff]  ;;  %v6862_v51 = vld [vmem:[%s11059_s0 + $0x70] sm:$0xff] }
 0x3a4   :  { %v10149_v45 = vadd.f32 %v3480_v63, %v12475_v10  ;;  %v10152_v37 = vmax.f32 %v12476_v5, %v3480_v63  ;;  %v10155_v17 = vadd.f32 %v3047_v56, %v12478_v62  ;;  %v10158_v7 = vmax.f32 %v12480_v3, %v3047_v56  ;;  %v6863_v19 = vld [vmem:[%s11059_s0 + $0x78] sm:$0xff]  ;;  %v12484_v38 = vld [vmem:[#allocation152_spill] sm:$0xff]  ;;  %v12486_v56 = vld [vmem:[#allocation153_spill] sm:$0xff] }
 0x3a5   :  { %3804 = vmatpush1.bf16.msra.mxu1 %v12482_v20  ;;  %v10168_v33 = vadd.f32 %v3481_v46, %v9792_v42  ;;  %v12483_v21 = vld [vmem:[#allocation151_spill] sm:$0xff]  ;;  %v10174_v63 = vadd.f32 %v3062_v9, %v12484_v38  ;;  %v10177_v5 = vmax.f32 %v12486_v56, %v3062_v9  ;;  %v12488_v62 = vld [vmem:[#allocation34_spill] sm:$0xff]  ;;  %v3496_v3 = vmax.f32 %v3257_v39, 0.0 }
 0x3a6   :  { %12477 = vst [vmem:[#allocation180_spill] sm:$0xff] %v10152_v37  ;;  %12479 = vst [vmem:[#allocation98_spill] sm:$0xff] %v10155_v17  ;;  %v10171_v10 = vmax.f32 %v12483_v21, %v3481_v46  ;;  %4033 = vmatpush1.bf16.msra.mxu0 %v12488_v62  ;;  %v3063_v20 = vmax.f32 %v3030_v60, 0.0  ;;  %v12489_v17 = vld [vmem:[#allocation118_spill] sm:$0xff]  ;;  %v12490_v37 = vld [vmem:[#allocation36_spill] sm:$0xff]  ;;  %v10183_v42 = vpack.c.bf16 %v6863_v19, %v6862_v51 }
 0x3a7   :  { %12481 = vst [vmem:[#allocation64_spill] sm:$0xff] %v10158_v7  ;;  %12485 = vst [vmem:[#allocation141_spill] sm:$0xff] %v10174_v63  ;;  %v3259_v7 = vadd.f32 %v3258_v26, %v8608_v25  ;;  %3805 = vmatprep.subr.bf16.mxu1 %v12489_v17  ;;  %4034 = vmatprep.subr.bf16.mxu0 %v12490_v37  ;;  %v12491_v46 = vld [vmem:[#allocation154_spill] sm:$0xff]  ;;  %v12493_v38 = vld [vmem:[#allocation183_spill] sm:$0xff] }
 0x3a8   :  { %12487 = vst [vmem:[#allocation142_spill] sm:$0xff] %v10177_v5  ;;  %v10186_v21 = vadd.f32 %v3496_v3, %v12491_v46  ;;  %v10189_v63 = vmax.f32 %v12493_v38, %v3496_v3  ;;  %v12495_v9 = vld [vmem:[#allocation155_spill] sm:$0xff]  ;;  %v12497_v62 = vld [vmem:[#allocation156_spill] sm:$0xff]  ;;  %v12500_v17 = vld [vmem:[#allocation38_spill] sm:$0xff] }
 0x3a9   :  { %v10192_v56 = vadd.f32 %v3063_v20, %v12495_v9  ;;  %v10195_v39 = vmax.f32 %v12497_v62, %v3063_v20  ;;  %v12499_v60 = vld [vmem:[#allocation119_spill] sm:$0xff]  ;;  %v3497_v26 = vmax.f32 %v3259_v7, 0.0  ;;  %v12501_v37 = vld [vmem:[#allocation120_spill] sm:$0xff]  ;;  %v12502_v51 = vld [vmem:[#allocation10_spill] sm:$0xff] }
 0x3aa   :  { %12492 = vst [vmem:[#allocation143_spill] sm:$0xff] %v10186_v21  ;;  %12494 = vst [vmem:[#allocation145_spill] sm:$0xff] %v10189_v63  ;;  %3806 = vmatpush1.bf16.msra.mxu1 %v12499_v60  ;;  %4035 = vmatpush1.bf16.msra.mxu0 %v12500_v17  ;;  %v12503_v19 = vld [vmem:[#allocation184_spill] sm:$0xff]  ;;  %v12505_v3 = vld [vmem:[#allocation185_spill] sm:$0xff] }
 0x3ab   :  { %12496 = vst [vmem:[#allocation144_spill] sm:$0xff] %v10192_v56  ;;  %12498 = vst [vmem:[#allocation8_spill] sm:$0xff] %v10195_v39  ;;  %3877 = vmatprep.subr.bf16.mxu1 %v12501_v37  ;;  %4106 = vmatprep.subr.bf16.mxu0 %v12502_v51  ;;  %v10202_v46 = vadd.f32 %v3497_v26, %v12503_v19  ;;  %v10205_v38 = vmax.f32 %v12505_v3, %v3497_v26  ;;  %v12507_v20 = vld [vmem:[#allocation121_spill] sm:$0xff]  ;;  %v12508_v9 = vld [vmem:[#allocation11_spill] sm:$0xff] }
 0x3ac   :  { %v12509_v7 = vld [vmem:[#allocation122_spill] sm:$0xff]  ;;  %v12510_v17 = vld [vmem:[#allocation13_spill] sm:$0xff]  ;;  %v12511_v62 = vld [vmem:[#allocation123_spill] sm:$0xff] }
 0x3ad   :  { %12504 = vst [vmem:[#allocation146_spill] sm:$0xff] %v10202_v46  ;;  %12506 = vst [vmem:[#allocation147_spill] sm:$0xff] %v10205_v38  ;;  %3824 = vmatmul.mubr.bf16.vlgmr.msra.gmra.mrb[108].mxu1 %v9807_v23  ;;  %4053 = vmatmul.mubr.bf16.vlgmr.msra.gmra.mrb[108].mxu0 %v10183_v42  ;;  %v12512_v26 = vld [vmem:[#allocation15_spill] sm:$0xff]  ;;  %v12513_v51 = vld [vmem:[#allocation124_spill] sm:$0xff] }
 0x3ae   :  { %3878 = vmatpush1.bf16.msra.mxu1 %v12507_v20  ;;  %4107 = vmatpush1.bf16.msra.mxu0 %v12508_v9  ;;  %v12514_v19 = vld [vmem:[#allocation17_spill] sm:$0xff]  ;;  %v12516_v20 = vld [vmem:[#allocation19_spill] sm:$0xff]  ;;  %v12517_v9 = vld [vmem:[#allocation126_spill] sm:$0xff] }
 0x3af   :  { %3879 = vmatprep.subr.bf16.mxu1 %v12509_v7  ;;  %4108 = vmatprep.subr.bf16.mxu0 %v12510_v17  ;;  %v12515_v3 = vld [vmem:[#allocation125_spill] sm:$0xff]  ;;  %v12519_v17 = vld [vmem:[#allocation127_spill] sm:$0xff]  ;;  %v12521_v46 = vld [vmem:[#allocation128_spill] sm:$0xff] }
 0x3b0   :  { %3909 = vmatprep.mubr.bf16.mxu1 %v11461_v16  ;;  %4138 = vmatprep.mubr.bf16.mxu0 %v11461_v16  ;;  %v12518_v7 = vld [vmem:[#allocation21_spill] sm:$0xff]  ;;  %v12520_v38 = vld [vmem:[#allocation23_spill] sm:$0xff] }
 0x3b1   :  { %v12529_v63 = vld [vmem:[#allocation31_spill] sm:$0xff] }
 0x3b2   :  { %3880 = vmatpush1.bf16.msra.mxu1 %v12511_v62  ;;  %4109 = vmatpush1.bf16.msra.mxu0 %v12512_v26  ;;  %v12522_v62 = vld [vmem:[#allocation25_spill] sm:$0xff] }
 0x3b3   :  { %3881 = vmatprep.subr.bf16.mxu1 %v12513_v51  ;;  %4110 = vmatprep.subr.bf16.mxu0 %v12514_v19  ;;  %v12523_v26 = vld [vmem:[#allocation129_spill] sm:$0xff]  ;;  %v12524_v51 = vld [vmem:[#allocation27_spill] sm:$0xff]  ;;  %v12525_v19 = vld [vmem:[#allocation130_spill] sm:$0xff] }
 0x3b6   :  { %3882 = vmatpush1.bf16.msra.mxu1 %v12515_v3  ;;  %4111 = vmatpush1.bf16.msra.mxu0 %v12516_v20  ;;  %v12526_v20 = vld [vmem:[#allocation29_spill] sm:$0xff] }
 0x3b7   :  { %3883 = vmatprep.subr.bf16.mxu1 %v12517_v9  ;;  %4112 = vmatprep.subr.bf16.mxu0 %v12518_v7  ;;  %v12527_v9 = vld [vmem:[#allocation163_spill] sm:$0xff] }
 0x3ba   :  { %3884 = vmatpush1.bf16.msra.mxu1 %v12519_v17  ;;  %4113 = vmatpush1.bf16.msra.mxu0 %v12520_v38 }
 0x3bb   :  { %3885 = vmatprep.subr.bf16.mxu1 %v12521_v46  ;;  %4114 = vmatprep.subr.bf16.mxu0 %v12522_v62  ;;  %v12528_v62 = vld [vmem:[#allocation131_spill] sm:$0xff] }
 0x3be   :  { %3886 = vmatpush1.bf16.msra.mxu1 %v12523_v26  ;;  %4115 = vmatpush1.bf16.msra.mxu0 %v12524_v51  ;;  %v3209_v3 = vpop.f32.mrb[84].mxu1 }
 0x3bf   :  { %3887 = vmatprep.subr.bf16.mxu1 %v12525_v19  ;;  %4116 = vmatprep.subr.bf16.mxu0 %v12526_v20  ;;  %v3210_v37 = vadd.f32 %v3209_v3, %v12527_v9  ;;  %v3338_v7 = vpop.f32.mrb[84].mxu0  ;;  %v3211_v60 = vpop.f32.mrb[85].mxu1 }
 0x3c0   :  { %v3339_v17 = vadd.f32 %v3338_v7, %v8702_v13  ;;  %v3212_v38 = vadd.f32 %v3211_v60, %v12113_v47  ;;  %v3340_v46 = vpop.f32.mrb[85].mxu0  ;;  %v3213_v39 = vpop.f32.mrb[86].mxu1 }
 0x3c1   :  { %v3478_v26 = vmax.f32 %v3210_v37, 0.0  ;;  %v3341_v51 = vadd.f32 %v3340_v46, %v8706_v27  ;;  %v3214_v19 = vadd.f32 %v3213_v39, %v12527_v9  ;;  %v3342_v56 = vpop.f32.mrb[86].mxu0  ;;  %v3215_v20 = vpop.f32.mrb[87].mxu1  ;;  %v12530_v37 = vld [vmem:[#allocation157_spill] sm:$0xff] }
 0x3c2   :  { %3888 = vmatpush1.bf16.msra.mxu1 %v12528_v62  ;;  %4117 = vmatpush1.bf16.msra.mxu0 %v12529_v63  ;;  %v3484_v3 = vmax.f32 %v3339_v17, 0.0  ;;  %v3479_v21 = vmax.f32 %v3212_v38, 0.0  ;;  %v3343_v7 = vadd.f32 %v3342_v56, %v8702_v13  ;;  %v3216_v60 = vadd.f32 %v3215_v20, %v12113_v47  ;;  %v3344_v5 = vpop.f32.mrb[87].mxu0 }
 0x3c3   :  { %3889 = vmatprep.subr.bf16.mxu1 %v12116_v55  ;;  %4118 = vmatprep.subr.bf16.mxu0 %v12324_v40  ;;  %v10243_v62 = vadd.f32 %v3478_v26, %v12530_v37  ;;  %v10246_v39 = vmax.f32 %v9870_v44, %v3478_v26  ;;  %v3485_v46 = vmax.f32 %v3341_v51, 0.0  ;;  %v3494_v63 = vmax.f32 %v3214_v19, 0.0  ;;  %v12531_v26 = vld [vmem:[#allocation158_spill] sm:$0xff]  ;;  %v12533_v19 = vld [vmem:[#allocation137_spill] sm:$0xff]  ;;  %v12534_v51 = vld [vmem:[#allocation35_spill] sm:$0xff] }
 0x3c4   :  { %v10249_v9 = vadd.f32 %v3484_v3, %v9873_v1  ;;  %v10252_v17 = vmax.f32 %v9876_v35, %v3484_v3  ;;  %v10255_v56 = vadd.f32 %v3479_v21, %v9879_v4  ;;  %v10258_v38 = vmax.f32 %v9882_v15, %v3479_v21  ;;  %v12535_v21 = vld [vmem:[#allocation134_spill] sm:$0xff]  ;;  %v12536_v3 = vld [vmem:[#allocation37_spill] sm:$0xff] }
 0x3c5   :  { %v10262_v40 = vadd.f32 %v3485_v46, %v9886_v22  ;;  %v10265_v44 = vmax.f32 %v9889_v57, %v3485_v46  ;;  %v10268_v1 = vadd.f32 %v3494_v63, %v12531_v26  ;;  %v10271_v35 = vmax.f32 %v12533_v19, %v3494_v63  ;;  %v12537_v22 = vld [vmem:[#allocation159_spill] sm:$0xff]  ;;  %v12539_v57 = vld [vmem:[#allocation160_spill] sm:$0xff]  ;;  %v12543_v63 = vld [vmem:[#allocation33_spill] sm:$0xff] }
 0x3c6   :  { %3890 = vmatpush1.bf16.msra.mxu1 %v12327_v34  ;;  %4119 = vmatpush1.bf16.msra.mxu0 %v12534_v51  ;;  %v3500_v4 = vmax.f32 %v3343_v7, 0.0  ;;  %v3495_v20 = vmax.f32 %v3216_v60, 0.0  ;;  %v3345_v15 = vadd.f32 %v3344_v5, %v8706_v27  ;;  %v12541_v26 = vld [vmem:[#allocation32_spill] sm:$0xff]  ;;  %v12545_v7 = vld [vmem:[#allocation135_spill] sm:$0xff] }
 0x3c7   :  { %12532 = vst [vmem:[#allocation9_spill] sm:$0xff] %v10268_v1  ;;  %3891 = vmatprep.subr.bf16.mxu1 %v12535_v21  ;;  %4120 = vmatprep.subr.bf16.mxu0 %v12536_v3  ;;  %v12546_v5 = vld [vmem:[#allocation39_spill] sm:$0xff]  ;;  %v12547_v51 = vld [vmem:[#allocation40_spill] sm:$0xff]  ;;  %v12548_v3 = vld [vmem:[#allocation41_spill] sm:$0xff] }
 0x3c8   :  { %v10278_v37 = vadd.f32 %v3500_v4, %v12537_v22  ;;  %v10281_v46 = vmax.f32 %v12539_v57, %v3500_v4  ;;  %v10284_v1 = vadd.f32 %v3495_v20, %v12541_v26  ;;  %v10287_v19 = vmax.f32 %v12543_v63, %v3495_v20  ;;  %v12549_v22 = vld [vmem:[#allocation161_spill] sm:$0xff]  ;;  %v12553_v20 = vld [vmem:[#allocation42_spill] sm:$0xff]  ;;  %v12554_v26 = vld [vmem:[#allocation43_spill] sm:$0xff] }
 0x3c9   :  { %v3501_v60 = vmax.f32 %v3345_v15, 0.0  ;;  %v12551_v4 = vld [vmem:[#allocation133_spill] sm:$0xff]  ;;  %v12555_v15 = vld [vmem:[#allocation44_spill] sm:$0xff] }
 0x3ca   :  { %12538 = vst [vmem:[#allocation12_spill] sm:$0xff] %v10278_v37  ;;  %12540 = vst [vmem:[#allocation14_spill] sm:$0xff] %v10281_v46  ;;  %3892 = vmatpush1.bf16.msra.mxu1 %v12545_v7  ;;  %4121 = vmatpush1.bf16.msra.mxu0 %v12546_v5  ;;  %v12556_v63 = vld [vmem:[#allocation45_spill] sm:$0xff]  ;;  %v12557_v5 = vld [vmem:[#allocation46_spill] sm:$0xff] }
 0x3cb   :  { %12542 = vst [vmem:[#allocation16_spill] sm:$0xff] %v10284_v1  ;;  %12544 = vst [vmem:[#allocation18_spill] sm:$0xff] %v10287_v19  ;;  %4063 = vmatprep.subr.bf16.mxu1 %v12547_v51  ;;  %4192 = vmatprep.subr.bf16.mxu0 %v12548_v3  ;;  %v10294_v37 = vadd.f32 %v3501_v60, %v12549_v22  ;;  %v10297_v57 = vmax.f32 %v12551_v4, %v3501_v60  ;;  %v12558_v60 = vld [vmem:[#allocation47_spill] sm:$0xff]  ;;  %v12559_v51 = vld [vmem:[#allocation48_spill] sm:$0xff] }
 0x3cc   :  { %v12561_v3 = vld [vmem:[#allocation50_spill] sm:$0xff]  ;;  %v12562_v22 = vld [vmem:[#allocation51_spill] sm:$0xff]  ;;  %v12563_v4 = vld [vmem:[#allocation52_spill] sm:$0xff] }
 0x3cd   :  { %12550 = vst [vmem:[#allocation20_spill] sm:$0xff] %v10294_v37  ;;  %12552 = vst [vmem:[#allocation22_spill] sm:$0xff] %v10297_v57  ;;  %3910 = vmatmul.mubr.bf16.vlgmr.msra.gmra.mrb[112].mxu1 %v9807_v23  ;;  %4139 = vmatmul.mubr.bf16.vlgmr.msra.gmra.mrb[112].mxu0 %v10183_v42  ;;  %v12560_v23 = vld [vmem:[#allocation49_spill] sm:$0xff]  ;;  %v12575_v1 = vld [vmem:[#allocation63_spill] sm:$0xff] }
 0x3ce   :  { %4064 = vmatpush1.bf16.msra.mxu1 %v12553_v20  ;;  %4193 = vmatpush1.bf16.msra.mxu0 %v12554_v26  ;;  %v12564_v20 = vld [vmem:[#allocation53_spill] sm:$0xff]  ;;  %v12565_v26 = vld [vmem:[#allocation54_spill] sm:$0xff] }
 0x3cf   :  { %4065 = vmatprep.subr.bf16.mxu1 %v12555_v15  ;;  %4194 = vmatprep.subr.bf16.mxu0 %v12556_v63  ;;  %v12566_v15 = vld [vmem:[#allocation55_spill] sm:$0xff]  ;;  %v12567_v63 = vld [vmem:[#allocation56_spill] sm:$0xff] }
 0x3d0   :  { %4095 = vmatprep.mubr.bf16.mxu1 %v11461_v16  ;;  %4224 = vmatprep.mubr.bf16.mxu0 %v11461_v16 }
 0x3d2   :  { %4066 = vmatpush1.bf16.msra.mxu1 %v12557_v5  ;;  %4195 = vmatpush1.bf16.msra.mxu0 %v12558_v60  ;;  %v12568_v5 = vld [vmem:[#allocation57_spill] sm:$0xff]  ;;  %v12569_v60 = vld [vmem:[#allocation58_spill] sm:$0xff] }
 0x3d3   :  { %4067 = vmatprep.subr.bf16.mxu1 %v12559_v51  ;;  %4196 = vmatprep.subr.bf16.mxu0 %v12560_v23  ;;  %v12570_v51 = vld [vmem:[#allocation59_spill] sm:$0xff]  ;;  %v12571_v23 = vld [vmem:[#allocation60_spill] sm:$0xff] }
 0x3d6   :  { %4068 = vmatpush1.bf16.msra.mxu1 %v12561_v3  ;;  %4197 = vmatpush1.bf16.msra.mxu0 %v12562_v22  ;;  %v12572_v22 = vld [vmem:[#allocation61_spill] sm:$0xff] }
 0x3d7   :  { %4069 = vmatprep.subr.bf16.mxu1 %v12563_v4  ;;  %4198 = vmatprep.subr.bf16.mxu0 %v12564_v20  ;;  %v12573_v4 = vld [vmem:[#allocation181_spill] sm:$0xff] }
 0x3da   :  { %4070 = vmatpush1.bf16.msra.mxu1 %v12565_v26  ;;  %4199 = vmatpush1.bf16.msra.mxu0 %v12566_v15 }
 0x3db   :  { %4071 = vmatprep.subr.bf16.mxu1 %v12567_v63  ;;  %4200 = vmatprep.subr.bf16.mxu0 %v12568_v5  ;;  %v12574_v5 = vld [vmem:[#allocation62_spill] sm:$0xff] }
 0x3de   :  { %4072 = vmatpush1.bf16.msra.mxu1 %v12569_v60  ;;  %4201 = vmatpush1.bf16.msra.mxu0 %v12570_v51  ;;  %v3295_v3 = vpop.f32.mrb[88].mxu1 }
 0x3df   :  { %4073 = vmatprep.subr.bf16.mxu1 %v12571_v23  ;;  %4202 = vmatprep.subr.bf16.mxu0 %v12572_v22  ;;  %v3296_v57 = vadd.f32 %v3295_v3, %v12573_v4  ;;  %v3424_v20 = vpop.f32.mrb[88].mxu0  ;;  %v3297_v37 = vpop.f32.mrb[89].mxu1 }
 0x3e0   :  { %v3425_v26 = vadd.f32 %v3424_v20, %v11765_v30  ;;  %v3298_v15 = vadd.f32 %v3297_v37, %v8813_v49  ;;  %v3426_v63 = vpop.f32.mrb[89].mxu0  ;;  %v3299_v7 = vpop.f32.mrb[90].mxu1 }
 0x3e1   :  { %v3482_v60 = vmax.f32 %v3296_v57, 0.0  ;;  %v3427_v51 = vadd.f32 %v3426_v63, %v11767_v43  ;;  %v3300_v23 = vadd.f32 %v3299_v7, %v12573_v4  ;;  %v3428_v19 = vpop.f32.mrb[90].mxu0  ;;  %v3301_v22 = vpop.f32.mrb[91].mxu1  ;;  %v12576_v57 = vld [vmem:[#allocation162_spill] sm:$0xff] }
 0x3e2   :  { %4074 = vmatpush1.bf16.msra.mxu1 %v12574_v5  ;;  %4203 = vmatpush1.bf16.msra.mxu0 %v12575_v1  ;;  %v3488_v3 = vmax.f32 %v3425_v26, 0.0  ;;  %v3483_v46 = vmax.f32 %v3298_v15, 0.0  ;;  %v3429_v20 = vadd.f32 %v3428_v19, %v11765_v30  ;;  %v3302_v37 = vadd.f32 %v3301_v22, %v8813_v49  ;;  %v3430_v21 = vpop.f32.mrb[91].mxu0  ;;  %v12578_v15 = vld [vmem:[#allocation164_spill] sm:$0xff] }
 0x3e3   :  { %4075 = vmatprep.subr.bf16.mxu1 %v11963_v58  ;;  %4204 = vmatprep.subr.bf16.mxu0 %v12373_v50  ;;  %v10335_v5 = vadd.f32 %v3482_v60, %v12576_v57  ;;  %v10338_v7 = vmax.f32 %v9962_v2, %v3482_v60  ;;  %v3489_v63 = vmax.f32 %v3427_v51, 0.0  ;;  %v3498_v1 = vmax.f32 %v3300_v23, 0.0  ;;  %v12577_v50 = vld [vmem:[#allocation66_spill] sm:$0xff]  ;;  %v12580_v2 = vld [vmem:[#allocation132_spill] sm:$0xff]  ;;  %v12581_v51 = vld [vmem:[#allocation165_spill] sm:$0xff] }
 0x3e4   :  { %v10341_v4 = vadd.f32 %v3488_v3, %v9965_v52  ;;  %v10344_v58 = vmax.f32 %v9968_v14, %v3488_v3  ;;  %v10347_v19 = vadd.f32 %v3483_v46, %v9971_v11  ;;  %v10350_v26 = vmax.f32 %v9974_v41, %v3483_v46  ;;  %v12583_v23 = vld [vmem:[#allocation166_spill] sm:$0xff]  ;;  %v12585_v3 = vld [vmem:[#allocation67_spill] sm:$0xff]  ;;  %v12586_v46 = vld [vmem:[#allocation68_spill] sm:$0xff] }
 0x3e5   :  { %v10354_v22 = vadd.f32 %v3489_v63, %v12578_v15  ;;  %v10357_v60 = vmax.f32 %v12580_v2, %v3489_v63  ;;  %v10360_v52 = vadd.f32 %v3498_v1, %v12581_v51  ;;  %v10363_v14 = vmax.f32 %v12583_v23, %v3498_v1  ;;  %v12588_v15 = vld [vmem:[#allocation167_spill] sm:$0xff]  ;;  %v12590_v63 = vld [vmem:[#allocation168_spill] sm:$0xff]  ;;  %v12592_v51 = vld [vmem:[#allocation169_spill] sm:$0xff] }
 0x3e6   :  { %4076 = vmatpush1.bf16.msra.mxu1 %v12577_v50  ;;  %4205 = vmatpush1.bf16.msra.mxu0 %v12585_v3  ;;  %v3504_v11 = vmax.f32 %v3429_v20, 0.0  ;;  %v3499_v57 = vmax.f32 %v3302_v37, 0.0  ;;  %v3431_v41 = vadd.f32 %v3430_v21, %v11767_v43  ;;  %v12587_v50 = vld [vmem:[#allocation69_spill] sm:$0xff]  ;;  %v12596_v20 = vld [vmem:[#allocation70_spill] sm:$0xff]  ;;  %v12597_v21 = vld [vmem:[#allocation71_spill] sm:$0xff] }
 0x3e7   :  { %12579 = vst [vmem:[#allocation24_spill] sm:$0xff] %v10354_v22  ;;  %12582 = vst [vmem:[#allocation26_spill] sm:$0xff] %v10360_v52  ;;  %4077 = vmatprep.subr.bf16.mxu1 %v12586_v46  ;;  %4206 = vmatprep.subr.bf16.mxu0 %v12587_v50  ;;  %v12594_v1 = vld [vmem:[#allocation65_spill] sm:$0xff]  ;;  %v12598_v3 = vld [vmem:[#allocation72_spill] sm:$0xff] }
 0x3e8   :  { %12584 = vst [vmem:[#allocation28_spill] sm:$0xff] %v10363_v14  ;;  %v10370_v22 = vadd.f32 %v3504_v11, %v12588_v15  ;;  %v10373_v2 = vmax.f32 %v12590_v63, %v3504_v11  ;;  %v10376_v52 = vadd.f32 %v3499_v57, %v12592_v51  ;;  %v10379_v23 = vmax.f32 %v12594_v1, %v3499_v57  ;;  %v12599_v46 = vld [vmem:[#allocation73_spill] sm:$0xff]  ;;  %v12600_v50 = vld [vmem:[#allocation170_spill] sm:$0xff]  ;;  %v12602_v11 = vld [vmem:[#allocation171_spill] sm:$0xff] }
 0x3e9   :  { %v3505_v37 = vmax.f32 %v3431_v41, 0.0  ;;  %v12604_v57 = vld [vmem:[#allocation74_spill] sm:$0xff]  ;;  %v12605_v51 = vld [vmem:[#allocation75_spill] sm:$0xff]  ;;  %v12606_v41 = vld [vmem:[#allocation76_spill] sm:$0xff] }
 0x3ea   :  { %12589 = vst [vmem:[#allocation30_spill] sm:$0xff] %v10370_v22  ;;  %12591 = vst [vmem:[#allocation139_spill] sm:$0xff] %v10373_v2  ;;  %4078 = vmatpush1.bf16.msra.mxu1 %v12596_v20  ;;  %4207 = vmatpush1.bf16.msra.mxu0 %v12597_v21  ;;  %v12607_v1 = vld [vmem:[#allocation77_spill] sm:$0xff]  ;;  %v12608_v20 = vld [vmem:[#allocation78_spill] sm:$0xff] }
 0x3eb   :  { %12593 = vst [vmem:[#allocation140_spill] sm:$0xff] %v10376_v52  ;;  %12595 = vst [vmem:[#allocation182_spill] sm:$0xff] %v10379_v23  ;;  %4149 = vmatprep.subr.bf16.mxu1 %v12598_v3  ;;  %4278 = vmatprep.subr.bf16.mxu0 %v12599_v46  ;;  %v10386_v15 = vadd.f32 %v3505_v37, %v12600_v50  ;;  %v10389_v63 = vmax.f32 %v12602_v11, %v3505_v37  ;;  %v12609_v37 = vld [vmem:[#allocation79_spill] sm:$0xff]  ;;  %v12610_v21 = vld [vmem:[#allocation80_spill] sm:$0xff] }
 0x3ec   :  { %v12611_v3 = vld [vmem:[#allocation81_spill] sm:$0xff]  ;;  %v12612_v46 = vld [vmem:[#allocation82_spill] sm:$0xff]  ;;  %v12613_v50 = vld [vmem:[#allocation83_spill] sm:$0xff] }
 0x3ed   :  { %12601 = vst [vmem:[#allocation96_spill] sm:$0xff] %v10386_v15  ;;  %12603 = vst [vmem:[#allocation151_spill] sm:$0xff] %v10389_v63  ;;  %4096 = vmatmul.mubr.bf16.vlgmr.msra.gmra.mrb[116].mxu1 %v10183_v42  ;;  %4225 = vmatmul.mubr.bf16.vlgmr.msra.gmra.mrb[116].mxu0 %v10183_v42  ;;  %v12614_v11 = vld [vmem:[#allocation84_spill] sm:$0xff]  ;;  %v12626_v2 = vld [vmem:[#allocation95_spill] sm:$0xff] }
 0x3ee   :  { %4150 = vmatpush1.bf16.msra.mxu1 %v12604_v57  ;;  %4279 = vmatpush1.bf16.msra.mxu0 %v12605_v51  ;;  %v12615_v57 = vld [vmem:[#allocation85_spill] sm:$0xff]  ;;  %v12616_v51 = vld [vmem:[#allocation86_spill] sm:$0xff] }
 0x3ef   :  { %4151 = vmatprep.subr.bf16.mxu1 %v12606_v41  ;;  %4280 = vmatprep.subr.bf16.mxu0 %v12607_v1  ;;  %v12617_v41 = vld [vmem:[#allocation87_spill] sm:$0xff]  ;;  %v12618_v1 = vld [vmem:[#allocation88_spill] sm:$0xff] }
 0x3f0   :  { %4181 = vmatprep.mubr.bf16.mxu1 %v11461_v16  ;;  %4310 = vmatprep.mubr.bf16.mxu0 %v11461_v16 }
 0x3f2   :  { %4152 = vmatpush1.bf16.msra.mxu1 %v12608_v20  ;;  %4281 = vmatpush1.bf16.msra.mxu0 %v12609_v37  ;;  %v12619_v20 = vld [vmem:[#allocation89_spill] sm:$0xff]  ;;  %v12620_v37 = vld [vmem:[#allocation90_spill] sm:$0xff] }
 0x3f3   :  { %4153 = vmatprep.subr.bf16.mxu1 %v12610_v21  ;;  %4282 = vmatprep.subr.bf16.mxu0 %v12611_v3  ;;  %v12621_v21 = vld [vmem:[#allocation91_spill] sm:$0xff]  ;;  %v12622_v3 = vld [vmem:[#allocation92_spill] sm:$0xff] }
 0x3f6   :  { %4154 = vmatpush1.bf16.msra.mxu1 %v12612_v46  ;;  %4283 = vmatpush1.bf16.msra.mxu0 %v12613_v50  ;;  %v12623_v50 = vld [vmem:[#allocation93_spill] sm:$0xff] }
 0x3f7   :  { %4155 = vmatprep.subr.bf16.mxu1 %v12614_v11  ;;  %4284 = vmatprep.subr.bf16.mxu0 %v12615_v57  ;;  %v12624_v11 = vld [vmem:[#allocation150_spill] sm:$0xff] }
 0x3fa   :  { %4156 = vmatpush1.bf16.msra.mxu1 %v12616_v51  ;;  %4285 = vmatpush1.bf16.msra.mxu0 %v12617_v41 }
 0x3fb   :  { %4157 = vmatprep.subr.bf16.mxu1 %v12618_v1  ;;  %4286 = vmatprep.subr.bf16.mxu0 %v12619_v20  ;;  %v12625_v20 = vld [vmem:[#allocation94_spill] sm:$0xff] }
 0x3fe   :  { %4158 = vmatpush1.bf16.msra.mxu1 %v12620_v37  ;;  %4287 = vmatpush1.bf16.msra.mxu0 %v12621_v21 }
 0x3ff   :  { %4159 = vmatprep.subr.bf16.mxu1 %v12622_v3  ;;  %v3381_v46 = vpop.f32.mrb[92].mxu1  ;;  %4288 = vmatprep.subr.bf16.mxu0 %v12623_v50 }
 0x400   :  { %v3382_v63 = vadd.f32 %v3381_v46, %v12624_v11  ;;  %v3610_v57 = vpop.f32.mrb[92].mxu0  ;;  %v3383_v15 = vpop.f32.mrb[93].mxu1 }
 0x401   :  { %v3611_v51 = vadd.f32 %v3610_v57, %v8503_v12  ;;  %v3384_v41 = vadd.f32 %v3383_v15, %v8533_v59  ;;  %v3612_v1 = vpop.f32.mrb[93].mxu0  ;;  %v3385_v23 = vpop.f32.mrb[94].mxu1 }
 0x402   :  { %4160 = vmatpush1.bf16.msra.mxu1 %v12625_v20  ;;  %v3486_v37 = vmax.f32 %v3382_v63, 0.0  ;;  %v3613_v21 = vadd.f32 %v3612_v1, %v8510_v18  ;;  %v3386_v3 = vadd.f32 %v3385_v23, %v12624_v11  ;;  %v3614_v52 = vpop.f32.mrb[94].mxu0  ;;  %4289 = vmatpush1.bf16.msra.mxu0 %v12626_v2  ;;  %v3387_v50 = vpop.f32.mrb[95].mxu1  ;;  %v12627_v63 = vld [vmem:[#allocation172_spill] sm:$0xff] }
 0x403   :  { %4161 = vmatprep.subr.bf16.mxu1 %v12015_v32  ;;  %v3920_v46 = vmax.f32 %v3611_v51, 0.0  ;;  %v3487_v22 = vmax.f32 %v3384_v41, 0.0  ;;  %v3615_v57 = vadd.f32 %v3614_v52, %v8503_v12  ;;  %v3388_v15 = vadd.f32 %v3387_v50, %v8533_v59  ;;  %v3616_v14 = vpop.f32.mrb[95].mxu0  ;;  %4290 = vmatprep.subr.bf16.mxu0 %v12426_v0  ;;  %v12628_v0 = vld [vmem:[#allocation173_spill] sm:$0xff]  ;;  %v12635_v50 = vld [vmem:[#allocation175_spill] sm:$0xff] }
 0x404   :  { %v10427_v20 = vadd.f32 %v3486_v37, %v12627_v63  ;;  %v10430_v23 = vmax.f32 %v10054_v48, %v3486_v37  ;;  %v3921_v1 = vmax.f32 %v3613_v21, 0.0  ;;  %v3502_v2 = vmax.f32 %v3386_v3, 0.0  ;;  %v12629_v37 = vld [vmem:[#allocation174_spill] sm:$0xff]  ;;  %v12632_v21 = vld [vmem:[#allocation99_spill] sm:$0xff] }
 0x405   :  { %v10433_v11 = vadd.f32 %v3920_v46, %v10057_v29  ;;  %v10436_v32 = vmax.f32 %v10060_v53, %v3920_v46  ;;  %v10439_v52 = vadd.f32 %v3487_v22, %v10063_v6  ;;  %v10442_v51 = vmax.f32 %v10066_v31, %v3487_v22  ;;  %v12633_v22 = vld [vmem:[#allocation100_spill] sm:$0xff] }
 0x406   :  { %4162 = vmatpush1.bf16.msra.mxu1 %v12429_v61  ;;  %v10446_v41 = vadd.f32 %v3921_v1, %v12628_v0  ;;  %v10449_v48 = vmax.f32 %v10073_v54, %v3921_v1  ;;  %v10452_v29 = vadd.f32 %v3502_v2, %v12629_v37  ;;  %v10455_v53 = vmax.f32 %v10079_v8, %v3502_v2  ;;  %v12634_v61 = vld [vmem:[#allocation101_spill] sm:$0xff]  ;;  %v12637_v54 = vld [vmem:[#allocation176_spill] sm:$0xff]  ;;  %v12641_v8 = vld [vmem:[#allocation178_spill] sm:$0xff] }
 0x407   :  { %4291 = vmatpush1.bf16.msra.mxu0 %v12632_v21  ;;  %v3936_v6 = vmax.f32 %v3615_v57, 0.0  ;;  %v3503_v3 = vmax.f32 %v3388_v15, 0.0  ;;  %v3617_v31 = vadd.f32 %v3616_v14, %v8510_v18  ;;  %4163 = vmatprep.subr.bf16.mxu1 %v12633_v22  ;;  %v12639_v1 = vld [vmem:[#allocation177_spill] sm:$0xff]  ;;  %v12643_v57 = vld [vmem:[#allocation102_spill] sm:$0xff]  ;;  %v12644_v14 = vld [vmem:[#allocation103_spill] sm:$0xff] }
 0x408   :  { %12630 = vst [vmem:[#allocation152_spill] sm:$0xff] %v10452_v29  ;;  %12631 = vst [vmem:[#allocation153_spill] sm:$0xff] %v10455_v53  ;;  %4292 = vmatprep.subr.bf16.mxu0 %v12634_v61  ;;  %v12645_v37 = vld [vmem:[#allocation104_spill] sm:$0xff]  ;;  %v12646_v21 = vld [vmem:[#allocation179_spill] sm:$0xff] }
 0x409   :  { %v10462_v46 = vadd.f32 %v3936_v6, %v12635_v50  ;;  %v10465_v63 = vmax.f32 %v12637_v54, %v3936_v6  ;;  %v10468_v0 = vadd.f32 %v3503_v3, %v12639_v1  ;;  %v10471_v2 = vmax.f32 %v12641_v8, %v3503_v3  ;;  %v12648_v61 = vld [vmem:[#allocation97_spill] sm:$0xff]  ;;  %v12651_v3 = vld [vmem:[#allocation106_spill] sm:$0xff]  ;;  %v12653_v54 = vld [vmem:[#allocation108_spill] sm:$0xff] }
 0x40a   :  { %4164 = vmatpush1.bf16.msra.mxu1 %v12643_v57  ;;  %v3937_v15 = vmax.f32 %v3617_v31, 0.0  ;;  %v12650_v6 = vld [vmem:[#allocation105_spill] sm:$0xff]  ;;  %v12652_v31 = vld [vmem:[#allocation107_spill] sm:$0xff]  ;;  %v12655_v8 = vld [vmem:[#allocation110_spill] sm:$0xff] }
 0x40b   :  { %12636 = vst [vmem:[#allocation34_spill] sm:$0xff] %v10462_v46  ;;  %12638 = vst [vmem:[#allocation36_spill] sm:$0xff] %v10465_v63  ;;  %4293 = vmatpush1.bf16.msra.mxu0 %v12644_v14  ;;  %4235 = vmatprep.subr.bf16.mxu1 %v12645_v37  ;;  %v12654_v1 = vld [vmem:[#allocation109_spill] sm:$0xff]  ;;  %v12656_v57 = vld [vmem:[#allocation111_spill] sm:$0xff] }
 0x40c   :  { %12640 = vst [vmem:[#allocation154_spill] sm:$0xff] %v10468_v0  ;;  %12642 = vst [vmem:[#allocation183_spill] sm:$0xff] %v10471_v2  ;;  %v10477_v22 = vadd.f32 %v3937_v15, %v12646_v21  ;;  %v10480_v50 = vmax.f32 %v12648_v61, %v3937_v15  ;;  %v12657_v15 = vld [vmem:[#allocation112_spill] sm:$0xff]  ;;  %v12658_v14 = vld [vmem:[#allocation113_spill] sm:$0xff] }
 0x40d   :  { %4182 = vmatmul.mubr.bf16.vlgmr.msra.gmra.mrb[120].mxu1 %v10183_v42  ;;  %v12659_v37 = vld [vmem:[#allocation114_spill] sm:$0xff]  ;;  %v12660_v61 = vld [vmem:[#allocation136_spill] sm:$0xff] }
 0x40e   :  { %12647 = vst [vmem:[#allocation155_spill] sm:$0xff] %v10477_v22  ;;  %12649 = vst [vmem:[#allocation156_spill] sm:$0xff] %v10480_v50  ;;  %4311 = vmatmul.mubr.bf16.vlgmr.msra.gmra.mrb[120].mxu0 %v10183_v42  ;;  %4236 = vmatpush1.bf16.msra.mxu1 %v12650_v6  ;;  %v12663_v63 = vld [vmem:[#allocation116_spill] sm:$0xff] }
 0x40f   :  { %4237 = vmatprep.subr.bf16.mxu1 %v12651_v3  ;;  %4267 = vmatprep.mubr.bf16.mxu1 %v11461_v16 }
 0x412   :  { %4238 = vmatpush1.bf16.msra.mxu1 %v12652_v31 }
 0x413   :  { %4239 = vmatprep.subr.bf16.mxu1 %v12653_v54  ;;  %v12661_v54 = vld [vmem:[#allocation138_spill] sm:$0xff] }
 0x416   :  { %4240 = vmatpush1.bf16.msra.mxu1 %v12654_v1 }
 0x417   :  { %4241 = vmatprep.subr.bf16.mxu1 %v12655_v8  ;;  %v12662_v8 = vld [vmem:[#allocation115_spill] sm:$0xff] }
 0x41a   :  { %4242 = vmatpush1.bf16.msra.mxu1 %v12656_v57 }
 0x41b   :  { %4243 = vmatprep.subr.bf16.mxu1 %v12657_v15 }
 0x41e   :  { %4244 = vmatpush1.bf16.msra.mxu1 %v12658_v14 }
 0x41f   :  { %4245 = vmatprep.subr.bf16.mxu1 %v12659_v37  ;;  %v3467_v21 = vpop.f32.mrb[96].mxu1 }
 0x420   :  { %v3468_v6 = vadd.f32 %v3467_v21, %v12660_v61  ;;  %v3696_v3 = vpop.f32.mrb[96].mxu0  ;;  %v3469_v50 = vpop.f32.mrb[97].mxu1 }
 0x421   :  { %v3697_v31 = vadd.f32 %v3696_v3, %v8600_v24  ;;  %v3470_v22 = vadd.f32 %v3469_v50, %v12661_v54  ;;  %v3698_v1 = vpop.f32.mrb[97].mxu0  ;;  %v3471_v2 = vpop.f32.mrb[98].mxu1 }
 0x422   :  { %4246 = vmatpush1.bf16.msra.mxu1 %v12662_v8  ;;  %v3490_v57 = vmax.f32 %v3468_v6, 0.0  ;;  %v3699_v15 = vadd.f32 %v3698_v1, %v8608_v25  ;;  %v3472_v14 = vadd.f32 %v3471_v2, %v12660_v61  ;;  %v3700_v0 = vpop.f32.mrb[98].mxu0  ;;  %v3473_v37 = vpop.f32.mrb[99].mxu1  ;;  %v12664_v61 = vld [vmem:[#allocation180_spill] sm:$0xff] }
 0x423   :  { %4247 = vmatprep.subr.bf16.mxu1 %v12663_v63  ;;  %v3924_v21 = vmax.f32 %v3697_v31, 0.0  ;;  %v3491_v46 = vmax.f32 %v3470_v22, 0.0  ;;  %v3701_v53 = vadd.f32 %v3700_v0, %v8600_v24  ;;  %v3474_v3 = vadd.f32 %v3473_v37, %v12661_v54  ;;  %v3702_v50 = vpop.f32.mrb[99].mxu0  ;;  %v12665_v22 = vld [vmem:[#allocation98_spill] sm:$0xff]  ;;  %v12666_v0 = vld [vmem:[#allocation64_spill] sm:$0xff]  ;;  %v12667_v54 = vld [vmem:[#allocation117_spill] sm:$0xff] }
 0x424   :  { %v10505_v29 = vadd.f32 %v3490_v57, %v10143_v28  ;;  %v10508_v6 = vmax.f32 %v10146_v36, %v3490_v57  ;;  %v3925_v1 = vmax.f32 %v3699_v15, 0.0  ;;  %v3506_v8 = vmax.f32 %v3472_v14, 0.0  ;;  %v12669_v57 = vld [vmem:[#allocation141_spill] sm:$0xff]  ;;  %v12671_v15 = vld [vmem:[#allocation142_spill] sm:$0xff] }
 0x425   :  { %v10511_v2 = vadd.f32 %v3924_v21, %v10149_v45  ;;  %v10514_v63 = vmax.f32 %v12664_v61, %v3924_v21  ;;  %v10517_v31 = vadd.f32 %v3491_v46, %v12665_v22  ;;  %v10520_v37 = vmax.f32 %v12666_v0, %v3491_v46  ;;  %v12673_v14 = vld [vmem:[#allocation118_spill] sm:$0xff]  ;;  %v12674_v0 = vld [vmem:[#allocation143_spill] sm:$0xff] }
 0x426   :  { %4248 = vmatpush1.bf16.msra.mxu1 %v12667_v54  ;;  %v10524_v28 = vadd.f32 %v3925_v1, %v10168_v33  ;;  %v10527_v36 = vmax.f32 %v10171_v10, %v3925_v1  ;;  %v10530_v45 = vadd.f32 %v3506_v8, %v12669_v57  ;;  %v10533_v61 = vmax.f32 %v12671_v15, %v3506_v8  ;;  %v12676_v33 = vld [vmem:[#allocation145_spill] sm:$0xff]  ;;  %v12678_v10 = vld [vmem:[#allocation144_spill] sm:$0xff]  ;;  %v12682_v8 = vld [vmem:[#allocation119_spill] sm:$0xff] }
 0x427   :  { %4249 = vmatprep.subr.bf16.mxu1 %v12673_v14  ;;  %v3940_v21 = vmax.f32 %v3701_v53, 0.0  ;;  %v3507_v22 = vmax.f32 %v3474_v3, 0.0  ;;  %v3703_v46 = vadd.f32 %v3702_v50, %v8608_v25  ;;  %v12680_v57 = vld [vmem:[#allocation8_spill] sm:$0xff]  ;;  %v12684_v53 = vld [vmem:[#allocation146_spill] sm:$0xff]  ;;  %v12686_v50 = vld [vmem:[#allocation147_spill] sm:$0xff] }
 0x428   :  { %12668 = vst [vmem:[#allocation38_spill] sm:$0xff] %v10524_v28  ;;  %12670 = vst [vmem:[#allocation10_spill] sm:$0xff] %v10530_v45  ;;  %v12683_v14 = vld [vmem:[#allocation120_spill] sm:$0xff] }
 0x429   :  { %12672 = vst [vmem:[#allocation184_spill] sm:$0xff] %v10533_v61  ;;  %v10538_v54 = vadd.f32 %v3940_v21, %v12674_v0  ;;  %v10541_v28 = vmax.f32 %v12676_v33, %v3940_v21  ;;  %v10544_v1 = vadd.f32 %v3507_v22, %v12678_v10  ;;  %v10547_v45 = vmax.f32 %v12680_v57, %v3507_v22  ;;  %v12688_v21 = vld [vmem:[#allocation121_spill] sm:$0xff]  ;;  %v12689_v33 = vld [vmem:[#allocation122_spill] sm:$0xff]  ;;  %v12690_v22 = vld [vmem:[#allocation123_spill] sm:$0xff] }
 0x42a   :  { %4250 = vmatpush1.bf16.msra.mxu1 %v12682_v8  ;;  %v3941_v15 = vmax.f32 %v3703_v46, 0.0  ;;  %v12691_v10 = vld [vmem:[#allocation124_spill] sm:$0xff]  ;;  %v12692_v8 = vld [vmem:[#allocation125_spill] sm:$0xff] }
 0x42b   :  { %12675 = vst [vmem:[#allocation185_spill] sm:$0xff] %v10538_v54  ;;  %12677 = vst [vmem:[#allocation11_spill] sm:$0xff] %v10541_v28  ;;  %4321 = vmatprep.subr.bf16.mxu1 %v12683_v14  ;;  %v7307_v46 = vld [vmem:[#allocation4 + $0x304] ss:$8 sps:$4 sm:$0xff]   ;;  %v7305_v57 = vld [vmem:[#allocation4 + $0x300] ss:$8 sps:$4 sm:$0xff]  }
 0x42c   :  { %12679 = vst [vmem:[#allocation13_spill] sm:$0xff] %v10544_v1  ;;  %12681 = vst [vmem:[#allocation15_spill] sm:$0xff] %v10547_v45  ;;  %v10552_v3 = vadd.f32 %v3941_v15, %v12684_v53  ;;  %v10555_v0 = vmax.f32 %v12686_v50, %v3941_v15  ;;  %6313 = vmatprep.subr.bf16.mxu0 %v7307_v46  ;;  %v12693_v14 = vld [vmem:[#allocation126_spill] sm:$0xff]  ;;  %v12694_v50 = vld [vmem:[#allocation127_spill] sm:$0xff] }
 0x42d   :  { %4268 = vmatmul.mubr.bf16.vlgmr.msra.gmra.mrb[124].mxu1 %v10183_v42  ;;  %6314 = vmatpush1.bf16.msra.mxu0 %v7305_v57  ;;  %v7311_v15 = vld [vmem:[#allocation4 + $0x310] ss:$8 sps:$4 sm:$0xff]   ;;  %v7313_v53 = vld [vmem:[#allocation4 + $0x314] ss:$8 sps:$4 sm:$0xff]  }
 0x42e   :  { %12685 = vst [vmem:[#allocation17_spill] sm:$0xff] %v10552_v3  ;;  %12687 = vst [vmem:[#allocation19_spill] sm:$0xff] %v10555_v0  ;;  %4322 = vmatpush1.bf16.msra.mxu1 %v12688_v21  ;;  %4353 = vmatprep.mubr.bf16.mxu1 %v11461_v16  ;;  %v12695_v16 = vld [vmem:[#allocation128_spill] sm:$0xff]  ;;  %v12698_v57 = vld [vmem:[#allocation163_spill] sm:$0xff] }
 0x42f   :  { %4323 = vmatprep.subr.bf16.mxu1 %v12689_v33  ;;  %6315 = vmatprep.subr.bf16.mxu0 %v7313_v53  ;;  %v7317_v21 = vld [vmem:[#allocation4 + $0x320] ss:$8 sps:$4 sm:$0xff]   ;;  %v7319_v33 = vld [vmem:[#allocation4 + $0x324] ss:$8 sps:$4 sm:$0xff]   ;;  %v12699_v1 = vld [vmem:[#allocation131_spill] sm:$0xff] }
 0x431   :  { %6316 = vmatpush1.bf16.msra.mxu0 %v7311_v15 }
 0x432   :  { %4324 = vmatpush1.bf16.msra.mxu1 %v12690_v22  ;;  %v12696_v22 = vld [vmem:[#allocation129_spill] sm:$0xff]  ;;  %6317 = vmatprep.subr.bf16.mxu0 %v7319_v33 }
 0x433   :  { %4325 = vmatprep.subr.bf16.mxu1 %v12691_v10  ;;  %v12697_v10 = vld [vmem:[#allocation130_spill] sm:$0xff] }
 0x435   :  { %6318 = vmatpush1.bf16.msra.mxu0 %v7317_v21 }
 0x436   :  { %4326 = vmatpush1.bf16.msra.mxu1 %v12692_v8  ;;  %v7323_v8 = vld [vmem:[#allocation4 + $0x330] ss:$8 sps:$4 sm:$0xff]  }
 0x437   :  { %4327 = vmatprep.subr.bf16.mxu1 %v12693_v14  ;;  %v7325_v14 = vld [vmem:[#allocation4 + $0x334] ss:$8 sps:$4 sm:$0xff]  }
 0x438   :  { %6319 = vmatprep.subr.bf16.mxu0 %v7325_v14 }
 0x439   :  { %6320 = vmatpush1.bf16.msra.mxu0 %v7323_v8 }
 0x43a   :  { %4328 = vmatpush1.bf16.msra.mxu1 %v12694_v50 }
 0x43b   :  { %4329 = vmatprep.subr.bf16.mxu1 %v12695_v16 }
 0x43e   :  { %4330 = vmatpush1.bf16.msra.mxu1 %v12696_v22 }
 0x43f   :  { %4331 = vmatprep.subr.bf16.mxu1 %v12697_v10  ;;  %v3653_v46 = vpop.f32.mrb[100].mxu1 }
 0x440   :  { %v3654_v0 = vadd.f32 %v3653_v46, %v12698_v57  ;;  %v3782_v3 = vpop.f32.mrb[100].mxu0  ;;  %v3655_v45 = vpop.f32.mrb[101].mxu1 }
 0x441   :  { %v3783_v53 = vadd.f32 %v3782_v3, %v8702_v13  ;;  %v3656_v50 = vadd.f32 %v3655_v45, %v12113_v47  ;;  %v3784_v15 = vpop.f32.mrb[101].mxu0  ;;  %v3657_v16 = vpop.f32.mrb[102].mxu1 }
 0x442   :  { %4332 = vmatpush1.bf16.msra.mxu1 %v12699_v1  ;;  %v3922_v33 = vmax.f32 %v3654_v0, 0.0  ;;  %v3785_v22 = vadd.f32 %v3784_v15, %v8706_v27  ;;  %v3658_v21 = vadd.f32 %v3657_v16, %v12698_v57  ;;  %v3786_v10 = vpop.f32.mrb[102].mxu0  ;;  %v3659_v28 = vpop.f32.mrb[103].mxu1  ;;  %v7329_v16 = vld [vmem:[#allocation4 + $0x340] ss:$8 sps:$4 sm:$0xff]  }
 0x443   :  { %4333 = vmatprep.subr.bf16.mxu1 %v12116_v55  ;;  %v3928_v46 = vmax.f32 %v3783_v53, 0.0  ;;  %v3923_v54 = vmax.f32 %v3656_v50, 0.0  ;;  %v3787_v3 = vadd.f32 %v3786_v10, %v8702_v13  ;;  %v3660_v45 = vadd.f32 %v3659_v28, %v12113_v47  ;;  %v3788_v61 = vpop.f32.mrb[103].mxu0  ;;  %v12707_v10 = vld [vmem:[#allocation16_spill] sm:$0xff] }
 0x444   :  { %v10579_v1 = vadd.f32 %v3922_v33, %v10243_v62  ;;  %v10582_v0 = vmax.f32 %v10246_v39, %v3922_v33  ;;  %v3929_v14 = vmax.f32 %v3785_v22, 0.0  ;;  %v3938_v15 = vmax.f32 %v3658_v21, 0.0  ;;  %v7331_v62 = vld [vmem:[#allocation4 + $0x344] ss:$8 sps:$4 sm:$0xff]  }
 0x445   :  { %v10585_v57 = vadd.f32 %v3928_v46, %v10249_v9  ;;  %v10588_v55 = vmax.f32 %v10252_v17, %v3928_v46  ;;  %v10591_v8 = vadd.f32 %v3923_v54, %v10255_v56  ;;  %v10594_v28 = vmax.f32 %v10258_v38, %v3923_v54  ;;  %v12700_v9 = vld [vmem:[#allocation9_spill] sm:$0xff]  ;;  %v12702_v56 = vld [vmem:[#allocation134_spill] sm:$0xff]  ;;  %6321 = vmatprep.subr.bf16.mxu0 %v7331_v62  ;;  %v12712_v62 = vld [vmem:[#allocation20_spill] sm:$0xff] }
 0x446   :  { %4334 = vmatpush1.bf16.msra.mxu1 %v12327_v34  ;;  %v10598_v39 = vadd.f32 %v3929_v14, %v10262_v40  ;;  %v10601_v53 = vmax.f32 %v10265_v44, %v3929_v14  ;;  %v10604_v50 = vadd.f32 %v3938_v15, %v12700_v9  ;;  %v10607_v17 = vmax.f32 %v10271_v35, %v3938_v15  ;;  %v7232_v33 = vld [vmem:[#allocation4 + $0x4] ss:$8 sps:$4 sm:$0xff]   ;;  %v12705_v44 = vld [vmem:[#allocation14_spill] sm:$0xff]  ;;  %v12711_v15 = vld [vmem:[#allocation135_spill] sm:$0xff] }
 0x447   :  { %4335 = vmatprep.subr.bf16.mxu1 %v12702_v56  ;;  %v3944_v38 = vmax.f32 %v3787_v3, 0.0  ;;  %v3939_v54 = vmax.f32 %v3660_v45, 0.0  ;;  %v3789_v34 = vadd.f32 %v3788_v61, %v8706_v27  ;;  %6322 = vmatpush1.bf16.msra.mxu0 %v7329_v16  ;;  %v12703_v40 = vld [vmem:[#allocation12_spill] sm:$0xff]  ;;  %v12709_v35 = vld [vmem:[#allocation18_spill] sm:$0xff] }
 0x448   :  { %12701 = vst [vmem:[#allocation21_spill] sm:$0xff] %v10607_v17  ;;  %v7230_v3 = vld [vmem:[#allocation4] ss:$8 sps:$4 sm:$0xff]   ;;  %v7337_v45 = vld [vmem:[#allocation4 + $0x354] ss:$8 sps:$4 sm:$0xff]  }
 0x449   :  { %v10612_v22 = vadd.f32 %v3944_v38, %v12703_v40  ;;  %v10615_v21 = vmax.f32 %v12705_v44, %v3944_v38  ;;  %v10618_v46 = vadd.f32 %v3939_v54, %v12707_v10  ;;  %v10621_v14 = vmax.f32 %v12709_v35, %v3939_v54  ;;  %v7235_v61 = vld [vmem:[#allocation4 + $0x14] ss:$8 sps:$4 sm:$0xff]   ;;  %v7335_v16 = vld [vmem:[#allocation4 + $0x350] ss:$8 sps:$4 sm:$0xff]   ;;  %6323 = vmatprep.subr.bf16.mxu0 %v7337_v45  ;;  %v7343_v44 = vld [vmem:[#allocation4 + $0x364] ss:$8 sps:$4 sm:$0xff]  }
 0x44a   :  { %4336 = vmatpush1.bf16.msra.mxu1 %v12711_v15  ;;  %v3945_v9 = vmax.f32 %v3789_v34, 0.0  ;;  %v12714_v38 = vld [vmem:[#allocation22_spill] sm:$0xff]  ;;  %v7238_v10 = vld [vmem:[#allocation4 + $0x24] ss:$8 sps:$4 sm:$0xff]   ;;  %v7341_v35 = vld [vmem:[#allocation4 + $0x360] ss:$8 sps:$4 sm:$0xff]  }
 0x44b   :  { %12704 = vst [vmem:[#allocation23_spill] sm:$0xff] %v10612_v22  ;;  %12706 = vst [vmem:[#allocation25_spill] sm:$0xff] %v10615_v21  ;;  %6184 = vmatprep.subr.bf16.mxu1 %v7232_v33  ;;  %6324 = vmatpush1.bf16.msra.mxu0 %v7335_v16  ;;  %v7233_v54 = vld [vmem:[#allocation4 + $0x10] ss:$8 sps:$4 sm:$0xff]   ;;  %v7236_v33 = vld [vmem:[#allocation4 + $0x20] ss:$8 sps:$4 sm:$0xff]  }
 0x44c   :  { %12708 = vst [vmem:[#allocation27_spill] sm:$0xff] %v10618_v46  ;;  %12710 = vst [vmem:[#allocation29_spill] sm:$0xff] %v10621_v14  ;;  %v10625_v56 = vadd.f32 %v3945_v9, %v12712_v62  ;;  %v10628_v40 = vmax.f32 %v12714_v38, %v3945_v9  ;;  %6325 = vmatprep.subr.bf16.mxu0 %v7343_v44  ;;  %v7349_v34 = vld [vmem:[#allocation4 + $0x374] ss:$8 sps:$4 sm:$0xff]   ;;  %v7347_v45 = vld [vmem:[#allocation4 + $0x370] ss:$8 sps:$4 sm:$0xff]  }
 0x44d   :  { %4354 = vmatmul.mubr.bf16.vlgmr.msra.gmra.mrb[128].mxu1 %v10183_v42  ;;  %v7241_v15 = vld [vmem:[#allocation4 + $0x34] ss:$8 sps:$4 sm:$0xff]   ;;  %v7239_v9 = vld [vmem:[#allocation4 + $0x30] ss:$8 sps:$4 sm:$0xff]   ;;  %v7355_v42 = vld [vmem:[#allocation4 + $0x384] ss:$8 sps:$4 sm:$0xff]  }
 0x44e   :  { %12713 = vst [vmem:[#allocation31_spill] sm:$0xff] %v10625_v56  ;;  %12715 = vst [vmem:[#allocation157_spill] sm:$0xff] %v10628_v40  ;;  %6185 = vmatpush1.bf16.msra.mxu1 %v7230_v3  ;;  %v7244_v3 = vld [vmem:[#allocation4 + $0x44] ss:$8 sps:$4 sm:$0xff]   ;;  %v7353_v16 = vld [vmem:[#allocation4 + $0x380] ss:$8 sps:$4 sm:$0xff]  }
 0x44f   :  { %6186 = vmatprep.subr.bf16.mxu1 %v7235_v61  ;;  %6326 = vmatpush1.bf16.msra.mxu0 %v7341_v35  ;;  %v7359_v61 = vld [vmem:[#allocation4 + $0x390] ss:$8 sps:$4 sm:$0xff]   ;;  %v7361_v62 = vld [vmem:[#allocation4 + $0x394] ss:$8 sps:$4 sm:$0xff]   ;;  %v7242_v38 = vld [vmem:[#allocation4 + $0x40] ss:$8 sps:$4 sm:$0xff]  }
 0x450   :  { %6327 = vmatprep.subr.bf16.mxu0 %v7349_v34  ;;  %v7367_v44 = vld [vmem:[#allocation4 + $0x3a4] ss:$8 sps:$4 sm:$0xff]   ;;  %v7245_v35 = vld [vmem:[#allocation4 + $0x50] ss:$8 sps:$4 sm:$0xff]   ;;  %v7253_v21 = vld [vmem:[#allocation4 + $0x74] ss:$8 sps:$4 sm:$0xff]  }
 0x452   :  { %6187 = vmatpush1.bf16.msra.mxu1 %v7233_v54  ;;  %v7247_v54 = vld [vmem:[#allocation4 + $0x54] ss:$8 sps:$4 sm:$0xff]  }
 0x453   :  { %6188 = vmatprep.subr.bf16.mxu1 %v7238_v10  ;;  %6328 = vmatpush1.bf16.msra.mxu0 %v7347_v45  ;;  %v7365_v10 = vld [vmem:[#allocation4 + $0x3a0] ss:$8 sps:$4 sm:$0xff]  }
 0x454   :  { %6329 = vmatprep.subr.bf16.mxu0 %v7355_v42  ;;  %v12716_v45 = vld [vmem:[#allocation181_spill] sm:$0xff] }
 0x456   :  { %6189 = vmatpush1.bf16.msra.mxu1 %v7236_v33  ;;  %v7250_v33 = vld [vmem:[#allocation4 + $0x64] ss:$8 sps:$4 sm:$0xff]  }
 0x457   :  { %6190 = vmatprep.subr.bf16.mxu1 %v7241_v15  ;;  %6330 = vmatpush1.bf16.msra.mxu0 %v7353_v16  ;;  %v7373_v15 = vld [vmem:[#allocation4 + $0x3b4] ss:$8 sps:$4 sm:$0xff]  }
 0x458   :  { %6331 = vmatprep.subr.bf16.mxu0 %v7361_v62 }
 0x45a   :  { %6191 = vmatpush1.bf16.msra.mxu1 %v7239_v9  ;;  %v7371_v9 = vld [vmem:[#allocation4 + $0x3b0] ss:$8 sps:$4 sm:$0xff]  }
 0x45b   :  { %6192 = vmatprep.subr.bf16.mxu1 %v7244_v3  ;;  %6332 = vmatpush1.bf16.msra.mxu0 %v7359_v61 }
 0x45c   :  { %6333 = vmatprep.subr.bf16.mxu0 %v7367_v44 }
 0x45e   :  { %6193 = vmatpush1.bf16.msra.mxu1 %v7242_v38  ;;  %v7248_v38 = vld [vmem:[#allocation4 + $0x60] ss:$8 sps:$4 sm:$0xff]  }
 0x45f   :  { %6194 = vmatprep.subr.bf16.mxu1 %v7247_v54  ;;  %v3739_v34 = vpop.f32.mrb[104].mxu1  ;;  %6334 = vmatpush1.bf16.msra.mxu0 %v7365_v10 }
 0x460   :  { %v3740_v42 = vadd.f32 %v3739_v34, %v12716_v45  ;;  %v3868_v16 = vpop.f32.mrb[104].mxu0  ;;  %v3741_v40 = vpop.f32.mrb[105].mxu1  ;;  %6335 = vmatprep.subr.bf16.mxu0 %v7373_v15 }
 0x461   :  { %v3869_v3 = vadd.f32 %v3868_v16, %v11765_v30  ;;  %v3742_v62 = vadd.f32 %v3741_v40, %v8813_v49  ;;  %v3870_v56 = vpop.f32.mrb[105].mxu0  ;;  %v3743_v61 = vpop.f32.mrb[106].mxu1 }
 0x462   :  { %6195 = vmatpush1.bf16.msra.mxu1 %v7245_v35  ;;  %v3926_v44 = vmax.f32 %v3740_v42, 0.0  ;;  %v3871_v54 = vadd.f32 %v3870_v56, %v11767_v43  ;;  %v3744_v14 = vadd.f32 %v3743_v61, %v12716_v45  ;;  %v3872_v46 = vpop.f32.mrb[106].mxu0  ;;  %v3745_v34 = vpop.f32.mrb[107].mxu1 }
 0x463   :  { %6196 = vmatprep.subr.bf16.mxu1 %v7250_v33  ;;  %v3932_v10 = vmax.f32 %v3869_v3, 0.0  ;;  %v3927_v22 = vmax.f32 %v3742_v62, 0.0  ;;  %v3873_v16 = vadd.f32 %v3872_v46, %v11765_v30  ;;  %v3746_v40 = vadd.f32 %v3745_v34, %v8813_v49  ;;  %v3874_v17 = vpop.f32.mrb[107].mxu0  ;;  %6336 = vmatpush1.bf16.msra.mxu0 %v7371_v9  ;;  %v7379_v62 = vld [vmem:[#allocation4 + $0x3c4] ss:$8 sps:$4 sm:$0xff]  }
 0x464   :  { %v10639_v35 = vadd.f32 %v3926_v44, %v10335_v5  ;;  %v10642_v15 = vmax.f32 %v10338_v7, %v3926_v44  ;;  %v3933_v56 = vmax.f32 %v3871_v54, 0.0  ;;  %v3942_v42 = vmax.f32 %v3744_v14, 0.0  ;;  %v7251_v5 = vld [vmem:[#allocation4 + $0x70] ss:$8 sps:$4 sm:$0xff]   ;;  %v12717_v7 = vld [vmem:[#allocation24_spill] sm:$0xff]  ;;  %6337 = vmatprep.subr.bf16.mxu0 %v7379_v62 }
 0x465   :  { %v10645_v61 = vadd.f32 %v3932_v10, %v10341_v4  ;;  %v10648_v33 = vmax.f32 %v10344_v58, %v3932_v10  ;;  %v10651_v46 = vadd.f32 %v3927_v22, %v10347_v19  ;;  %v10654_v3 = vmax.f32 %v10350_v26, %v3927_v22  ;;  %v12719_v4 = vld [vmem:[#allocation26_spill] sm:$0xff]  ;;  %v12721_v58 = vld [vmem:[#allocation28_spill] sm:$0xff] }
 0x466   :  { %6197 = vmatpush1.bf16.msra.mxu1 %v7248_v38  ;;  %v10657_v44 = vadd.f32 %v3933_v56, %v12717_v7  ;;  %v10660_v14 = vmax.f32 %v10357_v60, %v3933_v56  ;;  %v10663_v9 = vadd.f32 %v3942_v42, %v12719_v4  ;;  %v10666_v54 = vmax.f32 %v12721_v58, %v3942_v42  ;;  %v7256_v19 = vld [vmem:[#allocation4 + $0x84] ss:$8 sps:$4 sm:$0xff]   ;;  %v7377_v34 = vld [vmem:[#allocation4 + $0x3c0] ss:$8 sps:$4 sm:$0xff]   ;;  %v12723_v10 = vld [vmem:[#allocation30_spill] sm:$0xff] }
 0x467   :  { %6198 = vmatprep.subr.bf16.mxu1 %v7253_v21  ;;  %v3948_v26 = vmax.f32 %v3873_v16, 0.0  ;;  %v3943_v22 = vmax.f32 %v3746_v40, 0.0  ;;  %v3875_v38 = vadd.f32 %v3874_v17, %v11767_v43  ;;  %6338 = vmatpush1.bf16.msra.mxu0 %v7377_v34  ;;  %v12725_v60 = vld [vmem:[#allocation139_spill] sm:$0xff]  ;;  %v12727_v4 = vld [vmem:[#allocation140_spill] sm:$0xff]  ;;  %v12729_v42 = vld [vmem:[#allocation182_spill] sm:$0xff] }
 0x468   :  { %12718 = vst [vmem:[#allocation158_spill] sm:$0xff] %v10660_v14  ;;  %12720 = vst [vmem:[#allocation137_spill] sm:$0xff] %v10663_v9  ;;  %v7254_v21 = vld [vmem:[#allocation4 + $0x80] ss:$8 sps:$4 sm:$0xff]   ;;  %v7385_v16 = vld [vmem:[#allocation4 + $0x3d4] ss:$8 sps:$4 sm:$0xff]  }
 0x469   :  { %12722 = vst [vmem:[#allocation35_spill] sm:$0xff] %v10666_v54  ;;  %v10670_v7 = vadd.f32 %v3948_v26, %v12723_v10  ;;  %v10673_v56 = vmax.f32 %v12725_v60, %v3948_v26  ;;  %v10676_v9 = vadd.f32 %v3943_v22, %v12727_v4  ;;  %v10679_v58 = vmax.f32 %v12729_v42, %v3943_v22  ;;  %v7259_v17 = vld [vmem:[#allocation4 + $0x94] ss:$8 sps:$4 sm:$0xff]   ;;  %v7383_v62 = vld [vmem:[#allocation4 + $0x3d0] ss:$8 sps:$4 sm:$0xff]   ;;  %v12731_v34 = vld [vmem:[#allocation96_spill] sm:$0xff] }
 0x46a   :  { %6199 = vmatpush1.bf16.msra.mxu1 %v7251_v5  ;;  %v3949_v40 = vmax.f32 %v3875_v38, 0.0  ;;  %6339 = vmatprep.subr.bf16.mxu0 %v7385_v16  ;;  %v7257_v60 = vld [vmem:[#allocation4 + $0x90] ss:$8 sps:$4 sm:$0xff]   ;;  %v7391_v4 = vld [vmem:[#allocation4 + $0x3e4] ss:$8 sps:$4 sm:$0xff]  }
 0x46b   :  { %12724 = vst [vmem:[#allocation37_spill] sm:$0xff] %v10670_v7  ;;  %12726 = vst [vmem:[#allocation159_spill] sm:$0xff] %v10673_v56  ;;  %6200 = vmatprep.subr.bf16.mxu1 %v7256_v19  ;;  %v12733_v7 = vld [vmem:[#allocation151_spill] sm:$0xff]  ;;  %6340 = vmatpush1.bf16.msra.mxu0 %v7383_v62  ;;  %v7262_v22 = vld [vmem:[#allocation4 + $0xa4] ss:$8 sps:$4 sm:$0xff]  }
 0x46c   :  { %12728 = vst [vmem:[#allocation160_spill] sm:$0xff] %v10676_v9  ;;  %12730 = vst [vmem:[#allocation32_spill] sm:$0xff] %v10679_v58  ;;  %v10682_v10 = vadd.f32 %v3949_v40, %v12731_v34  ;;  %v10685_v26 = vmax.f32 %v12733_v7, %v3949_v40  ;;  %v7389_v5 = vld [vmem:[#allocation4 + $0x3e0] ss:$8 sps:$4 sm:$0xff]   ;;  %6341 = vmatprep.subr.bf16.mxu0 %v7391_v4  ;;  %v7397_v38 = vld [vmem:[#allocation4 + $0x3f4] ss:$8 sps:$4 sm:$0xff]  }
 0x46d   :  { %v7260_v19 = vld [vmem:[#allocation4 + $0xa0] ss:$8 sps:$4 sm:$0xff]   ;;  %v7265_v42 = vld [vmem:[#allocation4 + $0xb4] ss:$8 sps:$4 sm:$0xff]   ;;  %v7395_v16 = vld [vmem:[#allocation4 + $0x3f0] ss:$8 sps:$4 sm:$0xff]  }
 0x46e   :  { %12732 = vst [vmem:[#allocation33_spill] sm:$0xff] %v10682_v10  ;;  %12734 = vst [vmem:[#allocation39_spill] sm:$0xff] %v10685_v26  ;;  %6201 = vmatpush1.bf16.msra.mxu1 %v7254_v21  ;;  %v7263_v7 = vld [vmem:[#allocation4 + $0xb0] ss:$8 sps:$4 sm:$0xff]   ;;  %v7403_v40 = vld [vmem:[#allocation4 + $0x404] ss:$8 sps:$4 sm:$0xff]  }
 0x46f   :  { %6202 = vmatprep.subr.bf16.mxu1 %v7259_v17  ;;  %6342 = vmatpush1.bf16.msra.mxu0 %v7389_v5  ;;  %v7268_v21 = vld [vmem:[#allocation4 + $0xc4] ss:$8 sps:$4 sm:$0xff]   ;;  %v7266_v17 = vld [vmem:[#allocation4 + $0xc0] ss:$8 sps:$4 sm:$0xff]   ;;  %v7271_v62 = vld [vmem:[#allocation4 + $0xd4] ss:$8 sps:$4 sm:$0xff]  }
 0x470   :  { %6343 = vmatprep.subr.bf16.mxu0 %v7397_v38  ;;  %v7269_v34 = vld [vmem:[#allocation4 + $0xd0] ss:$8 sps:$4 sm:$0xff]   ;;  %v7277_v9 = vld [vmem:[#allocation4 + $0xf4] ss:$8 sps:$4 sm:$0xff]  }
 0x472   :  { %6203 = vmatpush1.bf16.msra.mxu1 %v7257_v60  ;;  %v7274_v60 = vld [vmem:[#allocation4 + $0xe4] ss:$8 sps:$4 sm:$0xff]  }
 0x473   :  { %6204 = vmatprep.subr.bf16.mxu1 %v7262_v22  ;;  %6344 = vmatpush1.bf16.msra.mxu0 %v7395_v16  ;;  %v12735_v22 = vld [vmem:[#allocation150_spill] sm:$0xff] }
 0x474   :  { %6356 = vmatprep.subr.bf16.mxu0 %v7403_v40 }
 0x476   :  { %6205 = vmatpush1.bf16.msra.mxu1 %v7260_v19 }
 0x477   :  { %6206 = vmatprep.subr.bf16.mxu1 %v7265_v42 }
 0x47a   :  { %6207 = vmatpush1.bf16.msra.mxu1 %v7263_v7  ;;  %v7272_v7 = vld [vmem:[#allocation4 + $0xe0] ss:$8 sps:$4 sm:$0xff]  }
 0x47b   :  { %6208 = vmatprep.subr.bf16.mxu1 %v7268_v21 }
 0x47e   :  { %6209 = vmatpush1.bf16.msra.mxu1 %v7266_v17 }
 0x47f   :  { %6210 = vmatprep.subr.bf16.mxu1 %v7271_v62 }
 0x480   :  { %v3825_v4 = vpop.f32.mrb[108].mxu1  ;;  %v4054_v26 = vpop.f32.mrb[108].mxu0 }
 0x481   :  { %v3826_v5 = vadd.f32 %v3825_v4, %v12735_v22  ;;  %v3827_v38 = vpop.f32.mrb[109].mxu1  ;;  %v4055_v19 = vadd.f32 %v4054_v26, %v8503_v12  ;;  %v4056_v42 = vpop.f32.mrb[109].mxu0 }
 0x482   :  { %v3828_v16 = vadd.f32 %v3827_v38, %v8533_v59  ;;  %v3829_v10 = vpop.f32.mrb[110].mxu1  ;;  %6211 = vmatpush1.bf16.msra.mxu1 %v7269_v34  ;;  %v4057_v21 = vadd.f32 %v4056_v42, %v8510_v18  ;;  %v4058_v62 = vpop.f32.mrb[110].mxu0 }
 0x483   :  { %v3930_v40 = vmax.f32 %v3826_v5, 0.0  ;;  %v3830_v17 = vadd.f32 %v3829_v10, %v12735_v22  ;;  %v3831_v58 = vpop.f32.mrb[111].mxu1  ;;  %6212 = vmatprep.subr.bf16.mxu1 %v7274_v60  ;;  %v4364_v4 = vmax.f32 %v4055_v19, 0.0  ;;  %v4059_v54 = vadd.f32 %v4058_v62, %v8503_v12  ;;  %v4060_v38 = vpop.f32.mrb[111].mxu0 }
 0x484   :  { %v3931_v56 = vmax.f32 %v3828_v16, 0.0  ;;  %v3832_v26 = vadd.f32 %v3831_v58, %v8533_v59  ;;  %v4365_v5 = vmax.f32 %v4057_v21, 0.0  ;;  %v7275_v58 = vld [vmem:[#allocation4 + $0xf0] ss:$8 sps:$4 sm:$0xff]   ;;  %v12739_v21 = vld [vmem:[#allocation153_spill] sm:$0xff] }
 0x485   :  { %v10695_v14 = vadd.f32 %v3930_v40, %v10427_v20  ;;  %v10698_v34 = vmax.f32 %v10430_v23, %v3930_v40  ;;  %v3946_v42 = vmax.f32 %v3830_v17, 0.0  ;;  %v4396_v10 = vadd.f32 %v4364_v4, %v10433_v11  ;;  %v12738_v23 = vld [vmem:[#allocation152_spill] sm:$0xff] }
 0x486   :  { %v4428_v60 = vmax.f32 %v10436_v32, %v4364_v4  ;;  %v10703_v19 = vadd.f32 %v3931_v56, %v10439_v52  ;;  %v10706_v12 = vmax.f32 %v10442_v51, %v3931_v56  ;;  %6213 = vmatpush1.bf16.msra.mxu1 %v7272_v7  ;;  %v4397_v20 = vadd.f32 %v4365_v5, %v10446_v41  ;;  %v7280_v11 = vld [vmem:[#allocation4 + $0x104] ss:$8 sps:$4 sm:$0xff]   ;;  %v12740_v4 = vld [vmem:[#allocation34_spill] sm:$0xff] }
 0x487   :  { %v4429_v16 = vmax.f32 %v10449_v48, %v4365_v5  ;;  %v10711_v40 = vadd.f32 %v3946_v42, %v12738_v23  ;;  %v10714_v17 = vmax.f32 %v12739_v21, %v3946_v42  ;;  %6214 = vmatprep.subr.bf16.mxu1 %v7277_v9  ;;  %v4460_v32 = vmul.f32 0.125, %v4396_v10  ;;  %v12741_v41 = vld [vmem:[#allocation36_spill] sm:$0xff]  ;;  %v12742_v48 = vld [vmem:[#allocation154_spill] sm:$0xff]  ;;  %v12743_v42 = vld [vmem:[#allocation183_spill] sm:$0xff] }
 0x488   :  { %12736 = vst [vmem:[#allocation40_spill] sm:$0xff] %v10703_v19  ;;  %12737 = vst [vmem:[#allocation41_spill] sm:$0xff] %v10706_v12  ;;  %v4380_v52 = vmax.f32 %v4059_v54, 0.0  ;;  %v3947_v62 = vmax.f32 %v3832_v26, 0.0  ;;  %v4061_v51 = vadd.f32 %v4060_v38, %v8510_v18  ;;  %v4461_v56 = vmul.f32 0.125, %v4397_v20  ;;  %v12744_v10 = vld [vmem:[#allocation155_spill] sm:$0xff] }
 0x489   :  { %v4492_v7 = vadd.f32 %v4460_v32, %v4428_v60  ;;  %v12745_v38 = vld [vmem:[#allocation156_spill] sm:$0xff] }
 0x48a   :  { %v4412_v12 = vadd.f32 %v4380_v52, %v12740_v4  ;;  %v4444_v19 = vmax.f32 %v12741_v41, %v4380_v52  ;;  %v10720_v5 = vadd.f32 %v3947_v62, %v12742_v48  ;;  %6215 = vmatpush1.bf16.msra.mxu1 %v7275_v58  ;;  %v4493_v23 = vadd.f32 %v4461_v56, %v4429_v16  ;;  %v7283_v4 = vld [vmem:[#allocation4 + $0x114] ss:$8 sps:$4 sm:$0xff]   ;;  %v7292_v48 = vld [vmem:[#allocation4 + $0x144] ss:$8 sps:$4 sm:$0xff]  }
 0x48b   :  { %v10723_v21 = vmax.f32 %v12743_v42, %v3947_v62  ;;  %v4381_v9 = vmax.f32 %v4061_v51, 0.0  ;;  %6227 = vmatprep.subr.bf16.mxu1 %v7280_v11  ;;  %v7278_v62 = vld [vmem:[#allocation4 + $0x100] ss:$8 sps:$4 sm:$0xff]   ;;  %v7289_v51 = vld [vmem:[#allocation4 + $0x134] ss:$8 sps:$4 sm:$0xff]  }
 0x48c   :  { %v4476_v54 = vmul.f32 0.125, %v4412_v12  ;;  %v7153_v26 = vpack.c.bf16 %v4493_v23, %v4492_v7  ;;  %v7281_v12 = vld [vmem:[#allocation4 + $0x110] ss:$8 sps:$4 sm:$0xff]   ;;  %v7284_v11 = vld [vmem:[#allocation4 + $0x120] ss:$8 sps:$4 sm:$0xff]  }
 0x48d   :  { %v4413_v18 = vadd.f32 %v4381_v9, %v12744_v10  ;;  %v4445_v60 = vmax.f32 %v12745_v38, %v4381_v9  ;;  %v12747_v10 = vld [vmem:[#allocation138_spill] sm:$0xff] }
 0x48e   :  { %v4508_v20 = vadd.f32 %v4476_v54, %v4444_v19  ;;  %4620 = vst [vmem:[%s11066_s7] sm:$0xff] %v7153_v26  ;;  %v7286_v19 = vld [vmem:[#allocation4 + $0x124] ss:$8 sps:$4 sm:$0xff]  }
 0x48f   :  { %v4477_v32 = vmul.f32 0.125, %v4413_v18 }
 0x490   :  { %v4524_v52 = vpack.c.bf16 %v4508_v20, %v4492_v7  ;;  %v7287_v7 = vld [vmem:[#allocation4 + $0x130] ss:$8 sps:$4 sm:$0xff]  }
 0x491   :  { %v4509_v58 = vadd.f32 %v4477_v32, %v4445_v60  ;;  %v7290_v32 = vld [vmem:[#allocation4 + $0x140] ss:$8 sps:$4 sm:$0xff]  }
 0x493   :  { %v7161_v16 = vpack.c.bf16 %v4509_v58, %v4508_v20  ;;  %v4525_v56 = vpack.c.bf16 %v4509_v58, %v4493_v23  ;;  %v12746_v23 = vld [vmem:[#allocation136_spill] sm:$0xff] }
 0x495   :  { %4628 = vst [vmem:[%s11066_s7 + $0x40] sm:$0xff] %v7161_v16  ;;  %6216 = vmatprep.mubr.bf16.mxu1 %v4525_v56 }
 0x496   :  { %6217 = vmatmul.mubr.bf16.vlgmr.msra.gmra.mrb[132].mxu1 %v4524_v52 }
 0x497   :  { %6228 = vmatpush1.bf16.msra.mxu1 %v7278_v62 }
 0x498   :  { %6229 = vmatprep.subr.bf16.mxu1 %v7283_v4 }
 0x49b   :  { %6230 = vmatpush1.bf16.msra.mxu1 %v7281_v12 }
 0x49c   :  { %6231 = vmatprep.subr.bf16.mxu1 %v7286_v19 }
 0x49f   :  { %6232 = vmatpush1.bf16.msra.mxu1 %v7284_v11 }
 0x4a0   :  { %6233 = vmatprep.subr.bf16.mxu1 %v7289_v51  ;;  %v3911_v41 = vpop.f32.mrb[112].mxu1  ;;  %v4140_v9 = vpop.f32.mrb[112].mxu0  ;;  %v7295_v51 = vld [vmem:[#allocation4 + $0x154] ss:$8 sps:$4 sm:$0xff]  }
 0x4a1   :  { %v3912_v42 = vadd.f32 %v3911_v41, %v12746_v23  ;;  %v3913_v54 = vpop.f32.mrb[113].mxu1  ;;  %v4141_v26 = vadd.f32 %v4140_v9, %v8600_v24  ;;  %v4142_v38 = vpop.f32.mrb[113].mxu0 }
 0x4a2   :  { %v3914_v18 = vadd.f32 %v3913_v54, %v12747_v10  ;;  %v3915_v60 = vpop.f32.mrb[114].mxu1  ;;  %v4143_v52 = vadd.f32 %v4142_v38, %v8608_v25  ;;  %v4144_v16 = vpop.f32.mrb[114].mxu0 }
 0x4a3   :  { %6234 = vmatpush1.bf16.msra.mxu1 %v7287_v7  ;;  %v3934_v20 = vmax.f32 %v3912_v42, 0.0  ;;  %v3916_v58 = vadd.f32 %v3915_v60, %v12746_v23  ;;  %v3917_v56 = vpop.f32.mrb[115].mxu1  ;;  %v4368_v62 = vmax.f32 %v4141_v26, 0.0  ;;  %v4145_v12 = vadd.f32 %v4144_v16, %v8600_v24  ;;  %v4146_v11 = vpop.f32.mrb[115].mxu0  ;;  %v12749_v60 = vld [vmem:[#allocation10_spill] sm:$0xff] }
 0x4a4   :  { %6235 = vmatprep.subr.bf16.mxu1 %v7292_v48  ;;  %v3935_v4 = vmax.f32 %v3914_v18, 0.0  ;;  %v3918_v19 = vadd.f32 %v3917_v56, %v12747_v10  ;;  %v4369_v42 = vmax.f32 %v4143_v52, 0.0  ;;  %v12748_v18 = vld [vmem:[#allocation38_spill] sm:$0xff] }
 0x4a5   :  { %v10741_v41 = vadd.f32 %v3934_v20, %v10505_v29  ;;  %v10744_v7 = vmax.f32 %v10508_v6, %v3934_v20  ;;  %v3950_v9 = vmax.f32 %v3916_v58, 0.0  ;;  %v4400_v54 = vadd.f32 %v4368_v62, %v10511_v2  ;;  %v12750_v20 = vld [vmem:[#allocation184_spill] sm:$0xff]  ;;  %v7293_v2 = vld [vmem:[#allocation4 + $0x150] ss:$8 sps:$4 sm:$0xff]  }
 0x4a6   :  { %v4432_v26 = vmax.f32 %v10514_v63, %v4368_v62  ;;  %v10749_v48 = vadd.f32 %v3935_v4, %v10517_v31  ;;  %v10752_v24 = vmax.f32 %v10520_v37, %v3935_v4  ;;  %v4401_v38 = vadd.f32 %v4369_v42, %v12748_v18  ;;  %v7298_v37 = vld [vmem:[#allocation4 + $0x164] ss:$8 sps:$4 sm:$0xff]  }
 0x4a7   :  { %v4433_v29 = vmax.f32 %v10527_v36, %v4369_v42  ;;  %6236 = vmatpush1.bf16.msra.mxu1 %v7290_v32  ;;  %v10757_v6 = vadd.f32 %v3950_v9, %v12749_v60  ;;  %v10760_v52 = vmax.f32 %v12750_v20, %v3950_v9  ;;  %v4464_v58 = vmul.f32 0.125, %v4400_v54  ;;  %v12752_v4 = vld [vmem:[#allocation185_spill] sm:$0xff]  ;;  %v12753_v32 = vld [vmem:[#allocation11_spill] sm:$0xff] }
 0x4a8   :  { %v4384_v63 = vmax.f32 %v4145_v12, 0.0  ;;  %v3951_v16 = vmax.f32 %v3918_v19, 0.0  ;;  %v4147_v31 = vadd.f32 %v4146_v11, %v8608_v25  ;;  %6237 = vmatprep.subr.bf16.mxu1 %v7295_v51  ;;  %v4465_v56 = vmul.f32 0.125, %v4401_v38  ;;  %v12754_v18 = vld [vmem:[#allocation13_spill] sm:$0xff]  ;;  %v12756_v20 = vld [vmem:[#allocation15_spill] sm:$0xff] }
 0x4a9   :  { %12751 = vst [vmem:[#allocation161_spill] sm:$0xff] %v10760_v52  ;;  %v10763_v62 = vadd.f32 %v4464_v58, %v4432_v26  ;;  %v7296_v25 = vld [vmem:[#allocation4 + $0x160] ss:$8 sps:$4 sm:$0xff]   ;;  %v7301_v11 = vld [vmem:[#allocation4 + $0x174] ss:$8 sps:$4 sm:$0xff]  }
 0x4aa   :  { %v4416_v36 = vadd.f32 %v4384_v63, %v12752_v4  ;;  %v4448_v42 = vmax.f32 %v12753_v32, %v4384_v63  ;;  %v10768_v60 = vadd.f32 %v3951_v16, %v12754_v18  ;;  %v10770_v9 = vadd.f32 %v4465_v56, %v4433_v29  ;;  %v12758_v26 = vld [vmem:[#allocation17_spill] sm:$0xff]  ;;  %v12759_v58 = vld [vmem:[#allocation19_spill] sm:$0xff] }
 0x4ab   :  { %v10773_v54 = vmax.f32 %v12756_v20, %v3951_v16  ;;  %v4385_v12 = vmax.f32 %v4147_v31, 0.0  ;;  %6238 = vmatpush1.bf16.msra.mxu1 %v7293_v2  ;;  %v7299_v2 = vld [vmem:[#allocation4 + $0x170] ss:$8 sps:$4 sm:$0xff]   ;;  %v7304_v31 = vld [vmem:[#allocation4 + $0x184] ss:$8 sps:$4 sm:$0xff]  }
 0x4ac   :  { %12755 = vst [vmem:[#allocation133_spill] sm:$0xff] %v10768_v60  ;;  %v4480_v19 = vmul.f32 0.125, %v4416_v36  ;;  %6239 = vmatprep.subr.bf16.mxu1 %v7298_v37  ;;  %v7155_v51 = vpack.c.bf16 %v10770_v9, %v10763_v62  ;;  %v7302_v36 = vld [vmem:[#allocation4 + $0x180] ss:$8 sps:$4 sm:$0xff]   ;;  %v7308_v18 = vld [vmem:[#allocation4 + $0x190] ss:$8 sps:$4 sm:$0xff]  }
 0x4ad   :  { %12757 = vst [vmem:[#allocation42_spill] sm:$0xff] %v10773_v54  ;;  %v4417_v38 = vadd.f32 %v4385_v12, %v12758_v26  ;;  %v4449_v63 = vmax.f32 %v12759_v58, %v4385_v12  ;;  %v7316_v20 = vld [vmem:[#allocation4 + $0x1a4] ss:$8 sps:$4 sm:$0xff]   ;;  %v7314_v12 = vld [vmem:[#allocation4 + $0x1a0] ss:$8 sps:$4 sm:$0xff]   ;;  %v12760_v26 = vld [vmem:[#allocation163_spill] sm:$0xff] }
 0x4ae   :  { %v10779_v4 = vadd.f32 %v4480_v19, %v4448_v42  ;;  %4622 = vst [vmem:[%s11066_s7 + $0x10] sm:$0xff] %v7155_v51  ;;  %v7310_v42 = vld [vmem:[#allocation4 + $0x194] ss:$8 sps:$4 sm:$0xff]   ;;  %v7320_v19 = vld [vmem:[#allocation4 + $0x1b0] ss:$8 sps:$4 sm:$0xff]  }
 0x4af   :  { %v4481_v29 = vmul.f32 0.125, %v4417_v38  ;;  %6240 = vmatpush1.bf16.msra.mxu1 %v7296_v25  ;;  %v7322_v25 = vld [vmem:[#allocation4 + $0x1b4] ss:$8 sps:$4 sm:$0xff]   ;;  %v7328_v51 = vld [vmem:[#allocation4 + $0x1c4] ss:$8 sps:$4 sm:$0xff]  }
 0x4b0   :  { %6241 = vmatprep.subr.bf16.mxu1 %v7301_v11 }
 0x4b1   :  { %v10786_v37 = vadd.f32 %v4481_v29, %v4449_v63 }
 0x4b3   :  { %v7163_v56 = vpack.c.bf16 %v10786_v37, %v10779_v4  ;;  %6242 = vmatpush1.bf16.msra.mxu1 %v7299_v2 }
 0x4b4   :  { %6243 = vmatprep.subr.bf16.mxu1 %v7304_v31 }
 0x4b5   :  { %4630 = vst [vmem:[%s11066_s7 + $0x50] sm:$0xff] %v7163_v56 }
 0x4b7   :  { %6244 = vmatpush1.bf16.msra.mxu1 %v7302_v36 }
 0x4b8   :  { %6245 = vmatprep.subr.bf16.mxu1 %v7310_v42  ;;  %v7326_v42 = vld [vmem:[#allocation4 + $0x1c0] ss:$8 sps:$4 sm:$0xff]  }
 0x4bb   :  { %6246 = vmatpush1.bf16.msra.mxu1 %v7308_v18 }
 0x4bc   :  { %6247 = vmatprep.subr.bf16.mxu1 %v7316_v20 }
 0x4bf   :  { %6248 = vmatpush1.bf16.msra.mxu1 %v7314_v12 }
 0x4c0   :  { %6249 = vmatprep.subr.bf16.mxu1 %v7322_v25  ;;  %v4097_v11 = vpop.f32.mrb[116].mxu1  ;;  %v4226_v58 = vpop.f32.mrb[116].mxu0 }
 0x4c1   :  { %v4098_v38 = vadd.f32 %v4097_v11, %v12760_v26  ;;  %v4099_v63 = vpop.f32.mrb[117].mxu1  ;;  %v4227_v29 = vadd.f32 %v4226_v58, %v8702_v13  ;;  %v4228_v31 = vpop.f32.mrb[117].mxu0 }
 0x4c2   :  { %v4100_v2 = vadd.f32 %v4099_v63, %v12113_v47  ;;  %v4101_v56 = vpop.f32.mrb[118].mxu1  ;;  %v4229_v18 = vadd.f32 %v4228_v31, %v8706_v27  ;;  %v4230_v12 = vpop.f32.mrb[118].mxu0  ;;  %v7334_v63 = vld [vmem:[#allocation4 + $0x1d4] ss:$8 sps:$4 sm:$0xff]  }
 0x4c3   :  { %6250 = vmatpush1.bf16.msra.mxu1 %v7320_v19  ;;  %v4366_v36 = vmax.f32 %v4098_v38, 0.0  ;;  %v4102_v20 = vadd.f32 %v4101_v56, %v12760_v26  ;;  %v4103_v25 = vpop.f32.mrb[119].mxu1  ;;  %v4372_v16 = vmax.f32 %v4227_v29, 0.0  ;;  %v4231_v32 = vadd.f32 %v4230_v12, %v8702_v13  ;;  %v4232_v54 = vpop.f32.mrb[119].mxu0  ;;  %v7332_v56 = vld [vmem:[#allocation4 + $0x1d0] ss:$8 sps:$4 sm:$0xff]  }
 0x4c4   :  { %6251 = vmatprep.subr.bf16.mxu1 %v7328_v51  ;;  %v4367_v11 = vmax.f32 %v4100_v2, 0.0  ;;  %v4104_v58 = vadd.f32 %v4103_v25, %v12113_v47  ;;  %v4373_v38 = vmax.f32 %v4229_v18, 0.0  ;;  %v12761_v18 = vld [vmem:[#allocation21_spill] sm:$0xff]  ;;  %v12762_v25 = vld [vmem:[#allocation23_spill] sm:$0xff] }
 0x4c5   :  { %v4398_v60 = vadd.f32 %v4366_v36, %v10579_v1  ;;  %v4430_v19 = vmax.f32 %v10582_v0, %v4366_v36  ;;  %v4382_v52 = vmax.f32 %v4102_v20, 0.0  ;;  %v4404_v31 = vadd.f32 %v4372_v16, %v10585_v57 }
 0x4c6   :  { %v4436_v26 = vmax.f32 %v10588_v55, %v4372_v16  ;;  %v4399_v29 = vadd.f32 %v4367_v11, %v10591_v8  ;;  %v4431_v51 = vmax.f32 %v10594_v28, %v4367_v11  ;;  %v4405_v13 = vadd.f32 %v4373_v38, %v10598_v39  ;;  %v7340_v55 = vld [vmem:[#allocation4 + $0x1e4] ss:$8 sps:$4 sm:$0xff]  }
 0x4c7   :  { %v4462_v2 = vmul.f32 0.125, %v4398_v60  ;;  %v4437_v47 = vmax.f32 %v10601_v53, %v4373_v38  ;;  %6252 = vmatpush1.bf16.msra.mxu1 %v7326_v42  ;;  %v4414_v1 = vadd.f32 %v4382_v52, %v10604_v50  ;;  %v4468_v0 = vmul.f32 0.125, %v4404_v31  ;;  %v12763_v42 = vld [vmem:[#allocation25_spill] sm:$0xff]  ;;  %v12764_v31 = vld [vmem:[#allocation27_spill] sm:$0xff] }
 0x4c8   :  { %v4463_v36 = vmul.f32 0.125, %v4399_v29  ;;  %v4446_v20 = vmax.f32 %v12761_v18, %v4382_v52  ;;  %v4388_v57 = vmax.f32 %v4231_v32, 0.0  ;;  %6253 = vmatprep.subr.bf16.mxu1 %v7334_v63  ;;  %v4469_v8 = vmul.f32 0.125, %v4405_v13  ;;  %v12765_v52 = vld [vmem:[#allocation29_spill] sm:$0xff] }
 0x4c9   :  { %v4494_v16 = vadd.f32 %v4462_v2, %v4430_v19  ;;  %v4478_v12 = vmul.f32 0.125, %v4414_v1  ;;  %v4383_v28 = vmax.f32 %v4104_v58, 0.0  ;;  %v10812_v60 = vadd.f32 %v4468_v0, %v4436_v26  ;;  %v7338_v63 = vld [vmem:[#allocation4 + $0x1e0] ss:$8 sps:$4 sm:$0xff]   ;;  %v7346_v26 = vld [vmem:[#allocation4 + $0x1f4] ss:$8 sps:$4 sm:$0xff]  }
 0x4ca   :  { %v4495_v39 = vadd.f32 %v4463_v36, %v4431_v51  ;;  %v4420_v53 = vadd.f32 %v4388_v57, %v12762_v25  ;;  %v4452_v11 = vmax.f32 %v12763_v42, %v4388_v57  ;;  %v10816_v50 = vadd.f32 %v4469_v8, %v4437_v47  ;;  %v12766_v36 = vld [vmem:[#allocation31_spill] sm:$0xff] }
 0x4cb   :  { %v4510_v38 = vadd.f32 %v4478_v12, %v4446_v20  ;;  %v4415_v29 = vadd.f32 %v4383_v28, %v12764_v31  ;;  %v4447_v32 = vmax.f32 %v12765_v52, %v4383_v28  ;;  %6254 = vmatpush1.bf16.msra.mxu1 %v7332_v56  ;;  %v4233_v58 = vadd.f32 %v4232_v54, %v8706_v27  ;;  %v7344_v27 = vld [vmem:[#allocation4 + $0x1f0] ss:$8 sps:$4 sm:$0xff]   ;;  %v12767_v20 = vld [vmem:[#allocation157_spill] sm:$0xff]  ;;  %v7370_v52 = vld [vmem:[#allocation4 + $0x234] ss:$8 sps:$4 sm:$0xff]  }
 0x4cc   :  { %v7154_v19 = vpack.c.bf16 %v4495_v39, %v4494_v16  ;;  %v4484_v2 = vmul.f32 0.125, %v4420_v53  ;;  %6255 = vmatprep.subr.bf16.mxu1 %v7340_v55  ;;  %v7157_v51 = vpack.c.bf16 %v10816_v50, %v10812_v60  ;;  %v7352_v55 = vld [vmem:[#allocation4 + $0x204] ss:$8 sps:$4 sm:$0xff]   ;;  %v7350_v28 = vld [vmem:[#allocation4 + $0x200] ss:$8 sps:$4 sm:$0xff]  }
 0x4cd   :  { %v4526_v13 = vpack.c.bf16 %v4510_v38, %v4494_v16  ;;  %v4479_v1 = vmul.f32 0.125, %v4415_v29  ;;  %v4389_v0 = vmax.f32 %v4233_v58, 0.0  ;;  %v7358_v53 = vld [vmem:[#allocation4 + $0x214] ss:$8 sps:$4 sm:$0xff]   ;;  %v7364_v31 = vld [vmem:[#allocation4 + $0x224] ss:$8 sps:$4 sm:$0xff]  }
 0x4ce   :  { %4621 = vst [vmem:[%s11066_s7 + $0x8] sm:$0xff] %v7154_v19  ;;  %v10826_v47 = vadd.f32 %v4484_v2, %v4452_v11  ;;  %4624 = vst [vmem:[%s11066_s7 + $0x20] sm:$0xff] %v7157_v51  ;;  %v7362_v29 = vld [vmem:[#allocation4 + $0x220] ss:$8 sps:$4 sm:$0xff]   ;;  %v7376_v19 = vld [vmem:[#allocation4 + $0x244] ss:$8 sps:$4 sm:$0xff]  }
 0x4cf   :  { %v4511_v56 = vadd.f32 %v4479_v1, %v4447_v32  ;;  %6256 = vmatpush1.bf16.msra.mxu1 %v7338_v63  ;;  %v4421_v18 = vadd.f32 %v4389_v0, %v12766_v36  ;;  %v4453_v57 = vmax.f32 %v12767_v20, %v4389_v0  ;;  %v7368_v32 = vld [vmem:[#allocation4 + $0x230] ss:$8 sps:$4 sm:$0xff]   ;;  %v7374_v0 = vld [vmem:[#allocation4 + $0x240] ss:$8 sps:$4 sm:$0xff]  }
 0x4d0   :  { %v4532_v54 = vpack.c.bf16 %v10826_v47, %v10812_v60  ;;  %6257 = vmatprep.subr.bf16.mxu1 %v7346_v26  ;;  %v7487_v60 = vld [vmem:[#allocation4 + $0x554] ss:$8 sps:$4 sm:$0xff]  }
 0x4d1   :  { %v7162_v16 = vpack.c.bf16 %v4511_v56, %v4510_v38  ;;  %v4527_v8 = vpack.c.bf16 %v4511_v56, %v4495_v39  ;;  %v4485_v12 = vmul.f32 0.125, %v4421_v18  ;;  %v12768_v39 = vpack.c.bf16 %v10786_v37, %v10770_v9  ;;  %v7356_v38 = vld [vmem:[#allocation4 + $0x210] ss:$8 sps:$4 sm:$0xff]  }
 0x4d3   :  { %4629 = vst [vmem:[%s11066_s7 + $0x48] sm:$0xff] %v7162_v16  ;;  %6258 = vmatpush1.bf16.msra.mxu1 %v7344_v27  ;;  %6259 = vmatprep.mubr.bf16.mxu1 %v4527_v8  ;;  %v10838_v25 = vadd.f32 %v4485_v12, %v4453_v57  ;;  %v7382_v12 = vld [vmem:[#allocation4 + $0x254] ss:$8 sps:$4 sm:$0xff]  }
 0x4d4   :  { %6270 = vmatprep.subr.bf16.mxu1 %v7352_v55 }
 0x4d5   :  { %v7165_v42 = vpack.c.bf16 %v10838_v25, %v10826_v47  ;;  %v4533_v11 = vpack.c.bf16 %v10838_v25, %v10816_v50  ;;  %v7413_v50 = vld [vmem:[#allocation4 + $0x420] ss:$8 sps:$4 sm:$0xff]   ;;  %v7421_v25 = vld [vmem:[#allocation4 + $0x434] ss:$8 sps:$4 sm:$0xff]   ;;  %v7485_v47 = vld [vmem:[#allocation4 + $0x550] ss:$8 sps:$4 sm:$0xff]  }
 0x4d6   :  { %6260 = vmatmul.mubr.bf16.vlgmr.msra.gmra.mrb[132].mxu1 %v4526_v13 }
 0x4d7   :  { %6271 = vmatpush1.bf16.msra.mxu1 %v7350_v28  ;;  %6302 = vmatprep.mubr.bf16.mxu1 %v12768_v39  ;;  %4632 = vst [vmem:[%s11066_s7 + $0x60] sm:$0xff] %v7165_v42 }
 0x4d8   :  { %6272 = vmatprep.subr.bf16.mxu1 %v7358_v53 }
 0x4db   :  { %6273 = vmatpush1.bf16.msra.mxu1 %v7356_v38 }
 0x4dc   :  { %6274 = vmatprep.subr.bf16.mxu1 %v7364_v31 }
 0x4df   :  { %6275 = vmatpush1.bf16.msra.mxu1 %v7362_v29 }
 0x4e0   :  { %6276 = vmatprep.subr.bf16.mxu1 %v7370_v52  ;;  %v4183_v63 = vpop.f32.mrb[120].mxu1 }
 0x4e1   :  { %v4184_v2 = vadd.f32 %v4183_v63, %v12716_v45  ;;  %v4312_v9 = vpop.f32.mrb[120].mxu0  ;;  %v4185_v37 = vpop.f32.mrb[121].mxu1  ;;  %v12770_v63 = vld [vmem:[#allocation137_spill] sm:$0xff] }
 0x4e2   :  { %v4313_v58 = vadd.f32 %v4312_v9, %v11765_v30  ;;  %v4186_v26 = vadd.f32 %v4185_v37, %v8813_v49  ;;  %v4314_v51 = vpop.f32.mrb[121].mxu0  ;;  %v4187_v13 = vpop.f32.mrb[122].mxu1  ;;  %v12771_v9 = vld [vmem:[#allocation35_spill] sm:$0xff] }
 0x4e3   :  { %6277 = vmatpush1.bf16.msra.mxu1 %v7368_v32  ;;  %v4370_v1 = vmax.f32 %v4184_v2, 0.0  ;;  %v4315_v56 = vadd.f32 %v4314_v51, %v11767_v43  ;;  %v4188_v27 = vadd.f32 %v4187_v13, %v12716_v45  ;;  %v4316_v36 = vpop.f32.mrb[122].mxu0  ;;  %v4189_v18 = vpop.f32.mrb[123].mxu1  ;;  %v12772_v13 = vld [vmem:[#allocation37_spill] sm:$0xff] }
 0x4e4   :  { %v4376_v20 = vmax.f32 %v4313_v58, 0.0  ;;  %6278 = vmatprep.subr.bf16.mxu1 %v7376_v19  ;;  %v4371_v57 = vmax.f32 %v4186_v26, 0.0  ;;  %v4317_v55 = vadd.f32 %v4316_v36, %v11765_v30  ;;  %v4190_v16 = vadd.f32 %v4189_v18, %v8813_v49  ;;  %v4318_v8 = vpop.f32.mrb[123].mxu0  ;;  %v12769_v49 = vld [vmem:[#allocation158_spill] sm:$0xff]  ;;  %v12774_v18 = vld [vmem:[#allocation160_spill] sm:$0xff] }
 0x4e5   :  { %v4402_v28 = vadd.f32 %v4370_v1, %v10639_v35  ;;  %v4434_v53 = vmax.f32 %v10642_v15, %v4370_v1  ;;  %v4377_v42 = vmax.f32 %v4315_v56, 0.0  ;;  %v4386_v39 = vmax.f32 %v4188_v27, 0.0  ;;  %v7380_v19 = vld [vmem:[#allocation4 + $0x250] ss:$8 sps:$4 sm:$0xff]  }
 0x4e6   :  { %v4408_v38 = vadd.f32 %v4376_v20, %v10645_v61  ;;  %v4440_v45 = vmax.f32 %v10648_v33, %v4376_v20  ;;  %v4403_v31 = vadd.f32 %v4371_v57, %v10651_v46  ;;  %v4435_v29 = vmax.f32 %v10654_v3, %v4371_v57  ;;  %v7388_v33 = vld [vmem:[#allocation4 + $0x264] ss:$8 sps:$4 sm:$0xff]  }
 0x4e7   :  { %v4466_v52 = vmul.f32 0.125, %v4402_v28  ;;  %v4409_v30 = vadd.f32 %v4377_v42, %v10657_v44  ;;  %v4441_v32 = vmax.f32 %v12769_v49, %v4377_v42  ;;  %6279 = vmatpush1.bf16.msra.mxu1 %v7374_v0  ;;  %v4418_v35 = vadd.f32 %v4386_v39, %v12770_v63  ;;  %v12773_v0 = vld [vmem:[#allocation159_spill] sm:$0xff]  ;;  %v12775_v57 = vld [vmem:[#allocation32_spill] sm:$0xff] }
 0x4e8   :  { %v4472_v15 = vmul.f32 0.125, %v4408_v38  ;;  %v4467_v2 = vmul.f32 0.125, %v4403_v31  ;;  %v4450_v37 = vmax.f32 %v12771_v9, %v4386_v39  ;;  %v4392_v61 = vmax.f32 %v4317_v55, 0.0  ;;  %6280 = vmatprep.subr.bf16.mxu1 %v7382_v12  ;;  %v7386_v12 = vld [vmem:[#allocation4 + $0x260] ss:$8 sps:$4 sm:$0xff]  }
 0x4e9   :  { %v4498_v58 = vadd.f32 %v4466_v52, %v4434_v53  ;;  %v4473_v46 = vmul.f32 0.125, %v4409_v30  ;;  %v4482_v26 = vmul.f32 0.125, %v4418_v35  ;;  %v4387_v3 = vmax.f32 %v4190_v16, 0.0  ;;  %v7394_v42 = vld [vmem:[#allocation4 + $0x274] ss:$8 sps:$4 sm:$0xff]   ;;  %v12776_v30 = vld [vmem:[#allocation33_spill] sm:$0xff] }
 0x4ea   :  { %v10867_v51 = vadd.f32 %v4472_v15, %v4440_v45  ;;  %v4499_v44 = vadd.f32 %v4467_v2, %v4435_v29  ;;  %v4424_v1 = vadd.f32 %v4392_v61, %v12772_v13  ;;  %v4456_v56 = vmax.f32 %v12773_v0, %v4392_v61  ;;  %v7400_v35 = vld [vmem:[#allocation4 + $0x284] ss:$8 sps:$4 sm:$0xff]   ;;  %v7401_v2 = vld [vmem:[#allocation4 + $0x400] ss:$8 sps:$4 sm:$0xff]   ;;  %v7404_v13 = vld [vmem:[#allocation4 + $0x290] ss:$8 sps:$4 sm:$0xff]  }
 0x4eb   :  { %v10871_v27 = vadd.f32 %v4473_v46, %v4441_v32  ;;  %v4514_v36 = vadd.f32 %v4482_v26, %v4450_v37  ;;  %v4419_v20 = vadd.f32 %v4387_v3, %v12774_v18  ;;  %v4451_v55 = vmax.f32 %v12775_v57, %v4387_v3  ;;  %6281 = vmatpush1.bf16.msra.mxu1 %v7380_v19  ;;  %v12777_v32 = vld [vmem:[#allocation39_spill] sm:$0xff]  ;;  %v7398_v61 = vld [vmem:[#allocation4 + $0x280] ss:$8 sps:$4 sm:$0xff]   ;;  %v7415_v3 = vld [vmem:[#allocation4 + $0x424] ss:$8 sps:$4 sm:$0xff]  }
 0x4ec   :  { %v7156_v28 = vpack.c.bf16 %v4499_v44, %v4498_v58  ;;  %v4488_v53 = vmul.f32 0.125, %v4424_v1  ;;  %v4319_v16 = vadd.f32 %v4318_v8, %v11767_v43  ;;  %6282 = vmatprep.subr.bf16.mxu1 %v7388_v33  ;;  %v7392_v43 = vld [vmem:[#allocation4 + $0x270] ss:$8 sps:$4 sm:$0xff]   ;;  %v7409_v37 = vld [vmem:[#allocation4 + $0x414] ss:$8 sps:$4 sm:$0xff]  }
 0x4ed   :  { %v7159_v39 = vpack.c.bf16 %v10871_v27, %v10867_v51  ;;  %v4530_v38 = vpack.c.bf16 %v4514_v36, %v4498_v58  ;;  %v4483_v45 = vmul.f32 0.125, %v4419_v20  ;;  %v7406_v58 = vld [vmem:[#allocation4 + $0x294] ss:$8 sps:$4 sm:$0xff]   ;;  %v7407_v46 = vld [vmem:[#allocation4 + $0x410] ss:$8 sps:$4 sm:$0xff]  }
 0x4ee   :  { %4623 = vst [vmem:[%s11066_s7 + $0x18] sm:$0xff] %v7156_v28  ;;  %v10881_v31 = vadd.f32 %v4488_v53, %v4456_v56  ;;  %v4393_v29 = vmax.f32 %v4319_v16, 0.0  ;;  %v7412_v1 = vld [vmem:[#allocation4 + $0x2a4] ss:$8 sps:$4 sm:$0xff]   ;;  %v7418_v0 = vld [vmem:[#allocation4 + $0x2b4] ss:$8 sps:$4 sm:$0xff]  }
 0x4ef   :  { %4626 = vst [vmem:[%s11066_s7 + $0x30] sm:$0xff] %v7159_v39  ;;  %v4515_v52 = vadd.f32 %v4483_v45, %v4451_v55  ;;  %6283 = vmatpush1.bf16.msra.mxu1 %v7386_v12  ;;  %v7419_v56 = vld [vmem:[#allocation4 + $0x430] ss:$8 sps:$4 sm:$0xff]   ;;  %v7424_v57 = vld [vmem:[#allocation4 + $0x2c4] ss:$8 sps:$4 sm:$0xff]  }
 0x4f0   :  { %v4536_v8 = vpack.c.bf16 %v10881_v31, %v10867_v51  ;;  %v4425_v49 = vadd.f32 %v4393_v29, %v12776_v30  ;;  %v4457_v63 = vmax.f32 %v12777_v32, %v4393_v29  ;;  %6284 = vmatprep.subr.bf16.mxu1 %v7394_v42  ;;  %v7416_v18 = vld [vmem:[#allocation4 + $0x2b0] ss:$8 sps:$4 sm:$0xff]   ;;  %v7425_v12 = vld [vmem:[#allocation4 + $0x440] ss:$8 sps:$4 sm:$0xff]   ;;  %v7433_v42 = vld [vmem:[#allocation4 + $0x454] ss:$8 sps:$4 sm:$0xff]  }
 0x4f1   :  { %v7164_v19 = vpack.c.bf16 %v4515_v52, %v4514_v36  ;;  %v4531_v15 = vpack.c.bf16 %v4515_v52, %v4499_v44  ;;  %v7427_v36 = vld [vmem:[#allocation4 + $0x444] ss:$8 sps:$4 sm:$0xff]   ;;  %v7430_v30 = vld [vmem:[#allocation4 + $0x2d4] ss:$8 sps:$4 sm:$0xff]  }
 0x4f2   :  { %v4489_v9 = vmul.f32 0.125, %v4425_v49  ;;  %v7583_v51 = vld [vmem:[#allocation4 + $0x754] ss:$8 sps:$4 sm:$0xff]  }
 0x4f3   :  { %4631 = vst [vmem:[%s11066_s7 + $0x58] sm:$0xff] %v7164_v19  ;;  %6285 = vmatpush1.bf16.msra.mxu1 %v7392_v43  ;;  %6345 = vmatprep.mubr.bf16.mxu0 %v4531_v15  ;;  %v12778_v19 = vld [vmem:[#allocation40_spill] sm:$0xff] }
 0x4f4   :  { %v10893_v33 = vadd.f32 %v4489_v9, %v4457_v63  ;;  %6286 = vmatprep.subr.bf16.mxu1 %v7400_v35  ;;  %6346 = vmatmul.mubr.bf16.vlgmr.msra.gmra.mrb[124].mxu0 %v4530_v38  ;;  %v7422_v38 = vld [vmem:[#allocation4 + $0x2c0] ss:$8 sps:$4 sm:$0xff]   ;;  %v7431_v35 = vld [vmem:[#allocation4 + $0x450] ss:$8 sps:$4 sm:$0xff]  }
 0x4f5   :  { %6357 = vmatpush1.bf16.msra.mxu0 %v7401_v2  ;;  %6388 = vmatprep.mubr.bf16.mxu0 %v4533_v11  ;;  %v7410_v11 = vld [vmem:[#allocation4 + $0x2a0] ss:$8 sps:$4 sm:$0xff]  }
 0x4f6   :  { %v7167_v26 = vpack.c.bf16 %v10893_v33, %v10881_v31  ;;  %6358 = vmatprep.subr.bf16.mxu0 %v7409_v37  ;;  %v4537_v44 = vpack.c.bf16 %v10893_v33, %v10871_v27  ;;  %v12779_v2 = vld [vmem:[#allocation41_spill] sm:$0xff]  ;;  %v7619_v27 = vld [vmem:[%s11064_s5 + $0x10] sm:$0xff]   ;;  %v7620_v33 = vld [vmem:[%s11064_s5 + $0x58] sm:$0xff]  }
 0x4f7   :  { %6287 = vmatpush1.bf16.msra.mxu1 %v7398_v61  ;;  %v7581_v31 = vld [vmem:[#allocation4 + $0x750] ss:$8 sps:$4 sm:$0xff]  }
 0x4f8   :  { %4634 = vst [vmem:[%s11066_s7 + $0x70] sm:$0xff] %v7167_v26  ;;  %6288 = vmatprep.subr.bf16.mxu1 %v7406_v58 }
 0x4f9   :  { %6359 = vmatpush1.bf16.msra.mxu0 %v7407_v46  ;;  %v7428_v46 = vld [vmem:[#allocation4 + $0x2d0] ss:$8 sps:$4 sm:$0xff]  }
 0x4fa   :  { %6360 = vmatprep.subr.bf16.mxu0 %v7415_v3  ;;  %v7436_v3 = vld [vmem:[#allocation4 + $0x2e4] ss:$8 sps:$4 sm:$0xff]  }
 0x4fb   :  { %6289 = vmatpush1.bf16.msra.mxu1 %v7404_v13 }
 0x4fc   :  { %6290 = vmatprep.subr.bf16.mxu1 %v7412_v1 }
 0x4fd   :  { %6361 = vmatpush1.bf16.msra.mxu0 %v7413_v50  ;;  %v7437_v50 = vld [vmem:[#allocation4 + $0x460] ss:$8 sps:$4 sm:$0xff]  }
 0x4fe   :  { %6362 = vmatprep.subr.bf16.mxu0 %v7421_v25 }
 0x4ff   :  { %6291 = vmatpush1.bf16.msra.mxu1 %v7410_v11 }
 0x500   :  { %6292 = vmatprep.subr.bf16.mxu1 %v7418_v0  ;;  %v4269_v20 = vpop.f32.mrb[124].mxu1 }
 0x501   :  { %6363 = vmatpush1.bf16.msra.mxu0 %v7419_v56  ;;  %v4270_v55 = vadd.f32 %v4269_v20, %v12735_v22  ;;  %v4271_v28 = vpop.f32.mrb[125].mxu1  ;;  %v7442_v56 = vld [vmem:[#allocation4 + $0x2f4] ss:$8 sps:$4 sm:$0xff]  }
 0x502   :  { %6364 = vmatprep.subr.bf16.mxu0 %v7427_v36  ;;  %v4272_v53 = vadd.f32 %v4271_v28, %v8533_v59  ;;  %v4273_v16 = vpop.f32.mrb[126].mxu1  ;;  %v7446_v28 = vld [vmem:[#allocation4 + $0x480] ss:$8 sps:$4 sm:$0xff]  }
 0x503   :  { %6293 = vmatpush1.bf16.msra.mxu1 %v7416_v18  ;;  %v4374_v39 = vmax.f32 %v4270_v55, 0.0  ;;  %v4274_v45 = vadd.f32 %v4273_v16, %v12735_v22  ;;  %v4275_v29 = vpop.f32.mrb[127].mxu1  ;;  %v7439_v22 = vld [vmem:[#allocation4 + $0x464] ss:$8 sps:$4 sm:$0xff]   ;;  %v7443_v18 = vld [vmem:[#allocation4 + $0x470] ss:$8 sps:$4 sm:$0xff]  }
 0x504   :  { %6294 = vmatprep.subr.bf16.mxu1 %v7424_v57  ;;  %v4375_v52 = vmax.f32 %v4272_v53, 0.0  ;;  %v4276_v43 = vadd.f32 %v4275_v29, %v8533_v59  ;;  %v7448_v57 = vld [vmem:[#allocation4 + $0x484] ss:$8 sps:$4 sm:$0xff]   ;;  %v7451_v53 = vld [vmem:[#allocation4 + $0x494] ss:$8 sps:$4 sm:$0xff]  }
 0x505   :  { %v4406_v49 = vadd.f32 %v4374_v39, %v10695_v14  ;;  %v4438_v32 = vmax.f32 %v10698_v34, %v4374_v39  ;;  %6365 = vmatpush1.bf16.msra.mxu0 %v7425_v12  ;;  %v4390_v63 = vmax.f32 %v4274_v45, 0.0  ;;  %v7440_v12 = vld [vmem:[#allocation4 + $0x2f0] ss:$8 sps:$4 sm:$0xff]   ;;  %v7454_v39 = vld [vmem:[#allocation4 + $0x4a4] ss:$8 sps:$4 sm:$0xff]  }
 0x506   :  { %v4407_v15 = vadd.f32 %v4375_v52, %v12778_v19  ;;  %v4439_v9 = vmax.f32 %v12779_v2, %v4375_v52  ;;  %v4391_v37 = vmax.f32 %v4276_v43, 0.0  ;;  %6366 = vmatprep.subr.bf16.mxu0 %v7433_v42  ;;  %v7449_v16 = vld [vmem:[#allocation4 + $0x490] ss:$8 sps:$4 sm:$0xff]   ;;  %v12780_v42 = vpack.c.bf16 %v10779_v4, %v10763_v62  ;;  %v7457_v45 = vld [vmem:[#allocation4 + $0x4b4] ss:$8 sps:$4 sm:$0xff]  }
 0x507   :  { %v4470_v61 = vmul.f32 0.125, %v4406_v49  ;;  %6295 = vmatpush1.bf16.msra.mxu1 %v7422_v38  ;;  %v4422_v58 = vadd.f32 %v4390_v63, %v10711_v40  ;;  %v4454_v59 = vmax.f32 %v10714_v17, %v4390_v63  ;;  %v7445_v40 = vld [vmem:[#allocation4 + $0x474] ss:$8 sps:$4 sm:$0xff]   ;;  %v7434_v17 = vld [vmem:[#allocation4 + $0x2e0] ss:$8 sps:$4 sm:$0xff]  }
 0x508   :  { %v4471_v14 = vmul.f32 0.125, %v4407_v15  ;;  %v4423_v34 = vadd.f32 %v4391_v37, %v10720_v5  ;;  %v4455_v26 = vmax.f32 %v10723_v21, %v4391_v37  ;;  %6296 = vmatprep.subr.bf16.mxu1 %v7430_v30  ;;  %v7452_v38 = vld [vmem:[#allocation4 + $0x4a0] ss:$8 sps:$4 sm:$0xff]   ;;  %v7455_v29 = vld [vmem:[#allocation4 + $0x4b0] ss:$8 sps:$4 sm:$0xff]  }
 0x509   :  { %v10917_v13 = vadd.f32 %v4470_v61, %v4438_v32  ;;  %v4486_v1 = vmul.f32 0.125, %v4422_v58  ;;  %6367 = vmatpush1.bf16.msra.mxu0 %v7431_v35  ;;  %v7460_v52 = vld [vmem:[#allocation4 + $0x4c4] ss:$8 sps:$4 sm:$0xff]   ;;  %v7458_v49 = vld [vmem:[#allocation4 + $0x4c0] ss:$8 sps:$4 sm:$0xff]  }
 0x50a   :  { %v10919_v25 = vadd.f32 %v4471_v14, %v4439_v9  ;;  %v4487_v11 = vmul.f32 0.125, %v4423_v34  ;;  %6368 = vmatprep.subr.bf16.mxu0 %v7439_v22  ;;  %v7463_v63 = vld [vmem:[#allocation4 + $0x4d4] ss:$8 sps:$4 sm:$0xff]   ;;  %v7461_v58 = vld [vmem:[#allocation4 + $0x4d0] ss:$8 sps:$4 sm:$0xff]  }
 0x50b   :  { %v10921_v0 = vadd.f32 %v4486_v1, %v4454_v59  ;;  %6297 = vmatpush1.bf16.msra.mxu1 %v7428_v46  ;;  %v7466_v34 = vld [vmem:[#allocation4 + $0x4e4] ss:$8 sps:$4 sm:$0xff]  }
 0x50c   :  { %v7158_v5 = vpack.c.bf16 %v10919_v25, %v10917_v13  ;;  %v10925_v21 = vadd.f32 %v4487_v11, %v4455_v26  ;;  %6298 = vmatprep.subr.bf16.mxu1 %v7436_v3  ;;  %v12781_v3 = vld [vmem:[#allocation161_spill] sm:$0xff]  ;;  %v12783_v11 = vld [vmem:[#allocation42_spill] sm:$0xff] }
 0x50d   :  { %v4534_v36 = vpack.c.bf16 %v10921_v0, %v10917_v13  ;;  %6369 = vmatpush1.bf16.msra.mxu0 %v7437_v50  ;;  %v12782_v50 = vld [vmem:[#allocation133_spill] sm:$0xff] }
 0x50e   :  { %4625 = vst [vmem:[%s11066_s7 + $0x28] sm:$0xff] %v7158_v5  ;;  %v7166_v20 = vpack.c.bf16 %v10925_v21, %v10921_v0  ;;  %6370 = vmatprep.subr.bf16.mxu0 %v7445_v40  ;;  %v4535_v55 = vpack.c.bf16 %v10925_v21, %v10919_v25  ;;  %v7488_v25 = vld [vmem:[#allocation4 + $0x560] ss:$8 sps:$4 sm:$0xff]   ;;  %v7493_v21 = vld [vmem:[#allocation4 + $0x574] ss:$8 sps:$4 sm:$0xff]  }
 0x50f   :  { %6299 = vmatpush1.bf16.msra.mxu1 %v7434_v17  ;;  %v7526_v13 = vld [vmem:[#allocation4 + $0x624] ss:$8 sps:$4 sm:$0xff]  }
 0x510   :  { %4633 = vst [vmem:[%s11066_s7 + $0x68] sm:$0xff] %v7166_v20  ;;  %6300 = vmatprep.subr.bf16.mxu1 %v7442_v56  ;;  %v7469_v56 = vld [vmem:[#allocation4 + $0x4f4] ss:$8 sps:$4 sm:$0xff]   ;;  %v7617_v0 = vld [vmem:[%s11064_s5 + $0x8] sm:$0xff]  }
 0x511   :  { %6371 = vmatpush1.bf16.msra.mxu0 %v7443_v18 }
 0x512   :  { %6372 = vmatprep.subr.bf16.mxu0 %v7448_v57 }
 0x513   :  { %6301 = vmatpush1.bf16.msra.mxu1 %v7440_v12  ;;  %v7467_v12 = vld [vmem:[#allocation4 + $0x4f0] ss:$8 sps:$4 sm:$0xff]  }
 0x515   :  { %6373 = vmatpush1.bf16.msra.mxu0 %v7446_v28 }
 0x516   :  { %6303 = vmatmul.mubr.bf16.vlgmr.msra.gmra.mrb[132].mxu1 %v12780_v42  ;;  %6374 = vmatprep.subr.bf16.mxu0 %v7451_v53  ;;  %v7472_v53 = vld [vmem:[#allocation4 + $0x504] ss:$8 sps:$4 sm:$0xff]   ;;  %v7470_v42 = vld [vmem:[#allocation4 + $0x500] ss:$8 sps:$4 sm:$0xff]  }
 0x519   :  { %6375 = vmatpush1.bf16.msra.mxu0 %v7449_v16 }
 0x51a   :  { %6376 = vmatprep.subr.bf16.mxu0 %v7454_v39  ;;  %v7475_v39 = vld [vmem:[#allocation4 + $0x514] ss:$8 sps:$4 sm:$0xff]  }
 0x51d   :  { %6377 = vmatpush1.bf16.msra.mxu0 %v7452_v38  ;;  %v7473_v38 = vld [vmem:[#allocation4 + $0x510] ss:$8 sps:$4 sm:$0xff]  }
 0x51e   :  { %6378 = vmatprep.subr.bf16.mxu0 %v7457_v45  ;;  %v7478_v45 = vld [vmem:[#allocation4 + $0x524] ss:$8 sps:$4 sm:$0xff]  }
 0x520   :  { %v4355_v43 = vpop.f32.mrb[128].mxu1 }
 0x521   :  { %6379 = vmatpush1.bf16.msra.mxu0 %v7455_v29  ;;  %v4356_v30 = vadd.f32 %v4355_v43, %v12746_v23  ;;  %v4357_v32 = vpop.f32.mrb[129].mxu1  ;;  %v7476_v29 = vld [vmem:[#allocation4 + $0x520] ss:$8 sps:$4 sm:$0xff]   ;;  %v7479_v43 = vld [vmem:[#allocation4 + $0x530] ss:$8 sps:$4 sm:$0xff]  }
 0x522   :  { %6380 = vmatprep.subr.bf16.mxu0 %v7460_v52  ;;  %v4358_v62 = vadd.f32 %v4357_v32, %v12747_v10  ;;  %v4359_v4 = vpop.f32.mrb[130].mxu1  ;;  %v7481_v52 = vld [vmem:[#allocation4 + $0x534] ss:$8 sps:$4 sm:$0xff]   ;;  %v7496_v32 = vld [vmem:[#allocation4 + $0x584] ss:$8 sps:$4 sm:$0xff]  }
 0x523   :  { %v4378_v35 = vmax.f32 %v4356_v30, 0.0  ;;  %v4360_v19 = vadd.f32 %v4359_v4, %v12746_v23  ;;  %v4361_v15 = vpop.f32.mrb[131].mxu1  ;;  %v7484_v30 = vld [vmem:[#allocation4 + $0x544] ss:$8 sps:$4 sm:$0xff]   ;;  %v7499_v4 = vld [vmem:[#allocation4 + $0x594] ss:$8 sps:$4 sm:$0xff]  }
 0x524   :  { %v4379_v2 = vmax.f32 %v4358_v62, 0.0  ;;  %v4362_v9 = vadd.f32 %v4361_v15, %v12747_v10  ;;  %v7494_v62 = vld [vmem:[#allocation4 + $0x580] ss:$8 sps:$4 sm:$0xff]   ;;  %v7505_v15 = vld [vmem:[#allocation4 + $0x5b4] ss:$8 sps:$4 sm:$0xff]  }
 0x525   :  { %v4410_v37 = vadd.f32 %v4378_v35, %v10741_v41  ;;  %v4442_v22 = vmax.f32 %v10744_v7, %v4378_v35  ;;  %6381 = vmatpush1.bf16.msra.mxu0 %v7458_v49  ;;  %v4394_v61 = vmax.f32 %v4360_v19, 0.0  ;;  %v7482_v49 = vld [vmem:[#allocation4 + $0x540] ss:$8 sps:$4 sm:$0xff]   ;;  %v7502_v35 = vld [vmem:[#allocation4 + $0x5a4] ss:$8 sps:$4 sm:$0xff]  }
 0x526   :  { %v4411_v59 = vadd.f32 %v4379_v2, %v10749_v48  ;;  %v4443_v46 = vmax.f32 %v10752_v24, %v4379_v2  ;;  %v4395_v14 = vmax.f32 %v4362_v9, 0.0  ;;  %6382 = vmatprep.subr.bf16.mxu0 %v7463_v63  ;;  %v7464_v48 = vld [vmem:[#allocation4 + $0x4e0] ss:$8 sps:$4 sm:$0xff]   ;;  %v7497_v63 = vld [vmem:[#allocation4 + $0x590] ss:$8 sps:$4 sm:$0xff]  }
 0x527   :  { %v4474_v26 = vmul.f32 0.125, %v4410_v37  ;;  %v4426_v23 = vadd.f32 %v4394_v61, %v10757_v6  ;;  %v4458_v1 = vmax.f32 %v12781_v3, %v4394_v61  ;;  %v7500_v19 = vld [vmem:[#allocation4 + $0x5a0] ss:$8 sps:$4 sm:$0xff]   ;;  %v7503_v2 = vld [vmem:[#allocation4 + $0x5b0] ss:$8 sps:$4 sm:$0xff]  }
 0x528   :  { %v4475_v10 = vmul.f32 0.125, %v4411_v59  ;;  %v4427_v41 = vadd.f32 %v4395_v14, %v12782_v50  ;;  %v4459_v7 = vmax.f32 %v12783_v11, %v4395_v14  ;;  %v7508_v9 = vld [vmem:[#allocation4 + $0x5c4] ss:$8 sps:$4 sm:$0xff]   ;;  %v7506_v37 = vld [vmem:[#allocation4 + $0x5c0] ss:$8 sps:$4 sm:$0xff]  }
 0x529   :  { %v10954_v40 = vadd.f32 %v4474_v26, %v4442_v22  ;;  %v4490_v17 = vmul.f32 0.125, %v4426_v23  ;;  %6383 = vmatpush1.bf16.msra.mxu0 %v7461_v58  ;;  %v7511_v22 = vld [vmem:[#allocation4 + $0x5d4] ss:$8 sps:$4 sm:$0xff]   ;;  %v7509_v61 = vld [vmem:[#allocation4 + $0x5d0] ss:$8 sps:$4 sm:$0xff]   ;;  %v7614_v3 = vld [vmem:[%s11064_s5 + $0x40] sm:$0xff]  }
 0x52a   :  { %v10956_v5 = vadd.f32 %v4475_v10, %v4443_v46  ;;  %v4491_v24 = vmul.f32 0.125, %v4427_v41  ;;  %6384 = vmatprep.subr.bf16.mxu0 %v7466_v34  ;;  %v7514_v58 = vld [vmem:[#allocation4 + $0x5e4] ss:$8 sps:$4 sm:$0xff]   ;;  %v7512_v59 = vld [vmem:[#allocation4 + $0x5e0] ss:$8 sps:$4 sm:$0xff]   ;;  %7169 = vmatprep.subr.bf16.mxu1 %v7614_v3 }
 0x52b   :  { %v10958_v18 = vadd.f32 %v4490_v17, %v4458_v1  ;;  %v7517_v46 = vld [vmem:[#allocation4 + $0x5f4] ss:$8 sps:$4 sm:$0xff]   ;;  %v7515_v14 = vld [vmem:[#allocation4 + $0x5f0] ss:$8 sps:$4 sm:$0xff]   ;;  %v7520_v34 = vld [vmem:[#allocation4 + $0x604] ss:$8 sps:$4 sm:$0xff]  }
 0x52c   :  { %v7160_v6 = vpack.c.bf16 %v10956_v5, %v10954_v40  ;;  %v10962_v20 = vadd.f32 %v4491_v24, %v4459_v7  ;;  %v7518_v26 = vld [vmem:[#allocation4 + $0x600] ss:$8 sps:$4 sm:$0xff]   ;;  %v7523_v23 = vld [vmem:[#allocation4 + $0x614] ss:$8 sps:$4 sm:$0xff]   ;;  %v7521_v50 = vld [vmem:[#allocation4 + $0x610] ss:$8 sps:$4 sm:$0xff]  }
 0x52d   :  { %v4538_v57 = vpack.c.bf16 %v10958_v18, %v10954_v40  ;;  %6385 = vmatpush1.bf16.msra.mxu0 %v7464_v48  ;;  %v7615_v1 = vld [vmem:[%s11064_s5] sm:$0xff]   ;;  %v7616_v10 = vld [vmem:[%s11064_s5 + $0x48] sm:$0xff]   ;;  %v7529_v11 = vld [vmem:[#allocation4 + $0x634] ss:$8 sps:$4 sm:$0xff]  }
 0x52e   :  { %4627 = vst [vmem:[%s11066_s7 + $0x38] sm:$0xff] %v7160_v6  ;;  %v7168_v28 = vpack.c.bf16 %v10962_v20, %v10958_v18  ;;  %6386 = vmatprep.subr.bf16.mxu0 %v7469_v56  ;;  %v4539_v16 = vpack.c.bf16 %v10962_v20, %v10956_v5  ;;  %7170 = vmatpush3.bf16.msra.mxu1 %v7615_v1  ;;  %v7524_v41 = vld [vmem:[#allocation4 + $0x620] ss:$8 sps:$4 sm:$0xff]   ;;  %v7532_v7 = vld [vmem:[#allocation4 + $0x644] ss:$8 sps:$4 sm:$0xff]   ;;  %v7621_v17 = vld [vmem:[%s11064_s5 + $0x18] sm:$0xff]  }
 0x52f   :  { %7171 = vmatprep.subr.bf16.mxu1 %v7616_v10  ;;  %v7622_v48 = vld [vmem:[%s11064_s5 + $0x60] sm:$0xff]   ;;  %v7535_v56 = vld [vmem:[#allocation4 + $0x654] ss:$8 sps:$4 sm:$0xff]   ;;  %v7599_v10 = vld [vmem:[#allocation4 + $0x7b0] ss:$8 sps:$4 sm:$0xff]  }
 0x530   :  { %4635 = vst [vmem:[%s11066_s7 + $0x78] sm:$0xff] %v7168_v28  ;;  %v7530_v24 = vld [vmem:[#allocation4 + $0x640] ss:$8 sps:$4 sm:$0xff]   ;;  %v7533_v28 = vld [vmem:[#allocation4 + $0x650] ss:$8 sps:$4 sm:$0xff]  }
 0x531   :  { %6387 = vmatpush1.bf16.msra.mxu0 %v7467_v12  ;;  %v7623_v6 = vld [vmem:[%s11064_s5 + $0x20] sm:$0xff]   ;;  %v7624_v12 = vld [vmem:[%s11064_s5 + $0x68] sm:$0xff]   ;;  %v7589_v20 = vld [vmem:[#allocation4 + $0x774] ss:$8 sps:$4 sm:$0xff]  }
 0x532   :  { %6399 = vmatprep.subr.bf16.mxu0 %v7472_v53  ;;  %7172 = vmatpush3.bf16.msra.mxu1 %v7617_v0  ;;  %v7538_v53 = vld [vmem:[#allocation4 + $0x664] ss:$8 sps:$4 sm:$0xff]   ;;  %v7584_v5 = vld [vmem:[#allocation4 + $0x760] ss:$8 sps:$4 sm:$0xff]   ;;  %v7601_v1 = vld [vmem:[#allocation4 + $0x7b4] ss:$8 sps:$4 sm:$0xff]  }
 0x533   :  { %v7596_v3 = vld [vmem:[#allocation4 + $0x7a0] ss:$8 sps:$4 sm:$0xff]   ;;  %v7607_v0 = vld [vmem:[#allocation4 + $0x7d4] ss:$8 sps:$4 sm:$0xff]  }
 0x534   :  { %6389 = vmatmul.mubr.bf16.vlgmr.msra.gmra.mrb[124].mxu0 %v4532_v54  ;;  %v7490_v54 = vld [vmem:[#allocation4 + $0x564] ss:$8 sps:$4 sm:$0xff]   ;;  %v7628_v40 = vld [vmem:[%s11064_s5 + $0x78] sm:$0xff]  }
 0x535   :  { %6400 = vmatpush1.bf16.msra.mxu0 %v7470_v42  ;;  %6431 = vmatprep.mubr.bf16.mxu0 %v4535_v55  ;;  %v7491_v55 = vld [vmem:[#allocation4 + $0x570] ss:$8 sps:$4 sm:$0xff]   ;;  %v7536_v42 = vld [vmem:[#allocation4 + $0x660] ss:$8 sps:$4 sm:$0xff]  }
 0x536   :  { %6401 = vmatprep.subr.bf16.mxu0 %v7475_v39  ;;  %v7541_v39 = vld [vmem:[#allocation4 + $0x674] ss:$8 sps:$4 sm:$0xff]  }
 0x537   :  { %v7629_v18 = vld [vmem:[%s11064_s5 + $0x38] sm:$0xff]  }
 0x539   :  { %6402 = vmatpush1.bf16.msra.mxu0 %v7473_v38  ;;  %v7539_v38 = vld [vmem:[#allocation4 + $0x670] ss:$8 sps:$4 sm:$0xff]  }
 0x53a   :  { %6403 = vmatprep.subr.bf16.mxu0 %v7478_v45  ;;  %v7544_v45 = vld [vmem:[#allocation4 + $0x684] ss:$8 sps:$4 sm:$0xff]  }
 0x53d   :  { %6404 = vmatpush1.bf16.msra.mxu0 %v7476_v29  ;;  %v7542_v29 = vld [vmem:[#allocation4 + $0x680] ss:$8 sps:$4 sm:$0xff]  }
 0x53e   :  { %6405 = vmatprep.subr.bf16.mxu0 %v7481_v52  ;;  %v7547_v52 = vld [vmem:[#allocation4 + $0x694] ss:$8 sps:$4 sm:$0xff]  }
 0x541   :  { %6406 = vmatpush1.bf16.msra.mxu0 %v7479_v43  ;;  %v7545_v43 = vld [vmem:[#allocation4 + $0x690] ss:$8 sps:$4 sm:$0xff]  }
 0x542   :  { %6407 = vmatprep.subr.bf16.mxu0 %v7484_v30  ;;  %v7550_v30 = vld [vmem:[#allocation4 + $0x6a4] ss:$8 sps:$4 sm:$0xff]  }
 0x545   :  { %6408 = vmatpush1.bf16.msra.mxu0 %v7482_v49  ;;  %v7548_v49 = vld [vmem:[#allocation4 + $0x6a0] ss:$8 sps:$4 sm:$0xff]  }
 0x546   :  { %6409 = vmatprep.subr.bf16.mxu0 %v7487_v60  ;;  %v7553_v60 = vld [vmem:[#allocation4 + $0x6b4] ss:$8 sps:$4 sm:$0xff]  }
 0x549   :  { %6410 = vmatpush1.bf16.msra.mxu0 %v7485_v47  ;;  %v7551_v47 = vld [vmem:[#allocation4 + $0x6b0] ss:$8 sps:$4 sm:$0xff]  }
 0x54a   :  { %6411 = vmatprep.subr.bf16.mxu0 %v7490_v54  ;;  %v7556_v54 = vld [vmem:[#allocation4 + $0x6c4] ss:$8 sps:$4 sm:$0xff]  }
 0x54d   :  { %6412 = vmatpush1.bf16.msra.mxu0 %v7488_v25  ;;  %v7554_v25 = vld [vmem:[#allocation4 + $0x6c0] ss:$8 sps:$4 sm:$0xff]  }
 0x54e   :  { %6413 = vmatprep.subr.bf16.mxu0 %v7493_v21  ;;  %v7559_v21 = vld [vmem:[#allocation4 + $0x6d4] ss:$8 sps:$4 sm:$0xff]  }
 0x551   :  { %6414 = vmatpush1.bf16.msra.mxu0 %v7491_v55  ;;  %v7557_v55 = vld [vmem:[#allocation4 + $0x6d0] ss:$8 sps:$4 sm:$0xff]  }
 0x552   :  { %6415 = vmatprep.subr.bf16.mxu0 %v7496_v32  ;;  %v7562_v32 = vld [vmem:[#allocation4 + $0x6e4] ss:$8 sps:$4 sm:$0xff]  }
 0x555   :  { %6416 = vmatpush1.bf16.msra.mxu0 %v7494_v62  ;;  %v7560_v62 = vld [vmem:[#allocation4 + $0x6e0] ss:$8 sps:$4 sm:$0xff]  }
 0x556   :  { %6417 = vmatprep.subr.bf16.mxu0 %v7499_v4  ;;  %v7565_v4 = vld [vmem:[#allocation4 + $0x6f4] ss:$8 sps:$4 sm:$0xff]  }
 0x559   :  { %6418 = vmatpush1.bf16.msra.mxu0 %v7497_v63  ;;  %v7563_v63 = vld [vmem:[#allocation4 + $0x6f0] ss:$8 sps:$4 sm:$0xff]  }
 0x55a   :  { %6419 = vmatprep.subr.bf16.mxu0 %v7502_v35  ;;  %v7568_v35 = vld [vmem:[#allocation4 + $0x704] ss:$8 sps:$4 sm:$0xff]  }
 0x55d   :  { %6420 = vmatpush1.bf16.msra.mxu0 %v7500_v19  ;;  %v7566_v19 = vld [vmem:[#allocation4 + $0x700] ss:$8 sps:$4 sm:$0xff]  }
 0x55e   :  { %6421 = vmatprep.subr.bf16.mxu0 %v7505_v15  ;;  %v7571_v15 = vld [vmem:[#allocation4 + $0x714] ss:$8 sps:$4 sm:$0xff]  }
 0x561   :  { %6422 = vmatpush1.bf16.msra.mxu0 %v7503_v2  ;;  %v7569_v2 = vld [vmem:[#allocation4 + $0x710] ss:$8 sps:$4 sm:$0xff]  }
 0x562   :  { %6423 = vmatprep.subr.bf16.mxu0 %v7508_v9  ;;  %v7574_v9 = vld [vmem:[#allocation4 + $0x724] ss:$8 sps:$4 sm:$0xff]  }
 0x565   :  { %6424 = vmatpush1.bf16.msra.mxu0 %v7506_v37  ;;  %v7572_v37 = vld [vmem:[#allocation4 + $0x720] ss:$8 sps:$4 sm:$0xff]  }
 0x566   :  { %6425 = vmatprep.subr.bf16.mxu0 %v7511_v22  ;;  %v7577_v22 = vld [vmem:[#allocation4 + $0x734] ss:$8 sps:$4 sm:$0xff]  }
 0x569   :  { %6426 = vmatpush1.bf16.msra.mxu0 %v7509_v61  ;;  %v7575_v61 = vld [vmem:[#allocation4 + $0x730] ss:$8 sps:$4 sm:$0xff]  }
 0x56a   :  { %6427 = vmatprep.subr.bf16.mxu0 %v7514_v58  ;;  %v7580_v58 = vld [vmem:[#allocation4 + $0x744] ss:$8 sps:$4 sm:$0xff]  }
 0x56d   :  { %6428 = vmatpush1.bf16.msra.mxu0 %v7512_v59  ;;  %v7578_v59 = vld [vmem:[#allocation4 + $0x740] ss:$8 sps:$4 sm:$0xff]  }
 0x56e   :  { %6429 = vmatprep.subr.bf16.mxu0 %v7517_v46  ;;  %v7592_v46 = vld [vmem:[#allocation4 + $0x784] ss:$8 sps:$4 sm:$0xff]  }
 0x571   :  { %6430 = vmatpush1.bf16.msra.mxu0 %v7515_v14  ;;  %v7590_v14 = vld [vmem:[#allocation4 + $0x780] ss:$8 sps:$4 sm:$0xff]  }
 0x572   :  { %6442 = vmatprep.subr.bf16.mxu0 %v7520_v34  ;;  %v7595_v34 = vld [vmem:[#allocation4 + $0x794] ss:$8 sps:$4 sm:$0xff]  }
 0x574   :  { %6432 = vmatmul.mubr.bf16.vlgmr.msra.gmra.mrb[124].mxu0 %v4534_v36  ;;  %v7618_v36 = vld [vmem:[%s11064_s5 + $0x50] sm:$0xff]  }
 0x575   :  { %6443 = vmatpush1.bf16.msra.mxu0 %v7518_v26  ;;  %6474 = vmatprep.mubr.bf16.mxu0 %v4537_v44  ;;  %v7527_v44 = vld [vmem:[#allocation4 + $0x630] ss:$8 sps:$4 sm:$0xff]  }
 0x576   :  { %6444 = vmatprep.subr.bf16.mxu0 %v7523_v23  ;;  %7173 = vmatprep.subr.bf16.mxu1 %v7618_v36  ;;  %v7593_v26 = vld [vmem:[#allocation4 + $0x790] ss:$8 sps:$4 sm:$0xff]   ;;  %v7598_v23 = vld [vmem:[#allocation4 + $0x7a4] ss:$8 sps:$4 sm:$0xff]  }
 0x577   :  { %7174 = vmatpush3.bf16.msra.mxu1 %v7619_v27  ;;  %v7605_v36 = vld [vmem:[#allocation4 + $0x7d0] ss:$8 sps:$4 sm:$0xff]   ;;  %v7608_v27 = vld [vmem:[#allocation4 + $0x7e0] ss:$8 sps:$4 sm:$0xff]  }
 0x578   :  { %7175 = vmatprep.subr.bf16.mxu1 %v7620_v33 }
 0x579   :  { %6445 = vmatpush1.bf16.msra.mxu0 %v7521_v50  ;;  %v7604_v50 = vld [vmem:[#allocation4 + $0x7c4] ss:$8 sps:$4 sm:$0xff]  }
 0x57a   :  { %6446 = vmatprep.subr.bf16.mxu0 %v7526_v13  ;;  %v7602_v13 = vld [vmem:[#allocation4 + $0x7c0] ss:$8 sps:$4 sm:$0xff]  }
 0x57b   :  { %7176 = vmatpush3.bf16.msra.mxu1 %v7621_v17 }
 0x57c   :  { %7177 = vmatprep.subr.bf16.mxu1 %v7622_v48  ;;  %v7611_v48 = vld [vmem:[#allocation4 + $0x7f0] ss:$8 sps:$4 sm:$0xff]  }
 0x57d   :  { %6447 = vmatpush1.bf16.msra.mxu0 %v7524_v41  ;;  %v7610_v41 = vld [vmem:[#allocation4 + $0x7e4] ss:$8 sps:$4 sm:$0xff]  }
 0x57e   :  { %6448 = vmatprep.subr.bf16.mxu0 %v7529_v11 }
 0x57f   :  { %7178 = vmatpush3.bf16.msra.mxu1 %v7623_v6  ;;  %v7627_v6 = vld [vmem:[%s11064_s5 + $0x30] sm:$0xff]  }
 0x580   :  { %7179 = vmatprep.subr.bf16.mxu1 %v7624_v12  ;;  %v12784_v12 = vld [vmem:[#allocation148_spill] sm:$0xff] }
 0x581   :  { %6449 = vmatpush1.bf16.msra.mxu0 %v7527_v44  ;;  %v7613_v44 = vld [vmem:[#allocation4 + $0x7f4] ss:$8 sps:$4 sm:$0xff]  }
 0x582   :  { %6450 = vmatprep.subr.bf16.mxu0 %v7532_v7 }
 0x585   :  { %6451 = vmatpush1.bf16.msra.mxu0 %v7530_v24  ;;  %v7625_v24 = vld [vmem:[%s11064_s5 + $0x28] sm:$0xff]  }
 0x586   :  { %6452 = vmatprep.subr.bf16.mxu0 %v7535_v56  ;;  %7180 = vmatpush3.bf16.msra.mxu1 %v7625_v24  ;;  %v7626_v56 = vld [vmem:[%s11064_s5 + $0x70] sm:$0xff]  }
 0x587   :  { %7181 = vmatprep.subr.bf16.mxu1 %v7626_v56 }
 0x589   :  { %6453 = vmatpush1.bf16.msra.mxu0 %v7533_v28 }
 0x58a   :  { %6454 = vmatprep.subr.bf16.mxu0 %v7538_v53  ;;  %7182 = vmatpush3.bf16.msra.mxu1 %v7627_v6  ;;  %v12785_v53 = vld [vmem:[#allocation149_spill] sm:$0xff] }
 0x58b   :  { %7183 = vmatprep.subr.bf16.mxu1 %v7628_v40 }
 0x58d   :  { %6455 = vmatpush1.bf16.msra.mxu0 %v7536_v42 }
 0x58e   :  { %6456 = vmatprep.subr.bf16.mxu0 %v7541_v39  ;;  %7184 = vmatpush3.bf16.msra.mxu1 %v7629_v18 }
 0x591   :  { %6457 = vmatpush1.bf16.msra.mxu0 %v7539_v38 }
 0x592   :  { %6458 = vmatprep.subr.bf16.mxu0 %v7544_v45 }
 0x595   :  { %6459 = vmatpush1.bf16.msra.mxu0 %v7542_v29 }
 0x596   :  { %6460 = vmatprep.subr.bf16.mxu0 %v7547_v52 }
 0x599   :  { %6461 = vmatpush1.bf16.msra.mxu0 %v7545_v43 }
 0x59a   :  { %6462 = vmatprep.subr.bf16.mxu0 %v7550_v30 }
 0x59d   :  { %6463 = vmatpush1.bf16.msra.mxu0 %v7548_v49 }
 0x59e   :  { %6464 = vmatprep.subr.bf16.mxu0 %v7553_v60 }
 0x5a1   :  { %6465 = vmatpush1.bf16.msra.mxu0 %v7551_v47 }
 0x5a2   :  { %6466 = vmatprep.subr.bf16.mxu0 %v7556_v54 }
 0x5a5   :  { %6467 = vmatpush1.bf16.msra.mxu0 %v7554_v25 }
 0x5a6   :  { %6468 = vmatprep.subr.bf16.mxu0 %v7559_v21 }
 0x5a9   :  { %6469 = vmatpush1.bf16.msra.mxu0 %v7557_v55 }
 0x5aa   :  { %6470 = vmatprep.subr.bf16.mxu0 %v7562_v32 }
 0x5ad   :  { %6471 = vmatpush1.bf16.msra.mxu0 %v7560_v62 }
 0x5ae   :  { %6472 = vmatprep.subr.bf16.mxu0 %v7565_v4 }
 0x5b1   :  { %6473 = vmatpush1.bf16.msra.mxu0 %v7563_v63 }
 0x5b2   :  { %6485 = vmatprep.subr.bf16.mxu0 %v7568_v35 }
 0x5b4   :  { %6475 = vmatmul.mubr.bf16.vlgmr.msra.gmra.mrb[124].mxu0 %v4536_v8  ;;  %v7586_v8 = vld [vmem:[#allocation4 + $0x764] ss:$8 sps:$4 sm:$0xff]  }
 0x5b5   :  { %6486 = vmatpush1.bf16.msra.mxu0 %v7566_v19  ;;  %6517 = vmatprep.mubr.bf16.mxu0 %v4539_v16  ;;  %v7587_v16 = vld [vmem:[#allocation4 + $0x770] ss:$8 sps:$4 sm:$0xff]   ;;  %v7136_v19 = vld [vmem:[%s11065_s6] ss:$0 sm:$0xff] }
 0x5b6   :  { %6487 = vmatprep.subr.bf16.mxu0 %v7571_v15 }
 0x5b9   :  { %6488 = vmatpush1.bf16.msra.mxu0 %v7569_v2 }
 0x5ba   :  { %6489 = vmatprep.subr.bf16.mxu0 %v7574_v9 }
 0x5bd   :  { %6490 = vmatpush1.bf16.msra.mxu0 %v7572_v37 }
 0x5be   :  { %6491 = vmatprep.subr.bf16.mxu0 %v7577_v22 }
 0x5c1   :  { %6492 = vmatpush1.bf16.msra.mxu0 %v7575_v61 }
 0x5c2   :  { %6493 = vmatprep.subr.bf16.mxu0 %v7580_v58 }
 0x5c5   :  { %6494 = vmatpush1.bf16.msra.mxu0 %v7578_v59 }
 0x5c6   :  { %6495 = vmatprep.subr.bf16.mxu0 %v7583_v51 }
 0x5c9   :  { %6496 = vmatpush1.bf16.msra.mxu0 %v7581_v31 }
 0x5ca   :  { %6497 = vmatprep.subr.bf16.mxu0 %v7586_v8 }
 0x5cd   :  { %6498 = vmatpush1.bf16.msra.mxu0 %v7584_v5 }
 0x5ce   :  { %6499 = vmatprep.subr.bf16.mxu0 %v7589_v20 }
 0x5d1   :  { %6500 = vmatpush1.bf16.msra.mxu0 %v7587_v16 }
 0x5d2   :  { %6501 = vmatprep.subr.bf16.mxu0 %v7592_v46 }
 0x5d5   :  { %6502 = vmatpush1.bf16.msra.mxu0 %v7590_v14 }
 0x5d6   :  { %6503 = vmatprep.subr.bf16.mxu0 %v7595_v34 }
 0x5d9   :  { %6504 = vmatpush1.bf16.msra.mxu0 %v7593_v26 }
 0x5da   :  { %6505 = vmatprep.subr.bf16.mxu0 %v7598_v23 }
 0x5dd   :  { %6506 = vmatpush1.bf16.msra.mxu0 %v7596_v3 }
 0x5de   :  { %6507 = vmatprep.subr.bf16.mxu0 %v7601_v1 }
 0x5e1   :  { %6508 = vmatpush1.bf16.msra.mxu0 %v7599_v10 }
 0x5e2   :  { %6509 = vmatprep.subr.bf16.mxu0 %v7604_v50 }
 0x5e5   :  { %6510 = vmatpush1.bf16.msra.mxu0 %v7602_v13 }
 0x5e6   :  { %6511 = vmatprep.subr.bf16.mxu0 %v7607_v0 }
 0x5e9   :  { %v6304_v11 = vpop.f32.mrb[132].mxu1  ;;  %6512 = vmatpush1.bf16.msra.mxu0 %v7605_v36 }
 0x5ea   :  { %v6306_v33 = vpop.f32.mrb[133].mxu1  ;;  %6513 = vmatprep.subr.bf16.mxu0 %v7610_v41 }
 0x5eb   :  { %v6308_v7 = vpop.f32.mrb[134].mxu1 }
 0x5ec   :  { %v6310_v17 = vpop.f32.mrb[135].mxu1 }
 0x5ed   :  { %6514 = vmatpush1.bf16.msra.mxu0 %v7608_v27 }
 0x5ee   :  { %6515 = vmatprep.subr.bf16.mxu0 %v7613_v44 }
 0x5f1   :  { %6516 = vmatpush1.bf16.msra.mxu0 %v7611_v48 }
 0x5f4   :  { %6518 = vmatmul.mubr.bf16.vlgmr.msra.gmra.mrb[124].mxu0 %v4538_v57  ;;  %v4892_v57 = vld [vmem:[%s11063_s4] sm:$0x3] }
 0x5f5   :  { %v4897_v28 = vrot.slane %v4892_v57, %v12784_v12  ;;  %v4901_v42 = vrot.slane %v4892_v57, %v12785_v53 }
 0x5f7   :  { %v7191_v39 = vadd.f32 %v6304_v11, %v4897_v28  ;;  %v7193_v38 = vadd.f32 %v6306_v33, %v4901_v42  ;;  %v7195_v29 = vadd.f32 %v6308_v7, %v4897_v28  ;;  %v7197_v30 = vadd.f32 %v6310_v17, %v4901_v42 }
 0x6c7   :  { %v6519_v45 = vpop.f32.mrb[124].mxu0 }
 0x6c8   :  { %v7192_v52 = vadd.f32 %v7191_v39, %v6519_v45  ;;  %v6521_v43 = vpop.f32.mrb[125].mxu0 }
 0x6c9   :  { %v7194_v49 = vadd.f32 %v7193_v38, %v6521_v43  ;;  %v6523_v60 = vpop.f32.mrb[126].mxu0 }
 0x6ca   :  { %v7196_v47 = vadd.f32 %v7195_v29, %v6523_v60  ;;  %v6525_v54 = vpop.f32.mrb[127].mxu0  ;;  %v6528_v21 = vmax.f32 %v7192_v52, 0.0 }
 0x6cb   :  { %v7198_v25 = vadd.f32 %v7197_v30, %v6525_v54  ;;  %v6529_v32 = vmax.f32 %v7194_v49, 0.0 }
 0x6cc   :  { %v6530_v55 = vmax.f32 %v7196_v47, 0.0 }
 0x6cd   :  { %v6531_v62 = vmax.f32 %v7198_v25, 0.0 }
 0x6ce   :  { %v6532_v4 = vpack.c.bf16 %v6530_v55, %v6528_v21 }
 0x6cf   :  { %v6533_v63 = vpack.c.bf16 %v6531_v62, %v6529_v32 }
 0x6d1   :  { %6701 = vmatprep.mubr.bf16.mxu1 %v6533_v63 }
 0x6d2   :  { %6702 = vmatmul.mubr.bf16.vlgmr.msra.gmra.mrb[136].mxu1 %v6532_v4 }
 0x7a5   :  { %v7185_v35 = vpop.f32.mrb[136].mxu1 }
 0x7a6   :  { %v7186_v15 = vpop.f32.mrb[137].mxu1 }
 0x7a7   :  { %v7187_v2 = vadd.f32 %v7186_v15, %v7185_v35  ;;  %v7188_v9 = vpop.f32.mrb[138].mxu1 }
 0x7a8   :  { %v7189_v37 = vpop.f32.mrb[139].mxu1 }
 0x7a9   :  { %v6704_v22 = vadd.f32 %v7187_v2, %v7136_v19  ;;  %v7190_v61 = vadd.f32 %v7189_v37, %v7188_v9 }
 0x7ab   :  { %6710 = vst [vmem:[%s11067_s8] sm:$0xff] %v6704_v22  ;;  %v6707_v58 = vadd.f32 %v7190_v61, %v7136_v19 }
 0x7ad   :  { %6711 = vst [vmem:[%s11067_s8 + $0x8] sm:$0xff] %v6707_v58 }
 0x7ae   :  { %6720 = vsyncpa [#allocation3], 1 }
 0x7af   :  { %6721 = vsyncpa [#allocation5], 1 }

</bundles_post_ra>
